<compile_context>
chip_gen: v7x
topology: tpu7x:2x2x1
jax: 0.10.0
libtpu: 0.0.40
codegen_flags: <defaults>
</compile_context>

<pallas_src>
import functools

import numpy as np
import jax
import jax.numpy as jnp
from jax.experimental import pallas as pl
from jax.experimental.pallas import tpu as pltpu


ROW_TILE = 256            # points per grid step (multiple of 128)
BLK = 256                 # pillar-block width = xmax output tile (multiple of 128)
WORK = BLK + ROW_TILE     # compaction working width
WORK_BITS = 9             # 2**WORK_BITS >= WORK (max in-window displacement)
NEG_INF = float("-inf")

assert ROW_TILE % 128 == 0 and BLK % 128 == 0
assert (1 << WORK_BITS) >= WORK


def _next_pow2(x):
    x = int(x)
    return 1 if x <= 1 else 1 << (x - 1).bit_length()


def _vmem_bytes(cin, cout):
    blk = 4 * (cin * ROW_TILE + cout * ROW_TILE      # x, z blocks
               + cout * cin + cout                   # w, b
               + ROW_TILE                            # inv block
               + cout * ROW_TILE + cout * BLK)       # y, xmax blocks
    need = 2 * blk + 4 * cout * WORK + (1 << 20)     # double-buffering + scratch + slack
    return int(min(max(need, 8 << 20), 32 << 20))


# ------------------------------- Pallas kernel ------------------------------ #

def _pfn_kernel(*refs, has_resid, emit_y):
    """relu(W @ x [+ z] + b) fused with a segmented max over sorted pillar ids.

    Rows of the tile are sorted by pillar id, dense (consecutive diffs in
    {0,1}) and all belong to pillar block blk = blk_ref[t], i.e. pillars
    [blk*BLK, (blk+1)*BLK).  The log-shift compaction moves every point's
    column to (pillar - blk*BLK); same-pillar columns merge via max.
    """
    it = iter(refs)
    blk_ref = next(it)                         # SMEM (num_tiles,) int32: pillar block id per tile
    x_ref = next(it)                           # (Cin, ROW_TILE)
    z_ref = next(it) if has_resid else None    # (Cout, ROW_TILE) pre-computed pillar branch
    w_ref = next(it)                           # (Cout, Cin)
    b_ref = next(it)                           # (Cout, 1)
    inv_ref = next(it)                         # (1, ROW_TILE) int32 pillar ids, -1 => padding
    y_ref = next(it) if emit_y else None       # (Cout, ROW_TILE)
    xmax_ref = next(it)                        # (Cout, BLK) resident while block id unchanged
    vals_ref = next(it)                        # scratch (Cout, WORK)

    t = pl.program_id(0)
    cout = xmax_ref.shape[0]

    @pl.when(t == 0)
    def _init_guard():
        # Guard region of the compaction window; never written again.
        vals_ref[:, :BLK] = jnp.full((cout, BLK), NEG_INF, jnp.float32)

    prev_blk = blk_ref[jnp.maximum(t - 1, 0)]

    @pl.when((t == 0) | (blk_ref[t] != prev_blk))
    def _init_block():
        # ReLU makes every activation >= 0, so 0 is a valid identity for the max.
        xmax_ref[...] = jnp.zeros_like(xmax_ref)

    # ----- Linear (BN scale folded into W) [+ residual] + bias + ReLU (MXU) --
    y = jnp.dot(w_ref[...], x_ref[...], preferred_element_type=jnp.float32)
    if has_resid:
        y = y + z_ref[...]
    y = jnp.maximum(y + b_ref[...], 0.0)
    if emit_y:
        y_ref[...] = y

    inv = inv_ref[...]                                  # (1, ROW_TILE)
    occ_t = inv >= 0                                    # padded rows masked out
    base = blk_ref[t] * BLK
    tgt_t = jnp.where(occ_t, inv - base, 0)             # target column in [0, BLK)

    # Stage the tile at columns [BLK, WORK) of the working window (guard at [0, BLK)).
    vals_ref[:, BLK:] = jnp.where(occ_t, y, NEG_INF)
    vals = vals_ref[...]                                # (Cout, WORK)

    pos = jax.lax.broadcasted_iota(jnp.int32, (1, WORK), 1)
    zpad = jnp.zeros((1, BLK), jnp.int32)
    occ = jnp.concatenate([zpad, occ_t.astype(jnp.int32)], axis=1)
    tgt = jnp.concatenate([zpad, tgt_t], axis=1)
    disp = jnp.where(occ != 0, pos - tgt, 0)            # remaining leftward shift >= 0

    def shift_up(a, sh, fill):
        # result[:, c] = a[:, c + sh]; columns shifted past the end get `fill`.
        rolled = pltpu.roll(a, WORK - sh, axis=1)
        return jnp.where(pos < WORK - sh, rolled, fill)

    # Log-step shift-and-max compaction (correct for sorted + dense pillar ids:
    # only same-pillar columns ever collide, and they merge via max).
    for bb in range(WORK_BITS):
        sh = 1 << bb
        move = ((occ != 0) & ((disp & sh) != 0)).astype(jnp.int32)
        v_in = shift_up(vals, sh, NEG_INF)
        d_in = shift_up(disp, sh, 0)
        m_in = shift_up(move, sh, 0)
        stay = (occ != 0) & (move == 0)
        arrive = m_in != 0
        vals = jnp.maximum(jnp.where(stay, vals, NEG_INF),
                           jnp.where(arrive, v_in, NEG_INF))
        disp = jnp.where(stay, disp, jnp.where(arrive, d_in - sh, 0))
        occ = (stay | arrive).astype(jnp.int32)

    # Columns [0, BLK) now hold this tile's per-pillar maxima; accumulate.
    xmax_ref[...] = jnp.maximum(xmax_ref[...], vals[:, :BLK])


def fused_pfn_layer(x, z, w, b, inv2d, tile_blk, *, pillars_pad, emit_y):
    """x: (Cin, Np) channel-major; z: optional (Cout, Np) residual; w: (Cout, Cin);
    b: (Cout,); inv2d: (1, Np) int32 (-1 = padding); tile_blk: (num_tiles,) int32
    pillar-block id per tile.  Returns (y, xmax) with y = (Cout, Np) or None and
    xmax = (Cout, pillars_pad)."""
    cin, np_rows = x.shape
    cout = w.shape[0]
    num_tiles = np_rows // ROW_TILE
    has_resid = z is not None

    in_specs = [pl.BlockSpec((cin, ROW_TILE), lambda i, blk: (0, i))]
    operands = [x]
    if has_resid:
        in_specs.append(pl.BlockSpec((cout, ROW_TILE), lambda i, blk: (0, i)))
        operands.append(z)
    in_specs += [
        pl.BlockSpec((cout, cin), lambda i, blk: (0, 0)),
        pl.BlockSpec((cout, 1), lambda i, blk: (0, 0)),
        pl.BlockSpec((1, ROW_TILE), lambda i, blk: (0, i)),
    ]
    operands += [w, b[:, None], inv2d]

    xmax_shape = jax.ShapeDtypeStruct((cout, pillars_pad), jnp.float32)
    xmax_spec = pl.BlockSpec((cout, BLK), lambda i, blk: (0, blk[i]))
    if emit_y:
        out_shape = (jax.ShapeDtypeStruct((cout, np_rows), jnp.float32), xmax_shape)
        out_specs = (pl.BlockSpec((cout, ROW_TILE), lambda i, blk: (0, i)), xmax_spec)
    else:
        out_shape = (xmax_shape,)
        out_specs = (xmax_spec,)

    kernel = functools.partial(_pfn_kernel, has_resid=has_resid, emit_y=emit_y)
    outs = pl.pallas_call(
        kernel,
        out_shape=out_shape,
        grid_spec=pltpu.PrefetchScalarGridSpec(
            num_scalar_prefetch=1,
            grid=(num_tiles,),
            in_specs=in_specs,
            out_specs=out_specs,
            scratch_shapes=[pltpu.VMEM((cout, WORK), jnp.float32)]),
        compiler_params=pltpu.CompilerParams(
            # Serial reduction into a per-block resident accumulator.
            # TODO(synk): v7x megacore split (disjoint pillar-block ranges per core) not done.
            dimension_semantics=("arbitrary",),
            vmem_limit_bytes=_vmem_bytes(cin, cout)),
    )(tile_blk, *operands)

    if emit_y:
        y, xmax = outs
    else:
        (xmax,) = outs
        y = None
    return y, xmax


# --------------------------- jitted device forward -------------------------- #

@functools.partial(jax.jit,
                   static_argnames=("pillars_pad", "use_absolute_xyz", "with_distance"))
def _device_forward(layer_params, pts, coords_f, inv_padded, tile_blk, geom, *,
                    pillars_pad, use_absolute_xyz, with_distance):
    """Device portion of DynamicPillarVFE.forward (after host unique / sort / tiling).
    Shapes are bucketed on the host, so this compiles once per bucket."""
    vx, vy, x_off, y_off, z_off = geom
    valid = inv_padded >= 0
    validf = valid.astype(jnp.float32)
    inv_safe = jnp.where(valid, inv_padded, 0)
    xyz = pts[:, 1:4]

    # TODO(synk): scatter_mean (data-dependent scatter) stays in XLA segment_sum glue.
    seg_sum = jax.ops.segment_sum(xyz * validf[:, None], inv_safe, num_segments=pillars_pad)
    counts = jax.ops.segment_sum(validf, inv_safe, num_segments=pillars_pad)
    points_mean = seg_sum / jnp.maximum(counts, 1.0)[:, None]
    f_cluster = xyz - points_mean[inv_safe]

    f_center = jnp.stack(
        [xyz[:, 0] - (coords_f[:, 0] * vx + x_off),
         xyz[:, 1] - (coords_f[:, 1] * vy + y_off),
         xyz[:, 2] - z_off], axis=1)

    if use_absolute_xyz:
        feats = [pts[:, 1:], f_cluster, f_center]
    else:
        feats = [pts[:, 4:], f_cluster, f_center]
    if with_distance:
        feats.append(jnp.linalg.norm(pts[:, 1:4], axis=1, keepdims=True))
    features = jnp.concatenate(feats, axis=-1).T            # channel-major (Cin0, Np)

    inv2d = inv_padded[None, :]

    x_cm = features
    xmax_cm = None
    n_layers = len(layer_params)
    for li, (w, b) in enumerate(layer_params):
        last = li == n_layers - 1
        if li == 0:
            z_cm = None
            wa = w
        else:
            c_prev = x_cm.shape[0]
            wa = w[:, :c_prev]
            wb = w[:, c_prev:]
            # concat([y, xmax[inv]]) @ W == y @ Wa + (Wb @ xmax)[:, inv]:
            # run the pillar branch on the small (C, P) array, gather the result.
            z_pillar = jnp.dot(wb, xmax_cm, preferred_element_type=jnp.float32)
            # TODO(synk): per-point gather of pillar features stays in XLA (jnp.take).
            z_cm = jnp.take(z_pillar, inv_safe, axis=1)
        y_cm, xmax_cm = fused_pfn_layer(x_cm, z_cm, wa, b, inv2d, tile_blk,
                                        pillars_pad=pillars_pad, emit_y=not last)
        x_cm = y_cm
    return xmax_cm                                            # (C_last, pillars_pad)


# ------------------------------ Module wrapper ------------------------------ #

class DynamicPillarVFEPallas:
    def __init__(self, model_cfg, num_point_features, voxel_size, grid_size,
                 point_cloud_range, key):
        if model_cfg.get('NUM_RAW_POINT_FEATURES', None) is not None:
            num_point_features = model_cfg['NUM_RAW_POINT_FEATURES']
        self.num_raw_point_features = num_point_features
        self.use_norm = model_cfg['USE_NORM']
        self.with_distance = model_cfg['WITH_DISTANCE']
        self.use_absolute_xyz = model_cfg['USE_ABSOLUTE_XYZ']
        num_point_features += 6 if self.use_absolute_xyz else 3
        if self.with_distance:
            num_point_features += 1
        self.num_filters = list(model_cfg['NUM_FILTERS'])
        assert len(self.num_filters) > 0
        num_filters = [num_point_features] + self.num_filters

        self.voxel_size = np.asarray(voxel_size, np.float32)
        self.grid_size = np.asarray(grid_size, np.int32)
        self.point_cloud_range = np.asarray(point_cloud_range, np.float32)
        self.voxel_x, self.voxel_y, self.voxel_z = [float(v) for v in voxel_size]
        self.x_offset = self.voxel_x / 2 + float(point_cloud_range[0])
        self.y_offset = self.voxel_y / 2 + float(point_cloud_range[1])
        self.z_offset = self.voxel_z / 2 + float(point_cloud_range[2])
        self.scale_xy = int(grid_size[0]) * int(grid_size[1])
        self.scale_y = int(grid_size[1])

        # PFNLayerV2: Linear(no bias) + BatchNorm1d(eps=1e-3, eval stats) + ReLU.
        # BN scale folded into the weight rows; weights stored (Cout, Cin).
        # TODO(synk): train-mode BatchNorm batch statistics are not reproduced.
        layers = []
        for i in range(len(num_filters) - 1):
            in_f = num_filters[i]
            out_f = num_filters[i + 1]
            last = i >= len(num_filters) - 2
            if not last:
                out_f = out_f // 2
            key, k1, k2, k3, k4, k5 = jax.random.split(key, 6)
            w = jax.random.normal(k1, (out_f, in_f), jnp.float32) * 0.1
            if self.use_norm:
                gamma = 1.0 + 0.1 * jax.random.normal(k2, (out_f,), jnp.float32)
                beta = 0.1 * jax.random.normal(k3, (out_f,), jnp.float32)
                running_mean = 0.1 * jax.random.normal(k4, (out_f,), jnp.float32)
                running_var = jnp.abs(
                    1.0 + 0.1 * jax.random.normal(k5, (out_f,), jnp.float32))
                scale = gamma / jnp.sqrt(running_var + 1e-3)
                w_fold = w * scale[:, None]                 # (Cout, Cin)
                bias = beta - running_mean * scale
            else:
                w_fold = w
                bias = 0.1 * jax.random.normal(k2, (out_f,), jnp.float32)
            layers.append((jnp.asarray(w_fold), jnp.asarray(bias)))
        self.layer_params = tuple(layers)

    def get_output_feature_dim(self):
        return self.num_filters[-1]

    def forward(self, points):
        """points: (N, 6) float32 - batch_idx, x, y, z, intensity, time."""
        points = np.asarray(points, dtype=np.float32)
        pcr = self.point_cloud_range
        vs = self.voxel_size
        gs = self.grid_size

        coords = np.floor((points[:, [1, 2]] - pcr[[0, 1]]) / vs[[0, 1]]).astype(np.int32)
        mask = ((coords >= 0) & (coords < gs[[0, 1]])).all(axis=1)
        points = points[mask]
        coords = coords[mask]

        merge_coords = (points[:, 0].astype(np.int64) * self.scale_xy
                        + coords[:, 0].astype(np.int64) * self.scale_y
                        + coords[:, 1].astype(np.int64))
        # TODO(synk): torch.unique / sort / tiling bookkeeping has no Pallas equivalent (host numpy).
        unq_coords, unq_inv = np.unique(merge_coords, return_inverse=True)
        n = int(points.shape[0])
        p = int(unq_coords.shape[0])
        if n == 0:
            return (jnp.zeros((0, 4), jnp.int32),
                    jnp.zeros((0, self.get_output_feature_dim()), jnp.float32))

        order = np.argsort(unq_inv, kind='stable')          # sort points by pillar id
        inv_sorted = unq_inv[order].astype(np.int32)
        pts_sorted = points[order]
        coords_sorted = coords[order].astype(np.float32)

        if n > 1:
            d = np.diff(inv_sorted)
            assert d.min() >= 0 and d.max() <= 1, "pillar ids must be sorted and dense"

        # --- re-tile so no tile crosses a BLK-pillar boundary (padded with -1) ---
        n_blocks = (p + BLK - 1) // BLK
        blk_starts = np.searchsorted(inv_sorted, np.arange(n_blocks + 1) * BLK)
        row_src, tile_blk = [], []
        for j in range(n_blocks):
            s, e = int(blk_starts[j]), int(blk_starts[j + 1])
            for ts in range(s, e, ROW_TILE):
                te = min(ts + ROW_TILE, e)
                idx = np.full(ROW_TILE, -1, np.int64)
                idx[:te - ts] = np.arange(ts, te)
                row_src.append(idx)
                tile_blk.append(j)
        num_tiles = len(row_src)
        num_tiles_b = _next_pow2(num_tiles)                  # bucket => stable compile shapes
        for _ in range(num_tiles_b - num_tiles):
            row_src.append(np.full(ROW_TILE, -1, np.int64))
            tile_blk.append(tile_blk[-1])
        row_src = np.concatenate(row_src)
        tile_blk = np.asarray(tile_blk, np.int32)

        valid_rows = row_src >= 0
        src = np.where(valid_rows, row_src, 0)
        pts_tiled = np.where(valid_rows[:, None], pts_sorted[src], 0.0).astype(np.float32)
        coords_tiled = np.where(valid_rows[:, None], coords_sorted[src], 0.0).astype(np.float32)
        inv_tiled = np.where(valid_rows, inv_sorted[src], -1).astype(np.int32)

        pillars_pad = _next_pow2(n_blocks) * BLK

        feats_pad = _device_forward(
            self.layer_params,
            jnp.asarray(pts_tiled),
            jnp.asarray(coords_tiled),
            jnp.asarray(inv_tiled),
            jnp.asarray(tile_blk),
            (self.voxel_x, self.voxel_y, self.x_offset, self.y_offset, self.z_offset),
            pillars_pad=pillars_pad,
            use_absolute_xyz=self.use_absolute_xyz,
            with_distance=self.with_distance)
        features = jnp.transpose(feats_pad)[:p]              # (P, C_last)

        unq = unq_coords.astype(np.int64)
        voxel_coords = np.stack(
            [unq // self.scale_xy,
             (unq % self.scale_xy) // self.scale_y,
             unq % self.scale_y,
             np.zeros_like(unq)], axis=1).astype(np.int32)
        voxel_coords = voxel_coords[:, [0, 3, 2, 1]]
        return jnp.asarray(voxel_coords), features


# ----------------------------- numpy reference ------------------------------ #

def _numpy_reference(vfe, points):
    pts = np.asarray(points, np.float32)
    pcr = vfe.point_cloud_range
    vs = vfe.voxel_size
    gs = vfe.grid_size
    coords = np.floor((pts[:, [1, 2]] - pcr[[0, 1]]) / vs[[0, 1]]).astype(np.int32)
    mask = ((coords >= 0) & (coords < gs[[0, 1]])).all(axis=1)
    pts = pts[mask]
    coords = coords[mask]
    merge = (pts[:, 0].astype(np.int64) * vfe.scale_xy
             + coords[:, 0].astype(np.int64) * vfe.scale_y
             + coords[:, 1].astype(np.int64))
    unq, inv = np.unique(merge, return_inverse=True)
    p = unq.shape[0]
    xyz = pts[:, 1:4]
    mean = np.zeros((p, 3), np.float32)
    np.add.at(mean, inv, xyz)
    cnt = np.bincount(inv, minlength=p).astype(np.float32)[:, None]
    mean /= cnt
    f_cluster = xyz - mean[inv]
    f_center = np.stack(
        [xyz[:, 0] - (coords[:, 0].astype(np.float32) * vfe.voxel_x + vfe.x_offset),
         xyz[:, 1] - (coords[:, 1].astype(np.float32) * vfe.voxel_y + vfe.y_offset),
         xyz[:, 2] - vfe.z_offset], axis=1)
    if vfe.use_absolute_xyz:
        feats = [pts[:, 1:], f_cluster, f_center]
    else:
        feats = [pts[:, 4:], f_cluster, f_center]
    if vfe.with_distance:
        feats.append(np.linalg.norm(pts[:, 1:4], axis=1, keepdims=True))
    x = np.concatenate(feats, axis=-1).astype(np.float32)
    n_layers = len(vfe.layer_params)
    for li, (w, b) in enumerate(vfe.layer_params):
        w = np.asarray(w)
        b = np.asarray(b)
        y = np.maximum(x @ w.T + b, 0.0)
        xmax = np.full((p, y.shape[1]), -np.inf, np.float32)
        np.maximum.at(xmax, inv, y)
        if li == n_layers - 1:
            x = xmax
        else:
            x = np.concatenate([y, xmax[inv]], axis=1)
    return x


# ---------------------------------- main ------------------------------------ #

if __name__ == "__main__":
    key = jax.random.PRNGKey(0)
    kb, kxy, kz, kr = jax.random.split(key, 4)

    N = 300
    voxel_size = [0.5, 0.5, 4.0]
    point_cloud_range = [0.0, 0.0, -2.0, 8.0, 8.0, 2.0]
    grid_size = [16, 16, 1]

    batch_idx = jax.random.randint(kb, (N, 1), 0, 2).astype(jnp.float32)
    xy = jax.random.uniform(kxy, (N, 2), minval=-1.0, maxval=9.0)   # some masked out
    z = jax.random.uniform(kz, (N, 1), minval=-2.0, maxval=2.0)
    rest = jax.random.uniform(kr, (N, 2))                           # intensity, time
    points = jnp.concatenate([batch_idx, xy, z, rest], axis=1)      # (N, 6)

    model_cfg = dict(USE_NORM=True, WITH_DISTANCE=False, USE_ABSOLUTE_XYZ=True,
                     NUM_FILTERS=[32, 32])
    vfe = DynamicPillarVFEPallas(model_cfg, num_point_features=5,
                                 voxel_size=voxel_size, grid_size=grid_size,
                                 point_cloud_range=point_cloud_range,
                                 key=jax.random.PRNGKey(42))

    voxel_coords, features = vfe.forward(points)
    features = jax.block_until_ready(features)

    assert features.shape[1] == vfe.get_output_feature_dim()
    assert voxel_coords.shape[0] == features.shape[0]

    ref = _numpy_reference(vfe, points)
    assert ref.shape == features.shape, (ref.shape, features.shape)
    assert np.allclose(np.asarray(features), ref, rtol=3e-2, atol=3e-2), (
        "max abs diff %.5f" % float(np.max(np.abs(np.asarray(features) - ref))))
    print("KERNEL_OK")
</pallas_src>

<mosaic_0001>
module attributes {stable_mosaic.version = 11 : i64} {
  func.func private @main(%arg0: i32) attributes {dimension_semantics = [#tpu.dimension_semantics<core_parallel>], iteration_bounds = array<i64: 2>, tpu.core_type = #tpu.core_type<sc_scalar_subcore>, window_params = []} {
    return
  }
}

module attributes {stable_mosaic.version = 11 : i64} {
  func.func private @main(%arg0: i32) attributes {dimension_semantics = [#tpu.dimension_semantics<core_parallel>], iteration_bounds = array<i64: 2>, tpu.core_type = #tpu.core_type<sc_scalar_subcore>, window_params = []} {
    return
  }
}

module attributes {stable_mosaic.version = 11 : i64} {
  func.func @_pfn_kernel(%arg0: i32, %arg1: memref<1xi32, #tpu.memory_space<smem>>, %arg2: memref<11x256xf32, #tpu.memory_space<vmem>>, %arg3: memref<16x11xf32, #tpu.memory_space<vmem>>, %arg4: memref<16x1xf32, #tpu.memory_space<vmem>>, %arg5: memref<1x256xi32, #tpu.memory_space<vmem>>, %arg6: memref<16x256xf32, #tpu.memory_space<vmem>>, %arg7: memref<16x256xf32, #tpu.memory_space<vmem>>, %arg8: memref<16x512xf32, #tpu.memory_space<vmem>>) attributes {dimension_semantics = [#tpu.dimension_semantics<arbitrary>], iteration_bounds = array<i64: 1>, scalar_prefetch = 1 : i64, scratch_operands = 1 : i64, tpu.core_type = #tpu.core_type<tc>, window_params = [{transform_indices = @transform_0, window_bounds = array<i64: 11, 256>}, {pipeline_mode = #tpu.pipeline_mode<synchronous>, transform_indices = @transform_1, window_bounds = array<i64: 16, 11>}, {pipeline_mode = #tpu.pipeline_mode<synchronous>, transform_indices = @transform_2, window_bounds = array<i64: 16, 1>}, {transform_indices = @transform_3, window_bounds = array<i64: 1, 256>}, {transform_indices = @transform_4, window_bounds = array<i64: 16, 256>}, {transform_indices = @transform_5, window_bounds = array<i64: 16, 256>}]} {
    %c0_i32 = arith.constant 0 : i32
    %0 = arith.cmpi eq, %arg0, %c0_i32 : i32
    %1 = arith.extui %0 : i1 to i32
    %c0_i32_0 = arith.constant 0 : i32
    %2 = arith.cmpi ne, %1, %c0_i32_0 : i32
    scf.if %2 {
      %cst_178 = arith.constant 0xFF800000 : f32
      %473 = vector.broadcast %cst_178 : f32 to vector<16x256xf32>
      %c0_179 = arith.constant 0 : index
      %c0_180 = arith.constant 0 : index
      %474 = vector.load %arg8[%c0_179, %c0_180] : memref<16x512xf32, #tpu.memory_space<vmem>>, vector<16x256xf32>
      tpu.vector_store %arg8[%c0_179, %c0_180], %473 {strides = array<i32>} : memref<16x512xf32, #tpu.memory_space<vmem>>, vector<16x256xf32>,
    } else {
    }
    %c1_i32 = arith.constant 1 : i32
    %3 = arith.subi %arg0, %c1_i32 : i32
    %c0_i32_1 = arith.constant 0 : i32
    %4 = arith.maxsi %3, %c0_i32_1 : i32
    %5 = arith.index_cast %4 : i32 to index
    %6 = memref.load %arg1[%5] : memref<1xi32, #tpu.memory_space<smem>>
    %c0_i32_2 = arith.constant 0 : i32
    %7 = arith.cmpi eq, %arg0, %c0_i32_2 : i32
    %8 = arith.index_cast %arg0 : i32 to index
    %9 = memref.load %arg1[%8] : memref<1xi32, #tpu.memory_space<smem>>
    %10 = arith.cmpi ne, %9, %6 : i32
    %11 = arith.ori %7, %10 : i1
    %12 = arith.extui %11 : i1 to i32
    %c0_i32_3 = arith.constant 0 : i32
    %13 = arith.cmpi ne, %12, %c0_i32_3 : i32
    scf.if %13 {
      %cst_178 = arith.constant 0.000000e+00 : f32
      %473 = vector.broadcast %cst_178 : f32 to vector<16x256xf32>
      %c0_179 = arith.constant 0 : index
      %c0_180 = arith.constant 0 : index
      %474 = vector.load %arg7[%c0_179, %c0_180] : memref<16x256xf32, #tpu.memory_space<vmem>>, vector<16x256xf32>
      tpu.vector_store %arg7[%c0_179, %c0_180], %473 {strides = array<i32>} : memref<16x256xf32, #tpu.memory_space<vmem>>, vector<16x256xf32>,
    } else {
    }
    %c0 = arith.constant 0 : index
    %c0_4 = arith.constant 0 : index
    %14 = vector.load %arg3[%c0, %c0_4] : memref<16x11xf32, #tpu.memory_space<vmem>>, vector<16x11xf32>
    %c0_5 = arith.constant 0 : index
    %c0_6 = arith.constant 0 : index
    %15 = vector.load %arg2[%c0_5, %c0_6] : memref<11x256xf32, #tpu.memory_space<vmem>>, vector<11x256xf32>
    %cst = arith.constant dense<0.000000e+00> : vector<16x256xf32>
    %16 = tpu.matmul %14, %15, %cst {dimension_numbers = #tpu.dot_dimension_numbers<[1], [0], [0], [1], [0, 0, 1, 1], [], []>} : vector<16x11xf32>, vector<11x256xf32>, vector<16x256xf32> -> vector<16x256xf32>
    %c0_7 = arith.constant 0 : index
    %c0_8 = arith.constant 0 : index
    %17 = vector.load %arg4[%c0_7, %c0_8] : memref<16x1xf32, #tpu.memory_space<vmem>>, vector<16x1xf32>
    %18 = vector.broadcast %17 : vector<16x1xf32> to vector<16x256xf32>
    %19 = arith.addf %16, %18 : vector<16x256xf32>
    %cst_9 = arith.constant 0.000000e+00 : f32
    %20 = vector.broadcast %cst_9 : f32 to vector<16x256xf32>
    %21 = arith.maximumf %19, %20 : vector<16x256xf32>
    %c0_10 = arith.constant 0 : index
    %c0_11 = arith.constant 0 : index
    %22 = vector.load %arg6[%c0_10, %c0_11] : memref<16x256xf32, #tpu.memory_space<vmem>>, vector<16x256xf32>
    tpu.vector_store %arg6[%c0_10, %c0_11], %21 {strides = array<i32>} : memref<16x256xf32, #tpu.memory_space<vmem>>, vector<16x256xf32>,
    %c0_12 = arith.constant 0 : index
    %c0_13 = arith.constant 0 : index
    %23 = vector.load %arg5[%c0_12, %c0_13] : memref<1x256xi32, #tpu.memory_space<vmem>>, vector<1x256xi32>
    %c0_i32_14 = arith.constant 0 : i32
    %24 = vector.broadcast %c0_i32_14 : i32 to vector<1x256xi32>
    %25 = arith.cmpi sge, %23, %24 : vector<1x256xi32>
    %26 = arith.index_cast %arg0 : i32 to index
    %27 = memref.load %arg1[%26] : memref<1xi32, #tpu.memory_space<smem>>
    %c256_i32 = arith.constant 256 : i32
    %28 = arith.muli %27, %c256_i32 : i32
    %29 = vector.broadcast %28 : i32 to vector<1x256xi32>
    %30 = arith.subi %23, %29 : vector<1x256xi32>
    %c0_i32_15 = arith.constant 0 : i32
    %31 = vector.broadcast %c0_i32_15 : i32 to vector<1x256xi32>
    %32 = arith.select %25, %30, %31 : vector<1x256xi1>, vector<1x256xi32>
    %cst_16 = arith.constant 0xFF800000 : f32
    %33 = vector.shape_cast %25 : vector<1x256xi1> to vector<1x256xi1>
    %34 = vector.broadcast %33 : vector<1x256xi1> to vector<16x256xi1>
    %35 = vector.broadcast %cst_16 : f32 to vector<16x256xf32>
    %36 = arith.select %34, %21, %35 : vector<16x256xi1>, vector<16x256xf32>
    %c0_17 = arith.constant 0 : index
    %c256 = arith.constant 256 : index
    %37 = vector.load %arg8[%c0_17, %c256] : memref<16x512xf32, #tpu.memory_space<vmem>>, vector<16x256xf32>
    tpu.vector_store %arg8[%c0_17, %c256], %36 {strides = array<i32>} : memref<16x512xf32, #tpu.memory_space<vmem>>, vector<16x256xf32>,
    %c0_18 = arith.constant 0 : index
    %c0_19 = arith.constant 0 : index
    %38 = vector.load %arg8[%c0_18, %c0_19] : memref<16x512xf32, #tpu.memory_space<vmem>>, vector<16x512xf32>
    %39 = tpu.iota {dimensions = array<i32: 1>} : vector<1x512xi32>
    %c0_i32_20 = arith.constant 0 : i32
    %40 = vector.broadcast %c0_i32_20 : i32 to vector<1x256xi32>
    %41 = arith.extui %25 : vector<1x256xi1> to vector<1x256xi32>
    %42 = tpu.concatenate %40, %41 in 1 : vector<1x256xi32>, vector<1x256xi32> -> vector<1x512xi32>
    %43 = tpu.concatenate %40, %32 in 1 : vector<1x256xi32>, vector<1x256xi32> -> vector<1x512xi32>
    %c0_i32_21 = arith.constant 0 : i32
    %44 = vector.broadcast %c0_i32_21 : i32 to vector<1x512xi32>
    %45 = arith.cmpi ne, %42, %44 : vector<1x512xi32>
    %46 = arith.subi %39, %43 : vector<1x512xi32>
    %c0_i32_22 = arith.constant 0 : i32
    %47 = vector.broadcast %c0_i32_22 : i32 to vector<1x512xi32>
    %48 = arith.select %45, %46, %47 : vector<1x512xi1>, vector<1x512xi32>
    %c0_i32_23 = arith.constant 0 : i32
    %49 = vector.broadcast %c0_i32_23 : i32 to vector<1x512xi32>
    %50 = arith.cmpi ne, %42, %49 : vector<1x512xi32>
    %c1_i32_24 = arith.constant 1 : i32
    %51 = vector.broadcast %c1_i32_24 : i32 to vector<1x512xi32>
    %52 = arith.andi %48, %51 : vector<1x512xi32>
    %c0_i32_25 = arith.constant 0 : i32
    %53 = vector.broadcast %c0_i32_25 : i32 to vector<1x512xi32>
    %54 = arith.cmpi ne, %52, %53 : vector<1x512xi32>
    %55 = arith.andi %50, %54 : vector<1x512xi1>
    %56 = arith.extui %55 : vector<1x512xi1> to vector<1x512xi32>
    %c511_i32 = arith.constant 511 : i32
    %57 = tpu.dynamic_rotate %38 by %c511_i32 dim 1 : vector<16x512xf32>, i32 -> vector<16x512xf32>
    %c511_i32_26 = arith.constant 511 : i32
    %58 = vector.broadcast %c511_i32_26 : i32 to vector<1x512xi32>
    %59 = arith.cmpi slt, %39, %58 : vector<1x512xi32>
    %cst_27 = arith.constant 0xFF800000 : f32
    %60 = vector.shape_cast %59 : vector<1x512xi1> to vector<1x512xi1>
    %61 = vector.broadcast %60 : vector<1x512xi1> to vector<16x512xi1>
    %62 = vector.broadcast %cst_27 : f32 to vector<16x512xf32>
    %63 = arith.select %61, %57, %62 : vector<16x512xi1>, vector<16x512xf32>
    %c511_i32_28 = arith.constant 511 : i32
    %64 = tpu.dynamic_rotate %48 by %c511_i32_28 dim 1 : vector<1x512xi32>, i32 -> vector<1x512xi32>
    %c511_i32_29 = arith.constant 511 : i32
    %65 = vector.broadcast %c511_i32_29 : i32 to vector<1x512xi32>
    %66 = arith.cmpi slt, %39, %65 : vector<1x512xi32>
    %c0_i32_30 = arith.constant 0 : i32
    %67 = vector.broadcast %c0_i32_30 : i32 to vector<1x512xi32>
    %68 = arith.select %66, %64, %67 : vector<1x512xi1>, vector<1x512xi32>
    %c511_i32_31 = arith.constant 511 : i32
    %69 = tpu.dynamic_rotate %56 by %c511_i32_31 dim 1 : vector<1x512xi32>, i32 -> vector<1x512xi32>
    %c511_i32_32 = arith.constant 511 : i32
    %70 = vector.broadcast %c511_i32_32 : i32 to vector<1x512xi32>
    %71 = arith.cmpi slt, %39, %70 : vector<1x512xi32>
    %c0_i32_33 = arith.constant 0 : i32
    %72 = vector.broadcast %c0_i32_33 : i32 to vector<1x512xi32>
    %73 = arith.select %71, %69, %72 : vector<1x512xi1>, vector<1x512xi32>
    %c0_i32_34 = arith.constant 0 : i32
    %74 = vector.broadcast %c0_i32_34 : i32 to vector<1x512xi32>
    %75 = arith.cmpi ne, %42, %74 : vector<1x512xi32>
    %c0_i32_35 = arith.constant 0 : i32
    %76 = vector.broadcast %c0_i32_35 : i32 to vector<1x512xi32>
    %77 = arith.cmpi eq, %56, %76 : vector<1x512xi32>
    %78 = arith.andi %75, %77 : vector<1x512xi1>
    %c0_i32_36 = arith.constant 0 : i32
    %79 = vector.broadcast %c0_i32_36 : i32 to vector<1x512xi32>
    %80 = arith.cmpi ne, %73, %79 : vector<1x512xi32>
    %cst_37 = arith.constant 0xFF800000 : f32
    %81 = vector.shape_cast %78 : vector<1x512xi1> to vector<1x512xi1>
    %82 = vector.broadcast %81 : vector<1x512xi1> to vector<16x512xi1>
    %83 = vector.broadcast %cst_37 : f32 to vector<16x512xf32>
    %84 = arith.select %82, %38, %83 : vector<16x512xi1>, vector<16x512xf32>
    %cst_38 = arith.constant 0xFF800000 : f32
    %85 = vector.shape_cast %80 : vector<1x512xi1> to vector<1x512xi1>
    %86 = vector.broadcast %85 : vector<1x512xi1> to vector<16x512xi1>
    %87 = vector.broadcast %cst_38 : f32 to vector<16x512xf32>
    %88 = arith.select %86, %63, %87 : vector<16x512xi1>, vector<16x512xf32>
    %89 = arith.maximumf %84, %88 : vector<16x512xf32>
    %c1_i32_39 = arith.constant 1 : i32
    %90 = vector.broadcast %c1_i32_39 : i32 to vector<1x512xi32>
    %91 = arith.subi %68, %90 : vector<1x512xi32>
    %c0_i32_40 = arith.constant 0 : i32
    %92 = vector.broadcast %c0_i32_40 : i32 to vector<1x512xi32>
    %93 = arith.select %80, %91, %92 : vector<1x512xi1>, vector<1x512xi32>
    %94 = arith.select %78, %48, %93 : vector<1x512xi1>, vector<1x512xi32>
    %95 = arith.ori %78, %80 : vector<1x512xi1>
    %96 = arith.extui %95 : vector<1x512xi1> to vector<1x512xi32>
    %c0_i32_41 = arith.constant 0 : i32
    %97 = vector.broadcast %c0_i32_41 : i32 to vector<1x512xi32>
    %98 = arith.cmpi ne, %96, %97 : vector<1x512xi32>
    %c2_i32 = arith.constant 2 : i32
    %99 = vector.broadcast %c2_i32 : i32 to vector<1x512xi32>
    %100 = arith.andi %94, %99 : vector<1x512xi32>
    %c0_i32_42 = arith.constant 0 : i32
    %101 = vector.broadcast %c0_i32_42 : i32 to vector<1x512xi32>
    %102 = arith.cmpi ne, %100, %101 : vector<1x512xi32>
    %103 = arith.andi %98, %102 : vector<1x512xi1>
    %104 = arith.extui %103 : vector<1x512xi1> to vector<1x512xi32>
    %c510_i32 = arith.constant 510 : i32
    %105 = tpu.dynamic_rotate %89 by %c510_i32 dim 1 : vector<16x512xf32>, i32 -> vector<16x512xf32>
    %c510_i32_43 = arith.constant 510 : i32
    %106 = vector.broadcast %c510_i32_43 : i32 to vector<1x512xi32>
    %107 = arith.cmpi slt, %39, %106 : vector<1x512xi32>
    %cst_44 = arith.constant 0xFF800000 : f32
    %108 = vector.shape_cast %107 : vector<1x512xi1> to vector<1x512xi1>
    %109 = vector.broadcast %108 : vector<1x512xi1> to vector<16x512xi1>
    %110 = vector.broadcast %cst_44 : f32 to vector<16x512xf32>
    %111 = arith.select %109, %105, %110 : vector<16x512xi1>, vector<16x512xf32>
    %c510_i32_45 = arith.constant 510 : i32
    %112 = tpu.dynamic_rotate %94 by %c510_i32_45 dim 1 : vector<1x512xi32>, i32 -> vector<1x512xi32>
    %c510_i32_46 = arith.constant 510 : i32
    %113 = vector.broadcast %c510_i32_46 : i32 to vector<1x512xi32>
    %114 = arith.cmpi slt, %39, %113 : vector<1x512xi32>
    %c0_i32_47 = arith.constant 0 : i32
    %115 = vector.broadcast %c0_i32_47 : i32 to vector<1x512xi32>
    %116 = arith.select %114, %112, %115 : vector<1x512xi1>, vector<1x512xi32>
    %c510_i32_48 = arith.constant 510 : i32
    %117 = tpu.dynamic_rotate %104 by %c510_i32_48 dim 1 : vector<1x512xi32>, i32 -> vector<1x512xi32>
    %c510_i32_49 = arith.constant 510 : i32
    %118 = vector.broadcast %c510_i32_49 : i32 to vector<1x512xi32>
    %119 = arith.cmpi slt, %39, %118 : vector<1x512xi32>
    %c0_i32_50 = arith.constant 0 : i32
    %120 = vector.broadcast %c0_i32_50 : i32 to vector<1x512xi32>
    %121 = arith.select %119, %117, %120 : vector<1x512xi1>, vector<1x512xi32>
    %c0_i32_51 = arith.constant 0 : i32
    %122 = vector.broadcast %c0_i32_51 : i32 to vector<1x512xi32>
    %123 = arith.cmpi ne, %96, %122 : vector<1x512xi32>
    %c0_i32_52 = arith.constant 0 : i32
    %124 = vector.broadcast %c0_i32_52 : i32 to vector<1x512xi32>
    %125 = arith.cmpi eq, %104, %124 : vector<1x512xi32>
    %126 = arith.andi %123, %125 : vector<1x512xi1>
    %c0_i32_53 = arith.constant 0 : i32
    %127 = vector.broadcast %c0_i32_53 : i32 to vector<1x512xi32>
    %128 = arith.cmpi ne, %121, %127 : vector<1x512xi32>
    %cst_54 = arith.constant 0xFF800000 : f32
    %129 = vector.shape_cast %126 : vector<1x512xi1> to vector<1x512xi1>
    %130 = vector.broadcast %129 : vector<1x512xi1> to vector<16x512xi1>
    %131 = vector.broadcast %cst_54 : f32 to vector<16x512xf32>
    %132 = arith.select %130, %89, %131 : vector<16x512xi1>, vector<16x512xf32>
    %cst_55 = arith.constant 0xFF800000 : f32
    %133 = vector.shape_cast %128 : vector<1x512xi1> to vector<1x512xi1>
    %134 = vector.broadcast %133 : vector<1x512xi1> to vector<16x512xi1>
    %135 = vector.broadcast %cst_55 : f32 to vector<16x512xf32>
    %136 = arith.select %134, %111, %135 : vector<16x512xi1>, vector<16x512xf32>
    %137 = arith.maximumf %132, %136 : vector<16x512xf32>
    %c2_i32_56 = arith.constant 2 : i32
    %138 = vector.broadcast %c2_i32_56 : i32 to vector<1x512xi32>
    %139 = arith.subi %116, %138 : vector<1x512xi32>
    %c0_i32_57 = arith.constant 0 : i32
    %140 = vector.broadcast %c0_i32_57 : i32 to vector<1x512xi32>
    %141 = arith.select %128, %139, %140 : vector<1x512xi1>, vector<1x512xi32>
    %142 = arith.select %126, %94, %141 : vector<1x512xi1>, vector<1x512xi32>
    %143 = arith.ori %126, %128 : vector<1x512xi1>
    %144 = arith.extui %143 : vector<1x512xi1> to vector<1x512xi32>
    %c0_i32_58 = arith.constant 0 : i32
    %145 = vector.broadcast %c0_i32_58 : i32 to vector<1x512xi32>
    %146 = arith.cmpi ne, %144, %145 : vector<1x512xi32>
    %c4_i32 = arith.constant 4 : i32
    %147 = vector.broadcast %c4_i32 : i32 to vector<1x512xi32>
    %148 = arith.andi %142, %147 : vector<1x512xi32>
    %c0_i32_59 = arith.constant 0 : i32
    %149 = vector.broadcast %c0_i32_59 : i32 to vector<1x512xi32>
    %150 = arith.cmpi ne, %148, %149 : vector<1x512xi32>
    %151 = arith.andi %146, %150 : vector<1x512xi1>
    %152 = arith.extui %151 : vector<1x512xi1> to vector<1x512xi32>
    %c508_i32 = arith.constant 508 : i32
    %153 = tpu.dynamic_rotate %137 by %c508_i32 dim 1 : vector<16x512xf32>, i32 -> vector<16x512xf32>
    %c508_i32_60 = arith.constant 508 : i32
    %154 = vector.broadcast %c508_i32_60 : i32 to vector<1x512xi32>
    %155 = arith.cmpi slt, %39, %154 : vector<1x512xi32>
    %cst_61 = arith.constant 0xFF800000 : f32
    %156 = vector.shape_cast %155 : vector<1x512xi1> to vector<1x512xi1>
    %157 = vector.broadcast %156 : vector<1x512xi1> to vector<16x512xi1>
    %158 = vector.broadcast %cst_61 : f32 to vector<16x512xf32>
    %159 = arith.select %157, %153, %158 : vector<16x512xi1>, vector<16x512xf32>
    %c508_i32_62 = arith.constant 508 : i32
    %160 = tpu.dynamic_rotate %142 by %c508_i32_62 dim 1 : vector<1x512xi32>, i32 -> vector<1x512xi32>
    %c508_i32_63 = arith.constant 508 : i32
    %161 = vector.broadcast %c508_i32_63 : i32 to vector<1x512xi32>
    %162 = arith.cmpi slt, %39, %161 : vector<1x512xi32>
    %c0_i32_64 = arith.constant 0 : i32
    %163 = vector.broadcast %c0_i32_64 : i32 to vector<1x512xi32>
    %164 = arith.select %162, %160, %163 : vector<1x512xi1>, vector<1x512xi32>
    %c508_i32_65 = arith.constant 508 : i32
    %165 = tpu.dynamic_rotate %152 by %c508_i32_65 dim 1 : vector<1x512xi32>, i32 -> vector<1x512xi32>
    %c508_i32_66 = arith.constant 508 : i32
    %166 = vector.broadcast %c508_i32_66 : i32 to vector<1x512xi32>
    %167 = arith.cmpi slt, %39, %166 : vector<1x512xi32>
    %c0_i32_67 = arith.constant 0 : i32
    %168 = vector.broadcast %c0_i32_67 : i32 to vector<1x512xi32>
    %169 = arith.select %167, %165, %168 : vector<1x512xi1>, vector<1x512xi32>
    %c0_i32_68 = arith.constant 0 : i32
    %170 = vector.broadcast %c0_i32_68 : i32 to vector<1x512xi32>
    %171 = arith.cmpi ne, %144, %170 : vector<1x512xi32>
    %c0_i32_69 = arith.constant 0 : i32
    %172 = vector.broadcast %c0_i32_69 : i32 to vector<1x512xi32>
    %173 = arith.cmpi eq, %152, %172 : vector<1x512xi32>
    %174 = arith.andi %171, %173 : vector<1x512xi1>
    %c0_i32_70 = arith.constant 0 : i32
    %175 = vector.broadcast %c0_i32_70 : i32 to vector<1x512xi32>
    %176 = arith.cmpi ne, %169, %175 : vector<1x512xi32>
    %cst_71 = arith.constant 0xFF800000 : f32
    %177 = vector.shape_cast %174 : vector<1x512xi1> to vector<1x512xi1>
    %178 = vector.broadcast %177 : vector<1x512xi1> to vector<16x512xi1>
    %179 = vector.broadcast %cst_71 : f32 to vector<16x512xf32>
    %180 = arith.select %178, %137, %179 : vector<16x512xi1>, vector<16x512xf32>
    %cst_72 = arith.constant 0xFF800000 : f32
    %181 = vector.shape_cast %176 : vector<1x512xi1> to vector<1x512xi1>
    %182 = vector.broadcast %181 : vector<1x512xi1> to vector<16x512xi1>
    %183 = vector.broadcast %cst_72 : f32 to vector<16x512xf32>
    %184 = arith.select %182, %159, %183 : vector<16x512xi1>, vector<16x512xf32>
    %185 = arith.maximumf %180, %184 : vector<16x512xf32>
    %c4_i32_73 = arith.constant 4 : i32
    %186 = vector.broadcast %c4_i32_73 : i32 to vector<1x512xi32>
    %187 = arith.subi %164, %186 : vector<1x512xi32>
    %c0_i32_74 = arith.constant 0 : i32
    %188 = vector.broadcast %c0_i32_74 : i32 to vector<1x512xi32>
    %189 = arith.select %176, %187, %188 : vector<1x512xi1>, vector<1x512xi32>
    %190 = arith.select %174, %142, %189 : vector<1x512xi1>, vector<1x512xi32>
    %191 = arith.ori %174, %176 : vector<1x512xi1>
    %192 = arith.extui %191 : vector<1x512xi1> to vector<1x512xi32>
    %c0_i32_75 = arith.constant 0 : i32
    %193 = vector.broadcast %c0_i32_75 : i32 to vector<1x512xi32>
    %194 = arith.cmpi ne, %192, %193 : vector<1x512xi32>
    %c8_i32 = arith.constant 8 : i32
    %195 = vector.broadcast %c8_i32 : i32 to vector<1x512xi32>
    %196 = arith.andi %190, %195 : vector<1x512xi32>
    %c0_i32_76 = arith.constant 0 : i32
    %197 = vector.broadcast %c0_i32_76 : i32 to vector<1x512xi32>
    %198 = arith.cmpi ne, %196, %197 : vector<1x512xi32>
    %199 = arith.andi %194, %198 : vector<1x512xi1>
    %200 = arith.extui %199 : vector<1x512xi1> to vector<1x512xi32>
    %c504_i32 = arith.constant 504 : i32
    %201 = tpu.dynamic_rotate %185 by %c504_i32 dim 1 : vector<16x512xf32>, i32 -> vector<16x512xf32>
    %c504_i32_77 = arith.constant 504 : i32
    %202 = vector.broadcast %c504_i32_77 : i32 to vector<1x512xi32>
    %203 = arith.cmpi slt, %39, %202 : vector<1x512xi32>
    %cst_78 = arith.constant 0xFF800000 : f32
    %204 = vector.shape_cast %203 : vector<1x512xi1> to vector<1x512xi1>
    %205 = vector.broadcast %204 : vector<1x512xi1> to vector<16x512xi1>
    %206 = vector.broadcast %cst_78 : f32 to vector<16x512xf32>
    %207 = arith.select %205, %201, %206 : vector<16x512xi1>, vector<16x512xf32>
    %c504_i32_79 = arith.constant 504 : i32
    %208 = tpu.dynamic_rotate %190 by %c504_i32_79 dim 1 : vector<1x512xi32>, i32 -> vector<1x512xi32>
    %c504_i32_80 = arith.constant 504 : i32
    %209 = vector.broadcast %c504_i32_80 : i32 to vector<1x512xi32>
    %210 = arith.cmpi slt, %39, %209 : vector<1x512xi32>
    %c0_i32_81 = arith.constant 0 : i32
    %211 = vector.broadcast %c0_i32_81 : i32 to vector<1x512xi32>
    %212 = arith.select %210, %208, %211 : vector<1x512xi1>, vector<1x512xi32>
    %c504_i32_82 = arith.constant 504 : i32
    %213 = tpu.dynamic_rotate %200 by %c504_i32_82 dim 1 : vector<1x512xi32>, i32 -> vector<1x512xi32>
    %c504_i32_83 = arith.constant 504 : i32
    %214 = vector.broadcast %c504_i32_83 : i32 to vector<1x512xi32>
    %215 = arith.cmpi slt, %39, %214 : vector<1x512xi32>
    %c0_i32_84 = arith.constant 0 : i32
    %216 = vector.broadcast %c0_i32_84 : i32 to vector<1x512xi32>
    %217 = arith.select %215, %213, %216 : vector<1x512xi1>, vector<1x512xi32>
    %c0_i32_85 = arith.constant 0 : i32
    %218 = vector.broadcast %c0_i32_85 : i32 to vector<1x512xi32>
    %219 = arith.cmpi ne, %192, %218 : vector<1x512xi32>
    %c0_i32_86 = arith.constant 0 : i32
    %220 = vector.broadcast %c0_i32_86 : i32 to vector<1x512xi32>
    %221 = arith.cmpi eq, %200, %220 : vector<1x512xi32>
    %222 = arith.andi %219, %221 : vector<1x512xi1>
    %c0_i32_87 = arith.constant 0 : i32
    %223 = vector.broadcast %c0_i32_87 : i32 to vector<1x512xi32>
    %224 = arith.cmpi ne, %217, %223 : vector<1x512xi32>
    %cst_88 = arith.constant 0xFF800000 : f32
    %225 = vector.shape_cast %222 : vector<1x512xi1> to vector<1x512xi1>
    %226 = vector.broadcast %225 : vector<1x512xi1> to vector<16x512xi1>
    %227 = vector.broadcast %cst_88 : f32 to vector<16x512xf32>
    %228 = arith.select %226, %185, %227 : vector<16x512xi1>, vector<16x512xf32>
    %cst_89 = arith.constant 0xFF800000 : f32
    %229 = vector.shape_cast %224 : vector<1x512xi1> to vector<1x512xi1>
    %230 = vector.broadcast %229 : vector<1x512xi1> to vector<16x512xi1>
    %231 = vector.broadcast %cst_89 : f32 to vector<16x512xf32>
    %232 = arith.select %230, %207, %231 : vector<16x512xi1>, vector<16x512xf32>
    %233 = arith.maximumf %228, %232 : vector<16x512xf32>
    %c8_i32_90 = arith.constant 8 : i32
    %234 = vector.broadcast %c8_i32_90 : i32 to vector<1x512xi32>
    %235 = arith.subi %212, %234 : vector<1x512xi32>
    %c0_i32_91 = arith.constant 0 : i32
    %236 = vector.broadcast %c0_i32_91 : i32 to vector<1x512xi32>
    %237 = arith.select %224, %235, %236 : vector<1x512xi1>, vector<1x512xi32>
    %238 = arith.select %222, %190, %237 : vector<1x512xi1>, vector<1x512xi32>
    %239 = arith.ori %222, %224 : vector<1x512xi1>
    %240 = arith.extui %239 : vector<1x512xi1> to vector<1x512xi32>
    %c0_i32_92 = arith.constant 0 : i32
    %241 = vector.broadcast %c0_i32_92 : i32 to vector<1x512xi32>
    %242 = arith.cmpi ne, %240, %241 : vector<1x512xi32>
    %c16_i32 = arith.constant 16 : i32
    %243 = vector.broadcast %c16_i32 : i32 to vector<1x512xi32>
    %244 = arith.andi %238, %243 : vector<1x512xi32>
    %c0_i32_93 = arith.constant 0 : i32
    %245 = vector.broadcast %c0_i32_93 : i32 to vector<1x512xi32>
    %246 = arith.cmpi ne, %244, %245 : vector<1x512xi32>
    %247 = arith.andi %242, %246 : vector<1x512xi1>
    %248 = arith.extui %247 : vector<1x512xi1> to vector<1x512xi32>
    %c496_i32 = arith.constant 496 : i32
    %249 = tpu.dynamic_rotate %233 by %c496_i32 dim 1 : vector<16x512xf32>, i32 -> vector<16x512xf32>
    %c496_i32_94 = arith.constant 496 : i32
    %250 = vector.broadcast %c496_i32_94 : i32 to vector<1x512xi32>
    %251 = arith.cmpi slt, %39, %250 : vector<1x512xi32>
    %cst_95 = arith.constant 0xFF800000 : f32
    %252 = vector.shape_cast %251 : vector<1x512xi1> to vector<1x512xi1>
    %253 = vector.broadcast %252 : vector<1x512xi1> to vector<16x512xi1>
    %254 = vector.broadcast %cst_95 : f32 to vector<16x512xf32>
    %255 = arith.select %253, %249, %254 : vector<16x512xi1>, vector<16x512xf32>
    %c496_i32_96 = arith.constant 496 : i32
    %256 = tpu.dynamic_rotate %238 by %c496_i32_96 dim 1 : vector<1x512xi32>, i32 -> vector<1x512xi32>
    %c496_i32_97 = arith.constant 496 : i32
    %257 = vector.broadcast %c496_i32_97 : i32 to vector<1x512xi32>
    %258 = arith.cmpi slt, %39, %257 : vector<1x512xi32>
    %c0_i32_98 = arith.constant 0 : i32
    %259 = vector.broadcast %c0_i32_98 : i32 to vector<1x512xi32>
    %260 = arith.select %258, %256, %259 : vector<1x512xi1>, vector<1x512xi32>
    %c496_i32_99 = arith.constant 496 : i32
    %261 = tpu.dynamic_rotate %248 by %c496_i32_99 dim 1 : vector<1x512xi32>, i32 -> vector<1x512xi32>
    %c496_i32_100 = arith.constant 496 : i32
    %262 = vector.broadcast %c496_i32_100 : i32 to vector<1x512xi32>
    %263 = arith.cmpi slt, %39, %262 : vector<1x512xi32>
    %c0_i32_101 = arith.constant 0 : i32
    %264 = vector.broadcast %c0_i32_101 : i32 to vector<1x512xi32>
    %265 = arith.select %263, %261, %264 : vector<1x512xi1>, vector<1x512xi32>
    %c0_i32_102 = arith.constant 0 : i32
    %266 = vector.broadcast %c0_i32_102 : i32 to vector<1x512xi32>
    %267 = arith.cmpi ne, %240, %266 : vector<1x512xi32>
    %c0_i32_103 = arith.constant 0 : i32
    %268 = vector.broadcast %c0_i32_103 : i32 to vector<1x512xi32>
    %269 = arith.cmpi eq, %248, %268 : vector<1x512xi32>
    %270 = arith.andi %267, %269 : vector<1x512xi1>
    %c0_i32_104 = arith.constant 0 : i32
    %271 = vector.broadcast %c0_i32_104 : i32 to vector<1x512xi32>
    %272 = arith.cmpi ne, %265, %271 : vector<1x512xi32>
    %cst_105 = arith.constant 0xFF800000 : f32
    %273 = vector.shape_cast %270 : vector<1x512xi1> to vector<1x512xi1>
    %274 = vector.broadcast %273 : vector<1x512xi1> to vector<16x512xi1>
    %275 = vector.broadcast %cst_105 : f32 to vector<16x512xf32>
    %276 = arith.select %274, %233, %275 : vector<16x512xi1>, vector<16x512xf32>
    %cst_106 = arith.constant 0xFF800000 : f32
    %277 = vector.shape_cast %272 : vector<1x512xi1> to vector<1x512xi1>
    %278 = vector.broadcast %277 : vector<1x512xi1> to vector<16x512xi1>
    %279 = vector.broadcast %cst_106 : f32 to vector<16x512xf32>
    %280 = arith.select %278, %255, %279 : vector<16x512xi1>, vector<16x512xf32>
    %281 = arith.maximumf %276, %280 : vector<16x512xf32>
    %c16_i32_107 = arith.constant 16 : i32
    %282 = vector.broadcast %c16_i32_107 : i32 to vector<1x512xi32>
    %283 = arith.subi %260, %282 : vector<1x512xi32>
    %c0_i32_108 = arith.constant 0 : i32
    %284 = vector.broadcast %c0_i32_108 : i32 to vector<1x512xi32>
    %285 = arith.select %272, %283, %284 : vector<1x512xi1>, vector<1x512xi32>
    %286 = arith.select %270, %238, %285 : vector<1x512xi1>, vector<1x512xi32>
    %287 = arith.ori %270, %272 : vector<1x512xi1>
    %288 = arith.extui %287 : vector<1x512xi1> to vector<1x512xi32>
    %c0_i32_109 = arith.constant 0 : i32
    %289 = vector.broadcast %c0_i32_109 : i32 to vector<1x512xi32>
    %290 = arith.cmpi ne, %288, %289 : vector<1x512xi32>
    %c32_i32 = arith.constant 32 : i32
    %291 = vector.broadcast %c32_i32 : i32 to vector<1x512xi32>
    %292 = arith.andi %286, %291 : vector<1x512xi32>
    %c0_i32_110 = arith.constant 0 : i32
    %293 = vector.broadcast %c0_i32_110 : i32 to vector<1x512xi32>
    %294 = arith.cmpi ne, %292, %293 : vector<1x512xi32>
    %295 = arith.andi %290, %294 : vector<1x512xi1>
    %296 = arith.extui %295 : vector<1x512xi1> to vector<1x512xi32>
    %c480_i32 = arith.constant 480 : i32
    %297 = tpu.dynamic_rotate %281 by %c480_i32 dim 1 : vector<16x512xf32>, i32 -> vector<16x512xf32>
    %c480_i32_111 = arith.constant 480 : i32
    %298 = vector.broadcast %c480_i32_111 : i32 to vector<1x512xi32>
    %299 = arith.cmpi slt, %39, %298 : vector<1x512xi32>
    %cst_112 = arith.constant 0xFF800000 : f32
    %300 = vector.shape_cast %299 : vector<1x512xi1> to vector<1x512xi1>
    %301 = vector.broadcast %300 : vector<1x512xi1> to vector<16x512xi1>
    %302 = vector.broadcast %cst_112 : f32 to vector<16x512xf32>
    %303 = arith.select %301, %297, %302 : vector<16x512xi1>, vector<16x512xf32>
    %c480_i32_113 = arith.constant 480 : i32
    %304 = tpu.dynamic_rotate %286 by %c480_i32_113 dim 1 : vector<1x512xi32>, i32 -> vector<1x512xi32>
    %c480_i32_114 = arith.constant 480 : i32
    %305 = vector.broadcast %c480_i32_114 : i32 to vector<1x512xi32>
    %306 = arith.cmpi slt, %39, %305 : vector<1x512xi32>
    %c0_i32_115 = arith.constant 0 : i32
    %307 = vector.broadcast %c0_i32_115 : i32 to vector<1x512xi32>
    %308 = arith.select %306, %304, %307 : vector<1x512xi1>, vector<1x512xi32>
    %c480_i32_116 = arith.constant 480 : i32
    %309 = tpu.dynamic_rotate %296 by %c480_i32_116 dim 1 : vector<1x512xi32>, i32 -> vector<1x512xi32>
    %c480_i32_117 = arith.constant 480 : i32
    %310 = vector.broadcast %c480_i32_117 : i32 to vector<1x512xi32>
    %311 = arith.cmpi slt, %39, %310 : vector<1x512xi32>
    %c0_i32_118 = arith.constant 0 : i32
    %312 = vector.broadcast %c0_i32_118 : i32 to vector<1x512xi32>
    %313 = arith.select %311, %309, %312 : vector<1x512xi1>, vector<1x512xi32>
    %c0_i32_119 = arith.constant 0 : i32
    %314 = vector.broadcast %c0_i32_119 : i32 to vector<1x512xi32>
    %315 = arith.cmpi ne, %288, %314 : vector<1x512xi32>
    %c0_i32_120 = arith.constant 0 : i32
    %316 = vector.broadcast %c0_i32_120 : i32 to vector<1x512xi32>
    %317 = arith.cmpi eq, %296, %316 : vector<1x512xi32>
    %318 = arith.andi %315, %317 : vector<1x512xi1>
    %c0_i32_121 = arith.constant 0 : i32
    %319 = vector.broadcast %c0_i32_121 : i32 to vector<1x512xi32>
    %320 = arith.cmpi ne, %313, %319 : vector<1x512xi32>
    %cst_122 = arith.constant 0xFF800000 : f32
    %321 = vector.shape_cast %318 : vector<1x512xi1> to vector<1x512xi1>
    %322 = vector.broadcast %321 : vector<1x512xi1> to vector<16x512xi1>
    %323 = vector.broadcast %cst_122 : f32 to vector<16x512xf32>
    %324 = arith.select %322, %281, %323 : vector<16x512xi1>, vector<16x512xf32>
    %cst_123 = arith.constant 0xFF800000 : f32
    %325 = vector.shape_cast %320 : vector<1x512xi1> to vector<1x512xi1>
    %326 = vector.broadcast %325 : vector<1x512xi1> to vector<16x512xi1>
    %327 = vector.broadcast %cst_123 : f32 to vector<16x512xf32>
    %328 = arith.select %326, %303, %327 : vector<16x512xi1>, vector<16x512xf32>
    %329 = arith.maximumf %324, %328 : vector<16x512xf32>
    %c32_i32_124 = arith.constant 32 : i32
    %330 = vector.broadcast %c32_i32_124 : i32 to vector<1x512xi32>
    %331 = arith.subi %308, %330 : vector<1x512xi32>
    %c0_i32_125 = arith.constant 0 : i32
    %332 = vector.broadcast %c0_i32_125 : i32 to vector<1x512xi32>
    %333 = arith.select %320, %331, %332 : vector<1x512xi1>, vector<1x512xi32>
    %334 = arith.select %318, %286, %333 : vector<1x512xi1>, vector<1x512xi32>
    %335 = arith.ori %318, %320 : vector<1x512xi1>
    %336 = arith.extui %335 : vector<1x512xi1> to vector<1x512xi32>
    %c0_i32_126 = arith.constant 0 : i32
    %337 = vector.broadcast %c0_i32_126 : i32 to vector<1x512xi32>
    %338 = arith.cmpi ne, %336, %337 : vector<1x512xi32>
    %c64_i32 = arith.constant 64 : i32
    %339 = vector.broadcast %c64_i32 : i32 to vector<1x512xi32>
    %340 = arith.andi %334, %339 : vector<1x512xi32>
    %c0_i32_127 = arith.constant 0 : i32
    %341 = vector.broadcast %c0_i32_127 : i32 to vector<1x512xi32>
    %342 = arith.cmpi ne, %340, %341 : vector<1x512xi32>
    %343 = arith.andi %338, %342 : vector<1x512xi1>
    %344 = arith.extui %343 : vector<1x512xi1> to vector<1x512xi32>
    %c448_i32 = arith.constant 448 : i32
    %345 = tpu.dynamic_rotate %329 by %c448_i32 dim 1 : vector<16x512xf32>, i32 -> vector<16x512xf32>
    %c448_i32_128 = arith.constant 448 : i32
    %346 = vector.broadcast %c448_i32_128 : i32 to vector<1x512xi32>
    %347 = arith.cmpi slt, %39, %346 : vector<1x512xi32>
    %cst_129 = arith.constant 0xFF800000 : f32
    %348 = vector.shape_cast %347 : vector<1x512xi1> to vector<1x512xi1>
    %349 = vector.broadcast %348 : vector<1x512xi1> to vector<16x512xi1>
    %350 = vector.broadcast %cst_129 : f32 to vector<16x512xf32>
    %351 = arith.select %349, %345, %350 : vector<16x512xi1>, vector<16x512xf32>
    %c448_i32_130 = arith.constant 448 : i32
    %352 = tpu.dynamic_rotate %334 by %c448_i32_130 dim 1 : vector<1x512xi32>, i32 -> vector<1x512xi32>
    %c448_i32_131 = arith.constant 448 : i32
    %353 = vector.broadcast %c448_i32_131 : i32 to vector<1x512xi32>
    %354 = arith.cmpi slt, %39, %353 : vector<1x512xi32>
    %c0_i32_132 = arith.constant 0 : i32
    %355 = vector.broadcast %c0_i32_132 : i32 to vector<1x512xi32>
    %356 = arith.select %354, %352, %355 : vector<1x512xi1>, vector<1x512xi32>
    %c448_i32_133 = arith.constant 448 : i32
    %357 = tpu.dynamic_rotate %344 by %c448_i32_133 dim 1 : vector<1x512xi32>, i32 -> vector<1x512xi32>
    %c448_i32_134 = arith.constant 448 : i32
    %358 = vector.broadcast %c448_i32_134 : i32 to vector<1x512xi32>
    %359 = arith.cmpi slt, %39, %358 : vector<1x512xi32>
    %c0_i32_135 = arith.constant 0 : i32
    %360 = vector.broadcast %c0_i32_135 : i32 to vector<1x512xi32>
    %361 = arith.select %359, %357, %360 : vector<1x512xi1>, vector<1x512xi32>
    %c0_i32_136 = arith.constant 0 : i32
    %362 = vector.broadcast %c0_i32_136 : i32 to vector<1x512xi32>
    %363 = arith.cmpi ne, %336, %362 : vector<1x512xi32>
    %c0_i32_137 = arith.constant 0 : i32
    %364 = vector.broadcast %c0_i32_137 : i32 to vector<1x512xi32>
    %365 = arith.cmpi eq, %344, %364 : vector<1x512xi32>
    %366 = arith.andi %363, %365 : vector<1x512xi1>
    %c0_i32_138 = arith.constant 0 : i32
    %367 = vector.broadcast %c0_i32_138 : i32 to vector<1x512xi32>
    %368 = arith.cmpi ne, %361, %367 : vector<1x512xi32>
    %cst_139 = arith.constant 0xFF800000 : f32
    %369 = vector.shape_cast %366 : vector<1x512xi1> to vector<1x512xi1>
    %370 = vector.broadcast %369 : vector<1x512xi1> to vector<16x512xi1>
    %371 = vector.broadcast %cst_139 : f32 to vector<16x512xf32>
    %372 = arith.select %370, %329, %371 : vector<16x512xi1>, vector<16x512xf32>
    %cst_140 = arith.constant 0xFF800000 : f32
    %373 = vector.shape_cast %368 : vector<1x512xi1> to vector<1x512xi1>
    %374 = vector.broadcast %373 : vector<1x512xi1> to vector<16x512xi1>
    %375 = vector.broadcast %cst_140 : f32 to vector<16x512xf32>
    %376 = arith.select %374, %351, %375 : vector<16x512xi1>, vector<16x512xf32>
    %377 = arith.maximumf %372, %376 : vector<16x512xf32>
    %c64_i32_141 = arith.constant 64 : i32
    %378 = vector.broadcast %c64_i32_141 : i32 to vector<1x512xi32>
    %379 = arith.subi %356, %378 : vector<1x512xi32>
    %c0_i32_142 = arith.constant 0 : i32
    %380 = vector.broadcast %c0_i32_142 : i32 to vector<1x512xi32>
    %381 = arith.select %368, %379, %380 : vector<1x512xi1>, vector<1x512xi32>
    %382 = arith.select %366, %334, %381 : vector<1x512xi1>, vector<1x512xi32>
    %383 = arith.ori %366, %368 : vector<1x512xi1>
    %384 = arith.extui %383 : vector<1x512xi1> to vector<1x512xi32>
    %c0_i32_143 = arith.constant 0 : i32
    %385 = vector.broadcast %c0_i32_143 : i32 to vector<1x512xi32>
    %386 = arith.cmpi ne, %384, %385 : vector<1x512xi32>
    %c128_i32 = arith.constant 128 : i32
    %387 = vector.broadcast %c128_i32 : i32 to vector<1x512xi32>
    %388 = arith.andi %382, %387 : vector<1x512xi32>
    %c0_i32_144 = arith.constant 0 : i32
    %389 = vector.broadcast %c0_i32_144 : i32 to vector<1x512xi32>
    %390 = arith.cmpi ne, %388, %389 : vector<1x512xi32>
    %391 = arith.andi %386, %390 : vector<1x512xi1>
    %392 = arith.extui %391 : vector<1x512xi1> to vector<1x512xi32>
    %c384_i32 = arith.constant 384 : i32
    %393 = tpu.dynamic_rotate %377 by %c384_i32 dim 1 : vector<16x512xf32>, i32 -> vector<16x512xf32>
    %c384_i32_145 = arith.constant 384 : i32
    %394 = vector.broadcast %c384_i32_145 : i32 to vector<1x512xi32>
    %395 = arith.cmpi slt, %39, %394 : vector<1x512xi32>
    %cst_146 = arith.constant 0xFF800000 : f32
    %396 = vector.shape_cast %395 : vector<1x512xi1> to vector<1x512xi1>
    %397 = vector.broadcast %396 : vector<1x512xi1> to vector<16x512xi1>
    %398 = vector.broadcast %cst_146 : f32 to vector<16x512xf32>
    %399 = arith.select %397, %393, %398 : vector<16x512xi1>, vector<16x512xf32>
    %c384_i32_147 = arith.constant 384 : i32
    %400 = tpu.dynamic_rotate %382 by %c384_i32_147 dim 1 : vector<1x512xi32>, i32 -> vector<1x512xi32>
    %c384_i32_148 = arith.constant 384 : i32
    %401 = vector.broadcast %c384_i32_148 : i32 to vector<1x512xi32>
    %402 = arith.cmpi slt, %39, %401 : vector<1x512xi32>
    %c0_i32_149 = arith.constant 0 : i32
    %403 = vector.broadcast %c0_i32_149 : i32 to vector<1x512xi32>
    %404 = arith.select %402, %400, %403 : vector<1x512xi1>, vector<1x512xi32>
    %c384_i32_150 = arith.constant 384 : i32
    %405 = tpu.dynamic_rotate %392 by %c384_i32_150 dim 1 : vector<1x512xi32>, i32 -> vector<1x512xi32>
    %c384_i32_151 = arith.constant 384 : i32
    %406 = vector.broadcast %c384_i32_151 : i32 to vector<1x512xi32>
    %407 = arith.cmpi slt, %39, %406 : vector<1x512xi32>
    %c0_i32_152 = arith.constant 0 : i32
    %408 = vector.broadcast %c0_i32_152 : i32 to vector<1x512xi32>
    %409 = arith.select %407, %405, %408 : vector<1x512xi1>, vector<1x512xi32>
    %c0_i32_153 = arith.constant 0 : i32
    %410 = vector.broadcast %c0_i32_153 : i32 to vector<1x512xi32>
    %411 = arith.cmpi ne, %384, %410 : vector<1x512xi32>
    %c0_i32_154 = arith.constant 0 : i32
    %412 = vector.broadcast %c0_i32_154 : i32 to vector<1x512xi32>
    %413 = arith.cmpi eq, %392, %412 : vector<1x512xi32>
    %414 = arith.andi %411, %413 : vector<1x512xi1>
    %c0_i32_155 = arith.constant 0 : i32
    %415 = vector.broadcast %c0_i32_155 : i32 to vector<1x512xi32>
    %416 = arith.cmpi ne, %409, %415 : vector<1x512xi32>
    %cst_156 = arith.constant 0xFF800000 : f32
    %417 = vector.shape_cast %414 : vector<1x512xi1> to vector<1x512xi1>
    %418 = vector.broadcast %417 : vector<1x512xi1> to vector<16x512xi1>
    %419 = vector.broadcast %cst_156 : f32 to vector<16x512xf32>
    %420 = arith.select %418, %377, %419 : vector<16x512xi1>, vector<16x512xf32>
    %cst_157 = arith.constant 0xFF800000 : f32
    %421 = vector.shape_cast %416 : vector<1x512xi1> to vector<1x512xi1>
    %422 = vector.broadcast %421 : vector<1x512xi1> to vector<16x512xi1>
    %423 = vector.broadcast %cst_157 : f32 to vector<16x512xf32>
    %424 = arith.select %422, %399, %423 : vector<16x512xi1>, vector<16x512xf32>
    %425 = arith.maximumf %420, %424 : vector<16x512xf32>
    %c128_i32_158 = arith.constant 128 : i32
    %426 = vector.broadcast %c128_i32_158 : i32 to vector<1x512xi32>
    %427 = arith.subi %404, %426 : vector<1x512xi32>
    %c0_i32_159 = arith.constant 0 : i32
    %428 = vector.broadcast %c0_i32_159 : i32 to vector<1x512xi32>
    %429 = arith.select %416, %427, %428 : vector<1x512xi1>, vector<1x512xi32>
    %430 = arith.select %414, %382, %429 : vector<1x512xi1>, vector<1x512xi32>
    %431 = arith.ori %414, %416 : vector<1x512xi1>
    %432 = arith.extui %431 : vector<1x512xi1> to vector<1x512xi32>
    %c0_i32_160 = arith.constant 0 : i32
    %433 = vector.broadcast %c0_i32_160 : i32 to vector<1x512xi32>
    %434 = arith.cmpi ne, %432, %433 : vector<1x512xi32>
    %c256_i32_161 = arith.constant 256 : i32
    %435 = vector.broadcast %c256_i32_161 : i32 to vector<1x512xi32>
    %436 = arith.andi %430, %435 : vector<1x512xi32>
    %c0_i32_162 = arith.constant 0 : i32
    %437 = vector.broadcast %c0_i32_162 : i32 to vector<1x512xi32>
    %438 = arith.cmpi ne, %436, %437 : vector<1x512xi32>
    %439 = arith.andi %434, %438 : vector<1x512xi1>
    %440 = arith.extui %439 : vector<1x512xi1> to vector<1x512xi32>
    %c256_i32_163 = arith.constant 256 : i32
    %441 = tpu.dynamic_rotate %425 by %c256_i32_163 dim 1 : vector<16x512xf32>, i32 -> vector<16x512xf32>
    %c256_i32_164 = arith.constant 256 : i32
    %442 = vector.broadcast %c256_i32_164 : i32 to vector<1x512xi32>
    %443 = arith.cmpi slt, %39, %442 : vector<1x512xi32>
    %cst_165 = arith.constant 0xFF800000 : f32
    %444 = vector.shape_cast %443 : vector<1x512xi1> to vector<1x512xi1>
    %445 = vector.broadcast %444 : vector<1x512xi1> to vector<16x512xi1>
    %446 = vector.broadcast %cst_165 : f32 to vector<16x512xf32>
    %447 = arith.select %445, %441, %446 : vector<16x512xi1>, vector<16x512xf32>
    %c256_i32_166 = arith.constant 256 : i32
    %448 = tpu.dynamic_rotate %440 by %c256_i32_166 dim 1 : vector<1x512xi32>, i32 -> vector<1x512xi32>
    %c256_i32_167 = arith.constant 256 : i32
    %449 = vector.broadcast %c256_i32_167 : i32 to vector<1x512xi32>
    %450 = arith.cmpi slt, %39, %449 : vector<1x512xi32>
    %c0_i32_168 = arith.constant 0 : i32
    %451 = vector.broadcast %c0_i32_168 : i32 to vector<1x512xi32>
    %452 = arith.select %450, %448, %451 : vector<1x512xi1>, vector<1x512xi32>
    %c0_i32_169 = arith.constant 0 : i32
    %453 = vector.broadcast %c0_i32_169 : i32 to vector<1x512xi32>
    %454 = arith.cmpi ne, %432, %453 : vector<1x512xi32>
    %c0_i32_170 = arith.constant 0 : i32
    %455 = vector.broadcast %c0_i32_170 : i32 to vector<1x512xi32>
    %456 = arith.cmpi eq, %440, %455 : vector<1x512xi32>
    %457 = arith.andi %454, %456 : vector<1x512xi1>
    %c0_i32_171 = arith.constant 0 : i32
    %458 = vector.broadcast %c0_i32_171 : i32 to vector<1x512xi32>
    %459 = arith.cmpi ne, %452, %458 : vector<1x512xi32>
    %cst_172 = arith.constant 0xFF800000 : f32
    %460 = vector.shape_cast %457 : vector<1x512xi1> to vector<1x512xi1>
    %461 = vector.broadcast %460 : vector<1x512xi1> to vector<16x512xi1>
    %462 = vector.broadcast %cst_172 : f32 to vector<16x512xf32>
    %463 = arith.select %461, %425, %462 : vector<16x512xi1>, vector<16x512xf32>
    %cst_173 = arith.constant 0xFF800000 : f32
    %464 = vector.shape_cast %459 : vector<1x512xi1> to vector<1x512xi1>
    %465 = vector.broadcast %464 : vector<1x512xi1> to vector<16x512xi1>
    %466 = vector.broadcast %cst_173 : f32 to vector<16x512xf32>
    %467 = arith.select %465, %447, %466 : vector<16x512xi1>, vector<16x512xf32>
    %468 = arith.maximumf %463, %467 : vector<16x512xf32>
    %c0_174 = arith.constant 0 : index
    %c0_175 = arith.constant 0 : index
    %469 = vector.load %arg7[%c0_174, %c0_175] : memref<16x256xf32, #tpu.memory_space<vmem>>, vector<16x256xf32>
    %470 = vector.extract_strided_slice %468 {offsets = [0, 0], sizes = [16, 256], strides = [1, 1]} : vector<16x512xf32> to vector<16x256xf32>
    %471 = arith.maximumf %469, %470 : vector<16x256xf32>
    %c0_176 = arith.constant 0 : index
    %c0_177 = arith.constant 0 : index
    %472 = vector.load %arg7[%c0_176, %c0_177] : memref<16x256xf32, #tpu.memory_space<vmem>>, vector<16x256xf32>
    tpu.vector_store %arg7[%c0_176, %c0_177], %471 {strides = array<i32>} : memref<16x256xf32, #tpu.memory_space<vmem>>, vector<16x256xf32>,
    return
  }
  func.func @transform_0(%arg0: i32, %arg1: memref<1xi32, #tpu.memory_space<smem>>) -> (i32, i32) {
    %c0_i32 = arith.constant 0 : i32
    %c0_i32_0 = arith.constant 0 : i32
    return %c0_i32, %arg0 : i32, i32
  }
  func.func @transform_1(%arg0: i32, %arg1: memref<1xi32, #tpu.memory_space<smem>>) -> (i32, i32) {
    %c0_i32 = arith.constant 0 : i32
    %c0_i32_0 = arith.constant 0 : i32
    %c0_i32_1 = arith.constant 0 : i32
    return %c0_i32, %c0_i32_0 : i32, i32
  }
  func.func @transform_2(%arg0: i32, %arg1: memref<1xi32, #tpu.memory_space<smem>>) -> (i32, i32) {
    %c0_i32 = arith.constant 0 : i32
    %c0_i32_0 = arith.constant 0 : i32
    %c0_i32_1 = arith.constant 0 : i32
    return %c0_i32, %c0_i32_0 : i32, i32
  }
  func.func @transform_3(%arg0: i32, %arg1: memref<1xi32, #tpu.memory_space<smem>>) -> (i32, i32) {
    %c0_i32 = arith.constant 0 : i32
    %c0_i32_0 = arith.constant 0 : i32
    return %c0_i32, %arg0 : i32, i32
  }
  func.func @transform_4(%arg0: i32, %arg1: memref<1xi32, #tpu.memory_space<smem>>) -> (i32, i32) {
    %c0_i32 = arith.constant 0 : i32
    %c0_i32_0 = arith.constant 0 : i32
    return %c0_i32, %arg0 : i32, i32
  }
  func.func @transform_5(%arg0: i32, %arg1: memref<1xi32, #tpu.memory_space<smem>>) -> (i32, i32) {
    %0 = arith.index_cast %arg0 : i32 to index
    %1 = memref.load %arg1[%0] : memref<1xi32, #tpu.memory_space<smem>>
    %c0_i32 = arith.constant 0 : i32
    %c0_i32_0 = arith.constant 0 : i32
    return %c0_i32, %1 : i32, i32
  }
}

module attributes {stable_mosaic.version = 11 : i64} {
  func.func @_pfn_kernel(%arg0: i32, %arg1: memref<1xi32, #tpu.memory_space<smem>>, %arg2: memref<16x256xf32, #tpu.memory_space<vmem>>, %arg3: memref<32x256xf32, #tpu.memory_space<vmem>>, %arg4: memref<32x16xf32, #tpu.memory_space<vmem>>, %arg5: memref<32x1xf32, #tpu.memory_space<vmem>>, %arg6: memref<1x256xi32, #tpu.memory_space<vmem>>, %arg7: memref<32x256xf32, #tpu.memory_space<vmem>>, %arg8: memref<32x512xf32, #tpu.memory_space<vmem>>) attributes {dimension_semantics = [#tpu.dimension_semantics<arbitrary>], iteration_bounds = array<i64: 1>, scalar_prefetch = 1 : i64, scratch_operands = 1 : i64, tpu.core_type = #tpu.core_type<tc>, window_params = [{transform_indices = @transform_0, window_bounds = array<i64: 16, 256>}, {transform_indices = @transform_1, window_bounds = array<i64: 32, 256>}, {pipeline_mode = #tpu.pipeline_mode<synchronous>, transform_indices = @transform_2, window_bounds = array<i64: 32, 16>}, {pipeline_mode = #tpu.pipeline_mode<synchronous>, transform_indices = @transform_3, window_bounds = array<i64: 32, 1>}, {transform_indices = @transform_4, window_bounds = array<i64: 1, 256>}, {transform_indices = @transform_5, window_bounds = array<i64: 32, 256>}]} {
    %c0_i32 = arith.constant 0 : i32
    %0 = arith.cmpi eq, %arg0, %c0_i32 : i32
    %1 = arith.extui %0 : i1 to i32
    %c0_i32_0 = arith.constant 0 : i32
    %2 = arith.cmpi ne, %1, %c0_i32_0 : i32
    scf.if %2 {
      %cst_178 = arith.constant 0xFF800000 : f32
      %474 = vector.broadcast %cst_178 : f32 to vector<32x256xf32>
      %c0_179 = arith.constant 0 : index
      %c0_180 = arith.constant 0 : index
      %475 = vector.load %arg8[%c0_179, %c0_180] : memref<32x512xf32, #tpu.memory_space<vmem>>, vector<32x256xf32>
      tpu.vector_store %arg8[%c0_179, %c0_180], %474 {strides = array<i32>} : memref<32x512xf32, #tpu.memory_space<vmem>>, vector<32x256xf32>,
    } else {
    }
    %c1_i32 = arith.constant 1 : i32
    %3 = arith.subi %arg0, %c1_i32 : i32
    %c0_i32_1 = arith.constant 0 : i32
    %4 = arith.maxsi %3, %c0_i32_1 : i32
    %5 = arith.index_cast %4 : i32 to index
    %6 = memref.load %arg1[%5] : memref<1xi32, #tpu.memory_space<smem>>
    %c0_i32_2 = arith.constant 0 : i32
    %7 = arith.cmpi eq, %arg0, %c0_i32_2 : i32
    %8 = arith.index_cast %arg0 : i32 to index
    %9 = memref.load %arg1[%8] : memref<1xi32, #tpu.memory_space<smem>>
    %10 = arith.cmpi ne, %9, %6 : i32
    %11 = arith.ori %7, %10 : i1
    %12 = arith.extui %11 : i1 to i32
    %c0_i32_3 = arith.constant 0 : i32
    %13 = arith.cmpi ne, %12, %c0_i32_3 : i32
    scf.if %13 {
      %cst_178 = arith.constant 0.000000e+00 : f32
      %474 = vector.broadcast %cst_178 : f32 to vector<32x256xf32>
      %c0_179 = arith.constant 0 : index
      %c0_180 = arith.constant 0 : index
      %475 = vector.load %arg7[%c0_179, %c0_180] : memref<32x256xf32, #tpu.memory_space<vmem>>, vector<32x256xf32>
      tpu.vector_store %arg7[%c0_179, %c0_180], %474 {strides = array<i32>} : memref<32x256xf32, #tpu.memory_space<vmem>>, vector<32x256xf32>,
    } else {
    }
    %c0 = arith.constant 0 : index
    %c0_4 = arith.constant 0 : index
    %14 = vector.load %arg4[%c0, %c0_4] : memref<32x16xf32, #tpu.memory_space<vmem>>, vector<32x16xf32>
    %c0_5 = arith.constant 0 : index
    %c0_6 = arith.constant 0 : index
    %15 = vector.load %arg2[%c0_5, %c0_6] : memref<16x256xf32, #tpu.memory_space<vmem>>, vector<16x256xf32>
    %cst = arith.constant dense<0.000000e+00> : vector<32x256xf32>
    %16 = tpu.matmul %14, %15, %cst {dimension_numbers = #tpu.dot_dimension_numbers<[1], [0], [0], [1], [0, 0, 1, 1], [], []>} : vector<32x16xf32>, vector<16x256xf32>, vector<32x256xf32> -> vector<32x256xf32>
    %c0_7 = arith.constant 0 : index
    %c0_8 = arith.constant 0 : index
    %17 = vector.load %arg3[%c0_7, %c0_8] : memref<32x256xf32, #tpu.memory_space<vmem>>, vector<32x256xf32>
    %18 = arith.addf %16, %17 : vector<32x256xf32>
    %c0_9 = arith.constant 0 : index
    %c0_10 = arith.constant 0 : index
    %19 = vector.load %arg5[%c0_9, %c0_10] : memref<32x1xf32, #tpu.memory_space<vmem>>, vector<32x1xf32>
    %20 = vector.broadcast %19 : vector<32x1xf32> to vector<32x256xf32>
    %21 = arith.addf %18, %20 : vector<32x256xf32>
    %cst_11 = arith.constant 0.000000e+00 : f32
    %22 = vector.broadcast %cst_11 : f32 to vector<32x256xf32>
    %23 = arith.maximumf %21, %22 : vector<32x256xf32>
    %c0_12 = arith.constant 0 : index
    %c0_13 = arith.constant 0 : index
    %24 = vector.load %arg6[%c0_12, %c0_13] : memref<1x256xi32, #tpu.memory_space<vmem>>, vector<1x256xi32>
    %c0_i32_14 = arith.constant 0 : i32
    %25 = vector.broadcast %c0_i32_14 : i32 to vector<1x256xi32>
    %26 = arith.cmpi sge, %24, %25 : vector<1x256xi32>
    %27 = arith.index_cast %arg0 : i32 to index
    %28 = memref.load %arg1[%27] : memref<1xi32, #tpu.memory_space<smem>>
    %c256_i32 = arith.constant 256 : i32
    %29 = arith.muli %28, %c256_i32 : i32
    %30 = vector.broadcast %29 : i32 to vector<1x256xi32>
    %31 = arith.subi %24, %30 : vector<1x256xi32>
    %c0_i32_15 = arith.constant 0 : i32
    %32 = vector.broadcast %c0_i32_15 : i32 to vector<1x256xi32>
    %33 = arith.select %26, %31, %32 : vector<1x256xi1>, vector<1x256xi32>
    %cst_16 = arith.constant 0xFF800000 : f32
    %34 = vector.shape_cast %26 : vector<1x256xi1> to vector<1x256xi1>
    %35 = vector.broadcast %34 : vector<1x256xi1> to vector<32x256xi1>
    %36 = vector.broadcast %cst_16 : f32 to vector<32x256xf32>
    %37 = arith.select %35, %23, %36 : vector<32x256xi1>, vector<32x256xf32>
    %c0_17 = arith.constant 0 : index
    %c256 = arith.constant 256 : index
    %38 = vector.load %arg8[%c0_17, %c256] : memref<32x512xf32, #tpu.memory_space<vmem>>, vector<32x256xf32>
    tpu.vector_store %arg8[%c0_17, %c256], %37 {strides = array<i32>} : memref<32x512xf32, #tpu.memory_space<vmem>>, vector<32x256xf32>,
    %c0_18 = arith.constant 0 : index
    %c0_19 = arith.constant 0 : index
    %39 = vector.load %arg8[%c0_18, %c0_19] : memref<32x512xf32, #tpu.memory_space<vmem>>, vector<32x512xf32>
    %40 = tpu.iota {dimensions = array<i32: 1>} : vector<1x512xi32>
    %c0_i32_20 = arith.constant 0 : i32
    %41 = vector.broadcast %c0_i32_20 : i32 to vector<1x256xi32>
    %42 = arith.extui %26 : vector<1x256xi1> to vector<1x256xi32>
    %43 = tpu.concatenate %41, %42 in 1 : vector<1x256xi32>, vector<1x256xi32> -> vector<1x512xi32>
    %44 = tpu.concatenate %41, %33 in 1 : vector<1x256xi32>, vector<1x256xi32> -> vector<1x512xi32>
    %c0_i32_21 = arith.constant 0 : i32
    %45 = vector.broadcast %c0_i32_21 : i32 to vector<1x512xi32>
    %46 = arith.cmpi ne, %43, %45 : vector<1x512xi32>
    %47 = arith.subi %40, %44 : vector<1x512xi32>
    %c0_i32_22 = arith.constant 0 : i32
    %48 = vector.broadcast %c0_i32_22 : i32 to vector<1x512xi32>
    %49 = arith.select %46, %47, %48 : vector<1x512xi1>, vector<1x512xi32>
    %c0_i32_23 = arith.constant 0 : i32
    %50 = vector.broadcast %c0_i32_23 : i32 to vector<1x512xi32>
    %51 = arith.cmpi ne, %43, %50 : vector<1x512xi32>
    %c1_i32_24 = arith.constant 1 : i32
    %52 = vector.broadcast %c1_i32_24 : i32 to vector<1x512xi32>
    %53 = arith.andi %49, %52 : vector<1x512xi32>
    %c0_i32_25 = arith.constant 0 : i32
    %54 = vector.broadcast %c0_i32_25 : i32 to vector<1x512xi32>
    %55 = arith.cmpi ne, %53, %54 : vector<1x512xi32>
    %56 = arith.andi %51, %55 : vector<1x512xi1>
    %57 = arith.extui %56 : vector<1x512xi1> to vector<1x512xi32>
    %c511_i32 = arith.constant 511 : i32
    %58 = tpu.dynamic_rotate %39 by %c511_i32 dim 1 : vector<32x512xf32>, i32 -> vector<32x512xf32>
    %c511_i32_26 = arith.constant 511 : i32
    %59 = vector.broadcast %c511_i32_26 : i32 to vector<1x512xi32>
    %60 = arith.cmpi slt, %40, %59 : vector<1x512xi32>
    %cst_27 = arith.constant 0xFF800000 : f32
    %61 = vector.shape_cast %60 : vector<1x512xi1> to vector<1x512xi1>
    %62 = vector.broadcast %61 : vector<1x512xi1> to vector<32x512xi1>
    %63 = vector.broadcast %cst_27 : f32 to vector<32x512xf32>
    %64 = arith.select %62, %58, %63 : vector<32x512xi1>, vector<32x512xf32>
    %c511_i32_28 = arith.constant 511 : i32
    %65 = tpu.dynamic_rotate %49 by %c511_i32_28 dim 1 : vector<1x512xi32>, i32 -> vector<1x512xi32>
    %c511_i32_29 = arith.constant 511 : i32
    %66 = vector.broadcast %c511_i32_29 : i32 to vector<1x512xi32>
    %67 = arith.cmpi slt, %40, %66 : vector<1x512xi32>
    %c0_i32_30 = arith.constant 0 : i32
    %68 = vector.broadcast %c0_i32_30 : i32 to vector<1x512xi32>
    %69 = arith.select %67, %65, %68 : vector<1x512xi1>, vector<1x512xi32>
    %c511_i32_31 = arith.constant 511 : i32
    %70 = tpu.dynamic_rotate %57 by %c511_i32_31 dim 1 : vector<1x512xi32>, i32 -> vector<1x512xi32>
    %c511_i32_32 = arith.constant 511 : i32
    %71 = vector.broadcast %c511_i32_32 : i32 to vector<1x512xi32>
    %72 = arith.cmpi slt, %40, %71 : vector<1x512xi32>
    %c0_i32_33 = arith.constant 0 : i32
    %73 = vector.broadcast %c0_i32_33 : i32 to vector<1x512xi32>
    %74 = arith.select %72, %70, %73 : vector<1x512xi1>, vector<1x512xi32>
    %c0_i32_34 = arith.constant 0 : i32
    %75 = vector.broadcast %c0_i32_34 : i32 to vector<1x512xi32>
    %76 = arith.cmpi ne, %43, %75 : vector<1x512xi32>
    %c0_i32_35 = arith.constant 0 : i32
    %77 = vector.broadcast %c0_i32_35 : i32 to vector<1x512xi32>
    %78 = arith.cmpi eq, %57, %77 : vector<1x512xi32>
    %79 = arith.andi %76, %78 : vector<1x512xi1>
    %c0_i32_36 = arith.constant 0 : i32
    %80 = vector.broadcast %c0_i32_36 : i32 to vector<1x512xi32>
    %81 = arith.cmpi ne, %74, %80 : vector<1x512xi32>
    %cst_37 = arith.constant 0xFF800000 : f32
    %82 = vector.shape_cast %79 : vector<1x512xi1> to vector<1x512xi1>
    %83 = vector.broadcast %82 : vector<1x512xi1> to vector<32x512xi1>
    %84 = vector.broadcast %cst_37 : f32 to vector<32x512xf32>
    %85 = arith.select %83, %39, %84 : vector<32x512xi1>, vector<32x512xf32>
    %cst_38 = arith.constant 0xFF800000 : f32
    %86 = vector.shape_cast %81 : vector<1x512xi1> to vector<1x512xi1>
    %87 = vector.broadcast %86 : vector<1x512xi1> to vector<32x512xi1>
    %88 = vector.broadcast %cst_38 : f32 to vector<32x512xf32>
    %89 = arith.select %87, %64, %88 : vector<32x512xi1>, vector<32x512xf32>
    %90 = arith.maximumf %85, %89 : vector<32x512xf32>
    %c1_i32_39 = arith.constant 1 : i32
    %91 = vector.broadcast %c1_i32_39 : i32 to vector<1x512xi32>
    %92 = arith.subi %69, %91 : vector<1x512xi32>
    %c0_i32_40 = arith.constant 0 : i32
    %93 = vector.broadcast %c0_i32_40 : i32 to vector<1x512xi32>
    %94 = arith.select %81, %92, %93 : vector<1x512xi1>, vector<1x512xi32>
    %95 = arith.select %79, %49, %94 : vector<1x512xi1>, vector<1x512xi32>
    %96 = arith.ori %79, %81 : vector<1x512xi1>
    %97 = arith.extui %96 : vector<1x512xi1> to vector<1x512xi32>
    %c0_i32_41 = arith.constant 0 : i32
    %98 = vector.broadcast %c0_i32_41 : i32 to vector<1x512xi32>
    %99 = arith.cmpi ne, %97, %98 : vector<1x512xi32>
    %c2_i32 = arith.constant 2 : i32
    %100 = vector.broadcast %c2_i32 : i32 to vector<1x512xi32>
    %101 = arith.andi %95, %100 : vector<1x512xi32>
    %c0_i32_42 = arith.constant 0 : i32
    %102 = vector.broadcast %c0_i32_42 : i32 to vector<1x512xi32>
    %103 = arith.cmpi ne, %101, %102 : vector<1x512xi32>
    %104 = arith.andi %99, %103 : vector<1x512xi1>
    %105 = arith.extui %104 : vector<1x512xi1> to vector<1x512xi32>
    %c510_i32 = arith.constant 510 : i32
    %106 = tpu.dynamic_rotate %90 by %c510_i32 dim 1 : vector<32x512xf32>, i32 -> vector<32x512xf32>
    %c510_i32_43 = arith.constant 510 : i32
    %107 = vector.broadcast %c510_i32_43 : i32 to vector<1x512xi32>
    %108 = arith.cmpi slt, %40, %107 : vector<1x512xi32>
    %cst_44 = arith.constant 0xFF800000 : f32
    %109 = vector.shape_cast %108 : vector<1x512xi1> to vector<1x512xi1>
    %110 = vector.broadcast %109 : vector<1x512xi1> to vector<32x512xi1>
    %111 = vector.broadcast %cst_44 : f32 to vector<32x512xf32>
    %112 = arith.select %110, %106, %111 : vector<32x512xi1>, vector<32x512xf32>
    %c510_i32_45 = arith.constant 510 : i32
    %113 = tpu.dynamic_rotate %95 by %c510_i32_45 dim 1 : vector<1x512xi32>, i32 -> vector<1x512xi32>
    %c510_i32_46 = arith.constant 510 : i32
    %114 = vector.broadcast %c510_i32_46 : i32 to vector<1x512xi32>
    %115 = arith.cmpi slt, %40, %114 : vector<1x512xi32>
    %c0_i32_47 = arith.constant 0 : i32
    %116 = vector.broadcast %c0_i32_47 : i32 to vector<1x512xi32>
    %117 = arith.select %115, %113, %116 : vector<1x512xi1>, vector<1x512xi32>
    %c510_i32_48 = arith.constant 510 : i32
    %118 = tpu.dynamic_rotate %105 by %c510_i32_48 dim 1 : vector<1x512xi32>, i32 -> vector<1x512xi32>
    %c510_i32_49 = arith.constant 510 : i32
    %119 = vector.broadcast %c510_i32_49 : i32 to vector<1x512xi32>
    %120 = arith.cmpi slt, %40, %119 : vector<1x512xi32>
    %c0_i32_50 = arith.constant 0 : i32
    %121 = vector.broadcast %c0_i32_50 : i32 to vector<1x512xi32>
    %122 = arith.select %120, %118, %121 : vector<1x512xi1>, vector<1x512xi32>
    %c0_i32_51 = arith.constant 0 : i32
    %123 = vector.broadcast %c0_i32_51 : i32 to vector<1x512xi32>
    %124 = arith.cmpi ne, %97, %123 : vector<1x512xi32>
    %c0_i32_52 = arith.constant 0 : i32
    %125 = vector.broadcast %c0_i32_52 : i32 to vector<1x512xi32>
    %126 = arith.cmpi eq, %105, %125 : vector<1x512xi32>
    %127 = arith.andi %124, %126 : vector<1x512xi1>
    %c0_i32_53 = arith.constant 0 : i32
    %128 = vector.broadcast %c0_i32_53 : i32 to vector<1x512xi32>
    %129 = arith.cmpi ne, %122, %128 : vector<1x512xi32>
    %cst_54 = arith.constant 0xFF800000 : f32
    %130 = vector.shape_cast %127 : vector<1x512xi1> to vector<1x512xi1>
    %131 = vector.broadcast %130 : vector<1x512xi1> to vector<32x512xi1>
    %132 = vector.broadcast %cst_54 : f32 to vector<32x512xf32>
    %133 = arith.select %131, %90, %132 : vector<32x512xi1>, vector<32x512xf32>
    %cst_55 = arith.constant 0xFF800000 : f32
    %134 = vector.shape_cast %129 : vector<1x512xi1> to vector<1x512xi1>
    %135 = vector.broadcast %134 : vector<1x512xi1> to vector<32x512xi1>
    %136 = vector.broadcast %cst_55 : f32 to vector<32x512xf32>
    %137 = arith.select %135, %112, %136 : vector<32x512xi1>, vector<32x512xf32>
    %138 = arith.maximumf %133, %137 : vector<32x512xf32>
    %c2_i32_56 = arith.constant 2 : i32
    %139 = vector.broadcast %c2_i32_56 : i32 to vector<1x512xi32>
    %140 = arith.subi %117, %139 : vector<1x512xi32>
    %c0_i32_57 = arith.constant 0 : i32
    %141 = vector.broadcast %c0_i32_57 : i32 to vector<1x512xi32>
    %142 = arith.select %129, %140, %141 : vector<1x512xi1>, vector<1x512xi32>
    %143 = arith.select %127, %95, %142 : vector<1x512xi1>, vector<1x512xi32>
    %144 = arith.ori %127, %129 : vector<1x512xi1>
    %145 = arith.extui %144 : vector<1x512xi1> to vector<1x512xi32>
    %c0_i32_58 = arith.constant 0 : i32
    %146 = vector.broadcast %c0_i32_58 : i32 to vector<1x512xi32>
    %147 = arith.cmpi ne, %145, %146 : vector<1x512xi32>
    %c4_i32 = arith.constant 4 : i32
    %148 = vector.broadcast %c4_i32 : i32 to vector<1x512xi32>
    %149 = arith.andi %143, %148 : vector<1x512xi32>
    %c0_i32_59 = arith.constant 0 : i32
    %150 = vector.broadcast %c0_i32_59 : i32 to vector<1x512xi32>
    %151 = arith.cmpi ne, %149, %150 : vector<1x512xi32>
    %152 = arith.andi %147, %151 : vector<1x512xi1>
    %153 = arith.extui %152 : vector<1x512xi1> to vector<1x512xi32>
    %c508_i32 = arith.constant 508 : i32
    %154 = tpu.dynamic_rotate %138 by %c508_i32 dim 1 : vector<32x512xf32>, i32 -> vector<32x512xf32>
    %c508_i32_60 = arith.constant 508 : i32
    %155 = vector.broadcast %c508_i32_60 : i32 to vector<1x512xi32>
    %156 = arith.cmpi slt, %40, %155 : vector<1x512xi32>
    %cst_61 = arith.constant 0xFF800000 : f32
    %157 = vector.shape_cast %156 : vector<1x512xi1> to vector<1x512xi1>
    %158 = vector.broadcast %157 : vector<1x512xi1> to vector<32x512xi1>
    %159 = vector.broadcast %cst_61 : f32 to vector<32x512xf32>
    %160 = arith.select %158, %154, %159 : vector<32x512xi1>, vector<32x512xf32>
    %c508_i32_62 = arith.constant 508 : i32
    %161 = tpu.dynamic_rotate %143 by %c508_i32_62 dim 1 : vector<1x512xi32>, i32 -> vector<1x512xi32>
    %c508_i32_63 = arith.constant 508 : i32
    %162 = vector.broadcast %c508_i32_63 : i32 to vector<1x512xi32>
    %163 = arith.cmpi slt, %40, %162 : vector<1x512xi32>
    %c0_i32_64 = arith.constant 0 : i32
    %164 = vector.broadcast %c0_i32_64 : i32 to vector<1x512xi32>
    %165 = arith.select %163, %161, %164 : vector<1x512xi1>, vector<1x512xi32>
    %c508_i32_65 = arith.constant 508 : i32
    %166 = tpu.dynamic_rotate %153 by %c508_i32_65 dim 1 : vector<1x512xi32>, i32 -> vector<1x512xi32>
    %c508_i32_66 = arith.constant 508 : i32
    %167 = vector.broadcast %c508_i32_66 : i32 to vector<1x512xi32>
    %168 = arith.cmpi slt, %40, %167 : vector<1x512xi32>
    %c0_i32_67 = arith.constant 0 : i32
    %169 = vector.broadcast %c0_i32_67 : i32 to vector<1x512xi32>
    %170 = arith.select %168, %166, %169 : vector<1x512xi1>, vector<1x512xi32>
    %c0_i32_68 = arith.constant 0 : i32
    %171 = vector.broadcast %c0_i32_68 : i32 to vector<1x512xi32>
    %172 = arith.cmpi ne, %145, %171 : vector<1x512xi32>
    %c0_i32_69 = arith.constant 0 : i32
    %173 = vector.broadcast %c0_i32_69 : i32 to vector<1x512xi32>
    %174 = arith.cmpi eq, %153, %173 : vector<1x512xi32>
    %175 = arith.andi %172, %174 : vector<1x512xi1>
    %c0_i32_70 = arith.constant 0 : i32
    %176 = vector.broadcast %c0_i32_70 : i32 to vector<1x512xi32>
    %177 = arith.cmpi ne, %170, %176 : vector<1x512xi32>
    %cst_71 = arith.constant 0xFF800000 : f32
    %178 = vector.shape_cast %175 : vector<1x512xi1> to vector<1x512xi1>
    %179 = vector.broadcast %178 : vector<1x512xi1> to vector<32x512xi1>
    %180 = vector.broadcast %cst_71 : f32 to vector<32x512xf32>
    %181 = arith.select %179, %138, %180 : vector<32x512xi1>, vector<32x512xf32>
    %cst_72 = arith.constant 0xFF800000 : f32
    %182 = vector.shape_cast %177 : vector<1x512xi1> to vector<1x512xi1>
    %183 = vector.broadcast %182 : vector<1x512xi1> to vector<32x512xi1>
    %184 = vector.broadcast %cst_72 : f32 to vector<32x512xf32>
    %185 = arith.select %183, %160, %184 : vector<32x512xi1>, vector<32x512xf32>
    %186 = arith.maximumf %181, %185 : vector<32x512xf32>
    %c4_i32_73 = arith.constant 4 : i32
    %187 = vector.broadcast %c4_i32_73 : i32 to vector<1x512xi32>
    %188 = arith.subi %165, %187 : vector<1x512xi32>
    %c0_i32_74 = arith.constant 0 : i32
    %189 = vector.broadcast %c0_i32_74 : i32 to vector<1x512xi32>
    %190 = arith.select %177, %188, %189 : vector<1x512xi1>, vector<1x512xi32>
    %191 = arith.select %175, %143, %190 : vector<1x512xi1>, vector<1x512xi32>
    %192 = arith.ori %175, %177 : vector<1x512xi1>
    %193 = arith.extui %192 : vector<1x512xi1> to vector<1x512xi32>
    %c0_i32_75 = arith.constant 0 : i32
    %194 = vector.broadcast %c0_i32_75 : i32 to vector<1x512xi32>
    %195 = arith.cmpi ne, %193, %194 : vector<1x512xi32>
    %c8_i32 = arith.constant 8 : i32
    %196 = vector.broadcast %c8_i32 : i32 to vector<1x512xi32>
    %197 = arith.andi %191, %196 : vector<1x512xi32>
    %c0_i32_76 = arith.constant 0 : i32
    %198 = vector.broadcast %c0_i32_76 : i32 to vector<1x512xi32>
    %199 = arith.cmpi ne, %197, %198 : vector<1x512xi32>
    %200 = arith.andi %195, %199 : vector<1x512xi1>
    %201 = arith.extui %200 : vector<1x512xi1> to vector<1x512xi32>
    %c504_i32 = arith.constant 504 : i32
    %202 = tpu.dynamic_rotate %186 by %c504_i32 dim 1 : vector<32x512xf32>, i32 -> vector<32x512xf32>
    %c504_i32_77 = arith.constant 504 : i32
    %203 = vector.broadcast %c504_i32_77 : i32 to vector<1x512xi32>
    %204 = arith.cmpi slt, %40, %203 : vector<1x512xi32>
    %cst_78 = arith.constant 0xFF800000 : f32
    %205 = vector.shape_cast %204 : vector<1x512xi1> to vector<1x512xi1>
    %206 = vector.broadcast %205 : vector<1x512xi1> to vector<32x512xi1>
    %207 = vector.broadcast %cst_78 : f32 to vector<32x512xf32>
    %208 = arith.select %206, %202, %207 : vector<32x512xi1>, vector<32x512xf32>
    %c504_i32_79 = arith.constant 504 : i32
    %209 = tpu.dynamic_rotate %191 by %c504_i32_79 dim 1 : vector<1x512xi32>, i32 -> vector<1x512xi32>
    %c504_i32_80 = arith.constant 504 : i32
    %210 = vector.broadcast %c504_i32_80 : i32 to vector<1x512xi32>
    %211 = arith.cmpi slt, %40, %210 : vector<1x512xi32>
    %c0_i32_81 = arith.constant 0 : i32
    %212 = vector.broadcast %c0_i32_81 : i32 to vector<1x512xi32>
    %213 = arith.select %211, %209, %212 : vector<1x512xi1>, vector<1x512xi32>
    %c504_i32_82 = arith.constant 504 : i32
    %214 = tpu.dynamic_rotate %201 by %c504_i32_82 dim 1 : vector<1x512xi32>, i32 -> vector<1x512xi32>
    %c504_i32_83 = arith.constant 504 : i32
    %215 = vector.broadcast %c504_i32_83 : i32 to vector<1x512xi32>
    %216 = arith.cmpi slt, %40, %215 : vector<1x512xi32>
    %c0_i32_84 = arith.constant 0 : i32
    %217 = vector.broadcast %c0_i32_84 : i32 to vector<1x512xi32>
    %218 = arith.select %216, %214, %217 : vector<1x512xi1>, vector<1x512xi32>
    %c0_i32_85 = arith.constant 0 : i32
    %219 = vector.broadcast %c0_i32_85 : i32 to vector<1x512xi32>
    %220 = arith.cmpi ne, %193, %219 : vector<1x512xi32>
    %c0_i32_86 = arith.constant 0 : i32
    %221 = vector.broadcast %c0_i32_86 : i32 to vector<1x512xi32>
    %222 = arith.cmpi eq, %201, %221 : vector<1x512xi32>
    %223 = arith.andi %220, %222 : vector<1x512xi1>
    %c0_i32_87 = arith.constant 0 : i32
    %224 = vector.broadcast %c0_i32_87 : i32 to vector<1x512xi32>
    %225 = arith.cmpi ne, %218, %224 : vector<1x512xi32>
    %cst_88 = arith.constant 0xFF800000 : f32
    %226 = vector.shape_cast %223 : vector<1x512xi1> to vector<1x512xi1>
    %227 = vector.broadcast %226 : vector<1x512xi1> to vector<32x512xi1>
    %228 = vector.broadcast %cst_88 : f32 to vector<32x512xf32>
    %229 = arith.select %227, %186, %228 : vector<32x512xi1>, vector<32x512xf32>
    %cst_89 = arith.constant 0xFF800000 : f32
    %230 = vector.shape_cast %225 : vector<1x512xi1> to vector<1x512xi1>
    %231 = vector.broadcast %230 : vector<1x512xi1> to vector<32x512xi1>
    %232 = vector.broadcast %cst_89 : f32 to vector<32x512xf32>
    %233 = arith.select %231, %208, %232 : vector<32x512xi1>, vector<32x512xf32>
    %234 = arith.maximumf %229, %233 : vector<32x512xf32>
    %c8_i32_90 = arith.constant 8 : i32
    %235 = vector.broadcast %c8_i32_90 : i32 to vector<1x512xi32>
    %236 = arith.subi %213, %235 : vector<1x512xi32>
    %c0_i32_91 = arith.constant 0 : i32
    %237 = vector.broadcast %c0_i32_91 : i32 to vector<1x512xi32>
    %238 = arith.select %225, %236, %237 : vector<1x512xi1>, vector<1x512xi32>
    %239 = arith.select %223, %191, %238 : vector<1x512xi1>, vector<1x512xi32>
    %240 = arith.ori %223, %225 : vector<1x512xi1>
    %241 = arith.extui %240 : vector<1x512xi1> to vector<1x512xi32>
    %c0_i32_92 = arith.constant 0 : i32
    %242 = vector.broadcast %c0_i32_92 : i32 to vector<1x512xi32>
    %243 = arith.cmpi ne, %241, %242 : vector<1x512xi32>
    %c16_i32 = arith.constant 16 : i32
    %244 = vector.broadcast %c16_i32 : i32 to vector<1x512xi32>
    %245 = arith.andi %239, %244 : vector<1x512xi32>
    %c0_i32_93 = arith.constant 0 : i32
    %246 = vector.broadcast %c0_i32_93 : i32 to vector<1x512xi32>
    %247 = arith.cmpi ne, %245, %246 : vector<1x512xi32>
    %248 = arith.andi %243, %247 : vector<1x512xi1>
    %249 = arith.extui %248 : vector<1x512xi1> to vector<1x512xi32>
    %c496_i32 = arith.constant 496 : i32
    %250 = tpu.dynamic_rotate %234 by %c496_i32 dim 1 : vector<32x512xf32>, i32 -> vector<32x512xf32>
    %c496_i32_94 = arith.constant 496 : i32
    %251 = vector.broadcast %c496_i32_94 : i32 to vector<1x512xi32>
    %252 = arith.cmpi slt, %40, %251 : vector<1x512xi32>
    %cst_95 = arith.constant 0xFF800000 : f32
    %253 = vector.shape_cast %252 : vector<1x512xi1> to vector<1x512xi1>
    %254 = vector.broadcast %253 : vector<1x512xi1> to vector<32x512xi1>
    %255 = vector.broadcast %cst_95 : f32 to vector<32x512xf32>
    %256 = arith.select %254, %250, %255 : vector<32x512xi1>, vector<32x512xf32>
    %c496_i32_96 = arith.constant 496 : i32
    %257 = tpu.dynamic_rotate %239 by %c496_i32_96 dim 1 : vector<1x512xi32>, i32 -> vector<1x512xi32>
    %c496_i32_97 = arith.constant 496 : i32
    %258 = vector.broadcast %c496_i32_97 : i32 to vector<1x512xi32>
    %259 = arith.cmpi slt, %40, %258 : vector<1x512xi32>
    %c0_i32_98 = arith.constant 0 : i32
    %260 = vector.broadcast %c0_i32_98 : i32 to vector<1x512xi32>
    %261 = arith.select %259, %257, %260 : vector<1x512xi1>, vector<1x512xi32>
    %c496_i32_99 = arith.constant 496 : i32
    %262 = tpu.dynamic_rotate %249 by %c496_i32_99 dim 1 : vector<1x512xi32>, i32 -> vector<1x512xi32>
    %c496_i32_100 = arith.constant 496 : i32
    %263 = vector.broadcast %c496_i32_100 : i32 to vector<1x512xi32>
    %264 = arith.cmpi slt, %40, %263 : vector<1x512xi32>
    %c0_i32_101 = arith.constant 0 : i32
    %265 = vector.broadcast %c0_i32_101 : i32 to vector<1x512xi32>
    %266 = arith.select %264, %262, %265 : vector<1x512xi1>, vector<1x512xi32>
    %c0_i32_102 = arith.constant 0 : i32
    %267 = vector.broadcast %c0_i32_102 : i32 to vector<1x512xi32>
    %268 = arith.cmpi ne, %241, %267 : vector<1x512xi32>
    %c0_i32_103 = arith.constant 0 : i32
    %269 = vector.broadcast %c0_i32_103 : i32 to vector<1x512xi32>
    %270 = arith.cmpi eq, %249, %269 : vector<1x512xi32>
    %271 = arith.andi %268, %270 : vector<1x512xi1>
    %c0_i32_104 = arith.constant 0 : i32
    %272 = vector.broadcast %c0_i32_104 : i32 to vector<1x512xi32>
    %273 = arith.cmpi ne, %266, %272 : vector<1x512xi32>
    %cst_105 = arith.constant 0xFF800000 : f32
    %274 = vector.shape_cast %271 : vector<1x512xi1> to vector<1x512xi1>
    %275 = vector.broadcast %274 : vector<1x512xi1> to vector<32x512xi1>
    %276 = vector.broadcast %cst_105 : f32 to vector<32x512xf32>
    %277 = arith.select %275, %234, %276 : vector<32x512xi1>, vector<32x512xf32>
    %cst_106 = arith.constant 0xFF800000 : f32
    %278 = vector.shape_cast %273 : vector<1x512xi1> to vector<1x512xi1>
    %279 = vector.broadcast %278 : vector<1x512xi1> to vector<32x512xi1>
    %280 = vector.broadcast %cst_106 : f32 to vector<32x512xf32>
    %281 = arith.select %279, %256, %280 : vector<32x512xi1>, vector<32x512xf32>
    %282 = arith.maximumf %277, %281 : vector<32x512xf32>
    %c16_i32_107 = arith.constant 16 : i32
    %283 = vector.broadcast %c16_i32_107 : i32 to vector<1x512xi32>
    %284 = arith.subi %261, %283 : vector<1x512xi32>
    %c0_i32_108 = arith.constant 0 : i32
    %285 = vector.broadcast %c0_i32_108 : i32 to vector<1x512xi32>
    %286 = arith.select %273, %284, %285 : vector<1x512xi1>, vector<1x512xi32>
    %287 = arith.select %271, %239, %286 : vector<1x512xi1>, vector<1x512xi32>
    %288 = arith.ori %271, %273 : vector<1x512xi1>
    %289 = arith.extui %288 : vector<1x512xi1> to vector<1x512xi32>
    %c0_i32_109 = arith.constant 0 : i32
    %290 = vector.broadcast %c0_i32_109 : i32 to vector<1x512xi32>
    %291 = arith.cmpi ne, %289, %290 : vector<1x512xi32>
    %c32_i32 = arith.constant 32 : i32
    %292 = vector.broadcast %c32_i32 : i32 to vector<1x512xi32>
    %293 = arith.andi %287, %292 : vector<1x512xi32>
    %c0_i32_110 = arith.constant 0 : i32
    %294 = vector.broadcast %c0_i32_110 : i32 to vector<1x512xi32>
    %295 = arith.cmpi ne, %293, %294 : vector<1x512xi32>
    %296 = arith.andi %291, %295 : vector<1x512xi1>
    %297 = arith.extui %296 : vector<1x512xi1> to vector<1x512xi32>
    %c480_i32 = arith.constant 480 : i32
    %298 = tpu.dynamic_rotate %282 by %c480_i32 dim 1 : vector<32x512xf32>, i32 -> vector<32x512xf32>
    %c480_i32_111 = arith.constant 480 : i32
    %299 = vector.broadcast %c480_i32_111 : i32 to vector<1x512xi32>
    %300 = arith.cmpi slt, %40, %299 : vector<1x512xi32>
    %cst_112 = arith.constant 0xFF800000 : f32
    %301 = vector.shape_cast %300 : vector<1x512xi1> to vector<1x512xi1>
    %302 = vector.broadcast %301 : vector<1x512xi1> to vector<32x512xi1>
    %303 = vector.broadcast %cst_112 : f32 to vector<32x512xf32>
    %304 = arith.select %302, %298, %303 : vector<32x512xi1>, vector<32x512xf32>
    %c480_i32_113 = arith.constant 480 : i32
    %305 = tpu.dynamic_rotate %287 by %c480_i32_113 dim 1 : vector<1x512xi32>, i32 -> vector<1x512xi32>
    %c480_i32_114 = arith.constant 480 : i32
    %306 = vector.broadcast %c480_i32_114 : i32 to vector<1x512xi32>
    %307 = arith.cmpi slt, %40, %306 : vector<1x512xi32>
    %c0_i32_115 = arith.constant 0 : i32
    %308 = vector.broadcast %c0_i32_115 : i32 to vector<1x512xi32>
    %309 = arith.select %307, %305, %308 : vector<1x512xi1>, vector<1x512xi32>
    %c480_i32_116 = arith.constant 480 : i32
    %310 = tpu.dynamic_rotate %297 by %c480_i32_116 dim 1 : vector<1x512xi32>, i32 -> vector<1x512xi32>
    %c480_i32_117 = arith.constant 480 : i32
    %311 = vector.broadcast %c480_i32_117 : i32 to vector<1x512xi32>
    %312 = arith.cmpi slt, %40, %311 : vector<1x512xi32>
    %c0_i32_118 = arith.constant 0 : i32
    %313 = vector.broadcast %c0_i32_118 : i32 to vector<1x512xi32>
    %314 = arith.select %312, %310, %313 : vector<1x512xi1>, vector<1x512xi32>
    %c0_i32_119 = arith.constant 0 : i32
    %315 = vector.broadcast %c0_i32_119 : i32 to vector<1x512xi32>
    %316 = arith.cmpi ne, %289, %315 : vector<1x512xi32>
    %c0_i32_120 = arith.constant 0 : i32
    %317 = vector.broadcast %c0_i32_120 : i32 to vector<1x512xi32>
    %318 = arith.cmpi eq, %297, %317 : vector<1x512xi32>
    %319 = arith.andi %316, %318 : vector<1x512xi1>
    %c0_i32_121 = arith.constant 0 : i32
    %320 = vector.broadcast %c0_i32_121 : i32 to vector<1x512xi32>
    %321 = arith.cmpi ne, %314, %320 : vector<1x512xi32>
    %cst_122 = arith.constant 0xFF800000 : f32
    %322 = vector.shape_cast %319 : vector<1x512xi1> to vector<1x512xi1>
    %323 = vector.broadcast %322 : vector<1x512xi1> to vector<32x512xi1>
    %324 = vector.broadcast %cst_122 : f32 to vector<32x512xf32>
    %325 = arith.select %323, %282, %324 : vector<32x512xi1>, vector<32x512xf32>
    %cst_123 = arith.constant 0xFF800000 : f32
    %326 = vector.shape_cast %321 : vector<1x512xi1> to vector<1x512xi1>
    %327 = vector.broadcast %326 : vector<1x512xi1> to vector<32x512xi1>
    %328 = vector.broadcast %cst_123 : f32 to vector<32x512xf32>
    %329 = arith.select %327, %304, %328 : vector<32x512xi1>, vector<32x512xf32>
    %330 = arith.maximumf %325, %329 : vector<32x512xf32>
    %c32_i32_124 = arith.constant 32 : i32
    %331 = vector.broadcast %c32_i32_124 : i32 to vector<1x512xi32>
    %332 = arith.subi %309, %331 : vector<1x512xi32>
    %c0_i32_125 = arith.constant 0 : i32
    %333 = vector.broadcast %c0_i32_125 : i32 to vector<1x512xi32>
    %334 = arith.select %321, %332, %333 : vector<1x512xi1>, vector<1x512xi32>
    %335 = arith.select %319, %287, %334 : vector<1x512xi1>, vector<1x512xi32>
    %336 = arith.ori %319, %321 : vector<1x512xi1>
    %337 = arith.extui %336 : vector<1x512xi1> to vector<1x512xi32>
    %c0_i32_126 = arith.constant 0 : i32
    %338 = vector.broadcast %c0_i32_126 : i32 to vector<1x512xi32>
    %339 = arith.cmpi ne, %337, %338 : vector<1x512xi32>
    %c64_i32 = arith.constant 64 : i32
    %340 = vector.broadcast %c64_i32 : i32 to vector<1x512xi32>
    %341 = arith.andi %335, %340 : vector<1x512xi32>
    %c0_i32_127 = arith.constant 0 : i32
    %342 = vector.broadcast %c0_i32_127 : i32 to vector<1x512xi32>
    %343 = arith.cmpi ne, %341, %342 : vector<1x512xi32>
    %344 = arith.andi %339, %343 : vector<1x512xi1>
    %345 = arith.extui %344 : vector<1x512xi1> to vector<1x512xi32>
    %c448_i32 = arith.constant 448 : i32
    %346 = tpu.dynamic_rotate %330 by %c448_i32 dim 1 : vector<32x512xf32>, i32 -> vector<32x512xf32>
    %c448_i32_128 = arith.constant 448 : i32
    %347 = vector.broadcast %c448_i32_128 : i32 to vector<1x512xi32>
    %348 = arith.cmpi slt, %40, %347 : vector<1x512xi32>
    %cst_129 = arith.constant 0xFF800000 : f32
    %349 = vector.shape_cast %348 : vector<1x512xi1> to vector<1x512xi1>
    %350 = vector.broadcast %349 : vector<1x512xi1> to vector<32x512xi1>
    %351 = vector.broadcast %cst_129 : f32 to vector<32x512xf32>
    %352 = arith.select %350, %346, %351 : vector<32x512xi1>, vector<32x512xf32>
    %c448_i32_130 = arith.constant 448 : i32
    %353 = tpu.dynamic_rotate %335 by %c448_i32_130 dim 1 : vector<1x512xi32>, i32 -> vector<1x512xi32>
    %c448_i32_131 = arith.constant 448 : i32
    %354 = vector.broadcast %c448_i32_131 : i32 to vector<1x512xi32>
    %355 = arith.cmpi slt, %40, %354 : vector<1x512xi32>
    %c0_i32_132 = arith.constant 0 : i32
    %356 = vector.broadcast %c0_i32_132 : i32 to vector<1x512xi32>
    %357 = arith.select %355, %353, %356 : vector<1x512xi1>, vector<1x512xi32>
    %c448_i32_133 = arith.constant 448 : i32
    %358 = tpu.dynamic_rotate %345 by %c448_i32_133 dim 1 : vector<1x512xi32>, i32 -> vector<1x512xi32>
    %c448_i32_134 = arith.constant 448 : i32
    %359 = vector.broadcast %c448_i32_134 : i32 to vector<1x512xi32>
    %360 = arith.cmpi slt, %40, %359 : vector<1x512xi32>
    %c0_i32_135 = arith.constant 0 : i32
    %361 = vector.broadcast %c0_i32_135 : i32 to vector<1x512xi32>
    %362 = arith.select %360, %358, %361 : vector<1x512xi1>, vector<1x512xi32>
    %c0_i32_136 = arith.constant 0 : i32
    %363 = vector.broadcast %c0_i32_136 : i32 to vector<1x512xi32>
    %364 = arith.cmpi ne, %337, %363 : vector<1x512xi32>
    %c0_i32_137 = arith.constant 0 : i32
    %365 = vector.broadcast %c0_i32_137 : i32 to vector<1x512xi32>
    %366 = arith.cmpi eq, %345, %365 : vector<1x512xi32>
    %367 = arith.andi %364, %366 : vector<1x512xi1>
    %c0_i32_138 = arith.constant 0 : i32
    %368 = vector.broadcast %c0_i32_138 : i32 to vector<1x512xi32>
    %369 = arith.cmpi ne, %362, %368 : vector<1x512xi32>
    %cst_139 = arith.constant 0xFF800000 : f32
    %370 = vector.shape_cast %367 : vector<1x512xi1> to vector<1x512xi1>
    %371 = vector.broadcast %370 : vector<1x512xi1> to vector<32x512xi1>
    %372 = vector.broadcast %cst_139 : f32 to vector<32x512xf32>
    %373 = arith.select %371, %330, %372 : vector<32x512xi1>, vector<32x512xf32>
    %cst_140 = arith.constant 0xFF800000 : f32
    %374 = vector.shape_cast %369 : vector<1x512xi1> to vector<1x512xi1>
    %375 = vector.broadcast %374 : vector<1x512xi1> to vector<32x512xi1>
    %376 = vector.broadcast %cst_140 : f32 to vector<32x512xf32>
    %377 = arith.select %375, %352, %376 : vector<32x512xi1>, vector<32x512xf32>
    %378 = arith.maximumf %373, %377 : vector<32x512xf32>
    %c64_i32_141 = arith.constant 64 : i32
    %379 = vector.broadcast %c64_i32_141 : i32 to vector<1x512xi32>
    %380 = arith.subi %357, %379 : vector<1x512xi32>
    %c0_i32_142 = arith.constant 0 : i32
    %381 = vector.broadcast %c0_i32_142 : i32 to vector<1x512xi32>
    %382 = arith.select %369, %380, %381 : vector<1x512xi1>, vector<1x512xi32>
    %383 = arith.select %367, %335, %382 : vector<1x512xi1>, vector<1x512xi32>
    %384 = arith.ori %367, %369 : vector<1x512xi1>
    %385 = arith.extui %384 : vector<1x512xi1> to vector<1x512xi32>
    %c0_i32_143 = arith.constant 0 : i32
    %386 = vector.broadcast %c0_i32_143 : i32 to vector<1x512xi32>
    %387 = arith.cmpi ne, %385, %386 : vector<1x512xi32>
    %c128_i32 = arith.constant 128 : i32
    %388 = vector.broadcast %c128_i32 : i32 to vector<1x512xi32>
    %389 = arith.andi %383, %388 : vector<1x512xi32>
    %c0_i32_144 = arith.constant 0 : i32
    %390 = vector.broadcast %c0_i32_144 : i32 to vector<1x512xi32>
    %391 = arith.cmpi ne, %389, %390 : vector<1x512xi32>
    %392 = arith.andi %387, %391 : vector<1x512xi1>
    %393 = arith.extui %392 : vector<1x512xi1> to vector<1x512xi32>
    %c384_i32 = arith.constant 384 : i32
    %394 = tpu.dynamic_rotate %378 by %c384_i32 dim 1 : vector<32x512xf32>, i32 -> vector<32x512xf32>
    %c384_i32_145 = arith.constant 384 : i32
    %395 = vector.broadcast %c384_i32_145 : i32 to vector<1x512xi32>
    %396 = arith.cmpi slt, %40, %395 : vector<1x512xi32>
    %cst_146 = arith.constant 0xFF800000 : f32
    %397 = vector.shape_cast %396 : vector<1x512xi1> to vector<1x512xi1>
    %398 = vector.broadcast %397 : vector<1x512xi1> to vector<32x512xi1>
    %399 = vector.broadcast %cst_146 : f32 to vector<32x512xf32>
    %400 = arith.select %398, %394, %399 : vector<32x512xi1>, vector<32x512xf32>
    %c384_i32_147 = arith.constant 384 : i32
    %401 = tpu.dynamic_rotate %383 by %c384_i32_147 dim 1 : vector<1x512xi32>, i32 -> vector<1x512xi32>
    %c384_i32_148 = arith.constant 384 : i32
    %402 = vector.broadcast %c384_i32_148 : i32 to vector<1x512xi32>
    %403 = arith.cmpi slt, %40, %402 : vector<1x512xi32>
    %c0_i32_149 = arith.constant 0 : i32
    %404 = vector.broadcast %c0_i32_149 : i32 to vector<1x512xi32>
    %405 = arith.select %403, %401, %404 : vector<1x512xi1>, vector<1x512xi32>
    %c384_i32_150 = arith.constant 384 : i32
    %406 = tpu.dynamic_rotate %393 by %c384_i32_150 dim 1 : vector<1x512xi32>, i32 -> vector<1x512xi32>
    %c384_i32_151 = arith.constant 384 : i32
    %407 = vector.broadcast %c384_i32_151 : i32 to vector<1x512xi32>
    %408 = arith.cmpi slt, %40, %407 : vector<1x512xi32>
    %c0_i32_152 = arith.constant 0 : i32
    %409 = vector.broadcast %c0_i32_152 : i32 to vector<1x512xi32>
    %410 = arith.select %408, %406, %409 : vector<1x512xi1>, vector<1x512xi32>
    %c0_i32_153 = arith.constant 0 : i32
    %411 = vector.broadcast %c0_i32_153 : i32 to vector<1x512xi32>
    %412 = arith.cmpi ne, %385, %411 : vector<1x512xi32>
    %c0_i32_154 = arith.constant 0 : i32
    %413 = vector.broadcast %c0_i32_154 : i32 to vector<1x512xi32>
    %414 = arith.cmpi eq, %393, %413 : vector<1x512xi32>
    %415 = arith.andi %412, %414 : vector<1x512xi1>
    %c0_i32_155 = arith.constant 0 : i32
    %416 = vector.broadcast %c0_i32_155 : i32 to vector<1x512xi32>
    %417 = arith.cmpi ne, %410, %416 : vector<1x512xi32>
    %cst_156 = arith.constant 0xFF800000 : f32
    %418 = vector.shape_cast %415 : vector<1x512xi1> to vector<1x512xi1>
    %419 = vector.broadcast %418 : vector<1x512xi1> to vector<32x512xi1>
    %420 = vector.broadcast %cst_156 : f32 to vector<32x512xf32>
    %421 = arith.select %419, %378, %420 : vector<32x512xi1>, vector<32x512xf32>
    %cst_157 = arith.constant 0xFF800000 : f32
    %422 = vector.shape_cast %417 : vector<1x512xi1> to vector<1x512xi1>
    %423 = vector.broadcast %422 : vector<1x512xi1> to vector<32x512xi1>
    %424 = vector.broadcast %cst_157 : f32 to vector<32x512xf32>
    %425 = arith.select %423, %400, %424 : vector<32x512xi1>, vector<32x512xf32>
    %426 = arith.maximumf %421, %425 : vector<32x512xf32>
    %c128_i32_158 = arith.constant 128 : i32
    %427 = vector.broadcast %c128_i32_158 : i32 to vector<1x512xi32>
    %428 = arith.subi %405, %427 : vector<1x512xi32>
    %c0_i32_159 = arith.constant 0 : i32
    %429 = vector.broadcast %c0_i32_159 : i32 to vector<1x512xi32>
    %430 = arith.select %417, %428, %429 : vector<1x512xi1>, vector<1x512xi32>
    %431 = arith.select %415, %383, %430 : vector<1x512xi1>, vector<1x512xi32>
    %432 = arith.ori %415, %417 : vector<1x512xi1>
    %433 = arith.extui %432 : vector<1x512xi1> to vector<1x512xi32>
    %c0_i32_160 = arith.constant 0 : i32
    %434 = vector.broadcast %c0_i32_160 : i32 to vector<1x512xi32>
    %435 = arith.cmpi ne, %433, %434 : vector<1x512xi32>
    %c256_i32_161 = arith.constant 256 : i32
    %436 = vector.broadcast %c256_i32_161 : i32 to vector<1x512xi32>
    %437 = arith.andi %431, %436 : vector<1x512xi32>
    %c0_i32_162 = arith.constant 0 : i32
    %438 = vector.broadcast %c0_i32_162 : i32 to vector<1x512xi32>
    %439 = arith.cmpi ne, %437, %438 : vector<1x512xi32>
    %440 = arith.andi %435, %439 : vector<1x512xi1>
    %441 = arith.extui %440 : vector<1x512xi1> to vector<1x512xi32>
    %c256_i32_163 = arith.constant 256 : i32
    %442 = tpu.dynamic_rotate %426 by %c256_i32_163 dim 1 : vector<32x512xf32>, i32 -> vector<32x512xf32>
    %c256_i32_164 = arith.constant 256 : i32
    %443 = vector.broadcast %c256_i32_164 : i32 to vector<1x512xi32>
    %444 = arith.cmpi slt, %40, %443 : vector<1x512xi32>
    %cst_165 = arith.constant 0xFF800000 : f32
    %445 = vector.shape_cast %444 : vector<1x512xi1> to vector<1x512xi1>
    %446 = vector.broadcast %445 : vector<1x512xi1> to vector<32x512xi1>
    %447 = vector.broadcast %cst_165 : f32 to vector<32x512xf32>
    %448 = arith.select %446, %442, %447 : vector<32x512xi1>, vector<32x512xf32>
    %c256_i32_166 = arith.constant 256 : i32
    %449 = tpu.dynamic_rotate %441 by %c256_i32_166 dim 1 : vector<1x512xi32>, i32 -> vector<1x512xi32>
    %c256_i32_167 = arith.constant 256 : i32
    %450 = vector.broadcast %c256_i32_167 : i32 to vector<1x512xi32>
    %451 = arith.cmpi slt, %40, %450 : vector<1x512xi32>
    %c0_i32_168 = arith.constant 0 : i32
    %452 = vector.broadcast %c0_i32_168 : i32 to vector<1x512xi32>
    %453 = arith.select %451, %449, %452 : vector<1x512xi1>, vector<1x512xi32>
    %c0_i32_169 = arith.constant 0 : i32
    %454 = vector.broadcast %c0_i32_169 : i32 to vector<1x512xi32>
    %455 = arith.cmpi ne, %433, %454 : vector<1x512xi32>
    %c0_i32_170 = arith.constant 0 : i32
    %456 = vector.broadcast %c0_i32_170 : i32 to vector<1x512xi32>
    %457 = arith.cmpi eq, %441, %456 : vector<1x512xi32>
    %458 = arith.andi %455, %457 : vector<1x512xi1>
    %c0_i32_171 = arith.constant 0 : i32
    %459 = vector.broadcast %c0_i32_171 : i32 to vector<1x512xi32>
    %460 = arith.cmpi ne, %453, %459 : vector<1x512xi32>
    %cst_172 = arith.constant 0xFF800000 : f32
    %461 = vector.shape_cast %458 : vector<1x512xi1> to vector<1x512xi1>
    %462 = vector.broadcast %461 : vector<1x512xi1> to vector<32x512xi1>
    %463 = vector.broadcast %cst_172 : f32 to vector<32x512xf32>
    %464 = arith.select %462, %426, %463 : vector<32x512xi1>, vector<32x512xf32>
    %cst_173 = arith.constant 0xFF800000 : f32
    %465 = vector.shape_cast %460 : vector<1x512xi1> to vector<1x512xi1>
    %466 = vector.broadcast %465 : vector<1x512xi1> to vector<32x512xi1>
    %467 = vector.broadcast %cst_173 : f32 to vector<32x512xf32>
    %468 = arith.select %466, %448, %467 : vector<32x512xi1>, vector<32x512xf32>
    %469 = arith.maximumf %464, %468 : vector<32x512xf32>
    %c0_174 = arith.constant 0 : index
    %c0_175 = arith.constant 0 : index
    %470 = vector.load %arg7[%c0_174, %c0_175] : memref<32x256xf32, #tpu.memory_space<vmem>>, vector<32x256xf32>
    %471 = vector.extract_strided_slice %469 {offsets = [0, 0], sizes = [32, 256], strides = [1, 1]} : vector<32x512xf32> to vector<32x256xf32>
    %472 = arith.maximumf %470, %471 : vector<32x256xf32>
    %c0_176 = arith.constant 0 : index
    %c0_177 = arith.constant 0 : index
    %473 = vector.load %arg7[%c0_176, %c0_177] : memref<32x256xf32, #tpu.memory_space<vmem>>, vector<32x256xf32>
    tpu.vector_store %arg7[%c0_176, %c0_177], %472 {strides = array<i32>} : memref<32x256xf32, #tpu.memory_space<vmem>>, vector<32x256xf32>,
    return
  }
  func.func @transform_0(%arg0: i32, %arg1: memref<1xi32, #tpu.memory_space<smem>>) -> (i32, i32) {
    %c0_i32 = arith.constant 0 : i32
    %c0_i32_0 = arith.constant 0 : i32
    return %c0_i32, %arg0 : i32, i32
  }
  func.func @transform_1(%arg0: i32, %arg1: memref<1xi32, #tpu.memory_space<smem>>) -> (i32, i32) {
    %c0_i32 = arith.constant 0 : i32
    %c0_i32_0 = arith.constant 0 : i32
    return %c0_i32, %arg0 : i32, i32
  }
  func.func @transform_2(%arg0: i32, %arg1: memref<1xi32, #tpu.memory_space<smem>>) -> (i32, i32) {
    %c0_i32 = arith.constant 0 : i32
    %c0_i32_0 = arith.constant 0 : i32
    %c0_i32_1 = arith.constant 0 : i32
    return %c0_i32, %c0_i32_0 : i32, i32
  }
  func.func @transform_3(%arg0: i32, %arg1: memref<1xi32, #tpu.memory_space<smem>>) -> (i32, i32) {
    %c0_i32 = arith.constant 0 : i32
    %c0_i32_0 = arith.constant 0 : i32
    %c0_i32_1 = arith.constant 0 : i32
    return %c0_i32, %c0_i32_0 : i32, i32
  }
  func.func @transform_4(%arg0: i32, %arg1: memref<1xi32, #tpu.memory_space<smem>>) -> (i32, i32) {
    %c0_i32 = arith.constant 0 : i32
    %c0_i32_0 = arith.constant 0 : i32
    return %c0_i32, %arg0 : i32, i32
  }
  func.func @transform_5(%arg0: i32, %arg1: memref<1xi32, #tpu.memory_space<smem>>) -> (i32, i32) {
    %0 = arith.index_cast %arg0 : i32 to index
    %1 = memref.load %arg1[%0] : memref<1xi32, #tpu.memory_space<smem>>
    %c0_i32 = arith.constant 0 : i32
    %c0_i32_0 = arith.constant 0 : i32
    return %c0_i32, %1 : i32, i32
  }
}

</mosaic_0001>

<bundles_post_ra>
// kernel: _device_forward.2
= control target key start
LH: loop header
LB: loop body
LE: loop exit
PB: predicated region body
PF: predicated region fallthrough
CT: control target
= control target key end

     0   :  { %vm82_vm0 = vcmask 1042432   ;;  %vm1879_vm1 = vmmov 1   ;;  %v1880_v3 = vmov 0.0   ;;  %v182_v4 = vlaneseq  ;;  %s1882_s11 = smov 127   ;;  %s1885_s28 = smov 124   ;;  %s4227_s1 = inlined_call_operand.vmem [shape: f32[11,256], index: 1, kind: input, shape index: {}]   ;;  %s4228_s3 = inlined_call_operand.vmem [shape: f32[16,1], index: 3, kind: input, shape index: {}]   ;;  %s4229_s0 = inlined_call_operand.<no memory space> [shape: s32[1], index: 0, kind: input, shape index: {}]   ;;  %s4230_s4 = inlined_call_operand.vmem [shape: s32[1,256], index: 4, kind: input, shape index: {}]   ;;  %s4231_s2 = inlined_call_operand.vmem [shape: f32[16,11], index: 2, kind: input, shape index: {}]   ;;  %s4232_s6 = inlined_call_operand.vmem [shape: f32[16,256], index: 6, kind: output, shape index: {1}]   ;;  %s4233_s5 = inlined_call_operand.vmem [shape: f32[16,256], index: 5, kind: output, shape index: {0}]  }
   0x1   :  { %v60_v0 = vld [vmem:[%s4227_s1 + $0x8] sm:$0xff]  ;;  %v62_v1 = vld [vmem:[%s4227_s1 + $0x18] sm:$0x7]  ;;  %vm1931_vm2 = vmpackc.low %vm82_vm0, %vm1879_vm1  ;;  %153 = vmatprep.mubr.f32.mxu0 %v1880_v3  ;;  %159 = vmatprep.mubr.f32.mxu1 %v1880_v3  ;;  %s1807_s27 = sshll.u32 %s4229_s0, 8  ;;  %s1801_s30 = sshll.u32 %s4229_s0, 1  ;;  %v1881_v8 = vmov 0  }
   0x2   :  { %v1843_v5 = vpack.c.bf16 %v62_v1, %v60_v0  ;;  %v59_v6 = vld [vmem:[%s4227_s1] sm:$0xff]  ;;  %v61_v7 = vld [vmem:[%s4227_s1 + $0x10] sm:$0x7]  ;;  %1862 = vset.pattern.permute.xlu0 %v1881_v8  ;;  %280 = vrot.lane.b32.xlu1 %v1881_v8, %s1882_s11  ;;  %p29_p0 = scmp.lt.s32.totalorder %s1801_s30, 1  ;;  %v178_v11 = vstv %s1807_s27  ;;  %v183_v12 = vshrl.u32 %v182_v4, 7  ;;  %v1953_v13 = vand.u32 127, %v182_v4 }
   0x3   :  { %v1846_v9 = vpack.c.bf16 %v61_v7, %v59_v6  ;;  %v63_v10 = vld [vmem:[%s4228_s3] sm:$0xff]  ;;  %vm75_vm3 = vcmask 89088   ;;  %v58_v16 = vld [vmem:[%s4231_s2 + $0x8] sm:$0xff]  ;;  %v1883_v39 = vmov -inf|-inf   ;;  %s1886_s29 = smov 120  }
   0x4   :  { %1845 = vmatprep.subr.msk.bf16.mxu0 %vm1931_vm2, %v1843_v5  ;;  %1849 = vmatprep.subr.msk.bf16.mxu1 %vm1931_vm2, %v1843_v5  ;;  %v174_v14 = vld [vmem:[%s4230_s4] sm:$0x3]  ;;  %s4631_s30 = smov (!%p29_p0, %s1801_s30), 1  ;;  %v1972_v18 = vsub.s32 0, %v183_v12  ;;  %v188_v19 = vsub.s32 1, %v183_v12  ;;  %v1976_v21 = vadd.s32 384, %v1953_v13 }
   0x5   :  { %1848 = vmatpush1.bf16.msk.msra.mxu0 %vm1931_vm2, %v1846_v9  ;;  %1850 = vmatpush1.bf16.msk.msra.mxu1 %vm1931_vm2, %v1846_v9  ;;  %v57_v15 = vld [vmem:[%s4231_s2] sm:$0xff]  ;;  %vm175_vm4 = vcmp.ge.s32.totalorder %v174_v14, 0  ;;  %v179_v17 = vsub.s32 %v174_v14, %v178_v11  ;;  %s1802_s4 = sshll.u32 %s4631_s30, 3  ;;  %v64_v22 = vld [vmem:[%s4228_s3 + $0x8] sm:$0xff]  ;;  %v211_v27 = vadd.s32 256, %v1953_v13  ;;  %vm251_vm15 = vcmp.lt.s32.totalorder %v1953_v13, 127 }
   0x6   :  { %67 = vperm.xlu0 %1862, %v63_v10   ;;  %v181_v20 = vsel %vm175_vm4, 1, %v1881_v8  ;;  %s1986_s21 = scalar_lea.vmem %s4232_s6, %s1802_s4  ;;  %s1887_s30 = smov 112  }
   0x7   :  { %v180_v23 = vsel %vm175_vm4, %v179_v17, 0  ;;  %v1981_v24 = vrot.slane %v181_v20, %v188_v19  ;;  %53 = vst [vmem:[%s1986_s21] sm:$0xff] %v1880_v3  ;;  %v1992_v26 = vrot.slane %v181_v20, %v1972_v18  ;;  %54 = vst [vmem:[%s1986_s21 + $0x8] sm:$0xff] %v1880_v3  ;;  %s1888_s7 = smov 96   ;;  %s1889_s8 = smov 64  }
   0x8   :  { %1805 = vmatmul.mubr.msk.f32.vlgmr.msra.gmra.mrb[0].mxu0 %vm75_vm3, %v57_v15  ;;  %1806 = vmatmul.mubr.msk.f32.vlgmr.msra.gmra.mrb[0].mxu1 %vm75_vm3, %v58_v16  ;;  %v220_v25 = vrot.slane %v180_v23, %v188_v19  ;;  %v216_v28 = vrot.slane %v180_v23, %v1972_v18  ;;  %55 = vst [vmem:[%s1986_s21 + $0x10] sm:$0xff] %v1880_v3  ;;  %56 = vst [vmem:[%s1986_s21 + $0x18] sm:$0xff] %v1880_v3 }
   0x9   :  { %vm222_vm5 = vcmp.ne.s32.totalorder %v1981_v24, 0  ;;  %vm221_vm6 = vcmp.ne.s32.totalorder %v1992_v26, 0 }
   0xa   :  { %72 = vperm.xlu0 %1862, %v64_v22   ;;  %v224_v29 = vsub.s32 %v1976_v21, %v220_v25  ;;  %v223_v30 = vsub.s32 %v211_v27, %v216_v28 }
   0xc   :  { %v2004_v31 = vsel %vm222_vm5, %v224_v29, 0  ;;  %v2011_v33 = vsel %vm221_vm6, %v223_v30, 0 }
   0xd   :  { %284 = vrot.lane.b32.xlu1 %v2004_v31, %s1882_s11  ;;  %v228_v32 = vand.u32 1, %v2004_v31  ;;  %v227_v34 = vand.u32 1, %v2011_v33 }
   0xf   :  { %vm230_vm7 = vcmp.ne.s32.totalorder %v228_v32, 0  ;;  %vm229_vm9 = vcmp.ne.s32.totalorder %v227_v34, 0 }
  0x10   :  { %vm232_vm8 = vmand %vm222_vm5, %vm230_vm7 }
  0x11   :  { %v234_v35 = vsel %vm232_vm8, 1, %v1881_v8  ;;  %vm1809_vm10 = vmneg %vm232_vm8  ;;  %282 = vrot.lane.b32.xlu1 %v2011_v33, %s1882_s11 }
  0x12   :  { %vm2021_vm11 = vmand %vm222_vm5, %vm1809_vm10  ;;  %295 = vrot.lane.b32.xlu0 %v234_v35, %s1882_s11  ;;  %vm263_vm10 = vcmp.lt.s32.totalorder %v1976_v21, 511 }
  0x13   :  { %vm231_vm12 = vmand %vm221_vm6, %vm229_vm9  ;;  %v312_v62 = vsel %vm2021_vm11, 1, %v1881_v8 }
  0x14   :  { %v233_v37 = vsel %vm231_vm12, 1, %v1881_v8  ;;  %vm1808_vm13 = vmneg %vm231_vm12  ;;  %v323_v4 = vrot.slane %v312_v62, %v1972_v18 }
  0x15   :  { %vm2031_vm14 = vmand %vm221_vm6, %vm1808_vm13  ;;  %1864 = vrot.lane.b32.xlu1 %v1883_v39, %s1882_s11  ;;  %vm190_vm13 = vcmp.eq.s32.totalorder %v1992_v26, 1 }
  0x16   :  { %293 = vrot.lane.b32.xlu0 %v233_v37, %s1882_s11  ;;  %v311_v61 = vsel %vm2031_vm14, 1, %v1881_v8 }
  0x17   :  { %v319_v1 = vrot.slane %v311_v61, %v1972_v18 }
  0x74   :  { %v2038_v40 = vpop.permute.xlu1 %280 }
  0x75   :  { %v1810_v53 = vadd.s32 4294967295, %v2038_v40  ;;  %vm307_vm4 = vcmp.ne.s32.totalorder %v2038_v40, 0 }
  0x77   :  { %v2073_v55 = vsel %vm307_vm4, %v1810_v53, 0 }
  0x78   :  { %v387_v56 = vand.u32 2, %v2073_v55 }
  0x7a   :  { %vm391_vm6 = vcmp.ne.s32.totalorder %v387_v56, 0 }
  0x7b   :  { %vm2078_vm7 = vmand %vm307_vm4, %vm391_vm6  ;;  %vm2118_vm6 = vcmp.eq.s32.totalorder %v323_v4, 1 }
  0x7c   :  { %vm1814_vm8 = vmneg %vm2078_vm7 }
  0x7d   :  { %vm2086_vm9 = vmand %vm307_vm4, %vm1814_vm8 }
  0x7f   :  { %v285_v41 = vpop.permute.xlu1 %284 }
  0x80   :  { %v288_v59 = vsel %vm251_vm15, %v285_v41, %v2038_v40 }
  0x81   :  { %v292_v63 = vsel %vm263_vm10, %v288_v59, 0  ;;  %v335_v59 = vsel %vm307_vm4, 1, %v1881_v8 }
  0x82   :  { %v1813_v5 = vadd.s32 4294967295, %v292_v63 }
  0x83   :  { %v283_v44 = vpop.permute.xlu1 %282 }
  0x84   :  { %v287_v46 = vsel %vm251_vm15, %v2038_v40, %v283_v44  ;;  %v286_v25 = vsel %vm251_vm15, %v283_v44, %v285_v41 }
  0x85   :  { %v68_v42 = vpop.permute.xlu0 %67  ;;  %v1811_v47 = vadd.s32 4294967295, %v287_v46  ;;  %v1812_v37 = vadd.s32 4294967295, %v286_v25 }
  0x87   :  { %v1865_v46 = vpop.permute.xlu1 %1864 }
  0x89   :  { %v73_v43 = vpop.permute.xlu0 %72 }
  0x8d   :  { %v296_v45 = vpop.permute.xlu0 %295 }
  0x8e   :  { %v299_v60 = vsel %vm251_vm15, %v296_v45, %v2038_v40 }
  0x8f   :  { %v2107_v0 = vsel %vm263_vm10, %v299_v60, 0 }
  0x90   :  { %vm310_vm12 = vcmp.ne.s32.totalorder %v2107_v0, 0 }
  0x91   :  { %v294_v48 = vpop.permute.xlu0 %293  ;;  %v382_v22 = vsel %vm310_vm12, %v1813_v5, 0 }
  0x92   :  { %v2047_v49 = vsel %vm251_vm15, %v2038_v40, %v294_v48  ;;  %v297_v27 = vsel %vm251_vm15, %v294_v48, %v296_v45  ;;  %v1867_v48 = vunpack.i.h.bf16 %v1865_v46 }
  0x93   :  { %vm308_vm0 = vcmp.ne.s32.totalorder %v2047_v49, 0  ;;  %vm309_vm8 = vcmp.ne.s32.totalorder %v297_v27, 0 }
  0x94   :  { %v2052_v50 = vsel %vm308_vm0, %v1811_v47, 0  ;;  %v338_v47 = vsel %vm310_vm12, 1, %v1881_v8  ;;  %v337_v52 = vsel %vm309_vm8, 1, %v1881_v8 }
  0x95   :  { %v388_v51 = vand.u32 2, %v2052_v50  ;;  %v354_v53 = vrot.slane %v338_v47, %v1972_v18  ;;  %v350_v62 = vrot.slane %v337_v52, %v1972_v18 }
  0x97   :  { %vm392_vm1 = vcmp.ne.s32.totalorder %v388_v51, 0  ;;  %v1866_v51 = vunpack.i.l.bf16 %v1865_v46 }
  0x98   :  { %vm2057_vm2 = vmand %vm308_vm0, %vm392_vm1  ;;  %vm191_vm1 = vcmp.eq.s32.totalorder %v1981_v24, 1  ;;  %v2163_v24 = vsel %vm2021_vm11, %v2004_v31, %v382_v22 }
  0x99   :  { %vm1815_vm3 = vmneg %vm2057_vm2  ;;  %v390_v41 = vand.u32 2, %v2163_v24  ;;  %v400_v45 = vsel %vm2057_vm2, 1, %v1881_v8  ;;  %vm2249_vm2 = vcmp.eq.s32.totalorder %v350_v62, 1 }
  0x9a   :  { %vm2067_vm5 = vmand %vm308_vm0, %vm1815_vm3  ;;  %vm2114_vm3 = vcmp.eq.s32.totalorder %v319_v1, 1  ;;  %v342_v1 = vrot.slane %v335_v59, %v1972_v18 }
  0x9c   :  { %vm355_vm4 = vcmp.eq.s32.totalorder %v342_v1, 1 }
  0xdb   :  { %v155_v2 = vpop.f32.mrb[0].mxu0  ;;  %v161_v3 = vpop.f32.mrb[0].mxu1 }
  0xdc   :  { %v156_v6 = vadd.f32 %v155_v2, %v68_v42  ;;  %v162_v7 = vadd.f32 %v161_v3, %v73_v43  ;;  %v157_v9 = vpop.f32.mrb[1].mxu0  ;;  %v163_v10 = vpop.f32.mrb[1].mxu1 }
  0xdd   :  { %v158_v11 = vadd.f32 %v157_v9, %v68_v42  ;;  %v164_v12 = vadd.f32 %v163_v10, %v73_v43  ;;  %v381_v42 = vsel %vm309_vm8, %v1812_v37, 0 }
  0xde   :  { %v166_v14 = vmax.f32 %v156_v6, 0.0  ;;  %v168_v16 = vmax.f32 %v162_v7, 0.0  ;;  %v2186_v31 = vsel %vm2031_vm14, %v2011_v33, %v381_v42 }
  0xdf   :  { %v167_v17 = vmax.f32 %v158_v11, 0.0  ;;  %v169_v19 = vmax.f32 %v164_v12, 0.0  ;;  %v389_v36 = vand.u32 2, %v2186_v31 }
  0xe0   :  { %170 = vst [vmem:[%s4233_s5] sm:$0xff] %v166_v14  ;;  %v2127_v23 = vsel %vm190_vm13, %v166_v14, -inf  ;;  %172 = vst [vmem:[%s4233_s5 + $0x10] sm:$0xff] %v168_v16  ;;  %v2134_v26 = vsel %vm190_vm13, %v168_v16, -inf  ;;  %v336_v14 = vsel %vm308_vm0, 1, %v1881_v8  ;;  %vm4235_vm0 = vcmp.lt.s32.totalorder %v1953_v13, 126 }
  0xe1   :  { %171 = vst [vmem:[%s4233_s5 + $0x8] sm:$0xff] %v167_v17  ;;  %173 = vst [vmem:[%s4233_s5 + $0x18] sm:$0xff] %v169_v19  ;;  %v195_v28 = vsel %vm191_vm1, %v169_v19, -inf  ;;  %v193_v29 = vsel %vm191_vm1, %v167_v17, -inf  ;;  %v329_v30 = vsel %vm2114_vm3, %v2127_v23, -inf  ;;  %v333_v32 = vsel %vm2114_vm3, %v2134_v26, -inf }
  0xe2   :  { %v334_v34 = vsel %vm2118_vm6, %v195_v28, -inf  ;;  %249 = vrot.lane.b32.xlu1 %v195_v28, %s1882_s11  ;;  %v330_v35 = vsel %vm2118_vm6, %v193_v29, -inf  ;;  %247 = vrot.lane.b32.xlu0 %v193_v29, %s1882_s11  ;;  %vm2175_vm13 = vmor %vm2021_vm11, %vm310_vm12  ;;  %vm394_vm1 = vcmp.ne.s32.totalorder %v390_v41, 0  ;;  %s1884_s5 = smov 126   ;;  %v346_v28 = vrot.slane %v336_v14, %v1972_v18 }
  0xe3   :  { %vm398_vm6 = vmand %vm2175_vm13, %vm394_vm1  ;;  %vm393_vm1 = vcmp.ne.s32.totalorder %v389_v36, 0 }
  0xe4   :  { %v2199_v44 = vsel %vm398_vm6, 1, %v1881_v8  ;;  %vm2204_vm11 = vmor %vm2031_vm14, %vm309_vm8  ;;  %vm358_vm14 = vcmp.eq.s32.totalorder %v354_v53, 1  ;;  %vm356_vm12 = vcmp.eq.s32.totalorder %v346_v28, 1  ;;  %v493_v28 = vsel %vm2067_vm5, 1, %v1881_v8 }
  0xe6   :  { %243 = vrot.lane.b32.xlu1 %v2127_v23, %s1882_s11  ;;  %1869 = vrot.lane.b32.xlu0 %v1883_v39, %s1882_s11  ;;  %v399_v39 = vsel %vm2078_vm7, 1, %v1881_v8  ;;  %vm397_vm7 = vmand %vm2204_vm11, %vm393_vm1 }
  0xe7   :  { %v2220_v38 = vsel %vm397_vm7, 1, %v1881_v8 }
  0xe8   :  { %vm482_vm6 = vcmp.eq.s32.totalorder %v2220_v38, 0 }
  0xe9   :  { %vm2346_vm1 = vmand %vm2204_vm11, %vm482_vm6 }
  0xea   :  { %448 = vrot.lane.b32.xlu1 %v2073_v55, %s1884_s5  ;;  %245 = vrot.lane.b32.xlu0 %v2134_v26, %s1882_s11 }
  0xee   :  { %454 = vrot.lane.b32.xlu0 %v2163_v24, %s1884_s5  ;;  %450 = vrot.lane.b32.xlu1 %v2052_v50, %s1884_s5 }
  0xf2   :  { %464 = vrot.lane.b32.xlu0 %v399_v39, %s1884_s5  ;;  %470 = vrot.lane.b32.xlu1 %v2199_v44, %s1884_s5 }
  0xf6   :  { %466 = vrot.lane.b32.xlu1 %v400_v45, %s1884_s5  ;;  %452 = vrot.lane.b32.xlu0 %v2186_v31, %s1884_s5 }
  0xfa   :  { %468 = vrot.lane.b32.xlu0 %v2220_v38, %s1884_s5 }
 0x154   :  { %v250_v56 = vpop.permute.xlu1 %249  ;;  %v248_v57 = vpop.permute.xlu0 %247 }
 0x155   :  { %v259_v60 = vsel %vm251_vm15, %v250_v56, %v1867_v48  ;;  %v258_v61 = vsel %vm251_vm15, %v248_v57, %v1866_v51 }
 0x156   :  { %v279_v63 = vsel %vm263_vm10, %v259_v60, -inf  ;;  %v275_v0 = vsel %vm263_vm10, %v258_v61, -inf  ;;  %vm4234_vm10 = vcmp.lt.s32.totalorder %v1976_v21, 510 }
 0x157   :  { %v362_v2 = vsel %vm358_vm14, %v275_v0, -inf  ;;  %v366_v40 = vsel %vm358_vm14, %v279_v63, -inf }
 0x158   :  { %v244_v3 = vpop.permute.xlu1 %243  ;;  %v1870_v4 = vpop.permute.xlu0 %1869  ;;  %v2243_v5 = vmax.f32 %v330_v35, %v362_v2  ;;  %v2245_v6 = vmax.f32 %v334_v34, %v366_v40 }
 0x159   :  { %v252_v7 = vsel %vm251_vm15, %v244_v3, %v248_v57  ;;  %v1872_v10 = vunpack.i.h.bf16 %v1870_v4  ;;  %v1871_v11 = vunpack.i.l.bf16 %v1870_v4 }
 0x15a   :  { %v361_v12 = vsel %vm2249_vm2, %v252_v7, -inf }
 0x15b   :  { %v2262_v16 = vmax.f32 %v329_v30, %v361_v12  ;;  %v256_v17 = vsel %vm251_vm15, %v1866_v51, %v1871_v11  ;;  %v257_v19 = vsel %vm251_vm15, %v1867_v48, %v1872_v10  ;;  %v254_v34 = vsel %vm251_vm15, %v1871_v11, %v244_v3 }
 0x15c   :  { %v449_v20 = vpop.permute.xlu1 %448  ;;  %v246_v22 = vpop.permute.xlu0 %245  ;;  %v2268_v25 = vsel %vm355_vm4, %v256_v17, -inf  ;;  %v2270_v27 = vsel %vm355_vm4, %v257_v19, -inf  ;;  %v2300_v26 = vsel %vm356_vm12, %v254_v34, -inf  ;;  %v494_v34 = vsel %vm2346_vm1, 1, %v1881_v8 }
 0x15d   :  { %v253_v49 = vsel %vm251_vm15, %v246_v22, %v250_v56  ;;  %411 = vrot.lane.b32.xlu0 %v2262_v16, %s1884_s5  ;;  %v1873_v23 = vpack.i.bf16 %v2270_v27, %v2268_v25  ;;  %v255_v41 = vsel %vm251_vm15, %v1872_v10, %v246_v22  ;;  %vm483_vm15 = vcmp.eq.s32.totalorder %v2199_v44, 0 }
 0x15e   :  { %v365_v29 = vsel %vm2249_vm2, %v253_v49, -inf  ;;  %v2306_v46 = vsel %vm356_vm12, %v255_v41, -inf  ;;  %vm2322_vm8 = vmand %vm2175_vm13, %vm483_vm15  ;;  %v503_v41 = vrot.slane %v493_v28, %v1972_v18 }
 0x15f   :  { %v2286_v30 = vmax.f32 %v333_v32, %v365_v29  ;;  %1874 = vrot.lane.b32.xlu1 %v1873_v23, %s1884_s5  ;;  %v495_v29 = vsel %vm2322_vm8, 1, %v1881_v8 }
 0x160   :  { %v451_v35 = vpop.permute.xlu1 %450  ;;  %v455_v37 = vpop.permute.xlu0 %454 }
 0x161   :  { %v459_v42 = vsel %vm4235_vm0, %v455_v37, %v449_v20  ;;  %415 = vrot.lane.b32.xlu0 %v2243_v5, %s1884_s5  ;;  %v458_v32 = vsel %vm4235_vm0, %v449_v20, %v451_v35 }
 0x162   :  { %v463_v15 = vsel %vm4234_vm10, %v459_v42, 0  ;;  %v1816_v51 = vadd.s32 4294967294, %v458_v32  ;;  %v507_v32 = vrot.slane %v494_v34, %v1972_v18 }
 0x163   :  { %407 = vrot.lane.b32.xlu1 %v2300_v26, %s1884_s5  ;;  %v1819_v36 = vadd.s32 4294967294, %v463_v15 }
 0x164   :  { %v471_v39 = vpop.permute.xlu1 %470  ;;  %v465_v45 = vpop.permute.xlu0 %464 }
 0x165   :  { %v475_v47 = vsel %vm4235_vm0, %v471_v39, %v465_v45  ;;  %409 = vrot.lane.b32.xlu0 %v2306_v46, %s1884_s5 }
 0x166   :  { %v2315_v48 = vsel %vm4234_vm10, %v475_v47, 0 }
 0x167   :  { %vm4238_vm3 = vcmp.ne.s32.totalorder %v2315_v48, 0  ;;  %417 = vrot.lane.b32.xlu1 %v2245_v6, %s1884_s5 }
 0x168   :  { %v467_v52 = vpop.permute.xlu1 %466  ;;  %v453_v53 = vpop.permute.xlu0 %452  ;;  %v571_v56 = vsel %vm4238_vm3, %v1819_v36, 0  ;;  %vm2363_vm11 = vmor %vm2322_vm8, %vm4238_vm3  ;;  %v511_v36 = vrot.slane %v495_v29, %v1972_v18 }
 0x169   :  { %v2331_v57 = vsel %vm4235_vm0, %v465_v45, %v467_v52  ;;  %v456_v59 = vsel %vm4235_vm0, %v453_v53, %v455_v37  ;;  %v457_v43 = vsel %vm4235_vm0, %v451_v35, %v453_v53  ;;  %v2340_v60 = vsel %vm2322_vm8, %v2163_v24, %v571_v56 }
 0x16a   :  { %vm4237_vm13 = vcmp.ne.s32.totalorder %v2331_v57, 0  ;;  %v583_v38 = vand.u32 4, %v2340_v60  ;;  %v1817_v62 = vadd.s32 4294967294, %v457_v43  ;;  %v1818_v0 = vadd.s32 4294967294, %v456_v59 }
 0x16b   :  { %413 = vrot.lane.b32.xlu1 %v2286_v30, %s1884_s5  ;;  %v568_v63 = vsel %vm4237_vm13, %v1816_v51, 0  ;;  %vm2380_vm12 = vmor %vm2086_vm9, %vm4237_vm13  ;;  %v492_v35 = vsel %vm2086_vm9, 1, %v1881_v8  ;;  %vm2482_vm8 = vcmp.eq.s32.totalorder %v507_v32, 1 }
 0x16c   :  { %v469_v24 = vpop.permute.xlu0 %468  ;;  %v2357_v1 = vsel %vm2086_vm9, %v2073_v55, %v568_v63  ;;  %vm587_vm7 = vcmp.ne.s32.totalorder %v583_v38, 0  ;;  %v499_v58 = vrot.slane %v492_v35, %v1972_v18  ;;  %vm2477_vm9 = vcmp.eq.s32.totalorder %v503_v41, 1 }
 0x16d   :  { %v472_v2 = vsel %vm4235_vm0, %v469_v24, %v471_v39  ;;  %v473_v40 = vsel %vm4235_vm0, %v467_v52, %v469_v24  ;;  %v580_v3 = vand.u32 4, %v2357_v1  ;;  %641 = vrot.lane.b32.xlu0 %v2357_v1, %s1885_s28  ;;  %vm591_vm14 = vmand %vm2363_vm11, %vm587_vm7  ;;  %v517_v43 = vsel %vm2477_vm9, %v2300_v26, -inf }
 0x16e   :  { %vm4236_vm2 = vcmp.ne.s32.totalorder %v473_v40, 0  ;;  %vm490_vm4 = vcmp.ne.s32.totalorder %v472_v2, 0  ;;  %v595_v4 = vsel %vm591_vm14, 1, %v1881_v8  ;;  %v518_v38 = vsel %vm2482_vm8, %v2262_v16, -inf }
 0x16f   :  { %647 = vrot.lane.b32.xlu1 %v2340_v60, %s1885_s28  ;;  %v569_v7 = vsel %vm4236_vm2, %v1817_v62, 0  ;;  %vm584_vm15 = vcmp.ne.s32.totalorder %v580_v3, 0  ;;  %vm2391_vm6 = vmor %vm2067_vm5, %vm4236_vm2  ;;  %vm676_vm14 = vcmp.eq.s32.totalorder %v595_v4, 0  ;;  %v570_v11 = vsel %vm490_vm4, %v1818_v0, 0 }
 0x170   :  { %v2398_v10 = vsel %vm2067_vm5, %v2052_v50, %v569_v7  ;;  %vm588_vm7 = vmand %vm2380_vm12, %vm584_vm15  ;;  %v2416_v50 = vsel %vm2346_vm1, %v2186_v31, %v570_v11  ;;  %vm4332_vm5 = vcmp.ne.s32.totalorder %v2331_v57, 0  ;;  %v526_v42 = vsel %vm490_vm4, 1, %v1881_v8 }
 0x171   :  { %v581_v12 = vand.u32 4, %v2398_v10  ;;  %643 = vrot.lane.b32.xlu0 %v2398_v10, %s1885_s28  ;;  %v592_v14 = vsel %vm588_vm7, 1, %v1881_v8  ;;  %vm2409_vm10 = vmand %vm2363_vm11, %vm676_vm14  ;;  %v582_v19 = vand.u32 4, %v2416_v50  ;;  %v524_v54 = vsel %vm4332_vm5, 1, %v1881_v8 }
 0x172   :  { %vm673_vm15 = vcmp.eq.s32.totalorder %v592_v14, 0  ;;  %vm578_vm0 = vmor %vm2346_vm1, %vm490_vm4  ;;  %v539_v47 = vrot.slane %v526_v42, %v1972_v18  ;;  %vm2490_vm1 = vcmp.eq.s32.totalorder %v511_v36, 1 }
 0x173   :  { %vm2424_vm7 = vmand %vm2380_vm12, %vm673_vm15  ;;  %657 = vrot.lane.b32.xlu1 %v592_v14, %s1885_s28  ;;  %vm585_vm11 = vcmp.ne.s32.totalorder %v581_v12, 0  ;;  %vm586_vm2 = vcmp.ne.s32.totalorder %v582_v19, 0  ;;  %v519_v63 = vsel %vm2490_vm1, %v2243_v5, -inf }
 0x174   :  { %vm589_vm14 = vmand %vm2391_vm6, %vm585_vm11  ;;  %vm2507_vm4 = vcmp.eq.s32.totalorder %v539_v47, 1 }
 0x175   :  { %663 = vrot.lane.b32.xlu0 %v595_v4, %s1885_s28  ;;  %v593_v31 = vsel %vm589_vm14, 1, %v1881_v8  ;;  %vm590_vm13 = vmand %vm578_vm0, %vm586_vm2 }
 0x176   :  { %vm674_vm3 = vcmp.eq.s32.totalorder %v593_v31, 0  ;;  %v594_v22 = vsel %vm590_vm13, 1, %v1881_v8  ;;  %vm2486_vm13 = vcmp.eq.s32.totalorder %v499_v58, 1 }
 0x177   :  { %645 = vrot.lane.b32.xlu1 %v2416_v50, %s1885_s28  ;;  %vm2438_vm12 = vmand %vm2391_vm6, %vm674_vm3  ;;  %vm675_vm15 = vcmp.eq.s32.totalorder %v594_v22, 0  ;;  %vm4333_vm3 = vcmp.ne.s32.totalorder %v473_v40, 0  ;;  %vm4346_vm6 = vcmp.lt.s32.totalorder %v1953_v13, 126  ;;  %v516_v11 = vsel %vm2486_vm13, %v2268_v25, -inf }
 0x178   :  { %vm2442_vm11 = vmand %vm578_vm0, %vm675_vm15  ;;  %vm4331_vm0 = vcmp.ne.s32.totalorder %v2315_v48, 0  ;;  %v525_v15 = vsel %vm4333_vm3, 1, %v1881_v8  ;;  %v531_v48 = vrot.slane %v524_v54, %v1972_v18  ;;  %v520_v25 = vsel %vm2486_vm13, %v2270_v27, -inf }
 0x179   :  { %659 = vrot.lane.b32.xlu0 %v593_v31, %s1885_s28  ;;  %v527_v37 = vsel %vm4331_vm0, 1, %v1881_v8  ;;  %v535_v52 = vrot.slane %v525_v15, %v1972_v18  ;;  %vm4347_vm14 = vmmov %vm4346_vm6  ;;  %vm4350_vm0 = vcmp.lt.s32.totalorder %v1976_v21, 510  ;;  %v523_v27 = vsel %vm2490_vm1, %v2245_v6, -inf }
 0x17a   :  { %v543_v45 = vrot.slane %v527_v37, %v1972_v18  ;;  %vm2515_vm15 = vcmp.eq.s32.totalorder %v531_v48, 1  ;;  %vm4353_vm3 = vmmov %vm4346_vm6  ;;  %v522_v6 = vsel %vm2482_vm8, %v2286_v30, -inf  ;;  %vm4240_vm1 = vcmp.lt.s32.totalorder %v1953_v13, 124 }
 0x17b   :  { %661 = vrot.lane.b32.xlu1 %v594_v22, %s1885_s28  ;;  %vm2523_vm5 = vcmp.eq.s32.totalorder %v535_v52, 1 }
 0x17c   :  { %vm2500_vm2 = vcmp.eq.s32.totalorder %v543_v45, 1 }
 0x1cf   :  { %v412_v39 = vpop.permute.xlu0 %411 }
 0x1d1   :  { %v1875_v44 = vpop.permute.xlu1 %1874 }
 0x1d2   :  { %v1876_v53 = vunpack.i.l.bf16 %v1875_v44  ;;  %v1877_v33 = vunpack.i.h.bf16 %v1875_v44 }
 0x1d3   :  { %v416_v62 = vpop.permute.xlu0 %415 }
 0x1d4   :  { %v420_v26 = vsel %vm4346_vm6, %v412_v39, %v416_v62  ;;  %v426_v24 = vsel %vm4347_vm14, %v416_v62, %v1876_v53  ;;  %vm4354_vm6 = vmmov %vm4353_vm3 }
 0x1d5   :  { %v443_v2 = vsel %vm4350_vm0, %v426_v24, -inf  ;;  %v550_v5 = vsel %vm2507_vm4, %v420_v26, -inf  ;;  %v408_v3 = vpop.permute.xlu1 %407  ;;  %vm4355_vm14 = vmmov %vm4353_vm3 }
 0x1d6   :  { %v551_v55 = vsel %vm2500_vm2, %v443_v2, -inf  ;;  %v2529_v4 = vmax.f32 %v518_v38, %v550_v5  ;;  %v422_v7 = vsel %vm4353_vm3, %v408_v3, %v412_v39  ;;  %v424_v9 = vsel %vm4354_vm6, %v1876_v53, %v408_v3  ;;  %vm4356_vm0 = vmmov %vm4353_vm3 }
 0x1d7   :  { %v548_v12 = vsel %vm2515_vm15, %v424_v9, -inf  ;;  %v549_v14 = vsel %vm2523_vm5, %v422_v7, -inf  ;;  %v410_v19 = vpop.permute.xlu0 %409  ;;  %v2542_v31 = vmax.f32 %v519_v63, %v551_v55  ;;  %vm4357_vm3 = vcmp.lt.s32.totalorder %v1976_v21, 510  ;;  %vm4358_vm13 = vmmov %vm4356_vm0 }
 0x1d8   :  { %v2544_v22 = vmax.f32 %v516_v11, %v548_v12  ;;  %v2546_v28 = vmax.f32 %v517_v43, %v549_v14  ;;  %v425_v29 = vsel %vm4355_vm14, %v1877_v33, %v410_v19  ;;  %v521_v39 = vsel %vm2477_vm9, %v2306_v46, -inf }
 0x1d9   :  { %v552_v34 = vsel %vm2515_vm15, %v425_v29, -inf  ;;  %v418_v35 = vpop.permute.xlu1 %417  ;;  %vm4359_vm15 = vmmov %vm4356_vm0  ;;  %vm4239_vm9 = vcmp.lt.s32.totalorder %v1976_v21, 508 }
 0x1da   :  { %v2555_v37 = vmax.f32 %v520_v25, %v552_v34  ;;  %v427_v41 = vsel %vm4356_vm0, %v418_v35, %v1877_v33  ;;  %596 = vrot.lane.b32.xlu0 %v2544_v22, %s1885_s28 }
 0x1db   :  { %v447_v54 = vsel %vm4357_vm3, %v427_v41, -inf }
 0x1dc   :  { %v555_v42 = vsel %vm2500_vm2, %v447_v54, -inf  ;;  %598 = vrot.lane.b32.xlu1 %v2555_v37, %s1885_s28 }
 0x1dd   :  { %v414_v15 = vpop.permute.xlu1 %413  ;;  %v2570_v32 = vmax.f32 %v523_v27, %v555_v42 }
 0x1de   :  { %v421_v58 = vsel %vm4358_vm13, %v414_v15, %v418_v35  ;;  %v423_v36 = vsel %vm4359_vm15, %v410_v19, %v414_v15  ;;  %600 = vrot.lane.b32.xlu0 %v2546_v28, %s1885_s28 }
 0x1df   :  { %v553_v45 = vsel %vm2523_vm5, %v423_v36, -inf  ;;  %v554_v47 = vsel %vm2507_vm4, %v421_v58, -inf  ;;  %v642_v48 = vpop.permute.xlu0 %641 }
 0x1e0   :  { %v2589_v44 = vmax.f32 %v521_v39, %v553_v45  ;;  %v2591_v52 = vmax.f32 %v522_v6, %v554_v47  ;;  %608 = vrot.lane.b32.xlu1 %v2542_v31, %s1885_s28  ;;  %v685_v45 = vsel %vm2424_vm7, 1, %v1881_v8 }
 0x1e1   :  { %v648_v46 = vpop.permute.xlu1 %647 }
 0x1e2   :  { %604 = vrot.lane.b32.xlu0 %v2529_v4, %s1885_s28  ;;  %v652_v30 = vsel %vm4240_vm1, %v648_v46, %v642_v48 }
 0x1e3   :  { %v644_v51 = vpop.permute.xlu0 %643  ;;  %v656_v56 = vsel %vm4239_vm9, %v652_v30, 0  ;;  %v686_v30 = vsel %vm2438_vm12, 1, %v1881_v8 }
 0x1e4   :  { %610 = vrot.lane.b32.xlu1 %v2570_v32, %s1885_s28  ;;  %v1823_v43 = vadd.s32 4294967292, %v656_v56  ;;  %v651_v38 = vsel %vm4240_vm1, %v642_v48, %v644_v51  ;;  %v688_v48 = vsel %vm2409_vm10, 1, %v1881_v8  ;;  %v692_v56 = vrot.slane %v685_v45, %v1972_v18 }
 0x1e5   :  { %v658_v53 = vpop.permute.xlu1 %657  ;;  %v1820_v16 = vadd.s32 4294967292, %v651_v38  ;;  %v704_v49 = vrot.slane %v688_v48, %v1972_v18 }
 0x1e6   :  { %602 = vrot.lane.b32.xlu0 %v2589_v44, %s1885_s28 }
 0x1e7   :  { %v664_v57 = vpop.permute.xlu0 %663 }
 0x1e8   :  { %v668_v59 = vsel %vm4240_vm1, %v664_v57, %v658_v53  ;;  %606 = vrot.lane.b32.xlu1 %v2591_v52, %s1885_s28 }
 0x1e9   :  { %v2614_v61 = vsel %vm4239_vm9, %v668_v59, 0  ;;  %v646_v62 = vpop.permute.xlu1 %645 }
 0x1ea   :  { %vm4243_vm8 = vcmp.ne.s32.totalorder %v2614_v61, 0  ;;  %v650_v63 = vsel %vm4240_vm1, %v644_v51, %v646_v62  ;;  %v649_v0 = vsel %vm4240_vm1, %v646_v62, %v648_v46  ;;  %v687_v46 = vsel %vm2442_vm11, 1, %v1881_v8 }
 0x1eb   :  { %v660_v26 = vpop.permute.xlu0 %659  ;;  %v764_v24 = vsel %vm4243_vm8, %v1823_v43, 0  ;;  %v1821_v5 = vadd.s32 4294967292, %v650_v63  ;;  %v1822_v55 = vadd.s32 4294967292, %v649_v0  ;;  %vm2642_vm4 = vmor %vm2409_vm10, %vm4243_vm8  ;;  %v700_v59 = vrot.slane %v687_v46, %v1972_v18 }
 0x1ec   :  { %v667_v33 = vsel %vm4240_vm1, %v658_v53, %v660_v26  ;;  %v2628_v2 = vsel %vm2409_vm10, %v2340_v60, %v764_v24  ;;  %v696_v43 = vrot.slane %v686_v30, %v1972_v18 }
 0x1ed   :  { %vm4244_vm2 = vcmp.ne.s32.totalorder %v667_v33, 0  ;;  %840 = vrot.lane.b32.xlu1 %v2628_v2, %s1886_s29  ;;  %v776_v40 = vand.u32 8, %v2628_v2  ;;  %v662_v3 = vpop.permute.xlu1 %661 }
 0x1ee   :  { %v665_v7 = vsel %vm4240_vm1, %v662_v3, %v664_v57  ;;  %v666_v9 = vsel %vm4240_vm1, %v660_v26, %v662_v3  ;;  %v761_v11 = vsel %vm4244_vm2, %v1820_v16, 0  ;;  %vm2654_vm14 = vmor %vm2424_vm7, %vm4244_vm2 }
 0x1ef   :  { %vm4242_vm5 = vcmp.ne.s32.totalorder %v666_v9, 0  ;;  %vm4241_vm6 = vcmp.ne.s32.totalorder %v665_v7, 0  ;;  %v2649_v12 = vsel %vm2424_vm7, %v2357_v1, %v761_v11  ;;  %vm780_vm0 = vcmp.ne.s32.totalorder %v776_v40, 0 }
 0x1f0   :  { %v773_v19 = vand.u32 8, %v2649_v12  ;;  %834 = vrot.lane.b32.xlu0 %v2649_v12, %s1886_s29  ;;  %v762_v29 = vsel %vm4242_vm5, %v1821_v5, 0  ;;  %vm784_vm3 = vmand %vm2642_vm4, %vm780_vm0  ;;  %v763_v34 = vsel %vm4241_vm6, %v1822_v55, 0  ;;  %vm4378_vm7 = vcmp.ne.s32.totalorder %v666_v9, 0 }
 0x1f1   :  { %v2667_v1 = vsel %vm2438_vm12, %v2398_v10, %v762_v29  ;;  %v788_v25 = vsel %vm784_vm3, 1, %v1881_v8  ;;  %vm2674_vm13 = vmor %vm2438_vm12, %vm4242_vm5  ;;  %v2682_v10 = vsel %vm2442_vm11, %v2416_v50, %v763_v34  ;;  %v718_v53 = vsel %vm4378_vm7, 1, %v1881_v8 }
 0x1f2   :  { %v774_v41 = vand.u32 8, %v2667_v1  ;;  %vm777_vm15 = vcmp.ne.s32.totalorder %v773_v19, 0  ;;  %vm869_vm0 = vcmp.eq.s32.totalorder %v788_v25, 0  ;;  %vm2687_vm3 = vmor %vm2442_vm11, %vm4241_vm6  ;;  %v775_v42 = vand.u32 8, %v2682_v10 }
 0x1f3   :  { %vm781_vm9 = vmand %vm2654_vm14, %vm777_vm15  ;;  %vm4379_vm10 = vcmp.ne.s32.totalorder %v665_v7, 0  ;;  %v728_v62 = vrot.slane %v718_v53, %v1972_v18  ;;  %vm2761_vm12 = vcmp.eq.s32.totalorder %v692_v56, 1 }
 0x1f4   :  { %836 = vrot.lane.b32.xlu0 %v2667_v1, %s1886_s29  ;;  %v785_v27 = vsel %vm781_vm9, 1, %v1881_v8  ;;  %vm2699_vm1 = vmand %vm2642_vm4, %vm869_vm0  ;;  %vm778_vm6 = vcmp.ne.s32.totalorder %v774_v41, 0  ;;  %vm779_vm8 = vcmp.ne.s32.totalorder %v775_v42, 0  ;;  %v719_v23 = vsel %vm4379_vm10, 1, %v1881_v8 }
 0x1f5   :  { %850 = vrot.lane.b32.xlu1 %v785_v27, %s1886_s29  ;;  %vm866_vm5 = vcmp.eq.s32.totalorder %v785_v27, 0  ;;  %vm782_vm15 = vmand %vm2674_vm13, %vm778_vm6  ;;  %v732_v24 = vrot.slane %v719_v23, %v1972_v18  ;;  %v709_v16 = vsel %vm2761_vm12, %v2544_v22, -inf  ;;  %v881_v15 = vsel %vm2699_vm1, 1, %v1881_v8 }
 0x1f6   :  { %vm2708_vm2 = vmand %vm2654_vm14, %vm866_vm5  ;;  %v786_v58 = vsel %vm782_vm15, 1, %v1881_v8  ;;  %vm4377_vm14 = vcmp.ne.s32.totalorder %v2614_v61, 0  ;;  %vm2781_vm15 = vcmp.eq.s32.totalorder %v704_v49, 1 }
 0x1f7   :  { %vm867_vm9 = vcmp.eq.s32.totalorder %v786_v58, 0  ;;  %vm783_vm4 = vmand %vm2687_vm3, %vm779_vm8  ;;  %vm4376_vm8 = vcmp.ne.s32.totalorder %v667_v33, 0  ;;  %v720_v20 = vsel %vm4377_vm14, 1, %v1881_v8  ;;  %vm2802_vm14 = vcmp.eq.s32.totalorder %v728_v62, 1 }
 0x1f8   :  { %856 = vrot.lane.b32.xlu0 %v788_v25, %s1886_s29  ;;  %vm2718_vm0 = vmand %vm2674_vm13, %vm867_vm9  ;;  %v787_v39 = vsel %vm783_vm4, 1, %v1881_v8  ;;  %v717_v47 = vsel %vm4376_vm8, 1, %v1881_v8  ;;  %v736_v61 = vrot.slane %v720_v20, %v1972_v18  ;;  %vm4384_vm13 = vcmp.lt.s32.totalorder %v1953_v13, 124 }
 0x1f9   :  { %838 = vrot.lane.b32.xlu1 %v2682_v10, %s1886_s29  ;;  %vm868_vm5 = vcmp.eq.s32.totalorder %v787_v39, 0  ;;  %v724_v17 = vrot.slane %v717_v47, %v1972_v18  ;;  %vm4389_vm9 = vmmov %vm4384_vm13  ;;  %vm2789_vm4 = vcmp.eq.s32.totalorder %v696_v43, 1  ;;  %vm4394_vm8 = vcmp.lt.s32.totalorder %v1976_v21, 508 }
 0x1fa   :  { %vm2727_vm6 = vmand %vm2687_vm3, %vm868_vm5  ;;  %vm2777_vm3 = vcmp.eq.s32.totalorder %v700_v59, 1  ;;  %vm2796_vm5 = vcmp.eq.s32.totalorder %v736_v61, 1  ;;  %v712_v29 = vsel %vm2781_vm15, %v2542_v31, -inf  ;;  %vm2811_vm7 = vcmp.eq.s32.totalorder %v732_v24, 1 }
 0x1fb   :  { %vm2765_vm11 = vcmp.eq.s32.totalorder %v724_v17, 1  ;;  %v711_v22 = vsel %vm2777_vm3, %v2529_v4, -inf  ;;  %vm4399_vm10 = vmmov %vm4389_vm9  ;;  %v710_v31 = vsel %vm2789_vm4, %v2546_v28, -inf  ;;  %v716_v30 = vsel %vm2781_vm15, %v2570_v32, -inf }
 0x1fc   :  { %852 = vrot.lane.b32.xlu0 %v786_v58, %s1886_s29  ;;  %v714_v32 = vsel %vm2789_vm4, %v2589_v44, -inf }
 0x1fd   :  { %854 = vrot.lane.b32.xlu1 %v787_v39, %s1886_s29 }
 0x24c   :  { %v597_v51 = vpop.permute.xlu0 %596 }
 0x24e   :  { %v599_v57 = vpop.permute.xlu1 %598 }
 0x250   :  { %v601_v38 = vpop.permute.xlu0 %600 }
 0x251   :  { %v617_v26 = vsel %vm4384_vm13, %v597_v51, %v601_v38  ;;  %vm4400_vm13 = vmmov %vm4389_vm9 }
 0x252   :  { %v741_v33 = vsel %vm2765_vm11, %v617_v26, -inf  ;;  %v609_v5 = vpop.permute.xlu1 %608 }
 0x253   :  { %v2785_v55 = vmax.f32 %v709_v16, %v741_v33  ;;  %v619_v7 = vsel %vm4389_vm9, %v609_v5, %v597_v51  ;;  %v713_v51 = vsel %vm2761_vm12, %v2555_v37, -inf  ;;  %v715_v37 = vsel %vm2777_vm3, %v2591_v52, -inf }
 0x254   :  { %v636_v60 = vsel %vm4394_vm8, %v619_v7, -inf  ;;  %v605_v19 = vpop.permute.xlu0 %604  ;;  %vm4247_vm12 = vcmp.lt.s32.totalorder %v1953_v13, 120 }
 0x255   :  { %v744_v25 = vsel %vm2796_vm5, %v636_v60, -inf  ;;  %v613_v34 = vsel %vm4399_vm10, %v605_v19, %v609_v5  ;;  %v615_v35 = vsel %vm4400_vm13, %v601_v38, %v605_v19  ;;  %789 = vrot.lane.b32.xlu0 %v2785_v55, %s1886_s29  ;;  %vm4401_vm10 = vmmov %vm4389_vm9 }
 0x256   :  { %v742_v41 = vsel %vm2802_vm14, %v615_v35, -inf  ;;  %v743_v54 = vsel %vm2811_vm7, %v613_v34, -inf  ;;  %v611_v42 = vpop.permute.xlu1 %610  ;;  %v2828_v27 = vmax.f32 %v712_v29, %v744_v25 }
 0x257   :  { %v2830_v58 = vmax.f32 %v710_v31, %v742_v41  ;;  %v2832_v39 = vmax.f32 %v711_v22, %v743_v54  ;;  %v620_v45 = vsel %vm4389_vm9, %v611_v42, %v599_v57 }
 0x258   :  { %v640_v47 = vsel %vm4394_vm8, %v620_v45, -inf  ;;  %v603_v28 = vpop.permute.xlu0 %602 }
 0x259   :  { %v748_v48 = vsel %vm2796_vm5, %v640_v47, -inf  ;;  %v618_v46 = vsel %vm4401_vm10, %v599_v57, %v603_v28  ;;  %793 = vrot.lane.b32.xlu0 %v2830_v58, %s1886_s29  ;;  %vm4402_vm5 = vmmov %vm4389_vm9 }
 0x25a   :  { %v745_v20 = vsel %vm2765_vm11, %v618_v46, -inf  ;;  %v607_v53 = vpop.permute.xlu1 %606  ;;  %v2852_v56 = vmax.f32 %v716_v30, %v748_v48  ;;  %vm4403_vm13 = vmmov %vm4402_vm5  ;;  %vm4245_vm11 = vcmp.lt.s32.totalorder %v1976_v21, 504 }
 0x25b   :  { %v2854_v17 = vmax.f32 %v713_v51, %v745_v20  ;;  %v614_v23 = vsel %vm4402_vm5, %v607_v53, %v611_v42  ;;  %v616_v57 = vsel %vm4403_vm13, %v603_v28, %v607_v53 }
 0x25c   :  { %v746_v59 = vsel %vm2802_vm14, %v616_v57, -inf  ;;  %v747_v49 = vsel %vm2811_vm7, %v614_v23, -inf }
 0x25d   :  { %v2870_v43 = vmax.f32 %v714_v32, %v746_v59  ;;  %v2872_v38 = vmax.f32 %v715_v37, %v747_v49  ;;  %791 = vrot.lane.b32.xlu1 %v2854_v17, %s1886_s29  ;;  %797 = vrot.lane.b32.xlu0 %v2832_v39, %s1886_s29  ;;  %v878_v59 = vsel %vm2708_vm2, 1, %v1881_v8 }
 0x25f   :  { %v841_v52 = vpop.permute.xlu1 %840 }
 0x261   :  { %801 = vrot.lane.b32.xlu1 %v2828_v27, %s1886_s29  ;;  %795 = vrot.lane.b32.xlu0 %v2870_v43, %s1886_s29 }
 0x262   :  { %v835_v44 = vpop.permute.xlu0 %834 }
 0x263   :  { %v845_v61 = vsel %vm4247_vm12, %v841_v52, %v835_v44 }
 0x264   :  { %v849_v0 = vsel %vm4245_vm11, %v845_v61, 0 }
 0x265   :  { %803 = vrot.lane.b32.xlu1 %v2852_v56, %s1886_s29  ;;  %v1827_v33 = vadd.s32 4294967288, %v849_v0  ;;  %v880_v0 = vsel %vm2727_vm6, 1, %v1881_v8 }
 0x266   :  { %v837_v62 = vpop.permute.xlu0 %836 }
 0x267   :  { %v851_v63 = vpop.permute.xlu1 %850  ;;  %v844_v5 = vsel %vm4247_vm12, %v835_v44, %v837_v62 }
 0x268   :  { %v1824_v11 = vadd.s32 4294967288, %v844_v5 }
 0x269   :  { %799 = vrot.lane.b32.xlu1 %v2872_v38, %s1886_s29 }
 0x26a   :  { %v857_v26 = vpop.permute.xlu0 %856 }
 0x26b   :  { %v861_v24 = vsel %vm4247_vm12, %v857_v26, %v851_v63  ;;  %v839_v16 = vpop.permute.xlu1 %838 }
 0x26c   :  { %v2898_v40 = vsel %vm4245_vm11, %v861_v24, 0  ;;  %v843_v3 = vsel %vm4247_vm12, %v837_v62, %v839_v16  ;;  %v842_v7 = vsel %vm4247_vm12, %v839_v16, %v841_v52  ;;  %v885_v52 = vrot.slane %v878_v59, %v1972_v18 }
 0x26d   :  { %vm4246_vm3 = vcmp.ne.s32.totalorder %v2898_v40, 0  ;;  %v1825_v60 = vadd.s32 4294967288, %v843_v3  ;;  %v1826_v35 = vadd.s32 4294967288, %v842_v7  ;;  %v879_v62 = vsel %vm2718_vm0, 1, %v1881_v8 }
 0x26e   :  { %v853_v9 = vpop.permute.xlu0 %852  ;;  %v957_v22 = vsel %vm4246_vm3, %v1827_v33, 0  ;;  %vm2929_vm7 = vmor %vm2699_vm1, %vm4246_vm3  ;;  %v889_v33 = vrot.slane %v879_v62, %v1972_v18 }
 0x26f   :  { %v860_v14 = vsel %vm4247_vm12, %v851_v63, %v853_v9  ;;  %v855_v19 = vpop.permute.xlu1 %854  ;;  %v2912_v29 = vsel %vm2699_vm1, %v2628_v2, %v957_v22  ;;  %v893_v22 = vrot.slane %v880_v0, %v1972_v18 }
 0x270   :  { %vm4250_vm15 = vcmp.ne.s32.totalorder %v860_v14, 0  ;;  %v2916_v25 = vsel %vm4247_vm12, %v855_v19, %v857_v26  ;;  %v859_v4 = vsel %vm4247_vm12, %v853_v9, %v855_v19  ;;  %1033 = vrot.lane.b32.xlu1 %v2912_v29, %s1887_s30  ;;  %v969_v34 = vand.u32 16, %v2912_v29 }
 0x271   :  { %vm4249_vm4 = vcmp.ne.s32.totalorder %v859_v4, 0  ;;  %vm4248_vm14 = vcmp.ne.s32.totalorder %v2916_v25, 0  ;;  %v954_v2 = vsel %vm4250_vm15, %v1824_v11, 0  ;;  %vm2942_vm9 = vmor %vm2708_vm2, %vm4250_vm15  ;;  %vm4427_vm1 = vcmp.ne.s32.totalorder %v2916_v25, 0 }
 0x272   :  { %v2936_v41 = vsel %vm2708_vm2, %v2649_v12, %v954_v2  ;;  %v955_v54 = vsel %vm4249_vm4, %v1825_v60, 0  ;;  %vm973_vm8 = vcmp.ne.s32.totalorder %v969_v34, 0  ;;  %v956_v12 = vsel %vm4248_vm14, %v1826_v35, 0  ;;  %vm2959_vm10 = vmor %vm2718_vm0, %vm4249_vm4 }
 0x273   :  { %v966_v45 = vand.u32 16, %v2936_v41  ;;  %1027 = vrot.lane.b32.xlu0 %v2936_v41, %s1887_s30  ;;  %v2952_v47 = vsel %vm2718_vm0, %v2667_v1, %v955_v54  ;;  %vm977_vm5 = vmand %vm2929_vm7, %vm973_vm8  ;;  %v2969_v1 = vsel %vm2727_vm6, %v2682_v10, %v956_v12  ;;  %vm3040_vm2 = vcmp.eq.s32.totalorder %v885_v52, 1 }
 0x274   :  { %v967_v48 = vand.u32 16, %v2952_v47  ;;  %v981_v46 = vsel %vm977_vm5, 1, %v1881_v8  ;;  %v968_v30 = vand.u32 16, %v2969_v1  ;;  %vm2977_vm11 = vmor %vm2727_vm6, %vm4248_vm14  ;;  %vm4426_vm0 = vcmp.lt.s32.totalorder %v1953_v13, 120 }
 0x275   :  { %vm970_vm13 = vcmp.ne.s32.totalorder %v966_v45, 0  ;;  %vm1062_vm3 = vcmp.eq.s32.totalorder %v981_v46, 0  ;;  %v912_v6 = vsel %vm4427_vm1, 1, %v1881_v8  ;;  %v902_v5 = vsel %vm3040_vm2, %v2785_v55, -inf }
 0x276   :  { %vm974_vm8 = vmand %vm2942_vm9, %vm970_vm13  ;;  %vm971_vm12 = vcmp.ne.s32.totalorder %v967_v48, 0  ;;  %vm972_vm14 = vcmp.ne.s32.totalorder %v968_v30, 0  ;;  %vm4428_vm6 = vcmp.ne.s32.totalorder %v2898_v40, 0  ;;  %v925_v25 = vrot.slane %v912_v6, %v1972_v18 }
 0x277   :  { %1029 = vrot.lane.b32.xlu0 %v2952_v47, %s1887_s30  ;;  %v978_v10 = vsel %vm974_vm8, 1, %v1881_v8  ;;  %vm2988_vm5 = vmand %vm2929_vm7, %vm1062_vm3  ;;  %v913_v7 = vsel %vm4428_vm6, 1, %v1881_v8 }
 0x278   :  { %1043 = vrot.lane.b32.xlu1 %v978_v10, %s1887_s30  ;;  %vm1059_vm4 = vcmp.eq.s32.totalorder %v978_v10, 0  ;;  %vm975_vm13 = vmand %vm2959_vm10, %vm971_vm12  ;;  %v929_v35 = vrot.slane %v913_v7, %v1972_v18  ;;  %v1074_v53 = vsel %vm2988_vm5, 1, %v1881_v8 }
 0x279   :  { %vm2997_vm15 = vmand %vm2942_vm9, %vm1059_vm4  ;;  %v979_v23 = vsel %vm975_vm13, 1, %v1881_v8 }
 0x27a   :  { %vm1060_vm8 = vcmp.eq.s32.totalorder %v979_v23, 0  ;;  %vm976_vm3 = vmand %vm2977_vm11, %vm972_vm14  ;;  %vm4420_vm14 = vcmp.ne.s32.totalorder %v860_v14, 0  ;;  %v897_v14 = vrot.slane %v881_v15, %v1972_v18  ;;  %vm3116_vm6 = vcmp.eq.s32.totalorder %v929_v35, 1 }
 0x27b   :  { %1049 = vrot.lane.b32.xlu0 %v981_v46, %s1887_s30  ;;  %vm3007_vm7 = vmand %vm2959_vm10, %vm1060_vm8  ;;  %v980_v32 = vsel %vm976_vm3, 1, %v1881_v8  ;;  %v910_v49 = vsel %vm4420_vm14, 1, %v1881_v8  ;;  %vm3067_vm10 = vcmp.eq.s32.totalorder %v889_v33, 1  ;;  %vm3088_vm3 = vcmp.eq.s32.totalorder %v893_v22, 1 }
 0x27c   :  { %1031 = vrot.lane.b32.xlu1 %v2969_v1, %s1887_s30  ;;  %vm1061_vm12 = vcmp.eq.s32.totalorder %v980_v32, 0  ;;  %v917_v61 = vrot.slane %v910_v49, %v1972_v18  ;;  %vm4433_vm8 = vmmov %vm4426_vm0  ;;  %v904_v54 = vsel %vm3088_vm3, %v2832_v39, -inf  ;;  %v908_v16 = vsel %vm3088_vm3, %v2872_v38, -inf }
 0x27d   :  { %vm3016_vm4 = vmand %vm2977_vm11, %vm1061_vm12  ;;  %vm4421_vm11 = vcmp.ne.s32.totalorder %v859_v4, 0  ;;  %v903_v4 = vsel %vm3067_vm10, %v2830_v58, -inf  ;;  %v906_v58 = vsel %vm3040_vm2, %v2854_v17, -inf  ;;  %vm3098_vm12 = vcmp.eq.s32.totalorder %v897_v14, 1 }
 0x27e   :  { %v911_v63 = vsel %vm4421_vm11, 1, %v1881_v8  ;;  %vm3044_vm9 = vcmp.eq.s32.totalorder %v917_v61, 1  ;;  %vm4438_vm14 = vmmov %vm4426_vm0  ;;  %vm4443_vm2 = vcmp.lt.s32.totalorder %v1976_v21, 504  ;;  %v905_v49 = vsel %vm3098_vm12, %v2828_v27, -inf }
 0x27f   :  { %1045 = vrot.lane.b32.xlu0 %v979_v23, %s1887_s30  ;;  %v921_v50 = vrot.slane %v911_v63, %v1972_v18  ;;  %vm4439_vm11 = vmmov %vm4426_vm0  ;;  %v909_v27 = vsel %vm3098_vm12, %v2852_v56, -inf  ;;  %v907_v56 = vsel %vm3067_vm10, %v2870_v43, -inf  ;;  %vm4254_vm10 = vcmp.lt.s32.totalorder %v1953_v13, 112 }
 0x280   :  { %1047 = vrot.lane.b32.xlu1 %v980_v32, %s1887_s30  ;;  %vm4442_vm1 = vmmov %vm4433_vm8  ;;  %v1073_v20 = vsel %vm3016_vm4, 1, %v1881_v8 }
 0x281   :  { %vm3071_vm13 = vcmp.eq.s32.totalorder %v921_v50, 1 }
 0x2c7   :  { %v790_v44 = vpop.permute.xlu0 %789 }
 0x2cb   :  { %v794_v24 = vpop.permute.xlu0 %793 }
 0x2cc   :  { %v810_v36 = vsel %vm4426_vm0, %v790_v44, %v794_v24  ;;  %vm3106_vm0 = vcmp.eq.s32.totalorder %v925_v25, 1 }
 0x2cd   :  { %v934_v3 = vsel %vm3044_vm9, %v810_v36, -inf }
 0x2ce   :  { %v3063_v9 = vmax.f32 %v902_v5, %v934_v3 }
 0x2cf   :  { %v792_v11 = vpop.permute.xlu1 %791  ;;  %v798_v60 = vpop.permute.xlu0 %797 }
 0x2d0   :  { %v808_v40 = vsel %vm4433_vm8, %v794_v24, %v798_v60  ;;  %982 = vrot.lane.b32.xlu0 %v3063_v9, %s1887_s30  ;;  %vm4446_vm8 = vmmov %vm4442_vm1 }
 0x2d1   :  { %v935_v34 = vsel %vm3071_vm13, %v808_v40, -inf }
 0x2d2   :  { %v3086_v2 = vmax.f32 %v903_v4, %v935_v34 }
 0x2d3   :  { %v802_v42 = vpop.permute.xlu1 %801  ;;  %v796_v45 = vpop.permute.xlu0 %795 }
 0x2d4   :  { %v806_v28 = vsel %vm4438_vm14, %v798_v60, %v802_v42  ;;  %v812_v48 = vsel %vm4439_vm11, %v802_v42, %v790_v44  ;;  %v811_v39 = vsel %vm4442_vm1, %v792_v11, %v796_v45  ;;  %986 = vrot.lane.b32.xlu0 %v3086_v2, %s1887_s30  ;;  %vm4448_vm14 = vmmov %vm4442_vm1 }
 0x2d5   :  { %v829_v17 = vsel %vm4443_vm2, %v812_v48, -inf  ;;  %v936_v51 = vsel %vm3106_vm0, %v806_v28, -inf  ;;  %v938_v10 = vsel %vm3044_vm9, %v811_v39, -inf  ;;  %vm4447_vm9 = vmmov %vm4443_vm2 }
 0x2d6   :  { %v937_v23 = vsel %vm3116_vm6, %v829_v17, -inf  ;;  %v3126_v32 = vmax.f32 %v904_v54, %v936_v51  ;;  %v3128_v59 = vmax.f32 %v906_v58, %v938_v10  ;;  %vm4449_vm11 = vmmov %vm4442_vm1 }
 0x2d7   :  { %v804_v44 = vpop.permute.xlu1 %803  ;;  %v3133_v52 = vmax.f32 %v905_v49, %v937_v23 }
 0x2d8   :  { %v813_v61 = vsel %vm4446_vm8, %v804_v44, %v792_v11  ;;  %984 = vrot.lane.b32.xlu1 %v3128_v59, %s1887_s30  ;;  %990 = vrot.lane.b32.xlu0 %v3126_v32, %s1887_s30 }
 0x2d9   :  { %v833_v62 = vsel %vm4447_vm9, %v813_v61, -inf }
 0x2da   :  { %v941_v63 = vsel %vm3116_vm6, %v833_v62, -inf }
 0x2db   :  { %v800_v15 = vpop.permute.xlu1 %799  ;;  %v3148_v0 = vmax.f32 %v909_v27, %v941_v63 }
 0x2dc   :  { %v807_v26 = vsel %vm4448_vm14, %v800_v15, %v804_v44  ;;  %v809_v24 = vsel %vm4449_vm11, %v796_v45, %v800_v15  ;;  %994 = vrot.lane.b32.xlu1 %v3133_v52, %s1887_s30 }
 0x2dd   :  { %v939_v36 = vsel %vm3071_vm13, %v809_v24, -inf  ;;  %v940_v33 = vsel %vm3106_vm0, %v807_v26, -inf  ;;  %vm4251_vm13 = vcmp.lt.s32.totalorder %v1976_v21, 496 }
 0x2de   :  { %v3166_v50 = vmax.f32 %v907_v56, %v939_v36  ;;  %v3168_v6 = vmax.f32 %v908_v16, %v940_v33  ;;  %v1071_v36 = vsel %vm2997_vm15, 1, %v1881_v8 }
 0x2e0   :  { %996 = vrot.lane.b32.xlu1 %v3148_v0, %s1887_s30  ;;  %988 = vrot.lane.b32.xlu0 %v3166_v50, %s1887_s30 }
 0x2e2   :  { %v1034_v38 = vpop.permute.xlu1 %1033 }
 0x2e4   :  { %992 = vrot.lane.b32.xlu1 %v3168_v6, %s1887_s30 }
 0x2e5   :  { %v1028_v43 = vpop.permute.xlu0 %1027 }
 0x2e6   :  { %v1038_v5 = vsel %vm4254_vm10, %v1034_v38, %v1028_v43 }
 0x2e7   :  { %v1042_v22 = vsel %vm4251_vm13, %v1038_v5, 0  ;;  %v1078_v5 = vrot.slane %v1071_v36, %v1972_v18 }
 0x2e8   :  { %v1831_v19 = vadd.s32 4294967280, %v1042_v22 }
 0x2e9   :  { %v1030_v3 = vpop.permute.xlu0 %1029 }
 0x2ea   :  { %v1044_v7 = vpop.permute.xlu1 %1043  ;;  %v1037_v55 = vsel %vm4254_vm10, %v1028_v43, %v1030_v3 }
 0x2eb   :  { %v1828_v31 = vadd.s32 4294967280, %v1037_v55 }
 0x2ed   :  { %v1050_v11 = vpop.permute.xlu0 %1049 }
 0x2ee   :  { %v1054_v60 = vsel %vm4254_vm10, %v1050_v11, %v1044_v7  ;;  %v1032_v14 = vpop.permute.xlu1 %1031 }
 0x2ef   :  { %v3188_v40 = vsel %vm4251_vm13, %v1054_v60, 0  ;;  %v1035_v25 = vsel %vm4254_vm10, %v1032_v14, %v1034_v38  ;;  %v1036_v4 = vsel %vm4254_vm10, %v1030_v3, %v1032_v14  ;;  %v1072_v38 = vsel %vm3007_vm7, 1, %v1881_v8 }
 0x2f0   :  { %vm4252_vm3 = vcmp.ne.s32.totalorder %v3188_v40, 0  ;;  %v1830_v54 = vadd.s32 4294967280, %v1035_v25  ;;  %v1829_v46 = vadd.s32 4294967280, %v1036_v4 }
 0x2f1   :  { %v1046_v34 = vpop.permute.xlu0 %1045  ;;  %v1150_v35 = vsel %vm4252_vm3, %v1831_v19, 0  ;;  %vm3219_vm2 = vmor %vm2988_vm5, %vm4252_vm3 }
 0x2f2   :  { %v1053_v42 = vsel %vm4254_vm10, %v1044_v7, %v1046_v34  ;;  %v1048_v58 = vpop.permute.xlu1 %1047  ;;  %v3202_v45 = vsel %vm2988_vm5, %v2912_v29, %v1150_v35 }
 0x2f3   :  { %vm4256_vm12 = vcmp.ne.s32.totalorder %v1053_v42, 0  ;;  %v3206_v12 = vsel %vm4254_vm10, %v1048_v58, %v1050_v11  ;;  %v1052_v28 = vsel %vm4254_vm10, %v1046_v34, %v1048_v58  ;;  %1226 = vrot.lane.b32.xlu1 %v3202_v45, %s1888_s7  ;;  %v1162_v48 = vand.u32 32, %v3202_v45 }
 0x2f4   :  { %vm4255_vm0 = vcmp.ne.s32.totalorder %v1052_v28, 0  ;;  %vm4253_vm1 = vcmp.ne.s32.totalorder %v3206_v12, 0  ;;  %v1147_v29 = vsel %vm4256_vm12, %v1828_v31, 0  ;;  %vm3233_vm6 = vmor %vm2997_vm15, %vm4256_vm12  ;;  %v1082_v11 = vrot.slane %v1072_v38, %v1972_v18 }
 0x2f5   :  { %v3226_v17 = vsel %vm2997_vm15, %v2936_v41, %v1147_v29  ;;  %v1149_v30 = vsel %vm4253_vm1, %v1830_v54, 0  ;;  %v1148_v23 = vsel %vm4255_vm0, %v1829_v46, 0  ;;  %vm1166_vm8 = vcmp.ne.s32.totalorder %v1162_v48, 0  ;;  %vm3250_vm9 = vmor %vm3016_vm4, %vm4253_vm1 }
 0x2f6   :  { %v1159_v10 = vand.u32 32, %v3226_v17  ;;  %1220 = vrot.lane.b32.xlu0 %v3226_v17, %s1888_s7  ;;  %v3243_v41 = vsel %vm3016_vm4, %v2969_v1, %v1149_v30  ;;  %v3260_v1 = vsel %vm3007_vm7, %v2952_v47, %v1148_v23  ;;  %vm1170_vm14 = vmand %vm3219_vm2, %vm1166_vm8  ;;  %vm3328_vm15 = vcmp.eq.s32.totalorder %v1078_v5, 1 }
 0x2f7   :  { %1224 = vrot.lane.b32.xlu1 %v3243_v41, %s1888_s7  ;;  %v1161_v44 = vand.u32 32, %v3243_v41  ;;  %v1160_v61 = vand.u32 32, %v3260_v1  ;;  %v1174_v62 = vsel %vm1170_vm14, 1, %v1881_v8  ;;  %vm3269_vm13 = vmor %vm3007_vm7, %vm4255_vm0  ;;  %vm4472_vm7 = vcmp.lt.s32.totalorder %v1953_v13, 112 }
 0x2f8   :  { %vm1163_vm11 = vcmp.ne.s32.totalorder %v1159_v10, 0  ;;  %vm1255_vm3 = vcmp.eq.s32.totalorder %v1174_v62, 0  ;;  %vm4473_vm5 = vcmp.ne.s32.totalorder %v3206_v12, 0  ;;  %v1095_v25 = vsel %vm3328_vm15, %v3063_v9, -inf }
 0x2f9   :  { %vm1167_vm1 = vmand %vm3233_vm6, %vm1163_vm11  ;;  %vm1165_vm10 = vcmp.ne.s32.totalorder %v1161_v44, 0  ;;  %vm1164_vm14 = vcmp.ne.s32.totalorder %v1160_v61, 0  ;;  %v1105_v55 = vsel %vm4473_vm5, 1, %v1881_v8  ;;  %vm4488_vm5 = vcmp.lt.s32.totalorder %v1976_v21, 496 }
 0x2fa   :  { %1222 = vrot.lane.b32.xlu0 %v3260_v1, %s1888_s7  ;;  %vm3279_vm8 = vmand %vm3219_vm2, %vm1255_vm3  ;;  %v1171_v27 = vsel %vm1167_vm1, 1, %v1881_v8  ;;  %v1118_v12 = vrot.slane %v1105_v55, %v1972_v18 }
 0x2fb   :  { %1242 = vrot.lane.b32.xlu1 %v1174_v62, %s1888_s7  ;;  %vm1252_vm0 = vcmp.eq.s32.totalorder %v1171_v27, 0  ;;  %vm1169_vm12 = vmand %vm3250_vm9, %vm1165_vm10 }
 0x2fc   :  { %vm3289_vm11 = vmand %vm3233_vm6, %vm1252_vm0  ;;  %v1173_v26 = vsel %vm1169_vm12, 1, %v1881_v8  ;;  %vm4466_vm0 = vcmp.ne.s32.totalorder %v1053_v42, 0  ;;  %v1090_v42 = vrot.slane %v1074_v53, %v1972_v18 }
 0x2fd   :  { %vm1254_vm3 = vcmp.eq.s32.totalorder %v1173_v26, 0  ;;  %vm1168_vm2 = vmand %vm3269_vm13, %vm1164_vm14  ;;  %v1103_v33 = vsel %vm4466_vm0, 1, %v1881_v8  ;;  %vm3355_vm14 = vcmp.eq.s32.totalorder %v1082_v11, 1 }
 0x2fe   :  { %1236 = vrot.lane.b32.xlu0 %v1171_v27, %s1888_s7  ;;  %vm3299_vm1 = vmand %vm3250_vm9, %vm1254_vm3  ;;  %v1172_v16 = vsel %vm1168_vm2, 1, %v1881_v8  ;;  %v1110_v3 = vrot.slane %v1103_v33, %v1972_v18  ;;  %vm4474_vm9 = vcmp.ne.s32.totalorder %v3188_v40, 0  ;;  %v1086_v40 = vrot.slane %v1073_v20, %v1972_v18 }
 0x2ff   :  { %1240 = vrot.lane.b32.xlu1 %v1173_v26, %s1888_s7  ;;  %vm1253_vm10 = vcmp.eq.s32.totalorder %v1172_v16, 0  ;;  %v1106_v34 = vsel %vm4474_vm9, 1, %v1881_v8  ;;  %vm4479_vm3 = vmmov %vm4472_vm7  ;;  %vm3378_vm2 = vcmp.eq.s32.totalorder %v1090_v42, 1 }
 0x300   :  { %vm3307_vm12 = vmand %vm3269_vm13, %vm1253_vm10  ;;  %vm4467_vm13 = vcmp.ne.s32.totalorder %v1052_v28, 0  ;;  %vm3332_vm6 = vcmp.eq.s32.totalorder %v1110_v3, 1  ;;  %v1096_v28 = vsel %vm3355_vm14, %v3086_v2, -inf  ;;  %v1122_v46 = vrot.slane %v1106_v34, %v1972_v18 }
 0x301   :  { %v1104_v7 = vsel %vm4467_vm13, 1, %v1881_v8  ;;  %vm3382_vm10 = vcmp.eq.s32.totalorder %v1086_v40, 1  ;;  %vm4484_vm0 = vmmov %vm4479_vm3  ;;  %v1098_v26 = vsel %vm3378_vm2, %v3133_v52, -inf  ;;  %v1099_v52 = vsel %vm3328_vm15, %v3128_v59, -inf }
 0x302   :  { %1238 = vrot.lane.b32.xlu0 %v1172_v16, %s1888_s7  ;;  %v1114_v19 = vrot.slane %v1104_v7, %v1972_v18  ;;  %vm4485_vm13 = vmmov %vm4484_vm0  ;;  %v1097_v49 = vsel %vm3382_vm10, %v3126_v32, -inf  ;;  %vm3401_vm9 = vcmp.eq.s32.totalorder %v1122_v46, 1  ;;  %v1102_v53 = vsel %vm3378_vm2, %v3148_v0, -inf }
 0x303   :  { %vm4494_vm15 = vmmov %vm4484_vm0  ;;  %v1101_v60 = vsel %vm3382_vm10, %v3168_v6, -inf  ;;  %v1100_v0 = vsel %vm3355_vm14, %v3166_v50, -inf  ;;  %vm4257_vm14 = vcmp.lt.s32.totalorder %v1976_v21, 480 }
 0x304   :  { %vm3360_vm4 = vcmp.eq.s32.totalorder %v1114_v19, 1 }
 0x342   :  { %v983_v43 = vpop.permute.xlu0 %982 }
 0x346   :  { %v987_v22 = vpop.permute.xlu0 %986 }
 0x347   :  { %v1003_v14 = vsel %vm4472_vm7, %v983_v43, %v987_v22  ;;  %vm3390_vm7 = vcmp.eq.s32.totalorder %v1118_v12, 1 }
 0x348   :  { %v1127_v4 = vsel %vm3332_vm6, %v1003_v14, -inf }
 0x349   :  { %v3353_v35 = vmax.f32 %v1095_v25, %v1127_v4 }
 0x34a   :  { %v985_v31 = vpop.permute.xlu1 %984  ;;  %v991_v54 = vpop.permute.xlu0 %990 }
 0x34b   :  { %v1001_v9 = vsel %vm4479_vm3, %v987_v22, %v991_v54  ;;  %1175 = vrot.lane.b32.xlu0 %v3353_v35, %s1888_s7  ;;  %vm4491_vm3 = vmmov %vm4484_vm0 }
 0x34c   :  { %v1128_v48 = vsel %vm3360_vm4, %v1001_v9, -inf }
 0x34d   :  { %v3376_v29 = vmax.f32 %v1096_v28, %v1128_v48 }
 0x34e   :  { %v995_v39 = vpop.permute.xlu1 %994 }
 0x34f   :  { %v999_v10 = vsel %vm4484_vm0, %v991_v54, %v995_v39  ;;  %v1005_v2 = vsel %vm4485_vm13, %v995_v39, %v983_v43  ;;  %1179 = vrot.lane.b32.xlu0 %v3376_v29, %s1888_s7  ;;  %vm4492_vm13 = vmmov %vm4488_vm5 }
 0x350   :  { %v1022_v44 = vsel %vm4488_vm5, %v1005_v2, -inf  ;;  %v1129_v62 = vsel %vm3390_vm7, %v999_v10, -inf  ;;  %vm4493_vm5 = vmmov %vm4484_vm0 }
 0x351   :  { %v1130_v63 = vsel %vm3401_vm9, %v1022_v44, -inf  ;;  %v3409_v27 = vmax.f32 %v1097_v49, %v1129_v62 }
 0x352   :  { %v997_v32 = vpop.permute.xlu1 %996  ;;  %v989_v16 = vpop.permute.xlu0 %988  ;;  %v3414_v36 = vmax.f32 %v1098_v26, %v1130_v63 }
 0x353   :  { %v1006_v33 = vsel %vm4491_vm3, %v997_v32, %v985_v31  ;;  %v1004_v43 = vsel %vm4484_vm0, %v985_v31, %v989_v16  ;;  %1183 = vrot.lane.b32.xlu0 %v3409_v27, %s1888_s7 }
 0x354   :  { %v1026_v38 = vsel %vm4492_vm13, %v1006_v33, -inf  ;;  %v1131_v5 = vsel %vm3332_vm6, %v1004_v43, -inf  ;;  %vm4260_vm6 = vcmp.lt.s32.totalorder %v1953_v13, 96 }
 0x355   :  { %v1134_v3 = vsel %vm3401_vm9, %v1026_v38, -inf  ;;  %v3431_v7 = vmax.f32 %v1099_v52, %v1131_v5 }
 0x356   :  { %v993_v22 = vpop.permute.xlu1 %992  ;;  %v3436_v11 = vmax.f32 %v1102_v53, %v1134_v3 }
 0x357   :  { %v1000_v14 = vsel %vm4493_vm5, %v993_v22, %v997_v32  ;;  %v1002_v59 = vsel %vm4494_vm15, %v989_v16, %v993_v22  ;;  %1177 = vrot.lane.b32.xlu1 %v3431_v7, %s1888_s7 }
 0x358   :  { %v1132_v57 = vsel %vm3360_vm4, %v1002_v59, -inf  ;;  %v1133_v19 = vsel %vm3390_vm7, %v1000_v14, -inf  ;;  %v4505_v59 = vmov 0 }
 0x359   :  { %v3454_v20 = vmax.f32 %v1100_v0, %v1132_v57  ;;  %v3456_v55 = vmax.f32 %v1101_v60, %v1133_v19  ;;  %v4509_v0 = vmov 0  ;;  %v1264_v57 = vsel %vm3289_vm11, 1, %v1881_v8 }
 0x35b   :  { %1187 = vrot.lane.b32.xlu1 %v3414_v36, %s1888_s7  ;;  %1181 = vrot.lane.b32.xlu0 %v3454_v20, %s1888_s7 }
 0x35f   :  { %1189 = vrot.lane.b32.xlu1 %v3436_v11, %s1888_s7 }
 0x363   :  { %1185 = vrot.lane.b32.xlu1 %v3456_v55, %s1888_s7 }
 0x365   :  { %v1227_v50 = vpop.permute.xlu1 %1226 }
 0x368   :  { %v1221_v6 = vpop.permute.xlu0 %1220 }
 0x369   :  { %v1225_v25 = vpop.permute.xlu1 %1224  ;;  %v1231_v4 = vsel %vm4260_vm6, %v1227_v50, %v1221_v6 }
 0x36a   :  { %v1235_v37 = vsel %vm4257_vm14, %v1231_v4, 0  ;;  %v1228_v54 = vsel %vm4260_vm6, %v1225_v25, %v1227_v50 }
 0x36b   :  { %v1835_v28 = vadd.s32 4294967264, %v1235_v37  ;;  %v1834_v48 = vadd.s32 4294967264, %v1228_v54 }
 0x36c   :  { %v1223_v34 = vpop.permute.xlu0 %1222 }
 0x36d   :  { %v1243_v31 = vpop.permute.xlu1 %1242  ;;  %v1229_v58 = vsel %vm4260_vm6, %v1223_v34, %v1225_v25  ;;  %v1230_v9 = vsel %vm4260_vm6, %v1221_v6, %v1223_v34  ;;  %v1271_v6 = vrot.slane %v1264_v57, %v1972_v18  ;;  %v1265_v25 = vsel %vm3307_vm12, 1, %v1881_v8 }
 0x36e   :  { %v1832_v30 = vadd.s32 4294967264, %v1230_v9  ;;  %v1833_v51 = vadd.s32 4294967264, %v1229_v58  ;;  %v1275_v54 = vrot.slane %v1265_v25, %v1972_v18 }
 0x370   :  { %v1237_v42 = vpop.permute.xlu0 %1236 }
 0x371   :  { %v1247_v40 = vsel %vm4260_vm6, %v1243_v31, %v1237_v42  ;;  %v1241_v12 = vpop.permute.xlu1 %1240 }
 0x372   :  { %v3482_v46 = vsel %vm4257_vm14, %v1247_v40, 0  ;;  %v3486_v39 = vsel %vm4260_vm6, %v1241_v12, %v1243_v31 }
 0x373   :  { %vm4258_vm4 = vcmp.ne.s32.totalorder %v3482_v46, 0  ;;  %vm4259_vm2 = vcmp.ne.s32.totalorder %v3486_v39, 0 }
 0x374   :  { %v1239_v10 = vpop.permute.xlu0 %1238  ;;  %v1343_v2 = vsel %vm4258_vm4, %v1835_v28, 0  ;;  %v1342_v23 = vsel %vm4259_vm2, %v1834_v48, 0  ;;  %vm3512_vm10 = vmor %vm3279_vm8, %vm4258_vm4  ;;  %v1267_v48 = vsel %vm3279_vm8, 1, %v1881_v8 }
 0x375   :  { %v1245_v49 = vsel %vm4260_vm6, %v1239_v10, %v1241_v12  ;;  %v1246_v44 = vsel %vm4260_vm6, %v1237_v42, %v1239_v10  ;;  %v3501_v61 = vsel %vm3279_vm8, %v3202_v45, %v1343_v2  ;;  %v3506_v62 = vsel %vm3299_vm1, %v3243_v41, %v1342_v23  ;;  %vm3522_vm3 = vmor %vm3299_vm1, %vm4259_vm2 }
 0x376   :  { %vm4262_vm7 = vcmp.ne.s32.totalorder %v1246_v44, 0  ;;  %vm4261_vm9 = vcmp.ne.s32.totalorder %v1245_v49, 0  ;;  %v1355_v26 = vand.u32 64, %v3501_v61  ;;  %v1354_v45 = vand.u32 64, %v3506_v62 }
 0x377   :  { %v1341_v32 = vsel %vm4261_vm9, %v1833_v51, 0  ;;  %v1340_v16 = vsel %vm4262_vm7, %v1832_v30, 0  ;;  %vm3541_vm5 = vmor %vm3307_vm12, %vm4261_vm9  ;;  %v1266_v51 = vsel %vm3299_vm1, 1, %v1881_v8  ;;  %vm4522_vm8 = vcmp.ne.s32.totalorder %v3486_v39, 0 }
 0x378   :  { %v3531_v33 = vsel %vm3307_vm12, %v3260_v1, %v1341_v32  ;;  %v3536_v43 = vsel %vm3289_vm11, %v3226_v17, %v1340_v16  ;;  %vm1359_vm0 = vcmp.ne.s32.totalorder %v1355_v26, 0  ;;  %vm1358_vm13 = vcmp.ne.s32.totalorder %v1354_v45, 0  ;;  %vm3559_vm2 = vmor %vm3289_vm11, %vm4262_vm7 }
 0x379   :  { %1415 = vrot.lane.b32.xlu1 %v3531_v33, %s1889_s8  ;;  %v1353_v1 = vand.u32 64, %v3531_v33  ;;  %v1352_v52 = vand.u32 64, %v3536_v43  ;;  %1413 = vrot.lane.b32.xlu0 %v3536_v43, %s1889_s8  ;;  %vm1363_vm15 = vmand %vm3512_vm10, %vm1359_vm0  ;;  %vm3617_vm11 = vcmp.eq.s32.totalorder %v1271_v6, 1  ;;  %v1298_v47 = vsel %vm4522_vm8, 1, %v1881_v8 }
 0x37a   :  { %v1367_v17 = vsel %vm1363_vm15, 1, %v1881_v8  ;;  %vm1362_vm14 = vmand %vm3522_vm3, %vm1358_vm13  ;;  %v1288_v12 = vsel %vm3617_vm11, %v3353_v35, -inf  ;;  %v1283_v26 = vrot.slane %v1267_v48, %v1972_v18  ;;  %v1279_v32 = vrot.slane %v1266_v51, %v1972_v18 }
 0x37b   :  { %vm1357_vm4 = vcmp.ne.s32.totalorder %v1353_v1, 0  ;;  %vm1356_vm6 = vcmp.ne.s32.totalorder %v1352_v52, 0  ;;  %vm1448_vm9 = vcmp.eq.s32.totalorder %v1367_v17, 0  ;;  %v1366_v3 = vsel %vm1362_vm14, 1, %v1881_v8 }
 0x37c   :  { %vm1361_vm0 = vmand %vm3541_vm5, %vm1357_vm4  ;;  %vm1447_vm4 = vcmp.eq.s32.totalorder %v1366_v3, 0  ;;  %v1311_v38 = vrot.slane %v1298_v47, %v1972_v18 }
 0x37d   :  { %1419 = vrot.lane.b32.xlu1 %v3501_v61, %s1889_s8  ;;  %1417 = vrot.lane.b32.xlu0 %v3506_v62, %s1889_s8  ;;  %v1365_v53 = vsel %vm1361_vm0, 1, %v1881_v8  ;;  %vm1360_vm13 = vmand %vm3559_vm2, %vm1356_vm6 }
 0x37e   :  { %vm1446_vm15 = vcmp.eq.s32.totalorder %v1365_v53, 0  ;;  %v1364_v22 = vsel %vm1360_vm13, 1, %v1881_v8  ;;  %vm3576_vm14 = vmand %vm3512_vm10, %vm1448_vm9  ;;  %vm4512_vm9 = vcmp.ne.s32.totalorder %v1245_v49, 0 }
 0x37f   :  { %vm3582_vm7 = vmand %vm3541_vm5, %vm1446_vm15  ;;  %vm1445_vm0 = vcmp.eq.s32.totalorder %v1364_v22, 0  ;;  %v1297_v15 = vsel %vm4512_vm9, 1, %v1881_v8  ;;  %vm3646_vm5 = vcmp.eq.s32.totalorder %v1275_v54, 1  ;;  %v1460_v52 = vsel %vm3576_vm14, 1, %v1881_v8 }
 0x380   :  { %v4506_v59 = vsel %vm3582_vm7, 4294967295, %v4505_v59  ;;  %vm3588_vm6 = vmand %vm3559_vm2, %vm1445_vm0  ;;  %vm4511_vm2 = vcmp.ne.s32.totalorder %v1246_v44, 0  ;;  %v1458_v56 = vsel %vm3582_vm7, 1, %v1881_v8  ;;  %v1307_v40 = vrot.slane %v1297_v15, %v1972_v18 }
 0x381   :  { %1431 = vrot.lane.b32.xlu1 %v1365_v53, %s1889_s8  ;;  %1429 = vrot.lane.b32.xlu0 %v1364_v22, %s1889_s8  ;;  %vm3596_vm10 = vmand %vm3522_vm3, %vm1447_vm4  ;;  %v1296_v19 = vsel %vm4511_vm2, 1, %v1881_v8  ;;  %v1457_v4 = vsel %vm3588_vm6, 1, %v1881_v8  ;;  %vm4517_vm3 = vcmp.lt.s32.totalorder %v1953_v13, 96  ;;  %v1468_v35 = vrot.slane %v1458_v56, %v1972_v18 }
 0x382   :  { %v4510_v0 = vsel %vm3596_vm10, 4294967295, %v4509_v0  ;;  %v1303_v34 = vrot.slane %v1296_v19, %v1972_v18  ;;  %v1464_v42 = vrot.slane %v1457_v4, %v1972_v18  ;;  %vm3658_vm15 = vcmp.eq.s32.totalorder %v1307_v40, 1  ;;  %vm4525_vm1 = vmmov %vm4517_vm3 }
 0x383   :  { %v1289_v63 = vsel %vm3646_vm5, %v3376_v29, -inf  ;;  %vm4526_vm4 = vcmp.ne.s32.totalorder %v3482_v46, 0  ;;  %vm3682_vm0 = vcmp.eq.s32.totalorder %v1468_v35, 1  ;;  %v1459_v29 = vsel %vm3596_vm10, 1, %v1881_v8  ;;  %vm4535_vm8 = vmmov %vm4525_vm1 }
 0x384   :  { %vm3626_vm12 = vcmp.eq.s32.totalorder %v1303_v34, 1  ;;  %vm3651_vm13 = vcmp.eq.s32.totalorder %v1464_v42, 1  ;;  %v1299_v45 = vsel %vm4526_vm4, 1, %v1881_v8  ;;  %vm3696_vm2 = vcmp.eq.s32.totalorder %v1279_v32, 1  ;;  %vm4536_vm4 = vmmov %vm4525_vm1 }
 0x385   :  { %1435 = vrot.lane.b32.xlu1 %v1367_v17, %s1889_s8  ;;  %1433 = vrot.lane.b32.xlu0 %v1366_v3, %s1889_s8  ;;  %v1315_v17 = vrot.slane %v1299_v45, %v1972_v18  ;;  %vm3700_vm9 = vcmp.eq.s32.totalorder %v1283_v26, 1  ;;  %v1290_v53 = vsel %vm3696_vm2, %v3409_v27, -inf  ;;  %v1292_v19 = vsel %vm3617_vm11, %v3431_v7, -inf  ;;  %vm4542_vm11 = vmmov %vm4525_vm1 }
 0x386   :  { %v1472_v25 = vrot.slane %v1459_v29, %v1972_v18  ;;  %v1476_v15 = vrot.slane %v1460_v52, %v1972_v18  ;;  %vm4537_vm10 = vcmp.lt.s32.totalorder %v1976_v21, 480  ;;  %v1295_v47 = vsel %vm3700_vm9, %v3436_v11, -inf }
 0x387   :  { %vm3724_vm7 = vcmp.eq.s32.totalorder %v1315_v17, 1  ;;  %v1294_v26 = vsel %vm3696_vm2, %v3456_v55, -inf  ;;  %v1293_v11 = vsel %vm3646_vm5, %v3454_v20, -inf  ;;  %vm4267_vm5 = vcmp.lt.s32.totalorder %v1976_v21, 448 }
 0x3bd   :  { %v1176_v50 = vpop.permute.xlu0 %1175 }
 0x3c1   :  { %v1180_v37 = vpop.permute.xlu0 %1179 }
 0x3c2   :  { %v1196_v9 = vsel %vm4517_vm3, %v1176_v50, %v1180_v37  ;;  %vm3707_vm3 = vcmp.eq.s32.totalorder %v1311_v38, 1 }
 0x3c3   :  { %v1320_v28 = vsel %vm3626_vm12, %v1196_v9, -inf }
 0x3c4   :  { %v3641_v30 = vmax.f32 %v1288_v12, %v1320_v28 }
 0x3c5   :  { %v1184_v2 = vpop.permute.xlu0 %1183 }
 0x3c6   :  { %v1194_v24 = vsel %vm4525_vm1, %v1180_v37, %v1184_v2  ;;  %1368 = vrot.lane.b32.xlu0 %v3641_v30, %s1889_s8  ;;  %v1481_v44 = vsel %vm3651_vm13, %v3641_v30, -inf }
 0x3c7   :  { %v1321_v39 = vsel %vm3658_vm15, %v1194_v24, -inf }
 0x3c8   :  { %v3678_v41 = vmax.f32 %v1289_v63, %v1321_v39 }
 0x3c9   :  { %v1178_v16 = vpop.permute.xlu1 %1177 }
 0x3ca   :  { %v1482_v46 = vsel %vm3682_vm0, %v3678_v41, -inf }
 0x3cd   :  { %v1188_v57 = vpop.permute.xlu1 %1187  ;;  %v1182_v6 = vpop.permute.xlu0 %1181 }
 0x3ce   :  { %v1192_v4 = vsel %vm4535_vm8, %v1184_v2, %v1188_v57  ;;  %v1198_v34 = vsel %vm4525_vm1, %v1188_v57, %v1176_v50  ;;  %v1197_v27 = vsel %vm4536_vm4, %v1178_v16, %v1182_v6  ;;  %v1291_v50 = vsel %vm3700_vm9, %v3414_v36, -inf  ;;  %vm4546_vm4 = vmmov %vm4525_vm1 }
 0x3cf   :  { %v1215_v37 = vsel %vm4537_vm10, %v1198_v34, -inf  ;;  %v1322_v7 = vsel %vm3707_vm3, %v1192_v4, -inf  ;;  %v1324_v54 = vsel %vm3626_vm12, %v1197_v27, -inf  ;;  %vm3743_vm10 = vcmp.eq.s32.totalorder %v1472_v25, 1 }
 0x3d0   :  { %v1323_v42 = vsel %vm3724_vm7, %v1215_v37, -inf  ;;  %v3737_v56 = vmax.f32 %v1290_v53, %v1322_v7  ;;  %v3739_v9 = vmax.f32 %v1292_v19, %v1324_v54  ;;  %vm3753_vm12 = vcmp.eq.s32.totalorder %v1476_v15, 1 }
 0x3d1   :  { %v3741_v40 = vmax.f32 %v1291_v50, %v1323_v42  ;;  %v1190_v12 = vpop.permute.xlu1 %1189  ;;  %vm4545_vm8 = vcmp.lt.s32.totalorder %v1976_v21, 480 }
 0x3d2   :  { %v1199_v58 = vsel %vm4542_vm11, %v1190_v12, %v1178_v16  ;;  %1376 = vrot.lane.b32.xlu1 %v3737_v56, %s1889_s8  ;;  %1370 = vrot.lane.b32.xlu0 %v3739_v9, %s1889_s8  ;;  %v1483_v48 = vsel %vm3743_vm10, %v3737_v56, -inf  ;;  %v1485_v51 = vsel %vm3651_vm13, %v3739_v9, -inf  ;;  %v4613_v56 = vmov 0 }
 0x3d3   :  { %v1219_v2 = vsel %vm4545_vm8, %v1199_v58, -inf  ;;  %v1484_v35 = vsel %vm3753_vm12, %v3741_v40, -inf }
 0x3d4   :  { %v1327_v24 = vsel %vm3724_vm7, %v1219_v2, -inf  ;;  %vm4268_vm7 = vcmp.lt.s32.totalorder %v1953_v13, 64 }
 0x3d5   :  { %v3773_v63 = vmax.f32 %v1295_v47, %v1327_v24  ;;  %v1186_v39 = vpop.permute.xlu1 %1185 }
 0x3d6   :  { %v1193_v45 = vsel %vm4525_vm1, %v1186_v39, %v1190_v12  ;;  %v1195_v32 = vsel %vm4546_vm4, %v1182_v6, %v1186_v39  ;;  %1380 = vrot.lane.b32.xlu1 %v3741_v40, %s1889_s8  ;;  %1372 = vrot.lane.b32.xlu0 %v3678_v41, %s1889_s8  ;;  %vm4550_vm4 = vnez %v4510_v0 }
 0x3d7   :  { %v1325_v16 = vsel %vm3658_vm15, %v1195_v32, -inf  ;;  %v1326_v55 = vsel %vm3707_vm3, %v1193_v45, -inf  ;;  %v1488_v38 = vsel %vm3753_vm12, %v3773_v63, -inf }
 0x3d8   :  { %v3796_v29 = vmax.f32 %v1293_v11, %v1325_v16  ;;  %v3798_v52 = vmax.f32 %v1294_v26, %v1326_v55 }
 0x3da   :  { %1382 = vrot.lane.b32.xlu1 %v3773_v63, %s1889_s8  ;;  %1374 = vrot.lane.b32.xlu0 %v3796_v29, %s1889_s8  ;;  %v1487_v20 = vsel %vm3743_vm10, %v3798_v52, -inf  ;;  %v1486_v10 = vsel %vm3682_vm0, %v3796_v29, -inf }
 0x3de   :  { %1378 = vrot.lane.b32.xlu1 %v3798_v52, %s1889_s8 }
 0x3eb   :  { %v1416_v49 = vpop.permute.xlu1 %1415  ;;  %v1414_v17 = vpop.permute.xlu0 %1413 }
 0x3ec   :  { %v1423_v53 = vsel %vm4268_vm7, %v1414_v17, %v1416_v49 }
 0x3ed   :  { %v1836_v6 = vadd.s32 4294967232, %v1423_v53 }
 0x3ef   :  { %v1420_v5 = vpop.permute.xlu1 %1419  ;;  %v1418_v3 = vpop.permute.xlu0 %1417 }
 0x3f0   :  { %v1424_v22 = vsel %vm4268_vm7, %v1420_v5, %v1414_v17  ;;  %v1421_v25 = vsel %vm4268_vm7, %v1418_v3, %v1420_v5  ;;  %v1422_v4 = vsel %vm4268_vm7, %v1416_v49, %v1418_v3 }
 0x3f1   :  { %v1428_v27 = vsel %vm4267_vm5, %v1424_v22, 0  ;;  %v1837_v37 = vadd.s32 4294967232, %v1422_v4  ;;  %v1838_v31 = vadd.s32 4294967232, %v1421_v25 }
 0x3f2   :  { %v1839_v47 = vadd.s32 4294967232, %v1428_v27 }
 0x3f3   :  { %v1432_v57 = vpop.permute.xlu1 %1431  ;;  %v1430_v19 = vpop.permute.xlu0 %1429 }
 0x3f4   :  { %v3824_v34 = vsel %vm4268_vm7, %v1430_v19, %v1432_v57 }
 0x3f5   :  { %vm4270_vm15 = vcmp.ne.s32.totalorder %v3824_v34, 0 }
 0x3f6   :  { %v1533_v15 = vsel %vm4270_vm15, %v1836_v6, 0  ;;  %vm3854_vm3 = vmor %vm3588_vm6, %vm4270_vm15 }
 0x3f7   :  { %v1537_v7 = vsel %vm3588_vm6, %v3536_v43, %v1533_v15  ;;  %v1436_v54 = vpop.permute.xlu1 %1435  ;;  %v1434_v50 = vpop.permute.xlu0 %1433  ;;  %vm4549_vm6 = vnez %v4506_v59 }
 0x3f8   :  { %v1545_v42 = vand.u32 128, %v1537_v7  ;;  %v1440_v12 = vsel %vm4268_vm7, %v1436_v54, %v1430_v19  ;;  %v3838_v58 = vsel %vm4268_vm7, %v1434_v50, %v1436_v54  ;;  %v3842_v2 = vsel %vm4268_vm7, %v1432_v57, %v1434_v50 }
 0x3f9   :  { %v3846_v24 = vsel %vm4267_vm5, %v1440_v12, 0  ;;  %vm4269_vm2 = vcmp.ne.s32.totalorder %v3842_v2, 0  ;;  %vm4275_vm9 = vcmp.ne.s32.totalorder %v3838_v58, 0 }
 0x3fa   :  { %vm1549_vm11 = vcmp.ne.s32.totalorder %v1545_v42, 0  ;;  %vm4273_vm8 = vcmp.ne.s32.totalorder %v3846_v24, 0  ;;  %v1534_v26 = vsel %vm4269_vm2, %v1837_v37, 0  ;;  %v1535_v45 = vsel %vm4275_vm9, %v1838_v31, 0  ;;  %vm3897_vm7 = vmor %vm4550_vm4, %vm4275_vm9 }
 0x3fb   :  { %vm1553_vm1 = vmand %vm3854_vm3, %vm1549_vm11  ;;  %v1536_v39 = vsel %vm4273_vm8, %v1839_v47, 0  ;;  %v1538_v32 = vsel %vm4549_vm6, %v3531_v33, %v1534_v26  ;;  %v1539_v11 = vsel %vm4550_vm4, %v3506_v62, %v1535_v45  ;;  %v4590_v26 = vmov 0 }
 0x3fc   :  { %v1540_v60 = vsel %vm3576_vm14, %v3501_v61, %v1536_v39  ;;  %v1557_v16 = vsel %vm1553_vm1, 1, %v1881_v8  ;;  %vm3881_vm11 = vmor %vm4549_vm6, %vm4269_vm2  ;;  %v1546_v61 = vand.u32 128, %v1538_v32  ;;  %v1547_v62 = vand.u32 128, %v1539_v11 }
 0x3fd   :  { %v1548_v55 = vand.u32 128, %v1540_v60  ;;  %vm3889_vm5 = vmor %vm3576_vm14, %vm4273_vm8  ;;  %vm1589_vm2 = vcmp.eq.s32.totalorder %v1557_v16, 0  ;;  %v1842_v17 = vadd.s32 4294967168, %v1540_v60  ;;  %v1840_v5 = vadd.s32 4294967168, %v1538_v32 }
 0x3fe   :  { %vm1550_vm6 = vcmp.ne.s32.totalorder %v1546_v61, 0  ;;  %vm1551_vm12 = vcmp.ne.s32.totalorder %v1547_v62, 0  ;;  %v1841_v3 = vadd.s32 4294967168, %v1539_v11 }
 0x3ff   :  { %vm1552_vm1 = vcmp.ne.s32.totalorder %v1548_v55, 0  ;;  %vm1554_vm14 = vmand %vm3881_vm11, %vm1550_vm6 }
 0x400   :  { %vm1556_vm15 = vmand %vm3889_vm5, %vm1552_vm1  ;;  %v3912_v0 = vsel %vm1554_vm14, 1, %v1881_v8 }
 0x401   :  { %v3904_v14 = vsel %vm1556_vm15, 1, %v1881_v8  ;;  %vm1555_vm4 = vmand %vm3897_vm7, %vm1551_vm12  ;;  %vm1590_vm15 = vcmp.eq.s32.totalorder %v3912_v0, 0  ;;  %vm4274_vm12 = vcmp.ne.s32.totalorder %v3912_v0, 0 }
 0x402   :  { %vm4283_vm8 = vcmp.ne.s32.totalorder %v3904_v14, 0  ;;  %vm3916_vm1 = vmand %vm3854_vm3, %vm1589_vm2  ;;  %v1559_v57 = vsel %vm1555_vm4, 1, %v1881_v8  ;;  %v1677_v25 = vsel %vm4274_vm12, %v1840_v5, 0 }
 0x403   :  { %v1679_v22 = vsel %vm4283_vm8, %v1842_v17, 0  ;;  %vm1591_vm6 = vcmp.eq.s32.totalorder %v1559_v57, 0  ;;  %vm3927_vm14 = vmand %vm3881_vm11, %vm1590_vm15  ;;  %vm4276_vm2 = vcmp.ne.s32.totalorder %v1559_v57, 0  ;;  %v1681_v27 = vsel %vm3916_vm1, %v1537_v7, %v1677_v25 }
 0x404   :  { %vm3933_vm3 = vmand %vm3897_vm7, %vm1591_vm6  ;;  %v1678_v4 = vsel %vm4276_vm2, %v1841_v3, 0  ;;  %v1689_v7 = vand.u32 256, %v1681_v27 }
 0x405   :  { %v1682_v15 = vsel %vm3927_vm14, %v1538_v32, %v1678_v4  ;;  %v1683_v37 = vsel %vm3933_vm3, %v1539_v11, %v1679_v22  ;;  %vm3950_vm7 = vmor %vm3916_vm1, %vm4274_vm12 }
 0x406   :  { %vm3957_vm11 = vmor %vm3927_vm14, %vm4276_vm2  ;;  %v1690_v50 = vand.u32 256, %v1682_v15  ;;  %v1691_v42 = vand.u32 256, %v1683_v37  ;;  %vm1693_vm15 = vcmp.ne.s32.totalorder %v1689_v7, 0 }
 0x407   :  { %vm1687_vm4 = vmor %vm3933_vm3, %vm4283_vm8 }
 0x408   :  { %vm1694_vm6 = vcmp.ne.s32.totalorder %v1690_v50, 0  ;;  %vm1695_vm12 = vcmp.ne.s32.totalorder %v1691_v42, 0  ;;  %vm1697_vm9 = vmand %vm3950_vm7, %vm1693_vm15 }
 0x409   :  { %vm1698_vm2 = vmand %vm3957_vm11, %vm1694_vm6  ;;  %v1701_v12 = vsel %vm1697_vm9, 1, %v1881_v8  ;;  %vm1592_vm9 = vcmp.eq.s32.totalorder %v3904_v14, 0  ;;  %vm4578_vm6 = vcmp.ne.s32.totalorder %v3904_v14, 0 }
 0x40a   :  { %vm3970_vm0 = vmand %vm1687_vm4, %vm1695_vm12  ;;  %v1702_v43 = vsel %vm1698_vm2, 1, %v1881_v8  ;;  %vm1717_vm13 = vcmp.eq.s32.totalorder %v1701_v12, 0  ;;  %v1635_v3 = vsel %vm4578_vm6, 1, %v1881_v8 }
 0x40b   :  { %vm1718_vm10 = vcmp.eq.s32.totalorder %v1702_v43, 0  ;;  %vm3977_vm8 = vmand %vm3950_vm7, %vm1717_vm13  ;;  %vm4573_vm13 = vcmp.ne.s32.totalorder %v3824_v34, 0  ;;  %vm4575_vm7 = vcmp.ne.s32.totalorder %v3846_v24, 0  ;;  %v1603_v24 = vsel %vm3933_vm3, 1, %v1881_v8 }
 0x40c   :  { %vm3983_vm15 = vmand %vm3957_vm11, %vm1718_vm10  ;;  %v1489_v16 = vsel %vm4573_vm13, 1, %v1881_v8  ;;  %vm4574_vm10 = vcmp.ne.s32.totalorder %v3838_v58, 0  ;;  %v1492_v49 = vsel %vm4575_vm7, 1, %v1881_v8  ;;  %v1703_v62 = vsel %vm3970_vm0, 1, %v1881_v8 }
 0x40d   :  { %vm1596_vm12 = vmand %vm3889_vm5, %vm1592_vm9  ;;  %v1491_v55 = vsel %vm4574_vm10, 1, %v1881_v8  ;;  %vm4576_vm5 = vcmp.ne.s32.totalorder %v3842_v2, 0  ;;  %v1496_v33 = vrot.slane %v1489_v16, %v1972_v18  ;;  %v1602_v2 = vsel %vm3927_vm14, 1, %v1881_v8 }
 0x40e   :  { %v1684_v45 = vsel %vm1596_vm12, %v1540_v60, 0  ;;  %v1601_v60 = vsel %vm3916_vm1, 1, %v1881_v8  ;;  %v1490_v61 = vsel %vm4576_vm5, 1, %v1881_v8  ;;  %v1504_v34 = vrot.slane %v1491_v55, %v1972_v18 }
 0x40f   :  { %v1692_v32 = vand.u32 256, %v1684_v45  ;;  %v1604_v58 = vsel %vm1596_vm12, 1, %v1881_v8  ;;  %vm4577_vm1 = vcmp.ne.s32.totalorder %v1559_v57, 0  ;;  %v1508_v5 = vrot.slane %v1492_v49, %v1972_v18 }
 0x410   :  { %v1634_v59 = vsel %vm4577_vm1, 1, %v1881_v8  ;;  %v1500_v22 = vrot.slane %v1490_v61, %v1972_v18  ;;  %vm1721_vm3 = vcmp.ne.s32.totalorder %v1703_v62, 0  ;;  %v1616_v6 = vrot.slane %v1603_v24, %v1972_v18 }
 0x411   :  { %vm1696_vm2 = vcmp.ne.s32.totalorder %v1692_v32, 0  ;;  %v1620_v57 = vrot.slane %v1604_v58, %v1972_v18  ;;  %v1644_v25 = vrot.slane %v1634_v59, %v1972_v18  ;;  %v1648_v19 = vrot.slane %v1635_v3, %v1972_v18 }
 0x412   :  { %vm1700_vm4 = vmand %vm1596_vm12, %vm1696_vm2  ;;  %v1608_v27 = vrot.slane %v1601_v60, %v1972_v18  ;;  %v1612_v14 = vrot.slane %v1602_v2, %v1972_v18  ;;  %vm4033_vm0 = vcmp.eq.s32.totalorder %v1504_v34, 1  ;;  %vm4037_vm14 = vcmp.eq.s32.totalorder %v1508_v5, 1 }
 0x413   :  { %v1704_v11 = vsel %vm1700_vm4, 1, %v1881_v8  ;;  %vm4041_vm9 = vcmp.eq.s32.totalorder %v1496_v33, 1  ;;  %v1724_v50 = vsel %vm3983_vm15, 1, %v1881_v8  ;;  %v1739_v42 = vsel %vm1721_vm3, 1, %v1881_v8 }
 0x414   :  { %vm1722_vm11 = vcmp.ne.s32.totalorder %v1704_v11, 0  ;;  %vm4585_vm12 = vcmp.ne.s32.totalorder %v3912_v0, 0  ;;  %v1723_v47 = vsel %vm3977_vm8, 1, %v1881_v8  ;;  %vm4055_vm2 = vcmp.eq.s32.totalorder %v1616_v6, 1 }
 0x415   :  { %v1740_v53 = vsel %vm1722_vm11, 1, %v1881_v8  ;;  %v1633_v12 = vsel %vm4585_vm12, 1, %v1881_v8  ;;  %v4586_v43 = vmov 0  ;;  %vm4059_vm4 = vcmp.eq.s32.totalorder %v1620_v57, 1 }
 0x416   :  { %v1748_v4 = vrot.slane %v1740_v53, %v1972_v18  ;;  %v4587_v43 = vsel %vm4055_vm2, 4294967295, %v4586_v43  ;;  %vm4063_vm13 = vcmp.eq.s32.totalorder %v1644_v25, 1  ;;  %vm4067_vm15 = vcmp.eq.s32.totalorder %v1500_v22, 1 }
 0x417   :  { %v4591_v26 = vsel %vm4063_vm13, 4294967295, %v4590_v26  ;;  %v4592_v32 = vmov 0  ;;  %vm4071_vm10 = vcmp.eq.s32.totalorder %v1648_v19, 1  ;;  %vm4079_vm7 = vcmp.eq.s32.totalorder %v1608_v27, 1 }
 0x418   :  { %v4593_v32 = vsel %vm4067_vm15, 4294967295, %v4592_v32  ;;  %vm4075_vm8 = vcmp.eq.s32.totalorder %v1748_v4, 1  ;;  %vm4083_vm11 = vcmp.eq.s32.totalorder %v1612_v14, 1  ;;  %v4600_v11 = vmov 0 }
 0x419   :  { %v4601_v11 = vsel %vm4083_vm11, 4294967295, %v4600_v11  ;;  %v1744_v55 = vrot.slane %v1739_v42, %v1972_v18  ;;  %v1640_v49 = vrot.slane %v1633_v12, %v1972_v18  ;;  %v1728_v60 = vrot.slane %v1723_v47, %v1972_v18 }
 0x41a   :  { %v1732_v61 = vrot.slane %v1724_v50, %v1972_v18  ;;  %vm4602_vm5 = vcmp.lt.s32.totalorder %v1953_v13, 64  ;;  %vm4606_vm12 = vcmp.lt.s32.totalorder %v1976_v21, 448 }
 0x41b   :  { %vm4603_vm1 = vmmov %vm4602_vm5 }
 0x41c   :  { %vm4604_vm6 = vmmov %vm4603_vm1 }
 0x41d   :  { %vm4605_vm3 = vmmov %vm4603_vm1 }
 0x438   :  { %v1369_v17 = vpop.permute.xlu0 %1368 }
 0x444   :  { %v1377_v15 = vpop.permute.xlu1 %1376  ;;  %v1371_v37 = vpop.permute.xlu0 %1370 }
 0x448   :  { %v1381_v16 = vpop.permute.xlu1 %1380  ;;  %v1373_v34 = vpop.permute.xlu0 %1372 }
 0x449   :  { %v1385_v33 = vsel %vm4602_vm5, %v1377_v15, %v1381_v16  ;;  %v1391_v58 = vsel %vm4603_vm1, %v1381_v16, %v1369_v17  ;;  %v1387_v24 = vsel %vm4604_vm6, %v1373_v34, %v1377_v15  ;;  %v1389_v62 = vsel %vm4605_vm3, %v1369_v17, %v1373_v34  ;;  %v1760_v16 = vld [vmem:[%s1986_s21 + $0x8] sm:$0xff] }
 0x44a   :  { %v1408_v59 = vsel %vm4606_vm12, %v1391_v58, -inf  ;;  %v1515_v2 = vsel %vm4033_vm0, %v1385_v33, -inf  ;;  %v1513_v18 = vsel %vm4041_vm9, %v1389_v62, -inf  ;;  %v1514_v5 = vsel %vm4067_vm15, %v1387_v24, -inf  ;;  %v1759_v58 = vld [vmem:[%s1986_s21] sm:$0xff] }
 0x44b   :  { %v1516_v3 = vsel %vm4037_vm14, %v1408_v59, -inf  ;;  %v1523_v17 = vmax.f32 %v1483_v48, %v1515_v2  ;;  %v1521_v53 = vmax.f32 %v1481_v44, %v1513_v18  ;;  %v1522_v22 = vmax.f32 %v1482_v46, %v1514_v5  ;;  %v1761_v5 = vld [vmem:[%s1986_s21 + $0x10] sm:$0xff] }
 0x44c   :  { %v1524_v6 = vmax.f32 %v1484_v35, %v1516_v3  ;;  %vm4125_vm12 = vcmp.eq.s32.totalorder %v1744_v55, 1  ;;  %vm4129_vm5 = vcmp.eq.s32.totalorder %v1640_v49, 1  ;;  %vm4133_vm15 = vcmp.eq.s32.totalorder %v1732_v61, 1  ;;  %v1383_v44 = vpop.permute.xlu1 %1382  ;;  %v1375_v35 = vpop.permute.xlu0 %1374  ;;  %v1878_v3 = vld [vmem:[%s1986_s21 + $0x18] sm:$0xff] }
 0x44d   :  { %v4614_v56 = vsel %vm4129_vm5, 4294967295, %v4613_v56  ;;  %v1627_v41 = vsel %vm4055_vm2, %v1523_v17, -inf  ;;  %v1658_v46 = vsel %vm4063_vm13, %v1523_v17, -inf  ;;  %v1625_v40 = vsel %vm4079_vm7, %v1521_v53, -inf }
 0x44e   :  { %v1626_v48 = vsel %vm4083_vm11, %v1522_v22, -inf  ;;  %v1628_v25 = vsel %vm4059_vm4, %v1524_v6, -inf  ;;  %v1659_v19 = vsel %vm4071_vm10, %v1524_v6, -inf  ;;  %v1657_v4 = vsel %vm4129_vm5, %v1522_v22, -inf }
 0x44f   :  { %v1666_v27 = vmax.f32 %v1626_v48, %v1658_v46  ;;  %v1667_v14 = vmax.f32 %v1627_v41, %v1659_v19  ;;  %v1752_v15 = vsel %vm4075_vm8, %v1628_v25, -inf  ;;  %v1665_v50 = vmax.f32 %v1625_v40, %v1657_v4 }
 0x450   :  { %vm4617_vm13 = vcmp.lt.s32.totalorder %v1953_v13, 64  ;;  %vm4155_vm2 = vcmp.eq.s32.totalorder %v1728_v60, 1  ;;  %vm4620_vm11 = vcmp.lt.s32.totalorder %v1976_v21, 448  ;;  %v1379_v61 = vpop.permute.xlu1 %1378 }
 0x451   :  { %v1392_v42 = vsel %vm4617_vm13, %v1383_v44, %v1371_v37  ;;  %v1736_v47 = vsel %vm4133_vm15, %v1666_v27, -inf  ;;  %vm4621_vm5 = vmmov %vm4617_vm13  ;;  %v1751_v34 = vsel %vm4125_vm12, %v1667_v14, -inf  ;;  %v1735_v60 = vsel %vm4155_vm2, %v1665_v50, -inf }
 0x452   :  { %v1412_v55 = vsel %vm4620_vm11, %v1392_v42, -inf  ;;  %v1390_v49 = vsel %vm4621_vm5, %v1371_v37, %v1375_v35  ;;  %v1756_v33 = vmax.f32 %v1736_v47, %v1752_v15  ;;  %v1755_v62 = vmax.f32 %v1735_v60, %v1751_v34  ;;  %vm4622_vm13 = vmmov %vm4621_vm5 }
 0x453   :  { %v1520_v24 = vsel %vm4037_vm14, %v1412_v55, -inf  ;;  %v1517_v37 = vsel %vm4041_vm9, %v1390_v49, -inf  ;;  %v1386_v59 = vsel %vm4622_vm13, %v1379_v61, %v1383_v44  ;;  %vm4623_vm14 = vmmov %vm4621_vm5  ;;  %vm4624_vm9 = vnez %v4593_v32 }
 0x454   :  { %v1528_v21 = vmax.f32 %v1488_v38, %v1520_v24  ;;  %v1764_v2 = vmax.f32 %v1760_v16, %v1756_v33  ;;  %v1525_v54 = vmax.f32 %v1485_v51, %v1517_v37  ;;  %v1388_v18 = vsel %vm4623_vm14, %v1375_v35, %v1379_v61 }
 0x455   :  { %v1519_v36 = vsel %vm4033_vm0, %v1386_v59, -inf  ;;  %v1763_v63 = vmax.f32 %v1759_v58, %v1755_v62  ;;  %v1518_v23 = vsel %vm4624_vm9, %v1388_v18, -inf }
 0x456   :  { %v1632_v38 = vsel %vm4059_vm4, %v1528_v21, -inf  ;;  %v1663_v7 = vsel %vm4071_vm10, %v1528_v21, -inf  ;;  %v1629_v13 = vsel %vm4079_vm7, %v1525_v54, -inf  ;;  %v1526_v51 = vmax.f32 %v1486_v10, %v1518_v23  ;;  %1768 = vst [vmem:[%s1986_s21 + $0x8] sm:$0xff] %v1764_v2 }
 0x457   :  { %v1754_v9 = vsel %vm4075_vm8, %v1632_v38, -inf  ;;  %v1527_v31 = vmax.f32 %v1487_v20, %v1519_v36  ;;  %1767 = vst [vmem:[%s1986_s21] sm:$0xff] %v1763_v63  ;;  %vm4626_vm4 = vnez %v4601_v11  ;;  %vm4627_vm10 = vnez %v4587_v43 }
 0x458   :  { %v1630_v45 = vsel %vm4626_vm4, %v1526_v51, -inf  ;;  %vm4628_vm8 = vnez %v4614_v56  ;;  %vm4629_vm7 = vnez %v4591_v26 }
 0x459   :  { %v1631_v32 = vsel %vm4627_vm10, %v1527_v31, -inf  ;;  %v1661_v1 = vsel %vm4628_vm8, %v1526_v51, -inf  ;;  %v1662_v29 = vsel %vm4629_vm7, %v1527_v31, -inf }
 0x45a   :  { %v1669_v28 = vmax.f32 %v1629_v13, %v1661_v1  ;;  %v1670_v52 = vmax.f32 %v1630_v45, %v1662_v29  ;;  %v1671_v20 = vmax.f32 %v1631_v32, %v1663_v7 }
 0x45c   :  { %v1737_v10 = vsel %vm4155_vm2, %v1669_v28, -inf  ;;  %v1738_v0 = vsel %vm4133_vm15, %v1670_v52, -inf  ;;  %v1753_v43 = vsel %vm4125_vm12, %v1671_v20, -inf }
 0x45d   :  { %v1757_v8 = vmax.f32 %v1737_v10, %v1753_v43  ;;  %v1758_v39 = vmax.f32 %v1738_v0, %v1754_v9 }
 0x45f   :  { %v1765_v11 = vmax.f32 %v1761_v5, %v1757_v8  ;;  %v1766_v17 = vmax.f32 %v1878_v3, %v1758_v39 }
 0x461   :  { %1769 = vst [vmem:[%s1986_s21 + $0x10] sm:$0xff] %v1765_v11  ;;  %1770 = vst [vmem:[%s1986_s21 + $0x18] sm:$0xff] %v1766_v17 }

// kernel: _device_forward.3
= control target key start
LH: loop header
LB: loop body
LE: loop exit
PB: predicated region body
PF: predicated region fallthrough
CT: control target
= control target key end

     0   :  { %v221_v3 = vlaneseq  ;;  %v2420_v6 = vmov 0.0   ;;  %v2421_v8 = vmov 0   ;;  %vm71_vm0 = vcmask 130048   ;;  %s5799_s0 = inlined_call_operand.<no memory space> [shape: s32[1], index: 0, kind: input, shape index: {}]   ;;  %s5800_s1 = inlined_call_operand.vmem [shape: f32[16,256], index: 1, kind: input, shape index: {}]   ;;  %s5801_s2 = inlined_call_operand.vmem [shape: f32[32,256], index: 2, kind: input, shape index: {}]   ;;  %s5802_s3 = inlined_call_operand.vmem [shape: f32[32,16], index: 3, kind: input, shape index: {}]   ;;  %s5803_s4 = inlined_call_operand.vmem [shape: f32[32,1], index: 4, kind: input, shape index: {}]   ;;  %s5804_s5 = inlined_call_operand.vmem [shape: s32[1,256], index: 5, kind: input, shape index: {}]   ;;  %s5805_s6 = inlined_call_operand.hbm [shape: f32[32,256], index: 6, kind: output, shape index: {}]  }
   0x1   :  { %v60_v0 = vld [vmem:[%s5800_s1 + $0x8] sm:$0xff]  ;;  %v62_v1 = vld [vmem:[%s5800_s1 + $0x18] sm:$0xff]  ;;  %v59_v2 = vld [vmem:[%s5800_s1] sm:$0xff]  ;;  %148 = vmatprep.mubr.f32.mxu0 %v2420_v6  ;;  %160 = vmatprep.mubr.f32.mxu1 %v2420_v6  ;;  %s2304_s7 = sshll.u32 %s5799_s0, 8 }
   0x2   :  { %v2343_v4 = vpack.c.bf16 %v62_v1, %v60_v0  ;;  %v61_v5 = vld [vmem:[%s5800_s1 + $0x10] sm:$0xff]  ;;  %2362 = vset.pattern.permute.xlu0 %v2421_v8  ;;  %v173_v9 = vld [vmem:[%s5803_s4] sm:$0xff]  ;;  %2363 = vset.pattern.permute.xlu1 %v2421_v8  ;;  %v217_v10 = vstv %s2304_s7  ;;  %v222_v11 = vshrl.u32 %v221_v3, 7  ;;  %v2492_v12 = vand.u32 127, %v221_v3 }
   0x3   :  { %v2345_v7 = vpack.c.bf16 %v61_v5, %v59_v2  ;;  %v175_v13 = vld [vmem:[%s5803_s4 + $0x10] sm:$0xff]  ;;  %v55_v14 = vld [vmem:[%s5802_s3] sm:$0xff]  ;;  %179 = vperm.xlu0 %2362, %v173_v9  }
   0x4   :  { %2344 = vmatprep.subr.bf16.mxu0 %v2343_v4  ;;  %2347 = vmatprep.subr.bf16.mxu1 %v2343_v4  ;;  %v57_v15 = vld [vmem:[%s5802_s3 + $0x10] sm:$0xff]  ;;  %v213_v16 = vld [vmem:[%s5804_s5] sm:$0x3]  ;;  %v2506_v17 = vsub.s32 0, %v222_v11  ;;  %v227_v18 = vsub.s32 1, %v222_v11 }
   0x5   :  { %2346 = vmatpush1.bf16.msra.mxu0 %v2345_v7  ;;  %2348 = vmatpush1.bf16.msra.mxu1 %v2345_v7  ;;  %vm214_vm1 = vcmp.ge.s32.totalorder %v213_v16, 0  ;;  %v218_v19 = vsub.s32 %v213_v16, %v217_v10 }
   0x6   :  { %189 = vperm.xlu1 %2363, %v175_v13  }
   0x7   :  { %12 = vsyncpa [#allocation6], 0  ;;  %v174_v20 = vld [vmem:[%s5803_s4 + $0x8] sm:$0xff]  ;;  %v176_v21 = vld [vmem:[%s5803_s4 + $0x18] sm:$0xff]  ;;  %v220_v22 = vsel %vm214_vm1, 1, %v2421_v8  ;;  %v2516_v23 = vadd.s32 384, %v2492_v12  ;;  %s5786_s25 = scalar_lea.hbm %s5805_s6, %s2304_s7 }
   0x8   :  { %2300 = vmatmul.mubr.msk.f32.vlgmr.msra.gmra.mrb[0].mxu0 %vm71_vm0, %v55_v14  ;;  %2302 = vmatmul.mubr.msk.f32.vlgmr.msra.gmra.mrb[0].mxu1 %vm71_vm0, %v57_v15  ;;  %v219_v24 = vsel %vm214_vm1, %v218_v19, 0  ;;  %v2520_v25 = vrot.slane %v220_v22, %v227_v18  ;;  %v2523_v26 = vrot.slane %v220_v22, %v2506_v17  ;;  %v56_v27 = vld [vmem:[%s5802_s3 + $0x8] sm:$0xff]  ;;  %v58_v28 = vld [vmem:[%s5802_s3 + $0x18] sm:$0xff]  ;;  %v266_v30 = vadd.s32 256, %v2492_v12  ;;  %s2422_s3 = smov 127   ;;  %v63_v0 = vld [vmem:[%s5801_s2] sm:$0xff] }
   0x9   :  { %154 = vmatprep.mubr.f32.mxu0 %v2420_v6  ;;  %166 = vmatprep.mubr.f32.mxu1 %v2420_v6  ;;  %v275_v29 = vrot.slane %v219_v24, %v227_v18  ;;  %v271_v31 = vrot.slane %v219_v24, %v2506_v17  ;;  %v2423_v42 = vmov -inf|-inf   ;;  %vm322_vm12 = vcmp.lt.s32.totalorder %v2492_v12, 127  ;;  %v64_v1 = vld [vmem:[%s5801_s2 + $0x8] sm:$0xff]  ;;  %v65_v10 = vld [vmem:[%s5801_s2 + $0x10] sm:$0xff]  ;;  %v66_v14 = vld [vmem:[%s5801_s2 + $0x18] sm:$0xff] }
   0xa   :  { %184 = vperm.xlu0 %2362, %v174_v20   ;;  %194 = vperm.xlu1 %2363, %v176_v21   ;;  %vm277_vm2 = vcmp.ne.s32.totalorder %v2520_v25, 0  ;;  %vm276_vm3 = vcmp.ne.s32.totalorder %v2523_v26, 0  ;;  %v68_v2 = vld [vmem:[%s5801_s2 + $0x28] sm:$0xff]  ;;  %v67_v15 = vld [vmem:[%s5801_s2 + $0x20] sm:$0xff]  ;;  %v70_v22 = vld [vmem:[%s5801_s2 + $0x38] sm:$0xff]  ;;  %s2425_s17 = smov 124  }
   0xb   :  { %v279_v32 = vsub.s32 %v2516_v23, %v275_v29  ;;  %v278_v33 = vsub.s32 %v266_v30, %v271_v31  ;;  %s2426_s18 = smov 120   ;;  %s2427_s19 = smov 112  }
   0xc   :  { %2301 = vmatmul.mubr.msk.f32.gmra.mrb[2].mxu0 %vm71_vm0, %v56_v27  ;;  %2303 = vmatmul.mubr.msk.f32.gmra.mrb[2].mxu1 %vm71_vm0, %v58_v28  ;;  %s2428_s20 = smov 96   ;;  %s2429_s21 = smov 64  }
   0xd   :  { %v2540_v34 = vsel %vm277_vm2, %v279_v32, 0  ;;  %v2544_v35 = vsel %vm276_vm3, %v278_v33, 0  ;;  %s2430_s22 = smov [#allocation5]  }
   0xe   :  { %367 = vrot.lane.b32.xlu0 %v2421_v8, %s2422_s3  ;;  %v283_v36 = vand.u32 1, %v2540_v34  ;;  %371 = vrot.lane.b32.xlu1 %v2540_v34, %s2422_s3  ;;  %v282_v37 = vand.u32 1, %v2544_v35  ;;  %s2287_s5 = sshll.u32 %s2430_s22, 4  ;;  %s2288_s5 = int_to_ptr.vmem [resolvable:$true] %s2287_s5 }
   0xf   :  { %s2394_s26 = scalar_lea.vmem %s2288_s5, 1024  ;;  %p2399_p1 = scmp.lt.s32.totalorder %s2288_s5, %s2288_s5 }
  0x10   :  { %vm285_vm4 = vcmp.ne.s32.totalorder %v283_v36, 0  ;;  %vm284_vm6 = vcmp.ne.s32.totalorder %v282_v37, 0  ;;  %p2395_p0 = scmp.ne.s32.totalorder %s2288_s5, %s2394_s26  ;;  %p2400_p2 = scmp.lt.s32.totalorder %s2394_s26, %s2394_s26 }
  0x11   :  { %vm287_vm5 = vmand %vm277_vm2, %vm285_vm4 }
  0x12   :  { %v289_v38 = vsel %vm287_vm5, 1, %v2421_v8  ;;  %vm2306_vm7 = vmneg %vm287_vm5  ;;  %369 = vrot.lane.b32.xlu1 %v2544_v35, %s2422_s3  ;;  %p2401_p3 = por %p2400_p2, %p2399_p1 }
  0x13   :  { %vm2559_vm8 = vmand %vm277_vm2, %vm2306_vm7  ;;  %382 = vrot.lane.b32.xlu0 %v289_v38, %s2422_s3  ;;  %vm342_vm7 = vcmp.lt.s32.totalorder %v2516_v23, 511 }
  0x14   :  { %vm286_vm9 = vmand %vm276_vm3, %vm284_vm6  ;;  %p2402_p4 = pnand %p2401_p3, %p2395_p0 }
  0x15   :  { %v288_v40 = vsel %vm286_vm9, 1, %v2421_v8  ;;  %vm2305_vm10 = vmneg %vm286_vm9  ;;  %vm229_vm9 = vcmp.eq.s32.totalorder %v2523_v26, 1 }
  0x16   :  { %vm2569_vm11 = vmand %vm276_vm3, %vm2305_vm10  ;;  %2365 = vrot.lane.b32.xlu1 %v2423_v42, %s2422_s3  ;;  %vm230_vm10 = vcmp.eq.s32.totalorder %v2520_v25, 1 }
  0x17   :  { %380 = vrot.lane.b32.xlu0 %v288_v40, %s2422_s3  ;;  %v69_v40 = vld [vmem:[%s5801_s2 + $0x30] sm:$0xff]  ;;  %s2424_s2 = smov 126  }
  0x1a   :  { %2375 = vrot.lane.b32.xlu1 %v2423_v42, %s2422_s3 }
  0x1b   :  { %2370 = vrot.lane.b32.xlu0 %v2423_v42, %s2422_s3 }
  0x1f   :  { %2380 = vrot.lane.b32.xlu0 %v2423_v42, %s2422_s3 }
  0x82   :  { %v180_v43 = vpop.permute.xlu0 %179 }
  0x85   :  { %v2578_v44 = vpop.permute.xlu1 %189 }
  0x89   :  { %v185_v45 = vpop.permute.xlu0 %184  ;;  %v2580_v46 = vpop.permute.xlu1 %194 }
  0x8d   :  { %v2582_v47 = vpop.permute.xlu0 %367  ;;  %v2584_v48 = vpop.permute.xlu1 %371 }
  0x8e   :  { %v2307_v59 = vadd.s32 4294967295, %v2582_v47  ;;  %vm394_vm2 = vcmp.ne.s32.totalorder %v2582_v47, 0  ;;  %v375_v16 = vsel %vm322_vm12, %v2584_v48, %v2582_v47 }
  0x8f   :  { %v379_v33 = vsel %vm342_vm7, %v375_v16, 0 }
  0x90   :  { %v2627_v60 = vsel %vm394_vm2, %v2307_v59, 0  ;;  %v2310_v59 = vadd.s32 4294967295, %v379_v33 }
  0x91   :  { %v2587_v49 = vpop.permute.xlu0 %382  ;;  %v2589_v50 = vpop.permute.xlu1 %369  ;;  %v498_v61 = vand.u32 2, %v2627_v60 }
  0x92   :  { %v374_v51 = vsel %vm322_vm12, %v2582_v47, %v2589_v50  ;;  %v386_v18 = vsel %vm322_vm12, %v2587_v49, %v2582_v47 }
  0x93   :  { %v2308_v52 = vadd.s32 4294967295, %v374_v51  ;;  %vm502_vm3 = vcmp.ne.s32.totalorder %v498_v61, 0  ;;  %v2680_v36 = vsel %vm342_vm7, %v386_v18, 0 }
  0x94   :  { %vm2632_vm4 = vmand %vm394_vm2, %vm502_vm3 }
  0x95   :  { %v2595_v53 = vpop.permute.xlu0 %380  ;;  %vm2311_vm5 = vmneg %vm2632_vm4 }
  0x96   :  { %v2601_v54 = vsel %vm322_vm12, %v2582_v47, %v2595_v53  ;;  %vm2640_vm6 = vmand %vm394_vm2, %vm2311_vm5 }
  0x97   :  { %vm395_vm13 = vcmp.ne.s32.totalorder %v2601_v54, 0 }
  0x98   :  { %v2606_v55 = vsel %vm395_vm13, %v2308_v52, 0 }
  0x99   :  { %v499_v56 = vand.u32 2, %v2606_v55 }
  0x9b   :  { %vm503_vm14 = vcmp.ne.s32.totalorder %v499_v56, 0 }
  0x9c   :  { %vm2611_vm15 = vmand %vm395_vm13, %vm503_vm14  ;;  %vm397_vm14 = vcmp.ne.s32.totalorder %v2680_v36, 0 }
  0x9d   :  { %vm2312_vm0 = vmneg %vm2611_vm15 }
  0x9e   :  { %vm2619_vm1 = vmand %vm395_vm13, %vm2312_vm0 }
  0x9f   :  { %vm2768_vm3 = vmor %vm2559_vm8, %vm397_vm14 }
  0xdb   :  { %v150_v3 = vpop.f32.mrb[0].mxu0  ;;  %v162_v4 = vpop.f32.mrb[0].mxu1 }
  0xdc   :  { %v151_v5 = vadd.f32 %v150_v3, %v63_v0  ;;  %v152_v6 = vpop.f32.mrb[1].mxu0  ;;  %v164_v7 = vpop.f32.mrb[1].mxu1  ;;  %v163_v32 = vadd.f32 %v162_v4, %v67_v15  ;;  %v493_v4 = vsel %vm397_vm14, %v2310_v59, 0 }
  0xdd   :  { %v153_v9 = vadd.f32 %v152_v6, %v64_v1  ;;  %v165_v11 = vadd.f32 %v164_v7, %v68_v2  ;;  %v2721_v6 = vsel %vm322_vm12, %v2595_v53, %v2587_v49  ;;  %v2758_v15 = vpop.permute.xlu0 %2370 }
  0xde   :  { %v197_v13 = vadd.f32 %v180_v43, %v151_v5  ;;  %v201_v61 = vadd.f32 %v2578_v44, %v163_v32  ;;  %v373_v5 = vsel %vm322_vm12, %v2589_v50, %v2584_v48  ;;  %v2735_v48 = vsel %vm2559_vm8, %v2540_v34, %v493_v4  ;;  %v2737_v50 = vpop.permute.xlu1 %2365 }
  0xdf   :  { %v198_v19 = vadd.f32 %v180_v43, %v153_v9  ;;  %v156_v20 = vpop.f32.mrb[2].mxu0  ;;  %v168_v21 = vpop.f32.mrb[2].mxu1  ;;  %v202_v29 = vadd.f32 %v2578_v44, %v165_v11  ;;  %v2309_v49 = vadd.s32 4294967295, %v373_v5  ;;  %vm396_vm0 = vcmp.ne.s32.totalorder %v2721_v6, 0 }
  0xe0   :  { %v205_v24 = vmax.f32 %v197_v13, 0.0  ;;  %v157_v27 = vadd.f32 %v156_v20, %v65_v10  ;;  %v158_v28 = vpop.f32.mrb[3].mxu0  ;;  %v170_v30 = vpop.f32.mrb[3].mxu1  ;;  %v169_v0 = vadd.f32 %v168_v21, %v69_v40  ;;  %v209_v11 = vmax.f32 %v201_v61, 0.0 }
  0xe1   :  { %v159_v31 = vadd.f32 %v158_v28, %v66_v14  ;;  %v206_v37 = vmax.f32 %v198_v19, 0.0  ;;  %v171_v42 = vadd.f32 %v170_v30, %v70_v22  ;;  %v210_v56 = vmax.f32 %v202_v29, 0.0  ;;  %v2797_v29 = vpop.permute.xlu0 %2380 }
  0xe2   :  { %v199_v38 = vadd.f32 %v185_v45, %v157_v27  ;;  %v2687_v43 = vsel %vm229_vm9, %v205_v24, -inf  ;;  %v203_v7 = vadd.f32 %v2580_v46, %v169_v0  ;;  %v2746_v53 = vsel %vm229_vm9, %v209_v11, -inf  ;;  %v2776_v19 = vpop.permute.xlu1 %2375 }
  0xe3   :  { %v200_v51 = vadd.f32 %v185_v45, %v159_v31  ;;  %306 = vrot.lane.b32.xlu1 %v2687_v43, %s2422_s3  ;;  %v204_v2 = vadd.f32 %v2580_v46, %v171_v42  ;;  %v2701_v45 = vsel %vm230_vm10, %v206_v37, -inf  ;;  %v2709_v44 = vsel %vm230_vm10, %v210_v56, -inf }
  0xe4   :  { %v207_v52 = vmax.f32 %v199_v38, 0.0  ;;  %v211_v13 = vmax.f32 %v203_v7, 0.0  ;;  %v501_v14 = vand.u32 2, %v2735_v48  ;;  %v430_v34 = vsel %vm394_vm2, 1, %v2421_v8 }
  0xe5   :  { %v208_v1 = vmax.f32 %v200_v51, 0.0  ;;  %v212_v10 = vmax.f32 %v204_v2, 0.0  ;;  %v492_v25 = vsel %vm396_vm0, %v2309_v49, 0  ;;  %v437_v20 = vrot.slane %v430_v34, %v2506_v17 }
  0xe6   :  { %v2697_v3 = vsel %vm229_vm9, %v207_v52, -inf  ;;  %v2762_v16 = vsel %vm229_vm9, %v211_v13, -inf  ;;  %vm2772_vm5 = vcmp.ne.s32.totalorder %v501_v14, 0  ;;  %v2785_v26 = vsel %vm2569_vm11, %v2544_v35, %v492_v25 }
  0xe7   :  { %308 = vrot.lane.b32.xlu0 %v2697_v3, %s2422_s3  ;;  %314 = vrot.lane.b32.xlu1 %v2701_v45, %s2422_s3  ;;  %v2726_v9 = vsel %vm230_vm10, %v208_v1, -inf  ;;  %v2742_v46 = vsel %vm230_vm10, %v212_v10, -inf  ;;  %vm509_vm2 = vmand %vm2768_vm3, %vm2772_vm5  ;;  %v2368_v21 = vunpack.i.h.bf16 %v2737_v50  ;;  %v2367_v22 = vunpack.i.l.bf16 %v2737_v50 }
  0xe8   :  { %v2378_v24 = vunpack.i.h.bf16 %v2776_v19  ;;  %v2377_v27 = vunpack.i.l.bf16 %v2776_v19  ;;  %v500_v28 = vand.u32 2, %v2785_v26  ;;  %vm2803_vm9 = vcmp.eq.s32.totalorder %v437_v20, 1 }
  0xe9   :  { %v510_v30 = vsel %vm2632_vm4, 1, %v2421_v8  ;;  %v2811_v31 = vsel %vm509_vm2, 1, %v2421_v8  ;;  %v2373_v32 = vunpack.i.h.bf16 %v2758_v15  ;;  %v2372_v33 = vunpack.i.l.bf16 %v2758_v15  ;;  %vm2827_vm4 = vmor %vm2569_vm11, %vm396_vm0 }
  0xea   :  { %v2383_v37 = vunpack.i.h.bf16 %v2797_v29  ;;  %v2382_v38 = vunpack.i.l.bf16 %v2797_v29  ;;  %v331_v40 = vsel %vm322_vm12, %v2367_v22, %v2377_v27  ;;  %v332_v62 = vsel %vm322_vm12, %v2368_v21, %v2378_v24 }
  0xeb   :  { %316 = vrot.lane.b32.xlu0 %v2726_v9, %s2422_s3  ;;  %318 = vrot.lane.b32.xlu1 %v2709_v44, %s2422_s3  ;;  %vm504_vm10 = vcmp.ne.s32.totalorder %v500_v28, 0  ;;  %v511_v51 = vsel %vm2611_vm15, 1, %v2421_v8  ;;  %v2839_v52 = vsel %vm2803_vm9, %v331_v40, -inf  ;;  %v2843_v56 = vsel %vm2803_vm9, %v332_v62, -inf }
  0xec   :  { %vm508_vm5 = vmand %vm2827_vm4, %vm504_vm10  ;;  %v333_v59 = vsel %vm322_vm12, %v2372_v33, %v2382_v38  ;;  %v334_v57 = vsel %vm322_vm12, %v2373_v32, %v2383_v37  ;;  %v2384_v61 = vpack.i.bf16 %v2843_v56, %v2839_v52  ;;  %v431_v5 = vsel %vm395_vm13, 1, %v2421_v8 }
  0xed   :  { %v2865_v0 = vsel %vm508_vm5, 1, %v2421_v8  ;;  %v2869_v1 = vsel %vm2803_vm9, %v333_v59, -inf  ;;  %v2873_v2 = vsel %vm2803_vm9, %v334_v57, -inf  ;;  %v398_v7 = vsel %vm2569_vm11, 1, %v2421_v8 }
  0xee   :  { %v2389_v4 = vpack.i.bf16 %v2873_v2, %v2869_v1  ;;  %v399_v10 = vsel %vm2559_vm8, 1, %v2421_v8  ;;  %v433_v11 = vsel %vm397_vm14, 1, %v2421_v8  ;;  %v441_v49 = vrot.slane %v431_v5, %v2506_v17 }
  0xef   :  { %320 = vrot.lane.b32.xlu0 %v2742_v46, %s2422_s3  ;;  %310 = vrot.lane.b32.xlu1 %v2746_v53, %s2422_s3  ;;  %v432_v13 = vsel %vm396_vm0, 1, %v2421_v8  ;;  %v406_v54 = vrot.slane %v398_v7, %v2506_v17  ;;  %v410_v14 = vrot.slane %v399_v10, %v2506_v17  ;;  %v449_v41 = vrot.slane %v433_v11, %v2506_v17 }
  0xf0   :  { %v445_v39 = vrot.slane %v432_v13, %v2506_v17  ;;  %vm2903_vm8 = vcmp.eq.s32.totalorder %v441_v49, 1  ;;  %vm626_vm0 = vcmp.eq.s32.totalorder %v2811_v31, 0  ;;  %vm625_vm10 = vcmp.eq.s32.totalorder %v2865_v0, 0 }
  0xf1   :  { %vm2911_vm11 = vcmp.eq.s32.totalorder %v406_v54, 1  ;;  %vm2917_vm13 = vcmp.eq.s32.totalorder %v410_v14, 1  ;;  %vm2921_vm15 = vcmp.eq.s32.totalorder %v449_v41, 1  ;;  %vm3073_vm9 = vmand %vm2768_vm3, %vm626_vm0 }
  0xf2   :  { %vm2925_vm14 = vcmp.eq.s32.totalorder %v445_v39, 1  ;;  %v425_v10 = vsel %vm2917_vm13, %v2709_v44, -inf  ;;  %v420_v13 = vsel %vm2911_vm11, %v2697_v3, -inf  ;;  %v428_v19 = vsel %vm2911_vm11, %v2762_v16, -inf  ;;  %vm3097_vm3 = vmand %vm2827_vm4, %vm625_vm10 }
  0xf3   :  { %312 = vrot.lane.b32.xlu0 %v2762_v16, %s2422_s3  ;;  %591 = vrot.lane.b32.xlu1 %v2627_v60, %s2424_s2  ;;  %v638_v58 = vsel %vm3073_vm9, 1, %v2421_v8 }
  0xf7   :  { %597 = vrot.lane.b32.xlu0 %v2735_v48, %s2424_s2  ;;  %593 = vrot.lane.b32.xlu1 %v2606_v55, %s2424_s2 }
  0xfb   :  { %607 = vrot.lane.b32.xlu0 %v510_v30, %s2424_s2  ;;  %613 = vrot.lane.b32.xlu1 %v2811_v31, %s2424_s2 }
  0xff   :  { %595 = vrot.lane.b32.xlu0 %v2785_v26, %s2424_s2  ;;  %609 = vrot.lane.b32.xlu1 %v511_v51, %s2424_s2  ;;  %v416_v51 = vsel %vm2911_vm11, %v2687_v43, -inf }
 0x103   :  { %611 = vrot.lane.b32.xlu0 %v2865_v0, %s2424_s2  ;;  %2385 = vrot.lane.b32.xlu1 %v2384_v61, %s2424_s2 }
 0x107   :  { %2390 = vrot.lane.b32.xlu0 %v2389_v4, %s2424_s2 }
 0x155   :  { %v307_v34 = vpop.permute.xlu1 %306 }
 0x156   :  { %v327_v25 = vsel %vm322_vm12, %v2377_v27, %v307_v34 }
 0x157   :  { %v2909_v6 = vsel %vm2903_vm8, %v327_v25, -inf }
 0x158   :  { %522 = vrot.lane.b32.xlu1 %v2909_v6, %s2424_s2 }
 0x159   :  { %v309_v27 = vpop.permute.xlu0 %308  ;;  %v315_v28 = vpop.permute.xlu1 %314 }
 0x15a   :  { %v323_v30 = vsel %vm322_vm12, %v307_v34, %v315_v28  ;;  %v335_v40 = vsel %vm322_vm12, %v315_v28, %v2367_v22  ;;  %v328_v62 = vsel %vm322_vm12, %v2378_v24, %v309_v27  ;;  %v417_v22 = vsel %vm2917_vm13, %v2701_v45, -inf }
 0x15b   :  { %v354_v59 = vsel %vm342_vm7, %v335_v40, -inf  ;;  %v456_v57 = vsel %vm2925_vm14, %v323_v30, -inf  ;;  %v2944_v61 = vsel %vm2903_vm8, %v328_v62, -inf  ;;  %v424_v30 = vsel %vm2911_vm11, %v2746_v53, -inf }
 0x15c   :  { %524 = vrot.lane.b32.xlu0 %v2944_v61, %s2424_s2  ;;  %v2951_v24 = vmax.f32 %v416_v51, %v456_v57  ;;  %v457_v43 = vsel %vm2921_vm15, %v354_v59, -inf  ;;  %v429_v62 = vsel %vm2917_vm13, %v2742_v46, -inf }
 0x15d   :  { %v317_v4 = vpop.permute.xlu0 %316  ;;  %v319_v5 = vpop.permute.xlu1 %318  ;;  %v2955_v7 = vmax.f32 %v417_v22, %v457_v43 }
 0x15e   :  { %v324_v11 = vsel %vm322_vm12, %v309_v27, %v317_v4  ;;  %v336_v45 = vsel %vm322_vm12, %v317_v4, %v2368_v21  ;;  %v337_v49 = vsel %vm322_vm12, %v319_v5, %v2372_v33  ;;  %v421_v21 = vsel %vm2917_vm13, %v2726_v9, -inf }
 0x15f   :  { %v358_v44 = vsel %vm342_vm7, %v336_v45, -inf  ;;  %v460_v54 = vsel %vm2925_vm14, %v324_v11, -inf  ;;  %v362_v50 = vsel %vm342_vm7, %v337_v49, -inf }
 0x160   :  { %v2982_v14 = vmax.f32 %v420_v13, %v460_v54  ;;  %v461_v33 = vsel %vm2921_vm15, %v358_v44, -inf  ;;  %v465_v3 = vsel %vm2921_vm15, %v362_v50, -inf }
 0x161   :  { %v321_v41 = vpop.permute.xlu0 %320  ;;  %v311_v34 = vpop.permute.xlu1 %310  ;;  %v2988_v39 = vmax.f32 %v421_v21, %v461_v33  ;;  %v2990_v25 = vmax.f32 %v425_v10, %v465_v3 }
 0x162   :  { %v338_v27 = vsel %vm322_vm12, %v321_v41, %v2373_v32  ;;  %v325_v9 = vsel %vm322_vm12, %v311_v34, %v319_v5  ;;  %v329_v28 = vsel %vm322_vm12, %v2382_v38, %v311_v34 }
 0x163   :  { %v366_v40 = vsel %vm342_vm7, %v338_v27, -inf  ;;  %v464_v15 = vsel %vm2925_vm14, %v325_v9, -inf  ;;  %v3011_v32 = vsel %vm2903_vm8, %v329_v28, -inf  ;;  %vm5809_vm7 = vcmp.lt.s32.totalorder %v2492_v12, 126 }
 0x164   :  { %526 = vrot.lane.b32.xlu1 %v3011_v32, %s2424_s2  ;;  %v469_v53 = vsel %vm2921_vm15, %v366_v40, -inf  ;;  %v3020_v38 = vmax.f32 %v424_v30, %v464_v15  ;;  %v636_v40 = vsel %vm2619_vm1, 1, %v2421_v8 }
 0x165   :  { %v313_v51 = vpop.permute.xlu0 %312  ;;  %v592_v59 = vpop.permute.xlu1 %591  ;;  %v3022_v57 = vmax.f32 %v429_v62, %v469_v53 }
 0x166   :  { %v326_v22 = vsel %vm322_vm12, %v313_v51, %v321_v41  ;;  %v330_v46 = vsel %vm322_vm12, %v2383_v37, %v313_v51  ;;  %vm5806_vm12 = vcmp.lt.s32.totalorder %v2516_v23, 510 }
 0x167   :  { %v468_v20 = vsel %vm2925_vm14, %v326_v22, -inf  ;;  %v3038_v43 = vsel %vm2903_vm8, %v330_v46, -inf }
 0x168   :  { %528 = vrot.lane.b32.xlu0 %v3038_v43, %s2424_s2  ;;  %530 = vrot.lane.b32.xlu1 %v2951_v24, %s2424_s2  ;;  %v3045_v29 = vmax.f32 %v428_v19, %v468_v20 }
 0x169   :  { %v598_v37 = vpop.permute.xlu0 %597  ;;  %v594_v47 = vpop.permute.xlu1 %593 }
 0x16a   :  { %v602_v16 = vsel %vm5809_vm7, %v598_v37, %v592_v59  ;;  %v601_v4 = vsel %vm5809_vm7, %v592_v59, %v594_v47 }
 0x16b   :  { %v606_v36 = vsel %vm5806_vm12, %v602_v16, 0  ;;  %v2313_v49 = vadd.s32 4294967294, %v601_v4 }
 0x16c   :  { %532 = vrot.lane.b32.xlu0 %v2982_v14, %s2424_s2  ;;  %538 = vrot.lane.b32.xlu1 %v2955_v7, %s2424_s2  ;;  %v2316_v35 = vadd.s32 4294967294, %v606_v36 }
 0x16d   :  { %v608_v5 = vpop.permute.xlu0 %607  ;;  %v614_v10 = vpop.permute.xlu1 %613 }
 0x16e   :  { %v618_v11 = vsel %vm5809_vm7, %v614_v10, %v608_v5 }
 0x16f   :  { %v3062_v45 = vsel %vm5806_vm12, %v618_v11, 0 }
 0x170   :  { %vm5807_vm2 = vcmp.ne.s32.totalorder %v3062_v45, 0  ;;  %540 = vrot.lane.b32.xlu0 %v2988_v39, %s2424_s2  ;;  %542 = vrot.lane.b32.xlu1 %v2990_v25, %s2424_s2 }
 0x171   :  { %v596_v13 = vpop.permute.xlu0 %595  ;;  %v610_v44 = vpop.permute.xlu1 %609  ;;  %v738_v54 = vsel %vm5807_vm2, %v2316_v35, 0  ;;  %vm3119_vm4 = vmor %vm3073_vm9, %vm5807_vm2  ;;  %v635_v35 = vsel %vm2640_vm6, 1, %v2421_v8 }
 0x172   :  { %v599_v50 = vsel %vm5809_vm7, %v596_v13, %v598_v37  ;;  %v600_v21 = vsel %vm5809_vm7, %v594_v47, %v596_v13  ;;  %v617_v33 = vsel %vm5809_vm7, %v608_v5, %v610_v44  ;;  %v3087_v18 = vsel %vm3073_vm9, %v2735_v48, %v738_v54 }
 0x173   :  { %vm5810_vm5 = vcmp.ne.s32.totalorder %v617_v33, 0  ;;  %v2314_v3 = vadd.s32 4294967294, %v600_v21  ;;  %v750_v41 = vand.u32 4, %v3087_v18  ;;  %v2315_v27 = vadd.s32 4294967294, %v599_v50 }
 0x174   :  { %544 = vrot.lane.b32.xlu0 %v3022_v57, %s2424_s2  ;;  %534 = vrot.lane.b32.xlu1 %v3020_v38, %s2424_s2  ;;  %v735_v0 = vsel %vm5810_vm5, %v2313_v49, 0  ;;  %vm3136_vm14 = vmor %vm2640_vm6, %vm5810_vm5  ;;  %v642_v5 = vrot.slane %v635_v35, %v2506_v17  ;;  %vm5913_vm9 = vcmp.ne.s32.totalorder %v3062_v45, 0 }
 0x175   :  { %v612_v48 = vpop.permute.xlu0 %611  ;;  %v3104_v9 = vsel %vm2640_vm6, %v2627_v60, %v735_v0  ;;  %vm754_vm8 = vcmp.ne.s32.totalorder %v750_v41, 0  ;;  %vm5909_vm6 = vcmp.lt.s32.totalorder %v2492_v12, 126 }
 0x176   :  { %v3108_v28 = vsel %vm5809_vm7, %v612_v48, %v614_v10  ;;  %v3112_v30 = vsel %vm5809_vm7, %v610_v44, %v612_v48  ;;  %v747_v42 = vand.u32 4, %v3104_v9  ;;  %vm758_vm15 = vmand %vm3119_vm4, %vm754_vm8  ;;  %v3212_v10 = vpop.permute.xlu1 %2385 }
 0x177   :  { %vm5808_vm11 = vcmp.ne.s32.totalorder %v3112_v30, 0  ;;  %vm633_vm13 = vcmp.ne.s32.totalorder %v3108_v28, 0  ;;  %v762_v53 = vsel %vm758_vm15, 1, %v2421_v8  ;;  %v2387_v13 = vunpack.i.l.bf16 %v3212_v10 }
 0x178   :  { %536 = vrot.lane.b32.xlu0 %v3045_v29, %s2424_s2  ;;  %840 = vrot.lane.b32.xlu1 %v3104_v9, %s2425_s17  ;;  %v736_v60 = vsel %vm5808_vm11, %v2314_v3, 0  ;;  %vm751_vm0 = vcmp.ne.s32.totalorder %v747_v42, 0  ;;  %vm875_vm8 = vcmp.eq.s32.totalorder %v762_v53, 0  ;;  %v737_v22 = vsel %vm633_vm13, %v2315_v27, 0  ;;  %vm3156_vm12 = vmor %vm2619_vm1, %vm5808_vm11 }
 0x179   :  { %v3143_v62 = vsel %vm2619_vm1, %v2606_v55, %v736_v60  ;;  %vm755_vm10 = vmand %vm3136_vm14, %vm751_vm0  ;;  %v3169_v19 = vsel %vm3097_vm3, %v2785_v26, %v737_v22  ;;  %v3220_v44 = vpop.permute.xlu0 %2390  ;;  %v2388_v3 = vunpack.i.h.bf16 %v3212_v10  ;;  %v677_v22 = vsel %vm633_vm13, 1, %v2421_v8 }
 0x17a   :  { %v748_v51 = vand.u32 4, %v3143_v62  ;;  %v759_v59 = vsel %vm755_vm10, 1, %v2421_v8  ;;  %vm3162_vm15 = vmand %vm3119_vm4, %vm875_vm8  ;;  %v749_v37 = vand.u32 4, %v3169_v19  ;;  %v2392_v15 = vunpack.i.l.bf16 %v3220_v44 }
 0x17b   :  { %vm872_vm2 = vcmp.eq.s32.totalorder %v759_v59, 0  ;;  %vm745_vm8 = vmor %vm3097_vm3, %vm633_vm13  ;;  %v654_v28 = vrot.slane %v638_v58, %v2506_v17  ;;  %v690_v45 = vrot.slane %v677_v22, %v2506_v17  ;;  %v887_v47 = vsel %vm3162_vm15, 1, %v2421_v8 }
 0x17c   :  { %846 = vrot.lane.b32.xlu0 %v3087_v18, %s2425_s17  ;;  %842 = vrot.lane.b32.xlu1 %v3143_v62, %s2425_s17  ;;  %vm3177_vm0 = vmand %vm3136_vm14, %vm872_vm2  ;;  %vm752_vm4 = vcmp.ne.s32.totalorder %v748_v51, 0  ;;  %vm753_vm11 = vcmp.ne.s32.totalorder %v749_v37, 0  ;;  %v678_v37 = vsel %vm5913_vm9, 1, %v2421_v8  ;;  %vm5931_vm9 = vcmp.lt.s32.totalorder %v2516_v23, 510 }
 0x17d   :  { %vm756_vm10 = vmand %vm3156_vm12, %vm752_vm4  ;;  %v694_v49 = vrot.slane %v678_v37, %v2506_v17 }
 0x17e   :  { %v760_v26 = vsel %vm756_vm10, 1, %v2421_v8  ;;  %vm757_vm5 = vmand %vm745_vm8, %vm753_vm11  ;;  %vm5911_vm10 = vcmp.ne.s32.totalorder %v3112_v30, 0 }
 0x17f   :  { %vm873_vm7 = vcmp.eq.s32.totalorder %v760_v26, 0  ;;  %v761_v16 = vsel %vm757_vm5, 1, %v2421_v8  ;;  %vm5910_vm11 = vmmov %vm5909_vm6  ;;  %v676_v60 = vsel %vm5911_vm10, 1, %v2421_v8 }
 0x180   :  { %856 = vrot.lane.b32.xlu0 %v759_v59, %s2425_s17  ;;  %862 = vrot.lane.b32.xlu1 %v762_v53, %s2425_s17  ;;  %vm3193_vm2 = vmand %vm3156_vm12, %vm873_vm7  ;;  %vm874_vm14 = vcmp.eq.s32.totalorder %v761_v16, 0  ;;  %vm5904_vm7 = vcmp.ne.s32.totalorder %v617_v33, 0  ;;  %vm3215_vm12 = vcmp.eq.s32.totalorder %v642_v5, 1  ;;  %v637_v53 = vsel %vm3097_vm3, 1, %v2421_v8 }
 0x181   :  { %vm3198_vm4 = vmand %vm745_vm8, %vm874_vm14  ;;  %v675_v4 = vsel %vm5904_vm7, 1, %v2421_v8  ;;  %v659_v33 = vsel %vm3215_vm12, %v2839_v52, -inf  ;;  %v663_v52 = vsel %vm3215_vm12, %v2843_v56, -inf  ;;  %v646_v56 = vrot.slane %v636_v40, %v2506_v17 }
 0x182   :  { %v682_v11 = vrot.slane %v675_v4, %v2506_v17  ;;  %v686_v59 = vrot.slane %v676_v60, %v2506_v17  ;;  %vm5912_vm1 = vmmov %vm5909_vm6  ;;  %v667_v55 = vsel %vm3215_vm12, %v2869_v1, -inf  ;;  %v650_v31 = vrot.slane %v637_v53, %v2506_v17 }
 0x183   :  { %vm3287_vm3 = vcmp.eq.s32.totalorder %v646_v56, 1  ;;  %v671_v1 = vsel %vm3215_vm12, %v2873_v2, -inf  ;;  %vm5918_vm8 = vmmov %vm5912_vm1  ;;  %vm3324_vm12 = vcmp.eq.s32.totalorder %v654_v28, 1 }
 0x184   :  { %844 = vrot.lane.b32.xlu0 %v3169_v19, %s2425_s17  ;;  %858 = vrot.lane.b32.xlu1 %v760_v26, %s2425_s17  ;;  %vm3222_vm5 = vcmp.eq.s32.totalorder %v682_v11, 1  ;;  %v2393_v26 = vunpack.i.h.bf16 %v3220_v44  ;;  %vm3297_vm13 = vcmp.eq.s32.totalorder %v686_v59, 1  ;;  %vm5919_vm14 = vmmov %vm5912_vm1  ;;  %v660_v2 = vsel %vm3287_vm3, %v2909_v6, -inf }
 0x185   :  { %vm3316_vm7 = vcmp.eq.s32.totalorder %v650_v31, 1  ;;  %v664_v6 = vsel %vm3287_vm3, %v2944_v61, -inf  ;;  %vm5928_vm10 = vmmov %vm5912_vm1 }
 0x186   :  { %v661_v60 = vsel %vm3316_vm7, %v2951_v24, -inf }
 0x188   :  { %860 = vrot.lane.b32.xlu0 %v761_v16, %s2425_s17 }
 0x1ca   :  { %v523_v54 = vpop.permute.xlu1 %522 }
 0x1cb   :  { %v555_v50 = vsel %vm5909_vm6, %v2387_v13, %v523_v54  ;;  %vm5926_vm6 = vmmov %vm5912_vm1 }
 0x1cc   :  { %v699_v21 = vsel %vm3222_vm5, %v555_v50, -inf }
 0x1cd   :  { %v3234_v0 = vmax.f32 %v659_v33, %v699_v21 }
 0x1ce   :  { %v525_v41 = vpop.permute.xlu0 %524 }
 0x1cf   :  { %v556_v27 = vsel %vm5910_vm11, %v2388_v3, %v525_v41  ;;  %763 = vrot.lane.b32.xlu1 %v3234_v0, %s2425_s17  ;;  %vm5927_vm11 = vmmov %vm5912_vm1 }
 0x1d0   :  { %v703_v48 = vsel %vm3222_vm5, %v556_v27, -inf }
 0x1d1   :  { %v3247_v42 = vmax.f32 %v663_v52, %v703_v48 }
 0x1d3   :  { %765 = vrot.lane.b32.xlu0 %v3247_v42, %s2425_s17 }
 0x1d6   :  { %v3262_v51 = vpop.permute.xlu1 %526 }
 0x1d7   :  { %v557_v30 = vsel %vm5912_vm1, %v2392_v15, %v3262_v51  ;;  %vm3348_vm1 = vcmp.eq.s32.totalorder %v694_v49, 1 }
 0x1d8   :  { %v707_v34 = vsel %vm3222_vm5, %v557_v30, -inf }
 0x1d9   :  { %v3284_v16 = vmax.f32 %v667_v55, %v707_v34  ;;  %v662_v34 = vsel %vm3324_vm12, %v2955_v7, -inf  ;;  %v665_v7 = vsel %vm3316_vm7, %v2982_v14, -inf  ;;  %v670_v14 = vsel %vm3324_vm12, %v2990_v25, -inf }
 0x1da   :  { %v3291_v4 = vpop.permute.xlu0 %528  ;;  %v531_v5 = vpop.permute.xlu1 %530 }
 0x1db   :  { %v558_v44 = vsel %vm5918_vm8, %v2393_v26, %v3291_v4  ;;  %v551_v50 = vsel %vm5919_vm14, %v523_v54, %v531_v5  ;;  %767 = vrot.lane.b32.xlu1 %v3284_v16, %s2425_s17  ;;  %vm5932_vm8 = vmmov %vm5926_vm6 }
 0x1dc   :  { %v711_v21 = vsel %vm3222_vm5, %v558_v44, -inf  ;;  %v700_v33 = vsel %vm3297_vm13, %v551_v50, -inf  ;;  %vm3334_vm5 = vcmp.eq.s32.totalorder %v690_v45, 1  ;;  %vm5933_vm14 = vmmov %vm5926_vm6 }
 0x1dd   :  { %v3320_v54 = vmax.f32 %v671_v1, %v711_v21  ;;  %v3322_v48 = vmax.f32 %v660_v2, %v700_v33 }
 0x1de   :  { %v533_v63 = vpop.permute.xlu0 %532  ;;  %v539_v40 = vpop.permute.xlu1 %538 }
 0x1df   :  { %v552_v56 = vsel %vm5926_vm6, %v525_v41, %v533_v63  ;;  %v547_v58 = vsel %vm5927_vm11, %v531_v5, %v539_v40  ;;  %v559_v59 = vsel %vm5928_vm10, %v539_v40, %v2387_v13  ;;  %769 = vrot.lane.b32.xlu0 %v3320_v54, %s2425_s17  ;;  %771 = vrot.lane.b32.xlu1 %v3322_v48, %s2425_s17  ;;  %vm5934_vm11 = vmmov %vm5931_vm9 }
 0x1e0   :  { %v704_v24 = vsel %vm3297_vm13, %v552_v56, -inf  ;;  %v578_v41 = vsel %vm5931_vm9, %v559_v59, -inf  ;;  %v701_v30 = vsel %vm3334_vm5, %v547_v58, -inf  ;;  %vm5935_vm10 = vmmov %vm5931_vm9 }
 0x1e1   :  { %v3358_v13 = vmax.f32 %v664_v6, %v704_v24  ;;  %v3360_v22 = vmax.f32 %v661_v60, %v701_v30  ;;  %v702_v55 = vsel %vm3348_vm1, %v578_v41, -inf  ;;  %vm5936_vm9 = vmmov %vm5926_vm6  ;;  %v674_v24 = vsel %vm3324_vm12, %v3022_v57, -inf }
 0x1e2   :  { %v541_v31 = vpop.permute.xlu0 %540  ;;  %v543_v37 = vpop.permute.xlu1 %542  ;;  %v3367_v28 = vmax.f32 %v662_v34, %v702_v55  ;;  %v672_v57 = vsel %vm3287_vm3, %v3038_v43, -inf }
 0x1e3   :  { %v548_v5 = vsel %vm5932_vm8, %v533_v63, %v541_v31  ;;  %v560_v1 = vsel %vm5933_vm14, %v541_v31, %v2388_v3  ;;  %v561_v45 = vsel %vm5926_vm6, %v543_v37, %v2392_v15  ;;  %773 = vrot.lane.b32.xlu0 %v3358_v13, %s2425_s17  ;;  %v666_v3 = vsel %vm3324_vm12, %v2988_v39, -inf  ;;  %vm5937_vm8 = vmmov %vm5926_vm6 }
 0x1e4   :  { %v582_v44 = vsel %vm5934_vm11, %v560_v1, -inf  ;;  %v705_v50 = vsel %vm3334_vm5, %v548_v5, -inf  ;;  %v586_v10 = vsel %vm5935_vm10, %v561_v45, -inf  ;;  %v668_v39 = vsel %vm3287_vm3, %v3011_v32, -inf  ;;  %vm5938_vm14 = vmmov %vm5926_vm6 }
 0x1e5   :  { %v3391_v15 = vmax.f32 %v665_v7, %v705_v50  ;;  %v706_v2 = vsel %vm3348_vm1, %v582_v44, -inf  ;;  %v710_v49 = vsel %vm3348_vm1, %v586_v10, -inf  ;;  %vm5939_vm6 = vmmov %vm5935_vm10  ;;  %v669_v32 = vsel %vm3316_vm7, %v3020_v38, -inf }
 0x1e6   :  { %v545_v21 = vpop.permute.xlu0 %544  ;;  %v535_v33 = vpop.permute.xlu1 %534  ;;  %v3400_v6 = vmax.f32 %v666_v3, %v706_v2  ;;  %v3402_v63 = vmax.f32 %v670_v14, %v710_v49  ;;  %vm5814_vm11 = vcmp.lt.s32.totalorder %v2492_v12, 124  ;;  %vm5940_vm10 = vmmov %vm5937_vm8  ;;  %vm5811_vm12 = vcmp.lt.s32.totalorder %v2516_v23, 508 }
 0x1e7   :  { %v562_v40 = vsel %vm5936_vm9, %v545_v21, %v2393_v26  ;;  %v549_v60 = vsel %vm5937_vm8, %v535_v33, %v543_v37  ;;  %v553_v25 = vsel %vm5938_vm14, %v3262_v51, %v535_v33  ;;  %vm5941_vm9 = vmmov %vm5937_vm8  ;;  %v673_v37 = vsel %vm3316_vm7, %v3045_v29, -inf }
 0x1e8   :  { %v590_v56 = vsel %vm5939_vm6, %v562_v40, -inf  ;;  %v708_v58 = vsel %vm3297_vm13, %v553_v25, -inf  ;;  %v709_v59 = vsel %vm3334_vm5, %v549_v60, -inf }
 0x1e9   :  { %v3423_v26 = vmax.f32 %v668_v39, %v708_v58  ;;  %v714_v51 = vsel %vm3348_vm1, %v590_v56, -inf  ;;  %v3430_v41 = vmax.f32 %v669_v32, %v709_v59 }
 0x1ea   :  { %v537_v30 = vpop.permute.xlu0 %536  ;;  %v841_v34 = vpop.permute.xlu1 %840  ;;  %v3432_v55 = vmax.f32 %v674_v24, %v714_v51 }
 0x1eb   :  { %v550_v38 = vsel %vm5940_vm10, %v537_v30, %v545_v21  ;;  %v554_v31 = vsel %vm5941_vm9, %v3291_v4, %v537_v30  ;;  %775 = vrot.lane.b32.xlu1 %v3423_v26, %s2425_s17 }
 0x1ec   :  { %v712_v52 = vsel %vm3297_vm13, %v554_v31, -inf  ;;  %v713_v61 = vsel %vm3334_vm5, %v550_v38, -inf }
 0x1ed   :  { %v3452_v5 = vmax.f32 %v672_v57, %v712_v52  ;;  %v3454_v4 = vmax.f32 %v673_v37, %v713_v61 }
 0x1ee   :  { %v847_v1 = vpop.permute.xlu0 %846  ;;  %v843_v45 = vpop.permute.xlu1 %842 }
 0x1ef   :  { %v851_v43 = vsel %vm5814_vm11, %v847_v1, %v841_v34  ;;  %777 = vrot.lane.b32.xlu0 %v3452_v5, %s2425_s17  ;;  %779 = vrot.lane.b32.xlu1 %v3360_v22, %s2425_s17  ;;  %v850_v7 = vsel %vm5814_vm11, %v841_v34, %v843_v45 }
 0x1f0   :  { %v855_v29 = vsel %vm5811_vm12, %v851_v43, 0  ;;  %v2317_v2 = vadd.s32 4294967292, %v850_v7 }
 0x1f1   :  { %v2320_v53 = vadd.s32 4294967292, %v855_v29 }
 0x1f2   :  { %v857_v35 = vpop.permute.xlu0 %856  ;;  %v863_v11 = vpop.permute.xlu1 %862 }
 0x1f3   :  { %v867_v27 = vsel %vm5814_vm11, %v863_v11, %v857_v35  ;;  %781 = vrot.lane.b32.xlu0 %v3391_v15, %s2425_s17  ;;  %787 = vrot.lane.b32.xlu1 %v3367_v28, %s2425_s17 }
 0x1f4   :  { %v3475_v44 = vsel %vm5811_vm12, %v867_v27, 0 }
 0x1f5   :  { %vm5812_vm3 = vcmp.ne.s32.totalorder %v3475_v44, 0 }
 0x1f6   :  { %v845_v50 = vpop.permute.xlu0 %844  ;;  %v859_v10 = vpop.permute.xlu1 %858  ;;  %v987_v3 = vsel %vm5812_vm3, %v2320_v53, 0  ;;  %vm3517_vm7 = vmor %vm3162_vm15, %vm5812_vm3 }
 0x1f7   :  { %v849_v14 = vsel %vm5814_vm11, %v843_v45, %v845_v50  ;;  %v866_v49 = vsel %vm5814_vm11, %v857_v35, %v859_v10  ;;  %789 = vrot.lane.b32.xlu0 %v3400_v6, %s2425_s17  ;;  %791 = vrot.lane.b32.xlu1 %v3402_v63, %s2425_s17  ;;  %v3491_v21 = vsel %vm3162_vm15, %v3087_v18, %v987_v3  ;;  %vm5964_vm15 = vcmp.ne.s32.totalorder %v3475_v44, 0 }
 0x1f8   :  { %vm880_vm13 = vcmp.ne.s32.totalorder %v866_v49, 0  ;;  %v999_v39 = vand.u32 8, %v3491_v21  ;;  %v848_v40 = vsel %vm5814_vm11, %v845_v50, %v847_v1  ;;  %v2318_v60 = vadd.s32 4294967292, %v849_v14 }
 0x1f9   :  { %v984_v33 = vsel %vm880_vm13, %v2317_v2, 0  ;;  %v2319_v32 = vadd.s32 4294967292, %v848_v40  ;;  %vm3532_vm6 = vmor %vm3177_vm0, %vm880_vm13  ;;  %v924_v27 = vsel %vm880_vm13, 1, %v2421_v8 }
 0x1fa   :  { %v861_v25 = vpop.permute.xlu0 %860  ;;  %v3500_v56 = vsel %vm3177_vm0, %v3104_v9, %v984_v33  ;;  %vm1003_vm5 = vcmp.ne.s32.totalorder %v999_v39, 0 }
 0x1fb   :  { %v3504_v58 = vsel %vm5814_vm11, %v861_v25, %v863_v11  ;;  %v3508_v18 = vsel %vm5814_vm11, %v859_v10, %v861_v25  ;;  %793 = vrot.lane.b32.xlu0 %v3432_v55, %s2425_s17  ;;  %v996_v59 = vand.u32 8, %v3500_v56  ;;  %783 = vrot.lane.b32.xlu1 %v3430_v41, %s2425_s17  ;;  %vm1007_vm14 = vmand %vm3517_vm7, %vm1003_vm5  ;;  %v884_v11 = vsel %vm3177_vm0, 1, %v2421_v8 }
 0x1fc   :  { %vm5813_vm1 = vcmp.ne.s32.totalorder %v3508_v18, 0  ;;  %vm882_vm8 = vcmp.ne.s32.totalorder %v3504_v58, 0  ;;  %v1011_v34 = vsel %vm1007_vm14, 1, %v2421_v8  ;;  %v891_v50 = vrot.slane %v884_v11, %v2506_v17 }
 0x1fd   :  { %v985_v24 = vsel %vm5813_vm1, %v2318_v60, 0  ;;  %vm1000_vm10 = vcmp.ne.s32.totalorder %v996_v59, 0  ;;  %vm1124_vm5 = vcmp.eq.s32.totalorder %v1011_v34, 0  ;;  %v986_v57 = vsel %vm882_vm8, %v2319_v32, 0  ;;  %vm3554_vm12 = vmor %vm3193_vm2, %vm5813_vm1 }
 0x1fe   :  { %v3539_v30 = vsel %vm3193_vm2, %v3143_v62, %v985_v24  ;;  %vm1004_vm9 = vmand %vm3532_vm6, %vm1000_vm10  ;;  %v3569_v61 = vsel %vm3198_vm4, %v3169_v19, %v986_v57  ;;  %v931_v10 = vrot.slane %v924_v27, %v2506_v17  ;;  %vm5960_vm0 = vcmp.lt.s32.totalorder %v2492_v12, 124 }
 0x1ff   :  { %785 = vrot.lane.b32.xlu0 %v3454_v4, %s2425_s17  ;;  %v997_v38 = vand.u32 8, %v3539_v30  ;;  %v1008_v31 = vsel %vm1004_vm9, 1, %v2421_v8  ;;  %1089 = vrot.lane.b32.xlu1 %v3500_v56, %s2426_s18  ;;  %vm3562_vm10 = vmand %vm3517_vm7, %vm1124_vm5  ;;  %v998_v1 = vand.u32 8, %v3569_v61  ;;  %v927_v62 = vsel %vm5964_vm15, 1, %v2421_v8 }
 0x200   :  { %vm1121_vm14 = vcmp.eq.s32.totalorder %v1008_v31, 0  ;;  %vm994_vm5 = vmor %vm3198_vm4, %vm882_vm8  ;;  %v943_v14 = vrot.slane %v927_v62, %v2506_v17  ;;  %vm5981_vm15 = vcmp.lt.s32.totalorder %v2516_v23, 508 }
 0x201   :  { %vm3573_vm9 = vmand %vm3532_vm6, %vm1121_vm14  ;;  %vm1001_vm3 = vcmp.ne.s32.totalorder %v997_v38, 0  ;;  %vm1002_vm6 = vcmp.ne.s32.totalorder %v998_v1, 0 }
 0x202   :  { %vm1005_vm7 = vmand %vm3554_vm12, %vm1001_vm3 }
 0x203   :  { %1095 = vrot.lane.b32.xlu0 %v3491_v21, %s2426_s18  ;;  %v1009_v45 = vsel %vm1005_vm7, 1, %v2421_v8  ;;  %1091 = vrot.lane.b32.xlu1 %v3539_v30, %s2426_s18  ;;  %vm1006_vm1 = vmand %vm994_vm5, %vm1002_vm6 }
 0x204   :  { %vm1122_vm14 = vcmp.eq.s32.totalorder %v1009_v45, 0  ;;  %v1010_v43 = vsel %vm1006_vm1, 1, %v2421_v8  ;;  %vm3623_vm1 = vcmp.eq.s32.totalorder %v931_v10, 1  ;;  %vm5961_vm13 = vmmov %vm5960_vm0 }
 0x205   :  { %vm3591_vm11 = vmand %vm3554_vm12, %vm1122_vm14  ;;  %vm1123_vm3 = vcmp.eq.s32.totalorder %v1010_v43, 0  ;;  %vm3619_vm12 = vcmp.eq.s32.totalorder %v891_v50, 1 }
 0x206   :  { %vm3597_vm7 = vmand %vm994_vm5, %vm1123_vm3  ;;  %v908_v39 = vsel %vm3619_vm12, %v3234_v0, -inf  ;;  %v912_v9 = vsel %vm3619_vm12, %v3247_v42, -inf  ;;  %v885_v0 = vsel %vm3193_vm2, 1, %v2421_v8  ;;  %vm5962_vm5 = vcmp.ne.s32.totalorder %v3508_v18, 0 }
 0x207   :  { %1105 = vrot.lane.b32.xlu0 %v1008_v31, %s2426_s18  ;;  %1111 = vrot.lane.b32.xlu1 %v1011_v34, %s2426_s18  ;;  %v925_v24 = vsel %vm5962_vm5, 1, %v2421_v8  ;;  %v895_v51 = vrot.slane %v885_v0, %v2506_v17  ;;  %v886_v34 = vsel %vm3198_vm4, 1, %v2421_v8  ;;  %vm5963_vm2 = vmmov %vm5960_vm0  ;;  %v926_v31 = vsel %vm882_vm8, 1, %v2421_v8 }
 0x208   :  { %v935_v38 = vrot.slane %v925_v24, %v2506_v17  ;;  %v916_v57 = vsel %vm3619_vm12, %v3284_v16, -inf  ;;  %v899_v46 = vrot.slane %v886_v34, %v2506_v17  ;;  %v920_v16 = vsel %vm3619_vm12, %v3320_v54, -inf  ;;  %vm5969_vm6 = vmmov %vm5960_vm0 }
 0x209   :  { %vm3685_vm4 = vcmp.eq.s32.totalorder %v895_v51, 1  ;;  %v939_v27 = vrot.slane %v926_v31, %v2506_v17  ;;  %vm5970_vm14 = vmmov %vm5960_vm0 }
 0x20a   :  { %vm3695_vm8 = vcmp.eq.s32.totalorder %v935_v38, 1  ;;  %vm3715_vm3 = vcmp.eq.s32.totalorder %v899_v46, 1  ;;  %v913_v0 = vsel %vm3685_vm4, %v3358_v13, -inf  ;;  %vm5978_vm5 = vmmov %vm5960_vm0  ;;  %v921_v13 = vsel %vm3685_vm4, %v3452_v5, -inf }
 0x20b   :  { %1093 = vrot.lane.b32.xlu0 %v3569_v61, %s2426_s18  ;;  %1107 = vrot.lane.b32.xlu1 %v1009_v45, %s2426_s18  ;;  %v903_v45 = vrot.slane %v887_v47, %v2506_v17 }
 0x20d   :  { %vm3723_vm12 = vcmp.eq.s32.totalorder %v903_v45, 1 }
 0x20e   :  { %v911_v31 = vsel %vm3723_vm12, %v3367_v28, -inf }
 0x20f   :  { %1109 = vrot.lane.b32.xlu0 %v1010_v43, %s2426_s18 }
 0x241   :  { %v764_v35 = vpop.permute.xlu1 %763 }
 0x245   :  { %v3611_v53 = vpop.permute.xlu0 %765 }
 0x24d   :  { %v3613_v7 = vpop.permute.xlu1 %767 }
 0x251   :  { %v3617_v3 = vpop.permute.xlu0 %769  ;;  %v772_v2 = vpop.permute.xlu1 %771 }
 0x252   :  { %v804_v49 = vsel %vm5960_vm0, %v764_v35, %v772_v2 }
 0x253   :  { %v948_v33 = vsel %vm3623_vm1, %v804_v49, -inf }
 0x254   :  { %v3634_v40 = vmax.f32 %v908_v39, %v948_v33  ;;  %v909_v33 = vsel %vm3685_vm4, %v3322_v48, -inf  ;;  %v910_v48 = vsel %vm3715_vm3, %v3360_v22, -inf }
 0x255   :  { %v774_v60 = vpop.permute.xlu0 %773 }
 0x256   :  { %v805_v25 = vsel %vm5961_vm13, %v3611_v53, %v774_v60  ;;  %1012 = vrot.lane.b32.xlu1 %v3634_v40, %s2426_s18  ;;  %vm5977_vm13 = vmmov %vm5960_vm0 }
 0x257   :  { %v952_v59 = vsel %vm3623_vm1, %v805_v25, -inf }
 0x258   :  { %v3646_v32 = vmax.f32 %v912_v9, %v952_v59 }
 0x25a   :  { %1014 = vrot.lane.b32.xlu0 %v3646_v32, %s2426_s18 }
 0x25d   :  { %v3660_v42 = vpop.permute.xlu1 %775 }
 0x25e   :  { %v806_v18 = vsel %vm5963_vm2, %v3613_v7, %v3660_v42  ;;  %vm3747_vm2 = vcmp.eq.s32.totalorder %v943_v14, 1  ;;  %v915_v14 = vsel %vm3723_vm12, %v3400_v6, -inf  ;;  %v917_v6 = vsel %vm3685_vm4, %v3423_v26, -inf }
 0x25f   :  { %v956_v36 = vsel %vm3623_vm1, %v806_v18, -inf  ;;  %vm5815_vm4 = vcmp.lt.s32.totalorder %v2516_v23, 504 }
 0x260   :  { %v3682_v1 = vmax.f32 %v916_v57, %v956_v36 }
 0x261   :  { %v3689_v43 = vpop.permute.xlu0 %777  ;;  %v780_v11 = vpop.permute.xlu1 %779 }
 0x262   :  { %v807_v50 = vsel %vm5969_vm6, %v3617_v3, %v3689_v43  ;;  %v800_v10 = vsel %vm5970_vm14, %v772_v2, %v780_v11  ;;  %1016 = vrot.lane.b32.xlu1 %v3682_v1, %s2426_s18  ;;  %vm5982_vm6 = vmmov %vm5960_vm0 }
 0x263   :  { %v960_v54 = vsel %vm3623_vm1, %v807_v50, -inf  ;;  %v949_v49 = vsel %vm3695_vm8, %v800_v10, -inf  ;;  %vm3733_vm1 = vcmp.eq.s32.totalorder %v939_v27, 1  ;;  %vm5983_vm14 = vmmov %vm5960_vm0  ;;  %v914_v50 = vsel %vm3715_vm3, %v3391_v15, -inf }
 0x264   :  { %v3719_v2 = vmax.f32 %v920_v16, %v960_v54  ;;  %v3721_v25 = vmax.f32 %v909_v33, %v949_v49 }
 0x265   :  { %v782_v20 = vpop.permute.xlu0 %781  ;;  %v788_v9 = vpop.permute.xlu1 %787 }
 0x266   :  { %v801_v51 = vsel %vm5960_vm0, %v774_v60, %v782_v20  ;;  %v796_v34 = vsel %vm5977_vm13, %v780_v11, %v788_v9  ;;  %v808_v47 = vsel %vm5978_vm5, %v788_v9, %v764_v35  ;;  %1018 = vrot.lane.b32.xlu0 %v3719_v2, %s2426_s18  ;;  %1020 = vrot.lane.b32.xlu1 %v3721_v25, %s2426_s18  ;;  %vm5984_vm0 = vmmov %vm5981_vm15 }
 0x267   :  { %v953_v22 = vsel %vm3695_vm8, %v801_v51, -inf  ;;  %v827_v60 = vsel %vm5981_vm15, %v808_v47, -inf  ;;  %v950_v38 = vsel %vm3733_vm1, %v796_v34, -inf  ;;  %vm5985_vm13 = vmmov %vm5978_vm5  ;;  %v923_v47 = vsel %vm3723_vm12, %v3432_v55, -inf }
 0x268   :  { %v3757_v35 = vmax.f32 %v913_v0, %v953_v22  ;;  %v3759_v18 = vmax.f32 %v910_v48, %v950_v38  ;;  %v951_v36 = vsel %vm3747_vm2, %v827_v60, -inf  ;;  %vm5986_vm5 = vmmov %vm5984_vm0 }
 0x269   :  { %v790_v57 = vpop.permute.xlu0 %789  ;;  %v3766_v46 = vmax.f32 %v911_v31, %v951_v36  ;;  %v792_v11 = vpop.permute.xlu1 %791  ;;  %vm5987_vm15 = vmmov %vm5982_vm6  ;;  %v922_v36 = vsel %vm3715_vm3, %v3454_v4, -inf }
 0x26a   :  { %v797_v62 = vsel %vm5982_vm6, %v782_v20, %v790_v57  ;;  %v809_v45 = vsel %vm5983_vm14, %v790_v57, %v3611_v53  ;;  %1022 = vrot.lane.b32.xlu0 %v3757_v35, %s2426_s18  ;;  %v810_v27 = vsel %vm5985_vm13, %v792_v11, %v3613_v7  ;;  %v919_v7 = vsel %vm3723_vm12, %v3402_v63, -inf  ;;  %vm5988_vm6 = vmmov %vm5984_vm0 }
 0x26b   :  { %v831_v28 = vsel %vm5984_vm0, %v809_v45, -inf  ;;  %v954_v16 = vsel %vm3733_vm1, %v797_v62, -inf  ;;  %v835_v53 = vsel %vm5986_vm5, %v810_v27, -inf  ;;  %v918_v63 = vsel %vm3715_vm3, %v3430_v41, -inf  ;;  %vm5989_vm14 = vmmov %vm5985_vm13 }
 0x26c   :  { %v3787_v10 = vmax.f32 %v914_v50, %v954_v16  ;;  %v955_v54 = vsel %vm3747_vm2, %v831_v28, -inf  ;;  %v959_v15 = vsel %vm3747_vm2, %v835_v53, -inf  ;;  %vm5990_vm0 = vmmov %vm5985_vm13  ;;  %vm5818_vm13 = vcmp.lt.s32.totalorder %v2492_v12, 120 }
 0x26d   :  { %v794_v49 = vpop.permute.xlu0 %793  ;;  %v3794_v33 = vmax.f32 %v915_v14, %v955_v54  ;;  %v784_v9 = vpop.permute.xlu1 %783  ;;  %v3807_v0 = vmax.f32 %v919_v7, %v959_v15  ;;  %vm5991_vm5 = vmmov %vm5990_vm0 }
 0x26e   :  { %v811_v20 = vsel %vm5987_vm15, %v794_v49, %v3617_v3  ;;  %v798_v51 = vsel %vm5989_vm14, %v784_v9, %v792_v11  ;;  %v802_v3 = vsel %vm5990_vm0, %v3660_v42, %v784_v9  ;;  %vm5992_vm15 = vmmov %vm5990_vm0 }
 0x26f   :  { %v839_v48 = vsel %vm5988_vm6, %v811_v20, -inf  ;;  %v957_v26 = vsel %vm3695_vm8, %v802_v3, -inf  ;;  %v958_v34 = vsel %vm3733_vm1, %v798_v51, -inf }
 0x270   :  { %v963_v41 = vsel %vm3747_vm2, %v839_v48, -inf  ;;  %v3828_v22 = vmax.f32 %v917_v6, %v957_v26  ;;  %v3830_v60 = vmax.f32 %v918_v63, %v958_v34 }
 0x271   :  { %v786_v38 = vpop.permute.xlu0 %785  ;;  %v3832_v31 = vmax.f32 %v923_v47, %v963_v41  ;;  %v1090_v55 = vpop.permute.xlu1 %1089 }
 0x272   :  { %v799_v42 = vsel %vm5991_vm5, %v786_v38, %v794_v49  ;;  %v803_v59 = vsel %vm5992_vm15, %v3689_v43, %v786_v38  ;;  %1024 = vrot.lane.b32.xlu1 %v3828_v22, %s2426_s18 }
 0x273   :  { %v961_v57 = vsel %vm3695_vm8, %v803_v59, -inf  ;;  %v962_v62 = vsel %vm3733_vm1, %v799_v42, -inf }
 0x274   :  { %v3852_v45 = vmax.f32 %v921_v13, %v961_v57  ;;  %v3854_v43 = vmax.f32 %v922_v36, %v962_v62 }
 0x275   :  { %v1096_v11 = vpop.permute.xlu0 %1095  ;;  %v1092_v4 = vpop.permute.xlu1 %1091 }
 0x276   :  { %v1100_v5 = vsel %vm5818_vm13, %v1096_v11, %v1090_v55  ;;  %1026 = vrot.lane.b32.xlu0 %v3852_v45, %s2426_s18  ;;  %1028 = vrot.lane.b32.xlu1 %v3759_v18, %s2426_s18  ;;  %v1099_v16 = vsel %vm5818_vm13, %v1090_v55, %v1092_v4 }
 0x277   :  { %v1104_v58 = vsel %vm5815_vm4, %v1100_v5, 0  ;;  %v2321_v54 = vadd.s32 4294967288, %v1099_v16 }
 0x278   :  { %v2324_v28 = vadd.s32 4294967288, %v1104_v58 }
 0x279   :  { %v1106_v44 = vpop.permute.xlu0 %1105  ;;  %v1112_v39 = vpop.permute.xlu1 %1111 }
 0x27a   :  { %1030 = vrot.lane.b32.xlu0 %v3787_v10, %s2426_s18  ;;  %v1116_v24 = vsel %vm5818_vm13, %v1112_v39, %v1106_v44  ;;  %1036 = vrot.lane.b32.xlu1 %v3766_v46, %s2426_s18 }
 0x27b   :  { %v3875_v27 = vsel %vm5815_vm4, %v1116_v24, 0 }
 0x27c   :  { %vm5816_vm8 = vcmp.ne.s32.totalorder %v3875_v27, 0 }
 0x27d   :  { %v1094_v50 = vpop.permute.xlu0 %1093  ;;  %v1108_v53 = vpop.permute.xlu1 %1107  ;;  %v1236_v14 = vsel %vm5816_vm8, %v2324_v28, 0  ;;  %vm3921_vm2 = vmor %vm3562_vm10, %vm5816_vm8 }
 0x27e   :  { %1038 = vrot.lane.b32.xlu0 %v3794_v33, %s2426_s18  ;;  %v1098_v49 = vsel %vm5818_vm13, %v1092_v4, %v1094_v50  ;;  %v1115_v7 = vsel %vm5818_vm13, %v1106_v44, %v1108_v53  ;;  %1040 = vrot.lane.b32.xlu1 %v3807_v0, %s2426_s18  ;;  %v3891_v15 = vsel %vm3562_vm10, %v3491_v21, %v1236_v14 }
 0x27f   :  { %vm1129_vm3 = vcmp.ne.s32.totalorder %v1115_v7, 0  ;;  %v1097_v20 = vsel %vm5818_vm13, %v1094_v50, %v1096_v11  ;;  %v1248_v48 = vand.u32 16, %v3891_v15  ;;  %v2322_v63 = vadd.s32 4294967288, %v1098_v49 }
 0x280   :  { %v1233_v9 = vsel %vm1129_vm3, %v2321_v54, 0  ;;  %vm3930_vm14 = vmor %vm3573_vm9, %vm1129_vm3  ;;  %v1173_v24 = vsel %vm1129_vm3, 1, %v2421_v8 }
 0x281   :  { %v1110_v6 = vpop.permute.xlu0 %1109  ;;  %v3910_v21 = vsel %vm3573_vm9, %v3500_v56, %v1233_v9  ;;  %vm1252_vm6 = vcmp.ne.s32.totalorder %v1248_v48, 0  ;;  %v2323_v56 = vadd.s32 4294967288, %v1097_v20 }
 0x282   :  { %v3899_v51 = vsel %vm5818_vm13, %v1110_v6, %v1112_v39  ;;  %v3903_v3 = vsel %vm5818_vm13, %v1108_v53, %v1110_v6  ;;  %1042 = vrot.lane.b32.xlu0 %v3832_v31, %s2426_s18  ;;  %1032 = vrot.lane.b32.xlu1 %v3830_v60, %s2426_s18  ;;  %v1245_v26 = vand.u32 16, %v3910_v21  ;;  %vm1256_vm5 = vmand %vm3921_vm2, %vm1252_vm6  ;;  %v1133_v39 = vsel %vm3573_vm9, 1, %v2421_v8 }
 0x283   :  { %vm5817_vm12 = vcmp.ne.s32.totalorder %v3903_v3, 0  ;;  %vm5819_vm1 = vcmp.ne.s32.totalorder %v3899_v51, 0  ;;  %v1260_v59 = vsel %vm1256_vm5, 1, %v2421_v8  ;;  %v1140_v50 = vrot.slane %v1133_v39, %v2506_v17 }
 0x284   :  { %v1234_v47 = vsel %vm5817_vm12, %v2322_v63, 0  ;;  %vm1249_vm0 = vcmp.ne.s32.totalorder %v1245_v26, 0  ;;  %v1235_v55 = vsel %vm5819_vm1, %v2323_v56, 0  ;;  %vm1373_vm6 = vcmp.eq.s32.totalorder %v1260_v59, 0  ;;  %vm3956_vm4 = vmor %vm3591_vm11, %vm5817_vm12 }
 0x285   :  { %v3937_v38 = vsel %vm3591_vm11, %v3539_v30, %v1234_v47  ;;  %vm1253_vm15 = vmand %vm3930_vm14, %vm1249_vm0  ;;  %v3969_v57 = vsel %vm3597_vm7, %v3569_v61, %v1235_v55  ;;  %v1180_v53 = vrot.slane %v1173_v24, %v2506_v17  ;;  %vm6011_vm9 = vcmp.lt.s32.totalorder %v2492_v12, 120 }
 0x286   :  { %1034 = vrot.lane.b32.xlu0 %v3854_v43, %s2426_s18  ;;  %v1246_v42 = vand.u32 16, %v3937_v38  ;;  %1338 = vrot.lane.b32.xlu1 %v3910_v21, %s2427_s19  ;;  %v1257_v30 = vsel %vm1253_vm15, 1, %v2421_v8  ;;  %vm3962_vm5 = vmand %vm3921_vm2, %vm1373_vm6  ;;  %v1247_v11 = vand.u32 16, %v3969_v57  ;;  %v1134_v56 = vsel %vm3591_vm11, 1, %v2421_v8 }
 0x287   :  { %vm1370_vm0 = vcmp.eq.s32.totalorder %v1257_v30, 0  ;;  %vm1243_vm6 = vmor %vm3597_vm7, %vm5819_vm1  ;;  %v1144_v41 = vrot.slane %v1134_v56, %v2506_v17 }
 0x288   :  { %vm1250_vm15 = vcmp.ne.s32.totalorder %v1246_v42, 0  ;;  %vm3973_vm8 = vmand %vm3930_vm14, %vm1370_vm0  ;;  %vm1251_vm14 = vcmp.ne.s32.totalorder %v1247_v11, 0 }
 0x289   :  { %vm1254_vm2 = vmand %vm3956_vm4, %vm1250_vm15 }
 0x28a   :  { %1344 = vrot.lane.b32.xlu0 %v3891_v15, %s2427_s19  ;;  %1340 = vrot.lane.b32.xlu1 %v3937_v38, %s2427_s19  ;;  %v1258_v61 = vsel %vm1254_vm2, 1, %v2421_v8  ;;  %vm1255_vm12 = vmand %vm1243_vm6, %vm1251_vm14  ;;  %vm6013_vm2 = vcmp.ne.s32.totalorder %v3903_v3, 0 }
 0x28b   :  { %vm1371_vm0 = vcmp.eq.s32.totalorder %v1258_v61, 0  ;;  %v1259_v4 = vsel %vm1255_vm12, 1, %v2421_v8  ;;  %vm4025_vm12 = vcmp.eq.s32.totalorder %v1180_v53, 1  ;;  %vm6012_vm3 = vmmov %vm6011_vm9  ;;  %v1174_v47 = vsel %vm6013_vm2, 1, %v2421_v8 }
 0x28c   :  { %vm3991_vm13 = vmand %vm3956_vm4, %vm1371_vm0  ;;  %vm1372_vm15 = vcmp.eq.s32.totalorder %v1259_v4, 0  ;;  %vm4021_vm4 = vcmp.eq.s32.totalorder %v1140_v50, 1  ;;  %v1184_v55 = vrot.slane %v1174_v47, %v2506_v17 }
 0x28d   :  { %vm3998_vm1 = vmand %vm1243_vm6, %vm1372_vm15  ;;  %v1157_v20 = vsel %vm4021_vm4, %v3634_v40, -inf  ;;  %v1161_v26 = vsel %vm4021_vm4, %v3646_v32, -inf  ;;  %v1135_v32 = vsel %vm3597_vm7, 1, %v2421_v8  ;;  %vm6015_vm6 = vcmp.ne.s32.totalorder %v3899_v51, 0 }
 0x28e   :  { %1354 = vrot.lane.b32.xlu0 %v1257_v30, %s2427_s19  ;;  %1360 = vrot.lane.b32.xlu1 %v1260_v59, %s2427_s19  ;;  %v1136_v59 = vsel %vm3562_vm10, 1, %v2421_v8  ;;  %vm6014_vm11 = vmmov %vm6012_vm3  ;;  %v1175_v3 = vsel %vm6015_vm6, 1, %v2421_v8  ;;  %v1165_v29 = vsel %vm4021_vm4, %v3682_v1, -inf  ;;  %v1148_v52 = vrot.slane %v1135_v32, %v2506_v17 }
 0x28f   :  { %vm6016_vm10 = vcmp.ne.s32.totalorder %v3875_v27, 0  ;;  %v1152_v51 = vrot.slane %v1136_v59, %v2506_v17  ;;  %vm4090_vm7 = vcmp.eq.s32.totalorder %v1144_v41, 1  ;;  %v1169_v1 = vsel %vm4021_vm4, %v3719_v2, -inf  ;;  %vm6019_vm14 = vmmov %vm6012_vm3 }
 0x290   :  { %v1176_v13 = vsel %vm6016_vm10, 1, %v2421_v8  ;;  %v1188_v24 = vrot.slane %v1175_v3, %v2506_v17  ;;  %vm4102_vm0 = vcmp.eq.s32.totalorder %v1184_v55, 1  ;;  %vm6022_vm15 = vmmov %vm6012_vm3  ;;  %vm4120_vm4 = vcmp.eq.s32.totalorder %v1148_v52, 1 }
 0x291   :  { %v1192_v2 = vrot.slane %v1176_v13, %v2506_v17  ;;  %v1159_v47 = vsel %vm4120_vm4, %v3759_v18, -inf  ;;  %vm6034_vm10 = vcmp.lt.s32.totalorder %v2516_v23, 504 }
 0x292   :  { %1342 = vrot.lane.b32.xlu0 %v3969_v57, %s2427_s19  ;;  %1356 = vrot.lane.b32.xlu1 %v1258_v61, %s2427_s19 }
 0x293   :  { %vm4153_vm6 = vcmp.eq.s32.totalorder %v1192_v2, 1 }
 0x296   :  { %1358 = vrot.lane.b32.xlu0 %v1259_v4, %s2427_s19 }
 0x2c8   :  { %v4006_v44 = vpop.permute.xlu1 %1012 }
 0x2cc   :  { %v4013_v28 = vpop.permute.xlu0 %1014 }
 0x2d4   :  { %v4015_v16 = vpop.permute.xlu1 %1016 }
 0x2d8   :  { %v4019_v14 = vpop.permute.xlu0 %1018  ;;  %v1021_v54 = vpop.permute.xlu1 %1020 }
 0x2d9   :  { %v1053_v7 = vsel %vm6011_vm9, %v4006_v44, %v1021_v54  ;;  %vm6027_vm9 = vmmov %vm6012_vm3 }
 0x2da   :  { %v1197_v6 = vsel %vm4025_vm12, %v1053_v7, -inf  ;;  %vm6030_vm2 = vmmov %vm6027_vm9 }
 0x2db   :  { %v4037_v9 = vmax.f32 %v1157_v20, %v1197_v6  ;;  %v1158_v20 = vsel %vm4090_vm7, %v3721_v25, -inf  ;;  %v1162_v25 = vsel %vm4090_vm7, %v3757_v35, -inf }
 0x2dc   :  { %v1023_v48 = vpop.permute.xlu0 %1022 }
 0x2dd   :  { %v1054_v63 = vsel %vm6012_vm3, %v4013_v28, %v1023_v48  ;;  %1261 = vrot.lane.b32.xlu1 %v4037_v9, %s2427_s19  ;;  %vm4140_vm3 = vcmp.eq.s32.totalorder %v1188_v24, 1 }
 0x2de   :  { %v1201_v40 = vsel %vm4025_vm12, %v1054_v63, -inf }
 0x2df   :  { %v4049_v34 = vmax.f32 %v1161_v26, %v1201_v40 }
 0x2e1   :  { %1263 = vrot.lane.b32.xlu0 %v4049_v34, %s2427_s19 }
 0x2e4   :  { %v4063_v42 = vpop.permute.xlu1 %1024 }
 0x2e5   :  { %v1055_v19 = vsel %vm6014_vm11, %v4015_v16, %v4063_v42  ;;  %vm6031_vm11 = vmmov %vm6030_vm2 }
 0x2e6   :  { %v1205_v30 = vsel %vm4025_vm12, %v1055_v19, -inf }
 0x2e7   :  { %v4085_v11 = vmax.f32 %v1165_v29, %v1205_v30 }
 0x2e8   :  { %v4087_v61 = vpop.permute.xlu0 %1026  ;;  %v1029_v39 = vpop.permute.xlu1 %1028 }
 0x2e9   :  { %v1056_v27 = vsel %vm6019_vm14, %v4019_v14, %v4087_v61  ;;  %v1049_v7 = vsel %vm6022_vm15, %v1021_v54, %v1029_v39  ;;  %1265 = vrot.lane.b32.xlu1 %v4085_v11, %s2427_s19  ;;  %vm6035_vm14 = vmmov %vm6030_vm2 }
 0x2ea   :  { %v1209_v53 = vsel %vm4025_vm12, %v1056_v27, -inf  ;;  %v1198_v6 = vsel %vm4102_vm0, %v1049_v7, -inf  ;;  %vm4126_vm12 = vcmp.eq.s32.totalorder %v1152_v51, 1  ;;  %vm6036_vm15 = vmmov %vm6030_vm2 }
 0x2eb   :  { %v4113_v49 = vmax.f32 %v1169_v1, %v1209_v53  ;;  %v4124_v63 = vmax.f32 %v1158_v20, %v1198_v6  ;;  %v1160_v3 = vsel %vm4126_vm12, %v3766_v46, -inf  ;;  %v1163_v46 = vsel %vm4120_vm4, %v3787_v10, -inf }
 0x2ec   :  { %v1031_v54 = vpop.permute.xlu0 %1030  ;;  %v1037_v56 = vpop.permute.xlu1 %1036  ;;  %v1168_v20 = vsel %vm4126_vm12, %v3807_v0, -inf  ;;  %v1166_v0 = vsel %vm4090_vm7, %v3828_v22, -inf }
 0x2ed   :  { %v1050_v40 = vsel %vm6027_vm9, %v1023_v48, %v1031_v54  ;;  %1267 = vrot.lane.b32.xlu0 %v4113_v49, %s2427_s19  ;;  %v1045_v48 = vsel %vm6030_vm2, %v1029_v39, %v1037_v56  ;;  %v1057_v35 = vsel %vm6031_vm11, %v1037_v56, %v4006_v44  ;;  %1269 = vrot.lane.b32.xlu1 %v4124_v63, %s2427_s19  ;;  %vm6037_vm9 = vmmov %vm6034_vm10 }
 0x2ee   :  { %v1202_v32 = vsel %vm4102_vm0, %v1050_v40, -inf  ;;  %v1076_v55 = vsel %vm6034_vm10, %v1057_v35, -inf  ;;  %v1199_v19 = vsel %vm4140_vm3, %v1045_v48, -inf  ;;  %vm6038_vm11 = vmmov %vm6037_vm9 }
 0x2ef   :  { %v4157_v59 = vmax.f32 %v1162_v25, %v1202_v32  ;;  %v1200_v44 = vsel %vm4153_vm6, %v1076_v55, -inf  ;;  %v4168_v29 = vmax.f32 %v1159_v47, %v1199_v19  ;;  %vm6039_vm10 = vmmov %vm6030_vm2 }
 0x2f0   :  { %v1039_v30 = vpop.permute.xlu0 %1038  ;;  %v4170_v52 = vmax.f32 %v1160_v3, %v1200_v44  ;;  %v1041_v1 = vpop.permute.xlu1 %1040  ;;  %v1170_v3 = vsel %vm4090_vm7, %v3852_v45, -inf  ;;  %v1171_v44 = vsel %vm4120_vm4, %v3854_v43, -inf  ;;  %vm5820_vm7 = vcmp.lt.s32.totalorder %v2516_v23, 496 }
 0x2f1   :  { %v1046_v13 = vsel %vm6035_vm14, %v1031_v54, %v1039_v30  ;;  %v1058_v51 = vsel %vm6036_vm15, %v1039_v30, %v4013_v28  ;;  %1271 = vrot.lane.b32.xlu0 %v4157_v59, %s2427_s19  ;;  %v1059_v24 = vsel %vm6030_vm2, %v1041_v1, %v4015_v16  ;;  %v1164_v28 = vsel %vm4126_vm12, %v3794_v33, -inf  ;;  %vm6040_vm14 = vmmov %vm6037_vm9 }
 0x2f2   :  { %v1080_v27 = vsel %vm6037_vm9, %v1058_v51, -inf  ;;  %v1203_v39 = vsel %vm4140_vm3, %v1046_v13, -inf  ;;  %v1084_v10 = vsel %vm6038_vm11, %v1059_v24, -inf  ;;  %v1172_v33 = vsel %vm4126_vm12, %v3832_v31, -inf  ;;  %vm6041_vm15 = vmmov %vm6030_vm2 }
 0x2f3   :  { %v1204_v53 = vsel %vm4153_vm6, %v1080_v27, -inf  ;;  %v4194_v7 = vmax.f32 %v1163_v46, %v1203_v39  ;;  %v1208_v16 = vsel %vm4153_vm6, %v1084_v10, -inf  ;;  %vm6042_vm9 = vmmov %vm6030_vm2  ;;  %vm5823_vm12 = vcmp.lt.s32.totalorder %v2492_v12, 112 }
 0x2f4   :  { %v4198_v2 = vmax.f32 %v1164_v28, %v1204_v53  ;;  %v1043_v6 = vpop.permute.xlu0 %1042  ;;  %v4205_v54 = vmax.f32 %v1168_v20, %v1208_v16  ;;  %v1033_v25 = vpop.permute.xlu1 %1032 }
 0x2f5   :  { %v1060_v40 = vsel %vm6039_vm10, %v1043_v6, %v4019_v14  ;;  %v1047_v47 = vsel %vm6041_vm15, %v1033_v25, %v1041_v1  ;;  %v1051_v26 = vsel %vm6042_vm9, %v4063_v42, %v1033_v25  ;;  %v1167_v14 = vsel %vm4120_vm4, %v3830_v60, -inf }
 0x2f6   :  { %v1088_v56 = vsel %vm6040_vm14, %v1060_v40, -inf  ;;  %v1206_v32 = vsel %vm4102_vm0, %v1051_v26, -inf  ;;  %v1207_v22 = vsel %vm4140_vm3, %v1047_v47, -inf }
 0x2f7   :  { %v1212_v31 = vsel %vm4153_vm6, %v1088_v56, -inf  ;;  %v4234_v35 = vmax.f32 %v1166_v0, %v1206_v32  ;;  %v4236_v55 = vmax.f32 %v1167_v14, %v1207_v22  ;;  %vm6043_vm6 = vmmov %vm6030_vm2  ;;  %v1383_v22 = vsel %vm3991_vm13, 1, %v2421_v8 }
 0x2f8   :  { %v4232_v48 = vmax.f32 %v1172_v33, %v1212_v31  ;;  %v1035_v42 = vpop.permute.xlu0 %1034  ;;  %v1339_v19 = vpop.permute.xlu1 %1338 }
 0x2f9   :  { %v1048_v18 = vsel %vm6043_vm6, %v1035_v42, %v1043_v6  ;;  %v1052_v60 = vsel %vm6030_vm2, %v4087_v61, %v1035_v42  ;;  %1273 = vrot.lane.b32.xlu1 %v4234_v35, %s2427_s19 }
 0x2fa   :  { %v1210_v30 = vsel %vm4102_vm0, %v1052_v60, -inf  ;;  %v1211_v13 = vsel %vm4140_vm3, %v1048_v18, -inf }
 0x2fb   :  { %v4256_v51 = vmax.f32 %v1170_v3, %v1210_v30  ;;  %v4258_v61 = vmax.f32 %v1171_v44, %v1211_v13 }
 0x2fc   :  { %v1345_v1 = vpop.permute.xlu0 %1344  ;;  %v1341_v43 = vpop.permute.xlu1 %1340 }
 0x2fd   :  { %v1349_v45 = vsel %vm5823_vm12, %v1345_v1, %v1339_v19  ;;  %1275 = vrot.lane.b32.xlu0 %v4256_v51, %s2427_s19  ;;  %1277 = vrot.lane.b32.xlu1 %v4168_v29, %s2427_s19  ;;  %v1348_v27 = vsel %vm5823_vm12, %v1339_v19, %v1341_v43 }
 0x2fe   :  { %v1353_v4 = vsel %vm5820_vm7, %v1349_v45, 0  ;;  %v2325_v20 = vadd.s32 4294967280, %v1348_v27 }
 0x2ff   :  { %v2328_v46 = vadd.s32 4294967280, %v1353_v4 }
 0x300   :  { %v1355_v50 = vpop.permute.xlu0 %1354  ;;  %v1361_v37 = vpop.permute.xlu1 %1360 }
 0x301   :  { %1279 = vrot.lane.b32.xlu0 %v4194_v7, %s2427_s19  ;;  %v1365_v41 = vsel %vm5823_vm12, %v1361_v37, %v1355_v50  ;;  %1285 = vrot.lane.b32.xlu1 %v4170_v52, %s2427_s19 }
 0x302   :  { %v4279_v39 = vsel %vm5820_vm7, %v1365_v41, 0 }
 0x303   :  { %vm5821_vm0 = vcmp.ne.s32.totalorder %v4279_v39, 0 }
 0x304   :  { %v1343_v24 = vpop.permute.xlu0 %1342  ;;  %v1485_v28 = vsel %vm5821_vm0, %v2328_v46, 0  ;;  %v1357_v10 = vpop.permute.xlu1 %1356  ;;  %vm4320_vm3 = vmor %vm3962_vm5, %vm5821_vm0  ;;  %v1382_v46 = vsel %vm3973_vm8, 1, %v2421_v8 }
 0x305   :  { %v1347_v53 = vsel %vm5823_vm12, %v1341_v43, %v1343_v24  ;;  %1287 = vrot.lane.b32.xlu0 %v4198_v2, %s2427_s19  ;;  %v1346_v16 = vsel %vm5823_vm12, %v1343_v24, %v1345_v1  ;;  %v1364_v6 = vsel %vm5823_vm12, %v1355_v50, %v1357_v10  ;;  %1289 = vrot.lane.b32.xlu1 %v4205_v54, %s2427_s19 }
 0x306   :  { %vm5824_vm4 = vcmp.ne.s32.totalorder %v1364_v6, 0  ;;  %v4297_v33 = vsel %vm3962_vm5, %v3891_v15, %v1485_v28  ;;  %v2326_v40 = vadd.s32 4294967280, %v1347_v53  ;;  %v2327_v47 = vadd.s32 4294967280, %v1346_v16 }
 0x307   :  { %v1482_v25 = vsel %vm5824_vm4, %v2325_v20, 0  ;;  %v1497_v0 = vand.u32 32, %v4297_v33  ;;  %vm4336_vm15 = vmor %vm3973_vm8, %vm5824_vm4  ;;  %v1389_v53 = vrot.slane %v1382_v46, %v2506_v17 }
 0x308   :  { %v1359_v56 = vpop.permute.xlu0 %1358  ;;  %v4314_v15 = vsel %vm3973_vm8, %v3910_v21, %v1482_v25  ;;  %vm6067_vm8 = vcmp.lt.s32.totalorder %v2492_v12, 112 }
 0x309   :  { %v4303_v26 = vsel %vm5823_vm12, %v1359_v56, %v1361_v37  ;;  %v4307_v31 = vsel %vm5823_vm12, %v1357_v10, %v1359_v56  ;;  %1291 = vrot.lane.b32.xlu0 %v4232_v48, %s2427_s19  ;;  %1281 = vrot.lane.b32.xlu1 %v4236_v55, %s2427_s19  ;;  %v1494_v32 = vand.u32 32, %v4314_v15  ;;  %vm4329_vm14 = vcmp.ne.s32.totalorder %v1497_v0, 0 }
 0x30a   :  { %vm5822_vm11 = vcmp.ne.s32.totalorder %v4307_v31, 0  ;;  %vm1380_vm10 = vcmp.ne.s32.totalorder %v4303_v26, 0  ;;  %vm1505_vm2 = vmand %vm4320_vm3, %vm4329_vm14 }
 0x30b   :  { %v1483_v42 = vsel %vm5822_vm11, %v2326_v40, 0  ;;  %v1484_v18 = vsel %vm1380_vm10, %v2327_v47, 0  ;;  %vm4348_vm9 = vmor %vm3991_vm13, %vm5822_vm11  ;;  %vm1498_vm6 = vcmp.ne.s32.totalorder %v1494_v32, 0  ;;  %v1509_v30 = vsel %vm1505_vm2, 1, %v2421_v8 }
 0x30c   :  { %v4355_v19 = vsel %vm3991_vm13, %v3937_v38, %v1483_v42  ;;  %v4363_v44 = vsel %vm3998_vm1, %v3969_v57, %v1484_v18  ;;  %vm1502_vm7 = vmand %vm4336_vm15, %vm1498_vm6  ;;  %vm1622_vm14 = vcmp.eq.s32.totalorder %v1509_v30, 0  ;;  %v1384_v18 = vsel %vm3998_vm1, 1, %v2421_v8 }
 0x30d   :  { %1283 = vrot.lane.b32.xlu0 %v4258_v61, %s2427_s19  ;;  %v1495_v3 = vand.u32 32, %v4355_v19  ;;  %1587 = vrot.lane.b32.xlu1 %v4314_v15, %s2428_s20  ;;  %v1496_v38 = vand.u32 32, %v4363_v44  ;;  %vm4379_vm0 = vmor %vm3998_vm1, %vm1380_vm10  ;;  %v1506_v13 = vsel %vm1502_vm7, 1, %v2421_v8  ;;  %v1397_v36 = vrot.slane %v1384_v18, %v2506_v17 }
 0x30e   :  { %vm1619_vm12 = vcmp.eq.s32.totalorder %v1506_v13, 0  ;;  %vm4386_vm4 = vmand %vm4320_vm3, %vm1622_vm14  ;;  %vm6071_vm1 = vcmp.ne.s32.totalorder %v4279_v39, 0 }
 0x30f   :  { %vm1499_vm11 = vcmp.ne.s32.totalorder %v1495_v3, 0  ;;  %vm1500_vm6 = vcmp.ne.s32.totalorder %v1496_v38, 0  ;;  %vm4394_vm2 = vmand %vm4336_vm15, %vm1619_vm12  ;;  %v1385_v3 = vsel %vm3962_vm5, 1, %v2421_v8  ;;  %v1425_v57 = vsel %vm6071_vm1, 1, %v2421_v8 }
 0x310   :  { %vm1503_vm7 = vmand %vm4348_vm9, %vm1499_vm11  ;;  %v1401_v26 = vrot.slane %v1385_v3, %v2506_v17  ;;  %vm6089_vm1 = vcmp.lt.s32.totalorder %v2516_v23, 496 }
 0x311   :  { %1593 = vrot.lane.b32.xlu0 %v4297_v33, %s2428_s20  ;;  %1589 = vrot.lane.b32.xlu1 %v4355_v19, %s2428_s20  ;;  %v1507_v43 = vsel %vm1503_vm7, 1, %v2421_v8  ;;  %vm1504_vm3 = vmand %vm4379_vm0, %vm1500_vm6 }
 0x312   :  { %vm1620_vm14 = vcmp.eq.s32.totalorder %v1507_v43, 0  ;;  %v1508_v4 = vsel %vm1504_vm3, 1, %v2421_v8  ;;  %vm6068_vm7 = vmmov %vm6067_vm8  ;;  %vm6069_vm3 = vcmp.ne.s32.totalorder %v4307_v31, 0  ;;  %v1424_v31 = vsel %vm1380_vm10, 1, %v2421_v8 }
 0x313   :  { %vm4410_vm12 = vmand %vm4348_vm9, %vm1620_vm14  ;;  %vm1621_vm15 = vcmp.eq.s32.totalorder %v1508_v4, 0  ;;  %vm6062_vm9 = vcmp.ne.s32.totalorder %v1364_v6, 0  ;;  %v1423_v42 = vsel %vm6069_vm3, 1, %v2421_v8 }
 0x314   :  { %vm4417_vm11 = vmand %vm4379_vm0, %vm1621_vm15  ;;  %v1422_v27 = vsel %vm6062_vm9, 1, %v2421_v8  ;;  %vm4439_vm0 = vcmp.eq.s32.totalorder %v1389_v53, 1  ;;  %v1433_v38 = vrot.slane %v1423_v42, %v2506_v17  ;;  %vm4540_vm9 = vcmp.eq.s32.totalorder %v1397_v36, 1 }
 0x315   :  { %1591 = vrot.lane.b32.xlu0 %v4363_v44, %s2428_s20  ;;  %1603 = vrot.lane.b32.xlu1 %v1506_v13, %s2428_s20  ;;  %v1429_v10 = vrot.slane %v1422_v27, %v2506_v17  ;;  %v1406_v25 = vsel %vm4439_vm0, %v4037_v9, -inf  ;;  %v1410_v32 = vsel %vm4439_vm0, %v4049_v34, -inf  ;;  %v1393_v34 = vrot.slane %v1383_v22, %v2506_v17  ;;  %vm6070_vm13 = vmmov %vm6068_vm7 }
 0x316   :  { %v1414_v58 = vsel %vm4439_vm0, %v4085_v11, -inf  ;;  %v1418_v11 = vsel %vm4439_vm0, %v4113_v49, -inf  ;;  %vm6074_vm10 = vmmov %vm6068_vm7  ;;  %v1437_v27 = vrot.slane %v1424_v31, %v2506_v17  ;;  %vm4520_vm14 = vcmp.eq.s32.totalorder %v1433_v38, 1 }
 0x317   :  { %vm4443_vm6 = vcmp.eq.s32.totalorder %v1429_v10, 1  ;;  %vm4508_vm5 = vcmp.eq.s32.totalorder %v1393_v34, 1  ;;  %vm6077_vm15 = vmmov %vm6068_vm7  ;;  %v1441_v49 = vrot.slane %v1425_v57, %v2506_v17  ;;  %vm4544_vm0 = vcmp.eq.s32.totalorder %v1401_v26, 1 }
 0x318   :  { %v1408_v42 = vsel %vm4540_vm9, %v4168_v29, -inf  ;;  %v1409_v31 = vsel %vm4544_vm0, %v4170_v52, -inf  ;;  %v1412_v52 = vsel %vm4540_vm9, %v4194_v7, -inf }
 0x319   :  { %1609 = vrot.lane.b32.xlu0 %v1509_v30, %s2428_s20  ;;  %1605 = vrot.lane.b32.xlu1 %v1507_v43, %s2428_s20 }
 0x31d   :  { %1607 = vrot.lane.b32.xlu0 %v1508_v4, %s2428_s20 }
 0x34f   :  { %v4424_v41 = vpop.permute.xlu1 %1261 }
 0x353   :  { %v4431_v24 = vpop.permute.xlu0 %1263 }
 0x35b   :  { %v4433_v28 = vpop.permute.xlu1 %1265 }
 0x35f   :  { %v4437_v20 = vpop.permute.xlu0 %1267  ;;  %v1270_v16 = vpop.permute.xlu1 %1269 }
 0x360   :  { %v1302_v6 = vsel %vm6067_vm8, %v4424_v41, %v1270_v16  ;;  %vm4558_vm8 = vcmp.eq.s32.totalorder %v1437_v27, 1 }
 0x361   :  { %v1446_v56 = vsel %vm4443_vm6, %v1302_v6, -inf }
 0x362   :  { %v4455_v0 = vmax.f32 %v1406_v25, %v1446_v56  ;;  %v1407_v25 = vsel %vm4508_vm5, %v4124_v63, -inf  ;;  %v1411_v63 = vsel %vm4508_vm5, %v4157_v59, -inf }
 0x363   :  { %v1272_v47 = vpop.permute.xlu0 %1271 }
 0x364   :  { %v1303_v14 = vsel %vm6068_vm7, %v4431_v24, %v1272_v47  ;;  %1510 = vrot.lane.b32.xlu1 %v4455_v0, %s2428_s20 }
 0x365   :  { %v1450_v21 = vsel %vm4443_vm6, %v1303_v14, -inf }
 0x366   :  { %v4467_v9 = vmax.f32 %v1410_v32, %v1450_v21 }
 0x368   :  { %1512 = vrot.lane.b32.xlu0 %v4467_v9, %s2428_s20 }
 0x36b   :  { %v4481_v60 = vpop.permute.xlu1 %1273 }
 0x36c   :  { %v1304_v5 = vsel %vm6070_vm13, %v4433_v28, %v4481_v60  ;;  %vm4571_vm13 = vcmp.eq.s32.totalorder %v1441_v49, 1 }
 0x36d   :  { %v1454_v30 = vsel %vm4443_vm6, %v1304_v5, -inf }
 0x36e   :  { %v4503_v13 = vmax.f32 %v1414_v58, %v1454_v30 }
 0x36f   :  { %v4505_v43 = vpop.permute.xlu0 %1275  ;;  %v1278_v46 = vpop.permute.xlu1 %1277 }
 0x370   :  { %v1305_v39 = vsel %vm6074_vm10, %v4437_v20, %v4505_v43  ;;  %v1298_v6 = vsel %vm6077_vm15, %v1270_v16, %v1278_v46  ;;  %1514 = vrot.lane.b32.xlu1 %v4503_v13, %s2428_s20 }
 0x371   :  { %v1458_v10 = vsel %vm4443_vm6, %v1305_v39, -inf  ;;  %v1447_v56 = vsel %vm4520_vm14, %v1298_v6, -inf  ;;  %vm6082_vm6 = vmmov %vm6068_vm7 }
 0x372   :  { %v4531_v40 = vmax.f32 %v1418_v11, %v1458_v10  ;;  %v4538_v14 = vmax.f32 %v1407_v25, %v1447_v56  ;;  %vm6085_vm7 = vmmov %vm6082_vm6  ;;  %v1417_v25 = vsel %vm4544_vm0, %v4205_v54, -inf  ;;  %v1415_v54 = vsel %vm4508_vm5, %v4234_v35, -inf }
 0x373   :  { %v1280_v62 = vpop.permute.xlu0 %1279  ;;  %v1286_v22 = vpop.permute.xlu1 %1285  ;;  %vm6086_vm3 = vmmov %vm6082_vm6 }
 0x374   :  { %v1299_v21 = vsel %vm6082_vm6, %v1272_v47, %v1280_v62  ;;  %1516 = vrot.lane.b32.xlu0 %v4531_v40, %s2428_s20  ;;  %v1294_v47 = vsel %vm6085_vm7, %v1278_v46, %v1286_v22  ;;  %v1306_v59 = vsel %vm6086_vm3, %v1286_v22, %v4424_v41  ;;  %1518 = vrot.lane.b32.xlu1 %v4538_v14, %s2428_s20  ;;  %vm6090_vm10 = vmmov %vm6086_vm3 }
 0x375   :  { %v1451_v18 = vsel %vm4520_vm14, %v1299_v21, -inf  ;;  %v1325_v38 = vsel %vm6089_vm1, %v1306_v59, -inf  ;;  %v1448_v5 = vsel %vm4558_vm8, %v1294_v47, -inf  ;;  %vm6091_vm15 = vmmov %vm6086_vm3 }
 0x376   :  { %v4575_v3 = vmax.f32 %v1411_v63, %v1451_v18  ;;  %v1449_v41 = vsel %vm4571_vm13, %v1325_v38, -inf  ;;  %v4586_v58 = vmax.f32 %v1408_v42, %v1448_v5  ;;  %vm6092_vm6 = vmmov %vm6089_vm1 }
 0x377   :  { %v1288_v30 = vpop.permute.xlu0 %1287  ;;  %v4588_v36 = vmax.f32 %v1409_v31, %v1449_v41  ;;  %v1290_v11 = vpop.permute.xlu1 %1289  ;;  %vm6093_vm7 = vmmov %vm6086_vm3  ;;  %v1419_v31 = vsel %vm4508_vm5, %v4256_v51, -inf  ;;  %v1420_v41 = vsel %vm4540_vm9, %v4258_v61, -inf  ;;  %vm5829_vm5 = vcmp.lt.s32.totalorder %v2492_v12, 96 }
 0x378   :  { %v1295_v57 = vsel %vm6090_vm10, %v1280_v62, %v1288_v30  ;;  %v1307_v26 = vsel %vm6091_vm15, %v1288_v30, %v4431_v24  ;;  %1520 = vrot.lane.b32.xlu0 %v4575_v3, %s2428_s20  ;;  %v1308_v27 = vsel %vm6093_vm7, %v1290_v11, %v4433_v28  ;;  %v1413_v24 = vsel %vm4544_vm0, %v4198_v2, -inf  ;;  %vm6094_vm3 = vmmov %vm6089_vm1 }
 0x379   :  { %v1329_v39 = vsel %vm6092_vm6, %v1307_v26, -inf  ;;  %v1452_v46 = vsel %vm4558_vm8, %v1295_v57, -inf  ;;  %v1333_v7 = vsel %vm6094_vm3, %v1308_v27, -inf  ;;  %v1421_v2 = vsel %vm4544_vm0, %v4232_v48, -inf  ;;  %vm6095_vm1 = vmmov %vm6093_vm7 }
 0x37a   :  { %v1453_v10 = vsel %vm4571_vm13, %v1329_v39, -inf  ;;  %v4612_v6 = vmax.f32 %v1412_v52, %v1452_v46  ;;  %v1457_v28 = vsel %vm4571_vm13, %v1333_v7, -inf  ;;  %vm6096_vm10 = vmmov %vm6094_vm3 }
 0x37b   :  { %v4616_v49 = vmax.f32 %v1413_v24, %v1453_v10  ;;  %v1292_v56 = vpop.permute.xlu0 %1291  ;;  %v4623_v62 = vmax.f32 %v1417_v25, %v1457_v28  ;;  %v1282_v63 = vpop.permute.xlu1 %1281  ;;  %vm6097_vm15 = vmmov %vm6095_vm1 }
 0x37c   :  { %v1309_v21 = vsel %vm6095_vm1, %v1292_v56, %v4437_v20  ;;  %v1296_v42 = vsel %vm6097_vm15, %v1282_v63, %v1290_v11  ;;  %vm6098_vm6 = vmmov %vm6095_vm1  ;;  %v1416_v20 = vsel %vm4540_vm9, %v4236_v55, -inf }
 0x37d   :  { %v1337_v22 = vsel %vm6096_vm10, %v1309_v21, -inf  ;;  %v1300_v16 = vsel %vm6098_vm6, %v4481_v60, %v1282_v63  ;;  %v1456_v35 = vsel %vm4558_vm8, %v1296_v42, -inf  ;;  %vm6099_vm0 = vmmov %vm6095_vm1 }
 0x37e   :  { %v1461_v48 = vsel %vm4571_vm13, %v1337_v22, -inf  ;;  %v1455_v18 = vsel %vm4520_vm14, %v1300_v16, -inf  ;;  %v4654_v38 = vmax.f32 %v1416_v20, %v1456_v35  ;;  %vm6100_vm13 = vmmov %vm6099_vm0  ;;  %v1634_v35 = vsel %vm4386_vm4, 1, %v2421_v8 }
 0x37f   :  { %v4650_v47 = vmax.f32 %v1421_v2, %v1461_v48  ;;  %v4652_v59 = vmax.f32 %v1415_v54, %v1455_v18  ;;  %v1284_v60 = vpop.permute.xlu0 %1283  ;;  %v1588_v5 = vpop.permute.xlu1 %1587 }
 0x380   :  { %v1297_v29 = vsel %vm6099_vm0, %v1284_v60, %v1292_v56  ;;  %v1301_v55 = vsel %vm6100_vm13, %v4505_v43, %v1284_v60 }
 0x381   :  { %v1459_v30 = vsel %vm4520_vm14, %v1301_v55, -inf  ;;  %v1460_v57 = vsel %vm4558_vm8, %v1297_v29, -inf  ;;  %1522 = vrot.lane.b32.xlu1 %v4652_v59, %s2428_s20  ;;  %vm5825_vm14 = vcmp.lt.s32.totalorder %v2516_v23, 480  ;;  %v1633_v55 = vsel %vm4417_vm11, 1, %v2421_v8 }
 0x382   :  { %v4673_v26 = vmax.f32 %v1419_v31, %v1459_v30  ;;  %v4675_v43 = vmax.f32 %v1420_v41, %v1460_v57 }
 0x383   :  { %v1594_v11 = vpop.permute.xlu0 %1593  ;;  %v1590_v4 = vpop.permute.xlu1 %1589 }
 0x384   :  { %1524 = vrot.lane.b32.xlu0 %v4673_v26, %s2428_s20  ;;  %v1598_v61 = vsel %vm5829_vm5, %v1594_v11, %v1588_v5  ;;  %v1597_v32 = vsel %vm5829_vm5, %v1588_v5, %v1590_v4 }
 0x385   :  { %1526 = vrot.lane.b32.xlu1 %v4586_v58, %s2428_s20  ;;  %v1602_v34 = vsel %vm5825_vm14, %v1598_v61, 0  ;;  %v2329_v27 = vadd.s32 4294967264, %v1597_v32 }
 0x386   :  { %v2332_v25 = vadd.s32 4294967264, %v1602_v34  ;;  %v1631_v34 = vsel %vm4394_vm2, 1, %v2421_v8 }
 0x387   :  { %v1592_v51 = vpop.permute.xlu0 %1591  ;;  %v1604_v53 = vpop.permute.xlu1 %1603 }
 0x388   :  { %1528 = vrot.lane.b32.xlu0 %v4612_v6, %s2428_s20  ;;  %v1596_v24 = vsel %vm5829_vm5, %v1590_v4, %v1592_v51  ;;  %v1595_v28 = vsel %vm5829_vm5, %v1592_v51, %v1594_v11 }
 0x389   :  { %1534 = vrot.lane.b32.xlu1 %v4588_v36, %s2428_s20  ;;  %v2330_v21 = vadd.s32 4294967264, %v1596_v24  ;;  %v2331_v42 = vadd.s32 4294967264, %v1595_v28 }
 0x38b   :  { %v1610_v52 = vpop.permute.xlu0 %1609  ;;  %v1606_v46 = vpop.permute.xlu1 %1605 }
 0x38c   :  { %v1614_v39 = vsel %vm5829_vm5, %v1610_v52, %v1604_v53  ;;  %1536 = vrot.lane.b32.xlu0 %v4616_v49, %s2428_s20  ;;  %v4705_v7 = vsel %vm5829_vm5, %v1604_v53, %v1606_v46 }
 0x38d   :  { %v4701_v10 = vsel %vm5825_vm14, %v1614_v39, 0  ;;  %1538 = vrot.lane.b32.xlu1 %v4623_v62, %s2428_s20  ;;  %vm5830_vm8 = vcmp.ne.s32.totalorder %v4705_v7, 0 }
 0x38e   :  { %vm5826_vm9 = vcmp.ne.s32.totalorder %v4701_v10, 0  ;;  %v1731_v56 = vsel %vm5830_vm8, %v2329_v27, 0  ;;  %vm4757_vm10 = vmor %vm4394_vm2, %vm5830_vm8  ;;  %v1638_v27 = vrot.slane %v1631_v34, %v2506_v17 }
 0x38f   :  { %v1608_v2 = vpop.permute.xlu0 %1607  ;;  %v1734_v63 = vsel %vm5826_vm9, %v2332_v25, 0  ;;  %v4734_v16 = vsel %vm4394_vm2, %v4314_v15, %v1731_v56  ;;  %vm4749_vm1 = vmor %vm4386_vm4, %vm5826_vm9  ;;  %v1632_v15 = vsel %vm4410_vm12, 1, %v2421_v8 }
 0x390   :  { %v4719_v22 = vsel %vm5829_vm5, %v1608_v2, %v1610_v52  ;;  %v4723_v54 = vsel %vm5829_vm5, %v1606_v46, %v1608_v2  ;;  %1540 = vrot.lane.b32.xlu0 %v4650_v47, %s2428_s20  ;;  %v4743_v18 = vsel %vm4386_vm4, %v4297_v33, %v1734_v63  ;;  %v1743_v33 = vand.u32 64, %v4734_v16 }
 0x391   :  { %vm5827_vm7 = vcmp.ne.s32.totalorder %v4723_v54, 0  ;;  %vm5828_vm3 = vcmp.ne.s32.totalorder %v4719_v22, 0  ;;  %1530 = vrot.lane.b32.xlu1 %v4654_v38, %s2428_s20  ;;  %v1746_v31 = vand.u32 64, %v4743_v18  ;;  %v1642_v37 = vrot.slane %v1632_v15, %v2506_v17 }
 0x392   :  { %v1732_v48 = vsel %vm5827_vm7, %v2330_v21, 0  ;;  %v1733_v20 = vsel %vm5828_vm3, %v2331_v42, 0  ;;  %vm4778_vm15 = vmor %vm4410_vm12, %vm5827_vm7  ;;  %vm1747_vm0 = vcmp.ne.s32.totalorder %v1743_v33, 0  ;;  %vm6126_vm4 = vcmp.ne.s32.totalorder %v4723_v54, 0 }
 0x393   :  { %v4767_v60 = vsel %vm4410_vm12, %v4355_v19, %v1732_v48  ;;  %v4772_v29 = vsel %vm4417_vm11, %v4363_v44, %v1733_v20  ;;  %vm4790_vm6 = vmor %vm4417_vm11, %vm5828_vm3  ;;  %v1650_v44 = vrot.slane %v1634_v35, %v2506_v17  ;;  %vm4922_vm11 = vcmp.eq.s32.totalorder %v1642_v37, 1 }
 0x394   :  { %1532 = vrot.lane.b32.xlu0 %v4675_v43, %s2428_s20  ;;  %v1744_v19 = vand.u32 64, %v4767_v60  ;;  %v1745_v5 = vand.u32 64, %v4772_v29  ;;  %vm1751_vm13 = vmand %vm4757_vm10, %vm1747_vm0 }
 0x395   :  { %1836 = vrot.lane.b32.xlu1 %v4734_v16, %s2429_s21  ;;  %v1755_v41 = vsel %vm1751_vm13, 1, %v2421_v8  ;;  %vm1750_vm13 = vcmp.ne.s32.totalorder %v1746_v31, 0  ;;  %v1646_v31 = vrot.slane %v1633_v55, %v2506_v17  ;;  %vm4918_vm12 = vcmp.eq.s32.totalorder %v1650_v44, 1 }
 0x396   :  { %vm1748_vm14 = vcmp.ne.s32.totalorder %v1744_v19, 0  ;;  %vm1749_vm9 = vcmp.ne.s32.totalorder %v1745_v5, 0  ;;  %vm1868_vm3 = vcmp.eq.s32.totalorder %v1755_v41, 0  ;;  %v1658_v2 = vsel %vm4918_vm12, %v4588_v36, -inf }
 0x397   :  { %vm1752_vm7 = vmand %vm4778_vm15, %vm1748_vm14 }
 0x398   :  { %1838 = vrot.lane.b32.xlu0 %v4767_v60, %s2429_s21  ;;  %v1756_v30 = vsel %vm1752_vm7, 1, %v2421_v8  ;;  %vm1753_vm5 = vmand %vm4790_vm6, %vm1749_vm9 }
 0x399   :  { %1840 = vrot.lane.b32.xlu1 %v4772_v29, %s2429_s21  ;;  %vm4809_vm0 = vmand %vm4757_vm10, %vm1868_vm3  ;;  %vm1869_vm8 = vcmp.eq.s32.totalorder %v1756_v30, 0  ;;  %v1757_v11 = vsel %vm1753_vm5, 1, %v2421_v8  ;;  %vm6117_vm10 = vcmp.ne.s32.totalorder %v4705_v7, 0  ;;  %v1662_v7 = vsel %vm4918_vm12, %v4616_v49, -inf }
 0x39a   :  { %vm4816_vm14 = vmand %vm4778_vm15, %vm1869_vm8  ;;  %vm1870_vm7 = vcmp.eq.s32.totalorder %v1757_v11, 0  ;;  %v1671_v52 = vsel %vm6117_vm10, 1, %v2421_v8  ;;  %v1880_v25 = vsel %vm4809_vm0, 1, %v2421_v8  ;;  %vm6122_vm15 = vcmp.lt.s32.totalorder %v2492_v12, 96 }
 0x39b   :  { %vm4824_vm9 = vmand %vm4790_vm6, %vm1870_vm7  ;;  %v1678_v24 = vrot.slane %v1671_v52, %v2506_v17  ;;  %v1887_v45 = vrot.slane %v1880_v25, %v2506_v17  ;;  %vm6131_vm7 = vcmp.ne.s32.totalorder %v4719_v22, 0  ;;  %v1881_v22 = vsel %vm4816_vm14, 1, %v2421_v8 }
 0x39c   :  { %1842 = vrot.lane.b32.xlu0 %v4743_v18, %s2429_s21  ;;  %vm1754_vm5 = vmand %vm4749_vm1, %vm1750_vm13  ;;  %v1656_v25 = vsel %vm4922_vm11, %v4538_v14, -inf  ;;  %vm6135_vm10 = vcmp.ne.s32.totalorder %v4701_v10, 0  ;;  %v1891_v36 = vrot.slane %v1881_v22, %v2506_v17 }
 0x39d   :  { %1852 = vrot.lane.b32.xlu1 %v1755_v41, %s2429_s21  ;;  %v1758_v61 = vsel %vm1754_vm5, 1, %v2421_v8  ;;  %vm4861_vm2 = vcmp.eq.s32.totalorder %v1678_v24, 1  ;;  %vm6123_vm6 = vmmov %vm6122_vm15  ;;  %vm4888_vm13 = vcmp.eq.s32.totalorder %v1887_v45, 1  ;;  %v1672_v41 = vsel %vm6126_vm4, 1, %v2421_v8 }
 0x39e   :  { %vm1871_vm8 = vcmp.eq.s32.totalorder %v1758_v61, 0  ;;  %vm4937_vm5 = vcmp.eq.s32.totalorder %v1646_v31, 1  ;;  %v1682_v24 = vrot.slane %v1672_v41, %v2506_v17  ;;  %v1660_v45 = vsel %vm4922_vm11, %v4575_v3, -inf }
 0x39f   :  { %vm4835_vm3 = vmand %vm4749_vm1, %vm1871_vm8  ;;  %vm4865_vm1 = vcmp.eq.s32.totalorder %v1638_v27, 1  ;;  %v1661_v3 = vsel %vm4937_vm5, %v4612_v6, -inf }
 0x3a0   :  { %1854 = vrot.lane.b32.xlu0 %v1756_v30, %s2429_s21  ;;  %v1655_v63 = vsel %vm4865_vm1, %v4455_v0, -inf  ;;  %v1659_v1 = vsel %vm4865_vm1, %v4467_v9, -inf  ;;  %v1663_v34 = vsel %vm4865_vm1, %v4503_v13, -inf  ;;  %v1667_v54 = vsel %vm4865_vm1, %v4531_v40, -inf  ;;  %vm6134_vm8 = vmmov %vm6123_vm6 }
 0x3a1   :  { %1856 = vrot.lane.b32.xlu1 %v1757_v11, %s2429_s21  ;;  %v1883_v10 = vsel %vm4835_vm3, 1, %v2421_v8  ;;  %vm6136_vm1 = vmmov %vm6123_vm6 }
 0x3a2   :  { %v1899_v41 = vrot.slane %v1883_v10, %v2506_v17  ;;  %vm6142_vm4 = vmmov %vm6136_vm1 }
 0x3a4   :  { %1858 = vrot.lane.b32.xlu0 %v1758_v61, %s2429_s21  ;;  %v1673_v61 = vsel %vm6131_vm7, 1, %v2421_v8  ;;  %vm5024_vm7 = vcmp.eq.s32.totalorder %v1891_v36, 1 }
 0x3a5   :  { %v1686_v14 = vrot.slane %v1673_v61, %v2506_v17 }
 0x3d6   :  { %v4841_v32 = vpop.permute.xlu1 %1510 }
 0x3da   :  { %v4849_v39 = vpop.permute.xlu0 %1512 }
 0x3e2   :  { %v4851_v46 = vpop.permute.xlu1 %1514 }
 0x3e6   :  { %v4858_v28 = vpop.permute.xlu0 %1516  ;;  %v1519_v56 = vpop.permute.xlu1 %1518 }
 0x3e7   :  { %v1551_v21 = vsel %vm6122_vm15, %v4841_v32, %v1519_v56  ;;  %vm4985_vm15 = vcmp.eq.s32.totalorder %v1682_v24, 1  ;;  %v1666_v24 = vsel %vm4918_vm12, %v4623_v62, -inf }
 0x3e8   :  { %v1695_v42 = vsel %vm4861_vm2, %v1551_v21, -inf  ;;  %v1657_v21 = vsel %vm4937_vm5, %v4586_v58, -inf  ;;  %v1882_v58 = vsel %vm4824_vm9, 1, %v2421_v8 }
 0x3e9   :  { %v4877_v48 = vmax.f32 %v1655_v63, %v1695_v42  ;;  %v1674_v63 = vsel %vm6135_vm10, 1, %v2421_v8  ;;  %vm6146_vm10 = vmmov %vm6136_vm1 }
 0x3ea   :  { %v1521_v20 = vpop.permute.xlu0 %1520  ;;  %v1690_v44 = vrot.slane %v1674_v63, %v2506_v17 }
 0x3eb   :  { %v1552_v33 = vsel %vm6123_vm6, %v4849_v39, %v1521_v20  ;;  %1759 = vrot.lane.b32.xlu1 %v4877_v48, %s2429_s21  ;;  %v1904_v19 = vsel %vm4888_vm13, %v4877_v48, -inf  ;;  %vm6139_vm6 = vmmov %vm6136_vm1 }
 0x3ec   :  { %v1699_v50 = vsel %vm4861_vm2, %v1552_v33, -inf }
 0x3ed   :  { %v4905_v5 = vmax.f32 %v1659_v1, %v1699_v50 }
 0x3ef   :  { %1761 = vrot.lane.b32.xlu0 %v4905_v5, %s2429_s21  ;;  %v1908_v9 = vsel %vm4888_vm13, %v4905_v5, -inf }
 0x3f3   :  { %v4932_v52 = vpop.permute.xlu1 %1522 }
 0x3f4   :  { %v1553_v13 = vsel %vm6134_vm8, %v4851_v46, %v4932_v52  ;;  %vm6145_vm8 = vmmov %vm6136_vm1 }
 0x3f5   :  { %v1703_v40 = vsel %vm4861_vm2, %v1553_v13, -inf }
 0x3f6   :  { %v4967_v42 = vmax.f32 %v1663_v34, %v1703_v40  ;;  %v4969_v35 = vpop.permute.xlu0 %1524 }
 0x3f7   :  { %v1554_v15 = vsel %vm6136_vm1, %v4858_v28, %v4969_v35  ;;  %v1527_v33 = vpop.permute.xlu1 %1526  ;;  %vm5040_vm1 = vcmp.eq.s32.totalorder %v1690_v44, 1 }
 0x3f8   :  { %v1707_v6 = vsel %vm4861_vm2, %v1554_v15, -inf  ;;  %v1547_v1 = vsel %vm6139_vm6, %v1519_v56, %v1527_v33  ;;  %1763 = vrot.lane.b32.xlu1 %v4967_v42, %s2429_s21  ;;  %v1912_v50 = vsel %vm4888_vm13, %v4967_v42, -inf  ;;  %v1895_v56 = vrot.slane %v1882_v58, %v2506_v17 }
 0x3f9   :  { %v4999_v37 = vmax.f32 %v1667_v54, %v1707_v6  ;;  %v1696_v31 = vsel %vm4985_vm15, %v1547_v1, -inf  ;;  %vm5013_vm2 = vcmp.eq.s32.totalorder %v1686_v14, 1  ;;  %vm6149_vm6 = vcmp.lt.s32.totalorder %v2516_v23, 480 }
 0x3fa   :  { %v5008_v61 = vmax.f32 %v1656_v25, %v1696_v31  ;;  %v1529_v34 = vpop.permute.xlu0 %1528  ;;  %v6143_v25 = vmov 0  ;;  %v6152_v1 = vmov 0  ;;  %v1668_v14 = vsel %vm4922_vm11, %v4673_v26, -inf }
 0x3fb   :  { %v1548_v22 = vsel %vm6142_vm4, %v1521_v20, %v1529_v34  ;;  %v1535_v13 = vpop.permute.xlu1 %1534  ;;  %1765 = vrot.lane.b32.xlu0 %v4999_v37, %s2429_s21  ;;  %v1916_v49 = vsel %vm4888_vm13, %v4999_v37, -inf  ;;  %v6144_v25 = vsel %vm5024_vm7, 4294967295, %v6143_v25  ;;  %vm5050_vm4 = vcmp.eq.s32.totalorder %v1899_v41, 1 }
 0x3fc   :  { %v1700_v62 = vsel %vm4985_vm15, %v1548_v22, -inf  ;;  %v1543_v40 = vsel %vm6145_vm8, %v1527_v33, %v1535_v13  ;;  %v1555_v20 = vsel %vm6146_vm10, %v1535_v13, %v4841_v32  ;;  %1767 = vrot.lane.b32.xlu1 %v5008_v61, %s2429_s21  ;;  %v1905_v63 = vsel %vm5024_vm7, %v5008_v61, -inf }
 0x3fd   :  { %v5044_v36 = vmax.f32 %v1660_v45, %v1700_v62  ;;  %v1574_v58 = vsel %vm6149_vm6, %v1555_v20, -inf  ;;  %v1697_v10 = vsel %vm5013_vm2, %v1543_v40, -inf  ;;  %v6150_v32 = vmov 0  ;;  %vm6154_vm6 = vmmov %vm6146_vm10 }
 0x3fe   :  { %v6151_v32 = vsel %vm5050_vm4, 4294967295, %v6150_v32  ;;  %v1698_v15 = vsel %vm5040_vm1, %v1574_v58, -inf  ;;  %v5056_v33 = vmax.f32 %v1657_v21, %v1697_v10  ;;  %v1537_v6 = vpop.permute.xlu0 %1536  ;;  %vm5058_vm8 = vcmp.eq.s32.totalorder %v1895_v56, 1 }
 0x3ff   :  { %v6153_v1 = vsel %vm5058_vm8, 4294967295, %v6152_v1  ;;  %v5062_v45 = vmax.f32 %v1658_v2, %v1698_v15  ;;  %v1544_v44 = vsel %vm6146_vm10, %v1529_v34, %v1537_v6  ;;  %v1556_v31 = vsel %vm6154_vm6, %v1537_v6, %v4849_v39  ;;  %v1539_v41 = vpop.permute.xlu1 %1538  ;;  %1769 = vrot.lane.b32.xlu0 %v5044_v36, %s2429_s21  ;;  %vm6156_vm10 = vmmov %vm6154_vm6 }
 0x400   :  { %v1909_v21 = vsel %vm5024_vm7, %v5044_v36, -inf  ;;  %vm6155_vm13 = vcmp.lt.s32.totalorder %v2516_v23, 480  ;;  %v1701_v2 = vsel %vm5013_vm2, %v1544_v44, -inf  ;;  %v1557_v34 = vsel %vm6156_vm10, %v1539_v41, %v4851_v46 }
 0x401   :  { %v1578_v56 = vsel %vm6155_vm13, %v1556_v31, -inf  ;;  %v1906_v39 = vsel %vm5058_vm8, %v5056_v33, -inf  ;;  %v5086_v13 = vmax.f32 %v1661_v3, %v1701_v2  ;;  %vm6157_vm6 = vmmov %vm6155_vm13  ;;  %v1907_v40 = vsel %vm5050_vm4, %v5062_v45, -inf }
 0x402   :  { %v1702_v22 = vsel %vm5040_vm1, %v1578_v56, -inf  ;;  %v1582_v62 = vsel %vm6157_vm6, %v1557_v34, -inf  ;;  %v1670_v58 = vsel %vm4918_vm12, %v4650_v47, -inf  ;;  %v1541_v10 = vpop.permute.xlu0 %1540  ;;  %v1664_v3 = vsel %vm4922_vm11, %v4652_v59, -inf  ;;  %vm6158_vm13 = vmmov %vm6156_vm10 }
 0x403   :  { %v5093_v20 = vmax.f32 %v1662_v7, %v1702_v22  ;;  %v1706_v46 = vsel %vm5040_vm1, %v1582_v62, -inf  ;;  %v1558_v6 = vsel %vm6158_vm13, %v1541_v10, %v4858_v28  ;;  %v1665_v7 = vsel %vm4937_vm5, %v4654_v38, -inf  ;;  %v1531_v44 = vpop.permute.xlu1 %1530  ;;  %vm6159_vm12 = vmmov %vm6157_vm6 }
 0x404   :  { %v5103_v15 = vmax.f32 %v1666_v24, %v1706_v46  ;;  %v1910_v47 = vsel %vm5058_vm8, %v5086_v13, -inf  ;;  %v1586_v30 = vsel %vm6159_vm12, %v1558_v6, -inf  ;;  %v1545_v59 = vsel %vm6156_vm10, %v1531_v44, %v1539_v41  ;;  %vm6160_vm6 = vmmov %vm6156_vm10 }
 0x405   :  { %v1549_v24 = vsel %vm6160_vm6, %v4932_v52, %v1531_v44  ;;  %v1911_v28 = vsel %vm5050_vm4, %v5093_v20, -inf  ;;  %v1710_v38 = vsel %vm5040_vm1, %v1586_v30, -inf  ;;  %v1705_v56 = vsel %vm5013_vm2, %v1545_v59, -inf  ;;  %vm6161_vm1 = vmmov %vm6160_vm6 }
 0x406   :  { %v1704_v31 = vsel %vm4985_vm15, %v1549_v24, -inf  ;;  %v1915_v41 = vsel %vm5050_vm4, %v5103_v15, -inf  ;;  %v5133_v2 = vmax.f32 %v1670_v58, %v1710_v38  ;;  %v5137_v34 = vmax.f32 %v1665_v7, %v1705_v56  ;;  %v1533_v22 = vpop.permute.xlu0 %1532  ;;  %vm6162_vm13 = vmmov %vm6161_vm1 }
 0x407   :  { %v5135_v52 = vmax.f32 %v1664_v3, %v1704_v31  ;;  %v1669_v62 = vsel %vm4937_vm5, %v4675_v43, -inf  ;;  %v1546_v46 = vsel %vm6161_vm1, %v1533_v22, %v1541_v10  ;;  %v1550_v58 = vsel %vm6162_vm13, %v4969_v35, %v1533_v22  ;;  %v1837_v3 = vpop.permute.xlu1 %1836 }
 0x408   :  { %v1708_v6 = vsel %vm4985_vm15, %v1550_v58, -inf  ;;  %v1709_v7 = vsel %vm5013_vm2, %v1546_v46, -inf  ;;  %vm5837_vm11 = vcmp.lt.s32.totalorder %v2492_v12, 64  ;;  %vm5834_vm5 = vcmp.lt.s32.totalorder %v2516_v23, 448 }
 0x409   :  { %1771 = vrot.lane.b32.xlu1 %v5135_v52, %s2429_s21  ;;  %v5162_v11 = vmax.f32 %v1668_v14, %v1708_v6  ;;  %v5164_v27 = vmax.f32 %v1669_v62, %v1709_v7  ;;  %vm6235_vm7 = vnez %v6153_v1 }
 0x40a   :  { %v1839_v55 = vpop.permute.xlu0 %1838 }
 0x40b   :  { %v1841_v54 = vpop.permute.xlu1 %1840  ;;  %1773 = vrot.lane.b32.xlu0 %v5162_v11, %s2429_s21  ;;  %v1846_v24 = vsel %vm5837_vm11, %v1837_v3, %v1839_v55 }
 0x40c   :  { %v1845_v38 = vsel %vm5837_vm11, %v1839_v55, %v1841_v54  ;;  %v2333_v56 = vadd.s32 4294967232, %v1846_v24 }
 0x40d   :  { %1775 = vrot.lane.b32.xlu1 %v5056_v33, %s2429_s21  ;;  %v2334_v46 = vadd.s32 4294967232, %v1845_v38 }
 0x40e   :  { %v1843_v30 = vpop.permute.xlu0 %1842 }
 0x40f   :  { %v1853_v59 = vpop.permute.xlu1 %1852  ;;  %1777 = vrot.lane.b32.xlu0 %v5086_v13, %s2429_s21  ;;  %v1847_v22 = vsel %vm5837_vm11, %v1843_v30, %v1837_v3  ;;  %v1844_v3 = vsel %vm5837_vm11, %v1841_v54, %v1843_v30 }
 0x410   :  { %v1851_v55 = vsel %vm5834_vm5, %v1847_v22, 0  ;;  %v2335_v57 = vadd.s32 4294967232, %v1844_v3 }
 0x411   :  { %1783 = vrot.lane.b32.xlu1 %v5062_v45, %s2429_s21 }
 0x412   :  { %v1855_v31 = vpop.permute.xlu0 %1854 }
 0x413   :  { %v5193_v14 = vsel %vm5837_vm11, %v1853_v59, %v1855_v31  ;;  %v1857_v62 = vpop.permute.xlu1 %1856  ;;  %1785 = vrot.lane.b32.xlu0 %v5093_v20, %s2429_s21 }
 0x414   :  { %vm5839_vm15 = vcmp.ne.s32.totalorder %v5193_v14, 0  ;;  %v5200_v58 = vsel %vm5837_vm11, %v1855_v31, %v1857_v62 }
 0x415   :  { %1787 = vrot.lane.b32.xlu1 %v5103_v15, %s2429_s21  ;;  %v1980_v6 = vsel %vm5839_vm15, %v2333_v56, 0  ;;  %vm5212_vm2 = vmor %vm4809_vm0, %vm5839_vm15  ;;  %vm5833_vm12 = vcmp.ne.s32.totalorder %v5200_v58, 0 }
 0x416   :  { %v1984_v54 = vsel %vm4809_vm0, %v4734_v16, %v1980_v6  ;;  %v1981_v30 = vsel %vm5833_vm12, %v2334_v46, 0  ;;  %vm5228_vm10 = vmor %vm4816_vm14, %vm5833_vm12  ;;  %v1859_v38 = vpop.permute.xlu0 %1858  ;;  %v2336_v6 = vadd.s32 4294967232, %v1851_v55 }
 0x417   :  { %v1992_v31 = vand.u32 128, %v1984_v54  ;;  %v1985_v56 = vsel %vm4816_vm14, %v4767_v60, %v1981_v30  ;;  %v5237_v16 = vsel %vm5837_vm11, %v1857_v62, %v1859_v38  ;;  %1789 = vrot.lane.b32.xlu0 %v5133_v2, %s2429_s21  ;;  %v1863_v46 = vsel %vm5837_vm11, %v1859_v38, %v1853_v59 }
 0x418   :  { %v1993_v22 = vand.u32 128, %v1985_v56  ;;  %v5247_v60 = vsel %vm5834_vm5, %v1863_v46, 0  ;;  %vm5835_vm14 = vcmp.ne.s32.totalorder %v5237_v16, 0  ;;  %v2337_v55 = vadd.s32 4294967168, %v1985_v56 }
 0x419   :  { %1779 = vrot.lane.b32.xlu1 %v5137_v34, %s2429_s21  ;;  %vm1996_vm0 = vcmp.ne.s32.totalorder %v1992_v31, 0  ;;  %vm5838_vm13 = vcmp.ne.s32.totalorder %v5247_v60, 0  ;;  %v1982_v4 = vsel %vm5835_vm14, %v2335_v57, 0 }
 0x41a   :  { %vm2000_vm6 = vmand %vm5212_vm2, %vm1996_vm0  ;;  %vm1997_vm1 = vcmp.ne.s32.totalorder %v1993_v22, 0  ;;  %v1983_v62 = vsel %vm5838_vm13, %v2336_v6, 0  ;;  %v1986_v30 = vsel %vm4824_vm9, %v4772_v29, %v1982_v4 }
 0x41b   :  { %v2004_v59 = vsel %vm2000_vm6, 1, %v2421_v8  ;;  %vm2001_vm12 = vmand %vm5228_vm10, %vm1997_vm1  ;;  %1781 = vrot.lane.b32.xlu0 %v5164_v27, %s2429_s21  ;;  %v1987_v29 = vsel %vm4835_vm3, %v4743_v18, %v1983_v62  ;;  %v1994_v18 = vand.u32 128, %v1986_v30  ;;  %v2338_v4 = vadd.s32 4294967168, %v1986_v30 }
 0x41c   :  { %vm2044_vm5 = vcmp.eq.s32.totalorder %v2004_v59, 0  ;;  %v5263_v3 = vsel %vm2001_vm12, 1, %v2421_v8  ;;  %vm5272_vm0 = vmor %vm4824_vm9, %vm5835_vm14  ;;  %v1995_v6 = vand.u32 128, %v1987_v29  ;;  %v6204_v62 = vmov 0 }
 0x41d   :  { %vm5278_vm6 = vmand %vm5212_vm2, %vm2044_vm5  ;;  %vm2045_vm12 = vcmp.eq.s32.totalorder %v5263_v3, 0  ;;  %vm5836_vm1 = vcmp.ne.s32.totalorder %v5263_v3, 0 }
 0x41e   :  { %vm5289_vm9 = vmand %vm5228_vm10, %vm2045_vm12  ;;  %v2156_v7 = vsel %vm5836_vm1, %v2337_v55, 0  ;;  %vm1998_vm10 = vcmp.ne.s32.totalorder %v1994_v18, 0  ;;  %vm1999_vm14 = vcmp.ne.s32.totalorder %v1995_v6, 0  ;;  %v2339_v55 = vadd.s32 4294967168, %v1987_v29 }
 0x41f   :  { %v2160_v57 = vsel %vm5278_vm6, %v1984_v54, %v2156_v7  ;;  %vm5301_vm5 = vmor %vm5278_vm6, %vm5836_vm1 }
 0x420   :  { %v2168_v24 = vand.u32 256, %v2160_v57  ;;  %vm5309_vm2 = vmor %vm4835_vm3, %vm5838_vm13 }
 0x421   :  { %vm2002_vm1 = vmand %vm5272_vm0, %vm1998_vm10 }
 0x422   :  { %vm2172_vm12 = vcmp.ne.s32.totalorder %v2168_v24, 0  ;;  %v5318_v54 = vsel %vm2002_vm1, 1, %v2421_v8  ;;  %vm2003_vm3 = vmand %vm5309_vm2, %vm1999_vm14 }
 0x423   :  { %vm2176_vm11 = vmand %vm5301_vm5, %vm2172_vm12  ;;  %vm2046_vm13 = vcmp.eq.s32.totalorder %v5318_v54, 0  ;;  %vm5842_vm15 = vcmp.ne.s32.totalorder %v5318_v54, 0  ;;  %v5326_v59 = vsel %vm2003_vm3, 1, %v2421_v8 }
 0x424   :  { %v2180_v53 = vsel %vm2176_vm11, 1, %v2421_v8  ;;  %vm5330_vm10 = vmand %vm5272_vm0, %vm2046_vm13  ;;  %v2157_v7 = vsel %vm5842_vm15, %v2338_v4, 0  ;;  %vm2047_vm14 = vcmp.eq.s32.totalorder %v5326_v59, 0  ;;  %vm5843_vm1 = vcmp.ne.s32.totalorder %v5326_v59, 0 }
 0x425   :  { %vm2200_vm4 = vcmp.eq.s32.totalorder %v2180_v53, 0  ;;  %v2161_v38 = vsel %vm5289_vm9, %v1985_v56, %v2157_v7  ;;  %vm5348_vm13 = vmand %vm5309_vm2, %vm2047_vm14  ;;  %v2158_v22 = vsel %vm5843_vm1, %v2339_v55, 0 }
 0x426   :  { %vm5338_vm11 = vmand %vm5301_vm5, %vm2200_vm4  ;;  %v2162_v24 = vsel %vm5330_vm10, %v1986_v30, %v2158_v22  ;;  %v2163_v6 = vsel %vm5348_vm13, %v1987_v29, 0  ;;  %v2169_v56 = vand.u32 256, %v2161_v38  ;;  %v2058_v30 = vsel %vm5330_vm10, 1, %v2421_v8 }
 0x427   :  { %vm2165_vm4 = vmor %vm5289_vm9, %vm5842_vm15  ;;  %v2170_v46 = vand.u32 256, %v2162_v24  ;;  %v2171_v4 = vand.u32 256, %v2163_v6  ;;  %v2059_v53 = vsel %vm5348_vm13, 1, %v2421_v8 }
 0x428   :  { %vm2166_vm0 = vmor %vm5330_vm10, %vm5843_vm1  ;;  %vm2173_vm5 = vcmp.ne.s32.totalorder %v2169_v56, 0  ;;  %v2056_v56 = vsel %vm5278_vm6, 1, %v2421_v8 }
 0x429   :  { %vm2174_vm2 = vcmp.ne.s32.totalorder %v2170_v46, 0  ;;  %vm2175_vm12 = vcmp.ne.s32.totalorder %v2171_v4, 0  ;;  %vm2177_vm3 = vmand %vm2165_vm4, %vm2173_vm5  ;;  %v2063_v4 = vrot.slane %v2056_v56, %v2506_v17 }
 0x42a   :  { %vm5366_vm14 = vmand %vm2166_vm0, %vm2174_vm2  ;;  %v2181_v29 = vsel %vm2177_vm3, 1, %v2421_v8  ;;  %vm6189_vm0 = vcmp.ne.s32.totalorder %v5193_v14, 0  ;;  %vm6198_vm3 = vcmp.ne.s32.totalorder %v5237_v16, 0 }
 0x42b   :  { %vm5373_vm15 = vmand %vm5348_vm13, %vm2175_vm12  ;;  %vm2201_vm1 = vcmp.eq.s32.totalorder %v2181_v29, 0  ;;  %v1920_v38 = vsel %vm6189_vm0, 1, %v2421_v8  ;;  %vm5412_vm6 = vcmp.eq.s32.totalorder %v2063_v4, 1  ;;  %vm6197_vm12 = vcmp.ne.s32.totalorder %v5200_v58, 0 }
 0x42c   :  { %vm5377_vm8 = vmand %vm2165_vm4, %vm2201_vm1  ;;  %v1927_v6 = vrot.slane %v1920_v38, %v2506_v17  ;;  %vm6192_vm4 = vcmp.lt.s32.totalorder %v2492_v12, 64  ;;  %v1921_v35 = vsel %vm6197_vm12, 1, %v2421_v8  ;;  %v1922_v4 = vsel %vm6198_vm3, 1, %v2421_v8 }
 0x42d   :  { %vm6196_vm2 = vmmov %vm6192_vm4  ;;  %vm6199_vm0 = vcmp.ne.s32.totalorder %v5247_v60, 0  ;;  %v2182_v16 = vsel %vm5366_vm14, 1, %v2421_v8  ;;  %vm6209_vm13 = vcmp.lt.s32.totalorder %v2492_v12, 64 }
 0x42e   :  { %vm5397_vm1 = vcmp.eq.s32.totalorder %v1927_v6, 1 }
 0x45d   :  { %v5381_v7 = vpop.permute.xlu1 %1759 }
 0x461   :  { %v5386_v22 = vpop.permute.xlu0 %1761 }
 0x46a   :  { %v5388_v24 = vpop.permute.xlu1 %1763 }
 0x46d   :  { %v5394_v46 = vpop.permute.xlu0 %1765 }
 0x46e   :  { %v1768_v29 = vpop.permute.xlu1 %1767 }
 0x46f   :  { %v1800_v14 = vsel %vm6192_vm4, %v5381_v7, %v1768_v29  ;;  %vm6200_vm4 = vcmp.ne.s32.totalorder %v5263_v3, 0  ;;  %v2206_v3 = vsel %vm5338_vm11, 1, %v2421_v8 }
 0x470   :  { %v1944_v38 = vsel %vm5397_vm1, %v1800_v14, -inf  ;;  %v2096_v51 = vsel %vm6200_vm4, 1, %v2421_v8  ;;  %v2211_v18 = vrot.slane %v2206_v3, %v2506_v17  ;;  %vm6214_vm4 = vmmov %vm6209_vm13 }
 0x471   :  { %v5410_v31 = vmax.f32 %v1904_v19, %v1944_v38  ;;  %v1770_v44 = vpop.permute.xlu0 %1769  ;;  %v2057_v19 = vsel %vm5289_vm9, 1, %v2421_v8  ;;  %v1923_v38 = vsel %vm6199_vm0, 1, %v2421_v8  ;;  %vm2204_vm9 = vcmp.ne.s32.totalorder %v2182_v16, 0  ;;  %vm6222_vm5 = vmmov %vm6214_vm4 }
 0x472   :  { %v1801_v6 = vsel %vm6196_vm2, %v5386_v22, %v1770_v44  ;;  %v1939_v60 = vrot.slane %v1923_v38, %v2506_v17  ;;  %v2103_v43 = vrot.slane %v2096_v51, %v2506_v17  ;;  %vm6208_vm2 = vcmp.ne.s32.totalorder %v5326_v59, 0 }
 0x473   :  { %v2080_v14 = vsel %vm5412_vm6, %v5410_v31, -inf  ;;  %v1948_v48 = vsel %vm5397_vm1, %v1801_v6, -inf  ;;  %v1931_v6 = vrot.slane %v1921_v35, %v2506_v17  ;;  %v2183_v35 = vsel %vm5373_vm15, 1, %v2421_v8 }
 0x474   :  { %v5437_v58 = vmax.f32 %v1908_v9, %v1948_v48  ;;  %v2067_v9 = vrot.slane %v2057_v19, %v2506_v17  ;;  %v1935_v48 = vrot.slane %v1922_v4, %v2506_v17  ;;  %v6201_v19 = vmov 0 }
 0x475   :  { %vm5465_vm14 = vcmp.eq.s32.totalorder %v1931_v6, 1  ;;  %vm6203_vm15 = vcmp.ne.s32.totalorder %v5318_v54, 0  ;;  %v2098_v6 = vsel %vm6208_vm2, 1, %v2421_v8  ;;  %vm2205_vm12 = vcmp.ne.s32.totalorder %v2183_v35, 0 }
 0x476   :  { %v2084_v5 = vsel %vm5412_vm6, %v5437_v58, -inf  ;;  %v6202_v19 = vsel %vm5465_vm14, 4294967295, %v6201_v19  ;;  %v2097_v57 = vsel %vm6203_vm15, 1, %v2421_v8  ;;  %vm5477_vm11 = vcmp.eq.s32.totalorder %v2067_v9, 1 }
 0x477   :  { %v6205_v62 = vsel %vm5477_vm11, 4294967295, %v6204_v62  ;;  %vm5481_vm10 = vcmp.eq.s32.totalorder %v1935_v48, 1  ;;  %v2071_v51 = vrot.slane %v2058_v30, %v2506_v17  ;;  %v2226_v16 = vsel %vm2204_vm9, 1, %v2421_v8 }
 0x478   :  { %vm5497_vm3 = vcmp.eq.s32.totalorder %v1939_v60, 1  ;;  %v2075_v59 = vrot.slane %v2059_v53, %v2506_v17  ;;  %vm5510_vm0 = vcmp.eq.s32.totalorder %v2103_v43, 1  ;;  %v6212_v30 = vmov 0 }
 0x479   :  { %v6213_v30 = vsel %vm5510_vm0, 4294967295, %v6212_v30  ;;  %v2207_v60 = vsel %vm5377_vm8, 1, %v2421_v8  ;;  %v2227_v53 = vsel %vm2205_vm12, 1, %v2421_v8  ;;  %v2231_v43 = vrot.slane %v2226_v16, %v2506_v17  ;;  %vm6215_vm8 = vmmov %vm6214_vm4 }
 0x47a   :  { %vm5532_vm9 = vcmp.eq.s32.totalorder %v2071_v51, 1  ;;  %vm5542_vm15 = vcmp.eq.s32.totalorder %v2211_v18, 1  ;;  %v2235_v51 = vrot.slane %v2227_v53, %v2506_v17 }
 0x47b   :  { %v5475_v4 = vpop.permute.xlu1 %1771 }
 0x47c   :  { %v1802_v54 = vsel %vm6209_vm13, %v5388_v24, %v5475_v4  ;;  %vm5571_vm13 = vcmp.eq.s32.totalorder %v2231_v43, 1 }
 0x47d   :  { %v1952_v9 = vsel %vm5397_vm1, %v1802_v54, -inf  ;;  %v5508_v3 = vpop.permute.xlu0 %1773  ;;  %v2107_v54 = vrot.slane %v2097_v57, %v2506_v17 }
 0x47e   :  { %v5506_v35 = vmax.f32 %v1912_v50, %v1952_v9  ;;  %v1803_v42 = vsel %vm6214_vm4, %v5394_v46, %v5508_v3  ;;  %v2111_v9 = vrot.slane %v2098_v6, %v2506_v17 }
 0x47f   :  { %v1776_v50 = vpop.permute.xlu1 %1775  ;;  %v1956_v55 = vsel %vm5397_vm1, %v1803_v42, -inf  ;;  %vm5548_vm1 = vcmp.eq.s32.totalorder %v2075_v59, 1  ;;  %vm5563_vm2 = vcmp.eq.s32.totalorder %v2107_v54, 1  ;;  %v6249_v42 = vsel %vm6235_vm7, %v5137_v34, -inf }
 0x480   :  { %v2088_v57 = vsel %vm5412_vm6, %v5506_v35, -inf  ;;  %v1796_v8 = vsel %vm6215_vm8, %v1768_v29, %v1776_v50  ;;  %v5540_v6 = vmax.f32 %v1916_v49, %v1956_v55  ;;  %v2215_v29 = vrot.slane %v2207_v60, %v2506_v17  ;;  %vm6229_vm8 = vmmov %vm6214_vm4 }
 0x481   :  { %v1945_v10 = vsel %vm5465_vm14, %v1796_v8, -inf  ;;  %v1778_v37 = vpop.permute.xlu0 %1777  ;;  %vm5567_vm12 = vcmp.eq.s32.totalorder %v2111_v9, 1  ;;  %v6253_v34 = vsel %vm6235_vm7, %v5164_v27, -inf }
 0x482   :  { %v1961_v0 = vmax.f32 %v1905_v63, %v1945_v10  ;;  %v2092_v49 = vsel %vm5412_vm6, %v5540_v6, -inf  ;;  %v1797_v18 = vsel %vm6222_vm5, %v1770_v44, %v1778_v37  ;;  %vm5596_vm5 = vcmp.eq.s32.totalorder %v2215_v29, 1 }
 0x483   :  { %v1784_v17 = vpop.permute.xlu1 %1783  ;;  %v1949_v44 = vsel %vm5465_vm14, %v1797_v18, -inf  ;;  %vm6234_vm14 = vcmp.lt.s32.totalorder %v2516_v23, 448 }
 0x484   :  { %v2081_v63 = vsel %vm5477_vm11, %v1961_v0, -inf  ;;  %v2120_v53 = vsel %vm5510_vm0, %v1961_v0, -inf  ;;  %v1792_v54 = vsel %vm6214_vm4, %v1776_v50, %v1784_v17  ;;  %v1965_v43 = vmax.f32 %v1909_v21, %v1949_v44 }
 0x485   :  { %v2136_v9 = vmax.f32 %v2080_v14, %v2120_v53  ;;  %v1804_v55 = vsel %vm6229_vm8, %v1784_v17, %v5381_v7  ;;  %v1946_v8 = vsel %vm5481_vm10, %v1792_v54, -inf  ;;  %vm5600_vm4 = vcmp.eq.s32.totalorder %v2235_v51, 1  ;;  %v1786_v21 = vpop.permute.xlu0 %1785 }
 0x486   :  { %v1823_v31 = vsel %vm6234_vm14, %v1804_v55, -inf  ;;  %v1962_v36 = vmax.f32 %v1906_v39, %v1946_v8  ;;  %v2085_v14 = vsel %vm5477_vm11, %v1965_v43, -inf  ;;  %v2124_v29 = vsel %vm5510_vm0, %v1965_v43, -inf  ;;  %vm6237_vm0 = vmmov %vm6229_vm8 }
 0x487   :  { %v2218_v7 = vsel %vm5542_vm15, %v2136_v9, -inf  ;;  %v1947_v51 = vsel %vm5497_vm3, %v1823_v31, -inf  ;;  %v1788_v0 = vpop.permute.xlu1 %1787  ;;  %v2140_v33 = vmax.f32 %v2084_v5, %v2124_v29  ;;  %vm6236_vm14 = vnez %v6151_v32  ;;  %vm6238_vm6 = vmmov %vm6237_vm0 }
 0x488   :  { %v1963_v39 = vmax.f32 %v1907_v40, %v1947_v51  ;;  %v2082_v18 = vsel %vm5532_vm9, %v1962_v36, -inf  ;;  %v2121_v17 = vsel %vm5563_vm2, %v1962_v36, -inf  ;;  %v1793_v44 = vsel %vm6229_vm8, %v1778_v37, %v1786_v21 }
 0x489   :  { %v2137_v53 = vmax.f32 %v2081_v63, %v2121_v17  ;;  %v1805_v58 = vsel %vm6237_vm0, %v1786_v21, %v5386_v22  ;;  %v1806_v5 = vsel %vm6238_vm6, %v1788_v0, %v5388_v24  ;;  %v2220_v45 = vsel %vm5542_vm15, %v2140_v33, -inf  ;;  %v1790_v54 = vpop.permute.xlu0 %1789 }
 0x48a   :  { %v2083_v40 = vsel %vm5548_vm1, %v1963_v39, -inf  ;;  %v2122_v63 = vsel %vm5567_vm12, %v1963_v39, -inf  ;;  %vm6239_vm11 = vcmp.lt.s32.totalorder %v2516_v23, 448  ;;  %v1950_v43 = vsel %vm5481_vm10, %v1793_v44, -inf }
 0x48b   :  { %v1827_v37 = vsel %vm6239_vm11, %v1805_v58, -inf  ;;  %v2138_v9 = vmax.f32 %v2082_v18, %v2122_v63  ;;  %v2219_v22 = vsel %vm5596_vm5, %v2137_v53, -inf  ;;  %v2239_v24 = vsel %vm5600_vm4, %v2083_v40, -inf  ;;  %vm6240_vm6 = vmmov %vm6239_vm11 }
 0x48c   :  { %v2247_v55 = vmax.f32 %v2219_v22, %v2239_v24  ;;  %v1951_v8 = vsel %vm5497_vm3, %v1827_v37, -inf  ;;  %v1966_v31 = vmax.f32 %v1910_v47, %v1950_v43  ;;  %v1831_v36 = vsel %vm6240_vm6, %v1806_v5, -inf  ;;  %vm6241_vm11 = vmmov %vm6237_vm0  ;;  %v1780_v5 = vpop.permute.xlu1 %1779 }
 0x48d   :  { %v2238_v21 = vsel %vm5571_vm13, %v2138_v9, -inf  ;;  %v1967_v29 = vmax.f32 %v1911_v28, %v1951_v8  ;;  %v1955_v51 = vsel %vm5497_vm3, %v1831_v36, -inf  ;;  %v1807_v33 = vsel %vm6241_vm11, %v1790_v54, %v5394_v46  ;;  %vm6242_vm0 = vmmov %vm6240_vm6  ;;  %v1782_v40 = vpop.permute.xlu0 %1781 }
 0x48e   :  { %v2246_v13 = vmax.f32 %v2218_v7, %v2238_v21  ;;  %v2263_v47 = vmax.f32 %v2247_v55, 0.0  ;;  %v2086_v39 = vsel %vm5532_vm9, %v1966_v31, -inf  ;;  %v2125_v18 = vsel %vm5563_vm2, %v1966_v31, -inf }
 0x48f   :  { %v2087_v17 = vsel %vm5548_vm1, %v1967_v29, -inf  ;;  %v2126_v20 = vsel %vm5567_vm12, %v1967_v29, -inf  ;;  %v2141_v28 = vmax.f32 %v2085_v14, %v2125_v18  ;;  %v1971_v46 = vmax.f32 %v1915_v41, %v1955_v51 }
 0x490   :  { %v2262_v7 = vmax.f32 %v2246_v13, 0.0  ;;  %2271 = vst [vmem:[#allocation5 + $0x8] sm:$0xff] %v2263_v47  ;;  %v2142_v53 = vmax.f32 %v2086_v39, %v2126_v20  ;;  %v2241_v44 = vsel %vm5600_vm4, %v2087_v17, -inf  ;;  %v1835_v58 = vsel %vm6242_vm0, %v1807_v33, -inf }
 0x491   :  { %v2221_v63 = vsel %vm5596_vm5, %v2141_v28, -inf  ;;  %v2091_v14 = vsel %vm5548_vm1, %v1971_v46, -inf  ;;  %v2130_v15 = vsel %vm5567_vm12, %v1971_v46, -inf  ;;  %v1959_v41 = vsel %vm5497_vm3, %v1835_v58, -inf  ;;  %vm6244_vm3 = vmmov %vm6229_vm8 }
 0x492   :  { %2270 = vst [vmem:[#allocation5] sm:$0xff] %v2262_v7  ;;  %v2240_v37 = vsel %vm5571_vm13, %v2142_v53, -inf  ;;  %v2249_v23 = vmax.f32 %v2221_v63, %v2241_v44  ;;  %v2243_v9 = vsel %vm5600_vm4, %v2091_v14, -inf  ;;  %v6243_v22 = vsel %vm6236_vm14, %v5133_v2, -inf  ;;  %vm6245_vm6 = vmmov %vm6244_vm3 }
 0x493   :  { %v1975_v24 = vmax.f32 %v6243_v22, %v1959_v41  ;;  %v2248_v43 = vmax.f32 %v2220_v45, %v2240_v37  ;;  %v1794_v55 = vsel %vm6229_vm8, %v1780_v5, %v1788_v0  ;;  %v1798_v48 = vsel %vm6244_vm3, %v5475_v4, %v1780_v5 }
 0x494   :  { %v1795_v8 = vsel %vm6245_vm6, %v1782_v40, %v1790_v54  ;;  %v2265_v31 = vmax.f32 %v2249_v23, 0.0  ;;  %vm6246_vm14 = vnez %v6202_v19  ;;  %v1954_v4 = vsel %vm5481_vm10, %v1794_v55, -inf }
 0x495   :  { %v2095_v36 = vsel %vm5548_vm1, %v1975_v24, -inf  ;;  %v2134_v32 = vsel %vm5567_vm12, %v1975_v24, -inf  ;;  %v1953_v2 = vsel %vm6246_vm14, %v1798_v48, -inf  ;;  %v2264_v45 = vmax.f32 %v2248_v43, 0.0  ;;  %vm6250_vm1 = vmmov %vm6244_vm3 }
 0x496   :  { %v2245_v0 = vsel %vm5600_vm4, %v2095_v36, -inf  ;;  %vm6247_vm11 = vnez %v6144_v25  ;;  %2273 = vst [vmem:[#allocation5 + $0x18] sm:$0xff] %v2265_v31  ;;  %v1970_v60 = vmax.f32 %v6249_v42, %v1954_v4  ;;  %v1799_v29 = vsel %vm6250_vm1, %v5508_v3, %v1782_v40 }
 0x497   :  { %v6248_v54 = vsel %vm6247_vm11, %v5135_v52, -inf  ;;  %v1958_v50 = vsel %vm5481_vm10, %v1795_v8, -inf  ;;  %2272 = vst [vmem:[#allocation5 + $0x10] sm:$0xff] %v2264_v45  ;;  %vm6251_vm12 = vnez %v6205_v62  ;;  %vm6252_vm4 = vnez %v6213_v30 }
 0x498   :  { %v1969_v21 = vmax.f32 %v6248_v54, %v1953_v2  ;;  %v1957_v33 = vsel %vm6246_vm14, %v1799_v29, -inf  ;;  %v1974_v13 = vmax.f32 %v6253_v34, %v1958_v50  ;;  %v2090_v12 = vsel %vm5532_vm9, %v1970_v60, -inf }
 0x499   :  { %v2129_v38 = vsel %vm5563_vm2, %v1970_v60, -inf  ;;  %v6255_v19 = vsel %vm6247_vm11, %v5162_v11, -inf  ;;  %v2146_v39 = vmax.f32 %v2090_v12, %v2130_v15 }
 0x49a   :  { %v2089_v51 = vsel %vm6251_vm12, %v1969_v21, -inf  ;;  %v2128_v52 = vsel %vm6252_vm4, %v1969_v21, -inf  ;;  %v1973_v47 = vmax.f32 %v6255_v19, %v1957_v33  ;;  %v2094_v27 = vsel %vm5532_vm9, %v1974_v13, -inf }
 0x49b   :  { %v2144_v3 = vmax.f32 %v2088_v57, %v2128_v52  ;;  %v2145_v1 = vmax.f32 %v2089_v51, %v2129_v38  ;;  %v2133_v18 = vsel %vm5563_vm2, %v1974_v13, -inf  ;;  %v2150_v57 = vmax.f32 %v2094_v27, %v2134_v32 }
 0x49c   :  { %v2093_v35 = vsel %vm6251_vm12, %v1973_v47, -inf  ;;  %v2132_v25 = vsel %vm6252_vm4, %v1973_v47, -inf  ;;  %v2242_v26 = vsel %vm5571_vm13, %v2146_v39, -inf }
 0x49d   :  { %v2222_v17 = vsel %vm5542_vm15, %v2144_v3, -inf  ;;  %v2223_v11 = vsel %vm5596_vm5, %v2145_v1, -inf  ;;  %v2148_v59 = vmax.f32 %v2092_v49, %v2132_v25  ;;  %v2149_v20 = vmax.f32 %v2093_v35, %v2133_v18 }
 0x49e   :  { %v2250_v28 = vmax.f32 %v2222_v17, %v2242_v26  ;;  %v2251_v46 = vmax.f32 %v2223_v11, %v2243_v9  ;;  %v2244_v62 = vsel %vm5571_vm13, %v2150_v57, -inf }
 0x49f   :  { %v2224_v30 = vsel %vm5542_vm15, %v2148_v59, -inf  ;;  %v2225_v7 = vsel %vm5596_vm5, %v2149_v20, -inf }
 0x4a0   :  { %v2266_v53 = vmax.f32 %v2250_v28, 0.0  ;;  %v2267_v44 = vmax.f32 %v2251_v46, 0.0  ;;  %v2252_v56 = vmax.f32 %v2224_v30, %v2244_v62  ;;  %v2253_v58 = vmax.f32 %v2225_v7, %v2245_v0 }
 0x4a2   :  { %2274 = vst [vmem:[#allocation5 + $0x20] sm:$0xff] %v2266_v53  ;;  %2275 = vst [vmem:[#allocation5 + $0x28] sm:$0xff] %v2267_v44  ;;  %v2268_v6 = vmax.f32 %v2252_v56, 0.0  ;;  %v2269_v16 = vmax.f32 %v2253_v58, 0.0 }
 0x4a4   :  { %2276 = vst [vmem:[#allocation5 + $0x30] sm:$0xff] %v2268_v6  ;;  %2277 = vst [vmem:[#allocation5 + $0x38] sm:$0xff] %v2269_v16 }
 0x4a5   :  { %2405 = shalt.err (!%p2402_p4)
}
 0x4a6   :  { %s2406_s0 = scalar_lea.hbm %s5786_s25, 1024  ;;  %s2408_s28 = scalar_lea.hbm %s5805_s6, 1024 }
 0x4a7   :  { %p2407_p5 = scmp.ne.s32.totalorder %s5786_s25, %s2406_s0  ;;  %p2409_p6 = scmp.lt.u32.totalorder %s5786_s25, %s5805_s6 }
 0x4a8   :  { %p2410_p7 = scmp.lt.u32.totalorder %s2408_s28, %s2406_s0  ;;  %p2412_p9 = scmp.lt.u32.totalorder %s2406_s0, %s5786_s25 }
 0x4aa   :  { %p2411_p8 = por %p2410_p7, %p2409_p6 }
 0x4ac   :  { %p2413_p10 = por %p2412_p9, %p2411_p8 }
 0x4ae   :  { %p2414_p11 = pnand %p2413_p10, %p2407_p5 }
 0x4b0   :  { %2417 = shalt.err (!%p2414_p11)
}
 0x4b1   :  { %s2431_s8 = smov 256   ;;  %s2432_s9 = smov 16  }
 0x4b2   :  { %2293 = dma.vmem_to_hbm [thread:$0]  %s2288_s5, 1024, %s5786_s25, [#allocation6], %s2431_s8, %s2431_s8, %s2432_s9  }
 0x4b3   :  { %2418 = dma.done.wait [#allocation6], 1024  }
 0x4b4   :  { %2419 = vsyncadd [#allocation6], 4294966272 }
 0x4b5   :  { %2297 = vsyncpa [#allocation6], 1 }

</bundles_post_ra>
